<compile_context>
chip_gen: v5e
topology: v5e:2x2
jax: 0.10.0
libtpu: 0.0.40
codegen_flags: <defaults>
</compile_context>

<pallas_src>
import jax
import jax.numpy as jnp
from jax.experimental import pallas as pl
from jax.experimental.pallas import tpu as pltpu

# ----- hyperparameters from the PyTorch module globals -----
dropout = 0.3            # identity at inference
n_embed = 256
n_pre_layers = 3
vocab_size = 129
KSIZE = 5
BN_EPS = 1e-5


# =====================  fused Pallas kernel  =====================

def _encoder_prenet_kernel(idx_ref, emb_ref, wa_ref, ba_ref, wb_ref, bb_ref,
                           s2_ref, sh2_ref, wp_ref, bp_ref, o_ref):
    Bt, T, _ = idx_ref.shape
    vpad, C = emb_ref.shape
    KC = wa_ref.shape[0]            # K * Cin (im2col-flattened weight rows)
    K = KC // C

    # --- Embedding lookup as a one-hot matmul, batch flattened into M ---
    ids = idx_ref[...]                                            # (Bt, T, 1) int32
    hot = (jax.lax.broadcasted_iota(jnp.int32, (Bt, T, vpad), 2) == ids)
    hot2 = hot.astype(jnp.float32).reshape(Bt * T, vpad)          # (Bt*T, vpad)
    x2 = jnp.dot(hot2, emb_ref[...],
                 preferred_element_type=jnp.float32)              # (Bt*T, C) f32
    h = x2.reshape(Bt, T, C)

    # --- Conv1d (VALID, K=5) as ONE im2col matmul per conv, M = Bt*lout ---
    def conv(h, w_ref, b_ref):
        lout = h.shape[1] - K + 1
        # (Bt, lout, K*C): column index = k*C + cin, matching w rows (K*Cin).
        patches = jnp.concatenate([h[:, k:k + lout, :] for k in range(K)],
                                  axis=-1)
        patches2 = patches.reshape(Bt * lout, KC).astype(jnp.bfloat16)
        out2 = jnp.dot(patches2, w_ref[...],
                       preferred_element_type=jnp.float32) + b_ref[...]
        return out2.reshape(Bt, lout, C)

    h = conv(h, wa_ref, ba_ref)          # Conv_A
    for _ in range(n_pre_layers - 1):    # Conv_B (shared instance) applied twice
        h = conv(h, wb_ref, bb_ref)

    # --- BatchNorm1d(eval) applied twice == one affine; ReLU; Dropout == id ---
    Tout = h.shape[1]
    h2 = h.reshape(Bt * Tout, C)
    h2 = jnp.maximum(h2 * s2_ref[...] + sh2_ref[...], 0.0)

    # --- proj: Linear(256, 256), f32 for accuracy margin ---
    y = jnp.dot(h2, wp_ref[...],
                preferred_element_type=jnp.float32) + bp_ref[...]
    o_ref[...] = y.reshape(Bt, Tout, C).astype(o_ref.dtype)


def encoder_prenet_pallas(prep, idx, block_b=16):
    B, T = idx.shape
    C = n_embed
    Tout = T - n_pre_layers * (KSIZE - 1)
    vpad = prep['emb'].shape[0]
    KC = prep['wa'].shape[0]

    # Largest divisor of B not exceeding block_b (VMEM is not the constraint;
    # pick from MXU fill / step count, per review).
    Bt = min(B, block_b)
    while B % Bt:
        Bt -= 1

    idx3 = idx.astype(jnp.int32).reshape(B, T, 1)

    vec = pl.BlockSpec((1, C), lambda b: (0, 0))
    return pl.pallas_call(
        _encoder_prenet_kernel,
        out_shape=jax.ShapeDtypeStruct((B, Tout, C), jnp.float32),
        grid=(B // Bt,),
        in_specs=[
            pl.BlockSpec((Bt, T, 1), lambda b: (b, 0, 0)),       # token ids
            pl.BlockSpec((vpad, C), lambda b: (0, 0)),           # embedding (f32)
            pl.BlockSpec((KC, C), lambda b: (0, 0)),             # Conv_A weight (K*C, C)
            vec,                                                 # Conv_A bias
            pl.BlockSpec((KC, C), lambda b: (0, 0)),             # Conv_B weight (K*C, C)
            vec,                                                 # Conv_B bias
            vec,                                                 # folded BN scale
            vec,                                                 # folded BN shift
            pl.BlockSpec((C, C), lambda b: (0, 0)),              # proj weight (f32)
            vec,                                                 # proj bias
        ],
        out_specs=pl.BlockSpec((Bt, Tout, C), lambda b: (b, 0, 0)),
        compiler_params=pltpu.CompilerParams(
            dimension_semantics=("parallel",)),                  # >=Bt seqs per TC
    )(idx3, prep['emb'], prep['wa'], prep['ba'], prep['wb'], prep['bb'],
      prep['bn_s2'], prep['bn_sh2'], prep['wp'], prep['bp'])


encoder_prenet_forward = jax.jit(encoder_prenet_pallas,
                                 static_argnames=("block_b",))


# =====================  parameters  =====================

class _KeyGen:
    def __init__(self, seed):
        self.key = jax.random.PRNGKey(seed)

    def __call__(self):
        self.key, sub = jax.random.split(self.key)
        return sub


def init_params(seed=0):
    kg = _KeyGen(seed)

    def w(shape, s=0.02):
        return s * jax.random.normal(kg(), shape, jnp.float32)

    emb = w((vocab_size, n_embed)).at[128].set(0.0)   # padding_idx=128 is zero
    return dict(
        embed=emb,
        # Conv weights stored channels-last as (K, Cin, Cout).
        # NOTE: real PyTorch Conv1d weights are (Cout, Cin, K) -> permute(2,1,0)
        # before use; nn.Linear weight is (out, in) -> transpose.
        conv_a_w=w((KSIZE, n_embed, n_embed)), conv_a_b=w((n_embed,)),
        conv_b_w=w((KSIZE, n_embed, n_embed)), conv_b_b=w((n_embed,)),
        bn_gamma=1.0 + w((n_embed,)), bn_beta=w((n_embed,)),
        bn_mean=w((n_embed,)),
        bn_var=1.0 + 0.1 * jnp.abs(jax.random.normal(kg(), (n_embed,), jnp.float32)),
        proj_w=w((n_embed, n_embed)), proj_b=w((n_embed,)),
    )


def prepare_params(p):
    """One-time trace-time prep.

    * Conv weights flattened (K, Cin, Cout) -> (K*Cin, Cout) for the in-kernel
      im2col matmul and cast to bf16 (dominant weight bytes / FLOPs).
    * Embedding table vocab-padded to a lane-aligned (256, C) table, kept f32;
      projection weight also kept f32 (tiny cost, larger accuracy margin).
    * The two eval-mode BatchNorm applications are folded into one affine.
    """
    C = n_embed
    s = p['bn_gamma'] * jax.lax.rsqrt(p['bn_var'] + BN_EPS)
    sh = p['bn_beta'] - p['bn_mean'] * s
    n_rep = n_pre_layers - 1                  # BN instance applied n_rep times
    s_tot = s ** n_rep                        # == s^2
    sh_tot = sh * sum(s ** i for i in range(n_rep))   # == (1 + s) * sh
    vpad = ((vocab_size + 127) // 128) * 128  # lane-dense, MXU-aligned table
    emb = jnp.zeros((vpad, C), jnp.float32).at[:vocab_size, :].set(p['embed'])
    return dict(
        emb=emb,                                                   # f32
        wa=p['conv_a_w'].reshape(KSIZE * C, C).astype(jnp.bfloat16),
        ba=p['conv_a_b'].reshape(1, C),
        wb=p['conv_b_w'].reshape(KSIZE * C, C).astype(jnp.bfloat16),
        bb=p['conv_b_b'].reshape(1, C),
        bn_s2=s_tot.reshape(1, C),
        bn_sh2=sh_tot.reshape(1, C),
        wp=p['proj_w'].astype(jnp.float32),                        # f32
        bp=p['proj_b'].reshape(1, C),
    )


# =====================  pure-JAX f32 reference  =====================

def encoder_prenet_ref(params, idx):
    x = jnp.take(params['embed'], idx, axis=0)                    # (B, T, C)

    def conv(h, w, b):                                            # VALID conv1d
        K = w.shape[0]
        L = h.shape[1] - K + 1
        out = sum(jnp.einsum('blc,cd->bld', h[:, k:k + L, :], w[k])
                  for k in range(K))
        return out + b

    h = conv(x, params['conv_a_w'], params['conv_a_b'])
    for _ in range(n_pre_layers - 1):
        h = conv(h, params['conv_b_w'], params['conv_b_b'])
    s = params['bn_gamma'] * jax.lax.rsqrt(params['bn_var'] + BN_EPS)
    sh = params['bn_beta'] - params['bn_mean'] * s
    for _ in range(n_pre_layers - 1):        # BatchNorm1d(eval) applied twice
        h = h * s + sh
    h = jnp.maximum(h, 0.0)                  # ReLU x2 == ReLU; Dropout == id
    return h @ params['proj_w'] + params['proj_b']


# =====================  main  =====================

if __name__ == "__main__":
    B, T = 2, 28                      # 28 -> 16 after three VALID K=5 convs
    params = init_params(0)
    prep = prepare_params(params)

    key = jax.random.PRNGKey(0)
    idx = jax.random.randint(key, (B, T), 0, vocab_size, dtype=jnp.int32)

    out = jax.block_until_ready(encoder_prenet_forward(prep, idx))

    Tout = T - n_pre_layers * (KSIZE - 1)
    assert out.shape == (B, Tout, n_embed), out.shape
    assert bool(jnp.all(jnp.isfinite(out)))

    ref = encoder_prenet_ref(params, idx)
    max_err = float(jnp.max(jnp.abs(out - ref)))
    assert max_err < 1e-2, max_err    # bf16 conv matmuls (f32 accum) vs f32 ref
    print("KERNEL_OK")
</pallas_src>

<mosaic_0001>
module attributes {stable_mosaic.version = 11 : i64} {
  func.func @_encoder_prenet_kernel(%arg0: i32, %arg1: memref<2x28x1xi32, #tpu.memory_space<vmem>>, %arg2: memref<256x256xf32, #tpu.memory_space<vmem>>, %arg3: memref<1280x256xbf16, #tpu.memory_space<vmem>>, %arg4: memref<1x256xf32, #tpu.memory_space<vmem>>, %arg5: memref<1280x256xbf16, #tpu.memory_space<vmem>>, %arg6: memref<1x256xf32, #tpu.memory_space<vmem>>, %arg7: memref<1x256xf32, #tpu.memory_space<vmem>>, %arg8: memref<1x256xf32, #tpu.memory_space<vmem>>, %arg9: memref<256x256xf32, #tpu.memory_space<vmem>>, %arg10: memref<1x256xf32, #tpu.memory_space<vmem>>, %arg11: memref<2x16x256xf32, #tpu.memory_space<vmem>>) attributes {dimension_semantics = [#tpu.dimension_semantics<parallel>], iteration_bounds = array<i64: 1>, scalar_prefetch = 0 : i64, scratch_operands = 0 : i64, tpu.core_type = #tpu.core_type<tc>, window_params = [{transform_indices = @transform_0, window_bounds = array<i64: 2, 28, 1>}, {pipeline_mode = #tpu.pipeline_mode<synchronous>, transform_indices = @transform_1, window_bounds = array<i64: 256, 256>}, {pipeline_mode = #tpu.pipeline_mode<synchronous>, transform_indices = @transform_2, window_bounds = array<i64: 1280, 256>}, {pipeline_mode = #tpu.pipeline_mode<synchronous>, transform_indices = @transform_3, window_bounds = array<i64: 1, 256>}, {pipeline_mode = #tpu.pipeline_mode<synchronous>, transform_indices = @transform_4, window_bounds = array<i64: 1280, 256>}, {pipeline_mode = #tpu.pipeline_mode<synchronous>, transform_indices = @transform_5, window_bounds = array<i64: 1, 256>}, {pipeline_mode = #tpu.pipeline_mode<synchronous>, transform_indices = @transform_6, window_bounds = array<i64: 1, 256>}, {pipeline_mode = #tpu.pipeline_mode<synchronous>, transform_indices = @transform_7, window_bounds = array<i64: 1, 256>}, {pipeline_mode = #tpu.pipeline_mode<synchronous>, transform_indices = @transform_8, window_bounds = array<i64: 256, 256>}, {pipeline_mode = #tpu.pipeline_mode<synchronous>, transform_indices = @transform_9, window_bounds = array<i64: 1, 256>}, {transform_indices = @transform_10, window_bounds = array<i64: 2, 16, 256>}]} {
    %c0 = arith.constant 0 : index
    %c0_0 = arith.constant 0 : index
    %c0_1 = arith.constant 0 : index
    %0 = vector.load %arg1[%c0, %c0_0, %c0_1] : memref<2x28x1xi32, #tpu.memory_space<vmem>>, vector<2x28x1xi32>
    %1 = tpu.iota {dimensions = array<i32: 2>} : vector<2x28x256xi32>
    %2 = vector.broadcast %0 : vector<2x28x1xi32> to vector<2x28x256xi32>
    %3 = arith.cmpi eq, %1, %2 : vector<2x28x256xi32>
    %4 = arith.extui %3 : vector<2x28x256xi1> to vector<2x28x256xi32>
    %5 = arith.sitofp %4 : vector<2x28x256xi32> to vector<2x28x256xf32>
    %6 = vector.shape_cast %5 : vector<2x28x256xf32> to vector<56x256xf32>
    %c0_2 = arith.constant 0 : index
    %c0_3 = arith.constant 0 : index
    %7 = vector.load %arg2[%c0_2, %c0_3] : memref<256x256xf32, #tpu.memory_space<vmem>>, vector<256x256xf32>
    %cst = arith.constant dense<0.000000e+00> : vector<56x256xf32>
    %8 = tpu.matmul %6, %7, %cst {dimension_numbers = #tpu.dot_dimension_numbers<[1], [0], [0], [1], [0, 0, 1, 1], [], []>} : vector<56x256xf32>, vector<256x256xf32>, vector<56x256xf32> -> vector<56x256xf32>
    %9 = vector.shape_cast %8 : vector<56x256xf32> to vector<2x28x256xf32>
    %10 = vector.extract_strided_slice %9 {offsets = [0, 0, 0], sizes = [2, 24, 256], strides = [1, 1, 1]} : vector<2x28x256xf32> to vector<2x24x256xf32>
    %11 = vector.extract_strided_slice %9 {offsets = [0, 1, 0], sizes = [2, 24, 256], strides = [1, 1, 1]} : vector<2x28x256xf32> to vector<2x24x256xf32>
    %12 = vector.extract_strided_slice %9 {offsets = [0, 2, 0], sizes = [2, 24, 256], strides = [1, 1, 1]} : vector<2x28x256xf32> to vector<2x24x256xf32>
    %13 = vector.extract_strided_slice %9 {offsets = [0, 3, 0], sizes = [2, 24, 256], strides = [1, 1, 1]} : vector<2x28x256xf32> to vector<2x24x256xf32>
    %14 = vector.extract_strided_slice %9 {offsets = [0, 4, 0], sizes = [2, 24, 256], strides = [1, 1, 1]} : vector<2x28x256xf32> to vector<2x24x256xf32>
    %15 = tpu.concatenate %10, %11, %12, %13, %14 in 2 : vector<2x24x256xf32>, vector<2x24x256xf32>, vector<2x24x256xf32>, vector<2x24x256xf32>, vector<2x24x256xf32> -> vector<2x24x1280xf32>
    %16 = vector.shape_cast %15 : vector<2x24x1280xf32> to vector<48x1280xf32>
    %17 = arith.truncf %16 : vector<48x1280xf32> to vector<48x1280xbf16>
    %c0_4 = arith.constant 0 : index
    %c0_5 = arith.constant 0 : index
    %18 = vector.load %arg3[%c0_4, %c0_5] : memref<1280x256xbf16, #tpu.memory_space<vmem>>, vector<1280x256xbf16>
    %cst_6 = arith.constant dense<0.000000e+00> : vector<48x256xf32>
    %19 = tpu.matmul %17, %18, %cst_6 {dimension_numbers = #tpu.dot_dimension_numbers<[1], [0], [0], [1], [0, 0, 1, 1], [], []>} : vector<48x1280xbf16>, vector<1280x256xbf16>, vector<48x256xf32> -> vector<48x256xf32>
    %c0_7 = arith.constant 0 : index
    %c0_8 = arith.constant 0 : index
    %20 = vector.load %arg4[%c0_7, %c0_8] : memref<1x256xf32, #tpu.memory_space<vmem>>, vector<1x256xf32>
    %21 = vector.broadcast %20 : vector<1x256xf32> to vector<48x256xf32>
    %22 = arith.addf %19, %21 : vector<48x256xf32>
    %23 = vector.shape_cast %22 : vector<48x256xf32> to vector<2x24x256xf32>
    %24 = vector.extract_strided_slice %23 {offsets = [0, 0, 0], sizes = [2, 20, 256], strides = [1, 1, 1]} : vector<2x24x256xf32> to vector<2x20x256xf32>
    %25 = vector.extract_strided_slice %23 {offsets = [0, 1, 0], sizes = [2, 20, 256], strides = [1, 1, 1]} : vector<2x24x256xf32> to vector<2x20x256xf32>
    %26 = vector.extract_strided_slice %23 {offsets = [0, 2, 0], sizes = [2, 20, 256], strides = [1, 1, 1]} : vector<2x24x256xf32> to vector<2x20x256xf32>
    %27 = vector.extract_strided_slice %23 {offsets = [0, 3, 0], sizes = [2, 20, 256], strides = [1, 1, 1]} : vector<2x24x256xf32> to vector<2x20x256xf32>
    %28 = vector.extract_strided_slice %23 {offsets = [0, 4, 0], sizes = [2, 20, 256], strides = [1, 1, 1]} : vector<2x24x256xf32> to vector<2x20x256xf32>
    %29 = tpu.concatenate %24, %25, %26, %27, %28 in 2 : vector<2x20x256xf32>, vector<2x20x256xf32>, vector<2x20x256xf32>, vector<2x20x256xf32>, vector<2x20x256xf32> -> vector<2x20x1280xf32>
    %30 = vector.shape_cast %29 : vector<2x20x1280xf32> to vector<40x1280xf32>
    %31 = arith.truncf %30 : vector<40x1280xf32> to vector<40x1280xbf16>
    %c0_9 = arith.constant 0 : index
    %c0_10 = arith.constant 0 : index
    %32 = vector.load %arg5[%c0_9, %c0_10] : memref<1280x256xbf16, #tpu.memory_space<vmem>>, vector<1280x256xbf16>
    %cst_11 = arith.constant dense<0.000000e+00> : vector<40x256xf32>
    %33 = tpu.matmul %31, %32, %cst_11 {dimension_numbers = #tpu.dot_dimension_numbers<[1], [0], [0], [1], [0, 0, 1, 1], [], []>} : vector<40x1280xbf16>, vector<1280x256xbf16>, vector<40x256xf32> -> vector<40x256xf32>
    %c0_12 = arith.constant 0 : index
    %c0_13 = arith.constant 0 : index
    %34 = vector.load %arg6[%c0_12, %c0_13] : memref<1x256xf32, #tpu.memory_space<vmem>>, vector<1x256xf32>
    %35 = vector.broadcast %34 : vector<1x256xf32> to vector<40x256xf32>
    %36 = arith.addf %33, %35 : vector<40x256xf32>
    %37 = vector.shape_cast %36 : vector<40x256xf32> to vector<2x20x256xf32>
    %38 = vector.extract_strided_slice %37 {offsets = [0, 0, 0], sizes = [2, 16, 256], strides = [1, 1, 1]} : vector<2x20x256xf32> to vector<2x16x256xf32>
    %39 = vector.extract_strided_slice %37 {offsets = [0, 1, 0], sizes = [2, 16, 256], strides = [1, 1, 1]} : vector<2x20x256xf32> to vector<2x16x256xf32>
    %40 = vector.extract_strided_slice %37 {offsets = [0, 2, 0], sizes = [2, 16, 256], strides = [1, 1, 1]} : vector<2x20x256xf32> to vector<2x16x256xf32>
    %41 = vector.extract_strided_slice %37 {offsets = [0, 3, 0], sizes = [2, 16, 256], strides = [1, 1, 1]} : vector<2x20x256xf32> to vector<2x16x256xf32>
    %42 = vector.extract_strided_slice %37 {offsets = [0, 4, 0], sizes = [2, 16, 256], strides = [1, 1, 1]} : vector<2x20x256xf32> to vector<2x16x256xf32>
    %43 = tpu.concatenate %38, %39, %40, %41, %42 in 2 : vector<2x16x256xf32>, vector<2x16x256xf32>, vector<2x16x256xf32>, vector<2x16x256xf32>, vector<2x16x256xf32> -> vector<2x16x1280xf32>
    %44 = vector.shape_cast %43 : vector<2x16x1280xf32> to vector<32x1280xf32>
    %45 = arith.truncf %44 : vector<32x1280xf32> to vector<32x1280xbf16>
    %c0_14 = arith.constant 0 : index
    %c0_15 = arith.constant 0 : index
    %46 = vector.load %arg5[%c0_14, %c0_15] : memref<1280x256xbf16, #tpu.memory_space<vmem>>, vector<1280x256xbf16>
    %cst_16 = arith.constant dense<0.000000e+00> : vector<32x256xf32>
    %47 = tpu.matmul %45, %46, %cst_16 {dimension_numbers = #tpu.dot_dimension_numbers<[1], [0], [0], [1], [0, 0, 1, 1], [], []>} : vector<32x1280xbf16>, vector<1280x256xbf16>, vector<32x256xf32> -> vector<32x256xf32>
    %c0_17 = arith.constant 0 : index
    %c0_18 = arith.constant 0 : index
    %48 = vector.load %arg6[%c0_17, %c0_18] : memref<1x256xf32, #tpu.memory_space<vmem>>, vector<1x256xf32>
    %49 = vector.broadcast %48 : vector<1x256xf32> to vector<32x256xf32>
    %50 = arith.addf %47, %49 : vector<32x256xf32>
    %51 = vector.shape_cast %50 : vector<32x256xf32> to vector<2x16x256xf32>
    %52 = vector.shape_cast %51 : vector<2x16x256xf32> to vector<32x256xf32>
    %c0_19 = arith.constant 0 : index
    %c0_20 = arith.constant 0 : index
    %53 = vector.load %arg7[%c0_19, %c0_20] : memref<1x256xf32, #tpu.memory_space<vmem>>, vector<1x256xf32>
    %54 = vector.broadcast %53 : vector<1x256xf32> to vector<32x256xf32>
    %55 = arith.mulf %52, %54 : vector<32x256xf32>
    %c0_21 = arith.constant 0 : index
    %c0_22 = arith.constant 0 : index
    %56 = vector.load %arg8[%c0_21, %c0_22] : memref<1x256xf32, #tpu.memory_space<vmem>>, vector<1x256xf32>
    %57 = vector.broadcast %56 : vector<1x256xf32> to vector<32x256xf32>
    %58 = arith.addf %55, %57 : vector<32x256xf32>
    %cst_23 = arith.constant 0.000000e+00 : f32
    %59 = vector.broadcast %cst_23 : f32 to vector<32x256xf32>
    %60 = arith.maximumf %58, %59 : vector<32x256xf32>
    %c0_24 = arith.constant 0 : index
    %c0_25 = arith.constant 0 : index
    %61 = vector.load %arg9[%c0_24, %c0_25] : memref<256x256xf32, #tpu.memory_space<vmem>>, vector<256x256xf32>
    %cst_26 = arith.constant dense<0.000000e+00> : vector<32x256xf32>
    %62 = tpu.matmul %60, %61, %cst_26 {dimension_numbers = #tpu.dot_dimension_numbers<[1], [0], [0], [1], [0, 0, 1, 1], [], []>} : vector<32x256xf32>, vector<256x256xf32>, vector<32x256xf32> -> vector<32x256xf32>
    %c0_27 = arith.constant 0 : index
    %c0_28 = arith.constant 0 : index
    %63 = vector.load %arg10[%c0_27, %c0_28] : memref<1x256xf32, #tpu.memory_space<vmem>>, vector<1x256xf32>
    %64 = vector.broadcast %63 : vector<1x256xf32> to vector<32x256xf32>
    %65 = arith.addf %62, %64 : vector<32x256xf32>
    %66 = vector.shape_cast %65 : vector<32x256xf32> to vector<2x16x256xf32>
    %c0_29 = arith.constant 0 : index
    %c0_30 = arith.constant 0 : index
    %c0_31 = arith.constant 0 : index
    %67 = vector.load %arg11[%c0_29, %c0_30, %c0_31] : memref<2x16x256xf32, #tpu.memory_space<vmem>>, vector<2x16x256xf32>
    tpu.vector_store %arg11[%c0_29, %c0_30, %c0_31], %66 {strides = array<i32>} : memref<2x16x256xf32, #tpu.memory_space<vmem>>, vector<2x16x256xf32>,
    return
  }
  func.func @transform_0(%arg0: i32) -> (i32, i32, i32) {
    %c0_i32 = arith.constant 0 : i32
    %c0_i32_0 = arith.constant 0 : i32
    %c0_i32_1 = arith.constant 0 : i32
    return %arg0, %c0_i32, %c0_i32_0 : i32, i32, i32
  }
  func.func @transform_1(%arg0: i32) -> (i32, i32) {
    %c0_i32 = arith.constant 0 : i32
    %c0_i32_0 = arith.constant 0 : i32
    %c0_i32_1 = arith.constant 0 : i32
    return %c0_i32, %c0_i32_0 : i32, i32
  }
  func.func @transform_2(%arg0: i32) -> (i32, i32) {
    %c0_i32 = arith.constant 0 : i32
    %c0_i32_0 = arith.constant 0 : i32
    %c0_i32_1 = arith.constant 0 : i32
    return %c0_i32, %c0_i32_0 : i32, i32
  }
  func.func @transform_3(%arg0: i32) -> (i32, i32) {
    %c0_i32 = arith.constant 0 : i32
    %c0_i32_0 = arith.constant 0 : i32
    %c0_i32_1 = arith.constant 0 : i32
    return %c0_i32, %c0_i32_0 : i32, i32
  }
  func.func @transform_4(%arg0: i32) -> (i32, i32) {
    %c0_i32 = arith.constant 0 : i32
    %c0_i32_0 = arith.constant 0 : i32
    %c0_i32_1 = arith.constant 0 : i32
    return %c0_i32, %c0_i32_0 : i32, i32
  }
  func.func @transform_5(%arg0: i32) -> (i32, i32) {
    %c0_i32 = arith.constant 0 : i32
    %c0_i32_0 = arith.constant 0 : i32
    %c0_i32_1 = arith.constant 0 : i32
    return %c0_i32, %c0_i32_0 : i32, i32
  }
  func.func @transform_6(%arg0: i32) -> (i32, i32) {
    %c0_i32 = arith.constant 0 : i32
    %c0_i32_0 = arith.constant 0 : i32
    %c0_i32_1 = arith.constant 0 : i32
    return %c0_i32, %c0_i32_0 : i32, i32
  }
  func.func @transform_7(%arg0: i32) -> (i32, i32) {
    %c0_i32 = arith.constant 0 : i32
    %c0_i32_0 = arith.constant 0 : i32
    %c0_i32_1 = arith.constant 0 : i32
    return %c0_i32, %c0_i32_0 : i32, i32
  }
  func.func @transform_8(%arg0: i32) -> (i32, i32) {
    %c0_i32 = arith.constant 0 : i32
    %c0_i32_0 = arith.constant 0 : i32
    %c0_i32_1 = arith.constant 0 : i32
    return %c0_i32, %c0_i32_0 : i32, i32
  }
  func.func @transform_9(%arg0: i32) -> (i32, i32) {
    %c0_i32 = arith.constant 0 : i32
    %c0_i32_0 = arith.constant 0 : i32
    %c0_i32_1 = arith.constant 0 : i32
    return %c0_i32, %c0_i32_0 : i32, i32
  }
  func.func @transform_10(%arg0: i32) -> (i32, i32, i32) {
    %c0_i32 = arith.constant 0 : i32
    %c0_i32_0 = arith.constant 0 : i32
    %c0_i32_1 = arith.constant 0 : i32
    return %arg0, %c0_i32, %c0_i32_0 : i32, i32, i32
  }
}

</mosaic_0001>

<bundles_post_ra>
// kernel: encoder_prenet_pallas.1
= control target key start
LH: loop header
LB: loop body
LE: loop exit
PB: predicated region body
PF: predicated region fallthrough
CT: control target
= control target key end

     0   :  { %15 = vsyncpa [#allocation3], 0  ;;  %s9235_s0 = inlined_call_operand.vmem [shape: s32[2,28,1], index: 0, kind: input, shape index: {}]   ;;  %s9236_s1 = inlined_call_operand.hbm [shape: f32[256,256], index: 1, kind: input, shape index: {}]   ;;  %s9237_s2 = inlined_call_operand.hbm [shape: bf16[1280,256], index: 2, kind: input, shape index: {}]   ;;  %s9238_s3 = inlined_call_operand.vmem [shape: f32[1,256], index: 3, kind: input, shape index: {}]   ;;  %s9239_s4 = inlined_call_operand.hbm [shape: bf16[1280,256], index: 4, kind: input, shape index: {}]   ;;  %s9240_s5 = inlined_call_operand.vmem [shape: f32[1,256], index: 5, kind: input, shape index: {}]   ;;  %s9241_s6 = inlined_call_operand.vmem [shape: f32[1,256], index: 6, kind: input, shape index: {}]   ;;  %s9242_s7 = inlined_call_operand.vmem [shape: f32[1,256], index: 7, kind: input, shape index: {}]   ;;  %s9243_s8 = inlined_call_operand.hbm [shape: f32[256,256], index: 8, kind: input, shape index: {}]   ;;  %s9244_s9 = inlined_call_operand.vmem [shape: f32[1,256], index: 9, kind: input, shape index: {}]   ;;  %s9245_s10 = inlined_call_operand.hbm [shape: f32[2,16,256], index: 10, kind: output, shape index: {}]  }
   0x1   :  { %16 = vsyncpa [#allocation6], 0 }
   0x2   :  { %17 = vsyncpa [#allocation9], 0  ;;  %s38_s15 = sshll.u32 %s9237_s2, 4  ;;  %s39_s15 = int_to_ptr.hbm [resolvable:$true] %s38_s15 }
   0x3   :  { %18 = vsyncpa [#allocation4], 0  ;;  %s6795_s16 = smov [#allocation5]   ;;  %s25_s20 = sshll.u32 %s9236_s1, 4  ;;  %s26_s20 = int_to_ptr.hbm [resolvable:$true] %s25_s20 }
   0x4   :  { %s40_s17 = sshll.u32 %s6795_s16, 4  ;;  %s6796_s21 = smov 128   ;;  %s41_s17 = int_to_ptr.vmem [resolvable:$true] %s40_s17 }
   0x5   :  { %s6797_s22 = smov 8   ;;  %s6798_s23 = smov [#allocation2]  }
   0x6   :  { %46 = dma.hbm_to_vmem [thread:$0]  %s39_s15, 20480, %s41_s17, [#allocation6], %s6796_s21, %s6796_s21, %s6797_s22  }
   0x7   :  { %s27_s24 = sshll.u32 %s6798_s23, 4  ;;  %s6799_s25 = smov 256   ;;  %s28_s24 = int_to_ptr.vmem [resolvable:$true] %s27_s24 }
   0x8   :  { %s6800_s26 = smov 16   ;;  %s53_s28 = sshll.u32 %s9239_s4, 4  ;;  %s54_s28 = int_to_ptr.hbm [resolvable:$true] %s53_s28 }
   0x9   :  { %33 = dma.hbm_to_vmem [thread:$0]  %s26_s20, 8192, %s28_s24, [#allocation3], %s6799_s25, %s6799_s25, %s6800_s26  }
   0xa   :  { %s6801_s29 = smov [#allocation7]   ;;  %s72_s12 = sshll.u32 %s9243_s8, 4  ;;  %s73_s12 = int_to_ptr.hbm [resolvable:$true] %s72_s12 }
   0xb   :  { %s55_s1 = sshll.u32 %s6801_s29, 4  ;;  %s6802_s13 = smov [#allocation8]   ;;  %s56_s1 = int_to_ptr.vmem [resolvable:$true] %s55_s1 }
   0xc   :  { %61 = dma.hbm_to_vmem [thread:$0]  %s54_s28, 20480, %s56_s1, [#allocation6], %s6796_s21, %s6796_s21, %s6797_s22  }
   0xd   :  { %s74_s14 = sshll.u32 %s6802_s13, 4  ;;  %s75_s14 = int_to_ptr.vmem [resolvable:$true] %s74_s14 }
   0xe   :  { %80 = dma.hbm_to_vmem [thread:$0]  %s73_s12, 8192, %s75_s14, [#allocation9], %s6799_s25, %s6799_s25, %s6800_s26  }
   0xf   :  { %6787 = dma.done.wait [#allocation3], 8192  }
  0x10   :  { %6788 = vsyncadd [#allocation3], 4294959104 }
  0x11   :  { %6789 = dma.done.wait [#allocation6], 40960  }
  0x12   :  { %6790 = vsyncadd [#allocation6], 4294926336 }
  0x13   :  { %6791 = dma.done.wait [#allocation9], 8192  }
  0x14   :  { %6792 = vsyncadd [#allocation9], 4294959104  ;;  %v6803_v0 = vmov 0   ;;  %v101_v1 = vld [vmem:[%s9235_s0 + $0x10] sm:$0xff]  ;;  %v99_v2 = vld [vmem:[%s9235_s0] sm:$0xff]  ;;  %v107_v52 = vlaneseq  ;;  %vm206_vm2 = vcmask 1043456  }
  0x15   :  { %6665 = vset.pattern.permute.xlu1 %v6803_v0  ;;  %6664 = vset.pattern.permute.xlu0 %v6803_v0  ;;  %v103_v3 = vld [vmem:[%s9235_s0 + $0x20] sm:$0xff]  ;;  %v257_v4 = vld [vmem:[#allocation2 + $0xf0] sm:$0xff]  ;;  %v255_v8 = vld [vmem:[#allocation2 + $0xe0] sm:$0xff]  ;;  %s5022_s15 = sshll.u32 %s9245_s10, 4  ;;  %s5023_s15 = int_to_ptr.hbm [resolvable:$true] %s5022_s15 }
  0x16   :  { %6666 = vset.pattern.permute.xlu2 %v6803_v0  ;;  %117 = vperm.xlu1 %6665, %v101_v1   ;;  %v289_v5 = vld [vmem:[#allocation2 + $0x1f0] sm:$0xff]  ;;  %v258_v6 = vld [vmem:[#allocation2 + $0xf8] sm:$0xff]  ;;  %v287_v9 = vld [vmem:[#allocation2 + $0x1e0] sm:$0xff]  ;;  %v6903_v58 = vand.u32 127, %v107_v52 }
  0x17   :  { %111 = vperm.xlu0 %6664, %v99_v2   ;;  %123 = vperm.xlu2 %6666, %v103_v3   ;;  %v290_v7 = vld [vmem:[#allocation2 + $0x1f8] sm:$0xff]  ;;  %v256_v10 = vld [vmem:[#allocation2 + $0xe8] sm:$0xff]  ;;  %v253_v12 = vld [vmem:[#allocation2 + $0xd0] sm:$0xff] }
  0x18   :  { %340 = vmatpush.msra.mxu0 %v257_v4  ;;  %378 = vmatpush.msra.mxu1 %v289_v5  ;;  %v288_v11 = vld [vmem:[#allocation2 + $0x1e8] sm:$0xff]  ;;  %v285_v13 = vld [vmem:[#allocation2 + $0x1d0] sm:$0xff]  ;;  %v100_v15 = vld [vmem:[%s9235_s0 + $0x8] sm:$0xff]  ;;  %v6906_v63 = vadd.s32 128, %v6903_v58 }
  0x19   :  { %416 = vmatpush.msra.mxu2 %v258_v6  ;;  %454 = vmatpush.msra.mxu3 %v290_v7  ;;  %v102_v14 = vld [vmem:[%s9235_s0 + $0x18] sm:$0xf]  ;;  %v254_v16 = vld [vmem:[#allocation2 + $0xd8] sm:$0xff]  ;;  %v251_v18 = vld [vmem:[#allocation2 + $0xc0] sm:$0xff] }
  0x1a   :  { %341 = vmatpush.msra.mxu0 %v255_v8  ;;  %379 = vmatpush.msra.mxu1 %v287_v9  ;;  %v286_v17 = vld [vmem:[#allocation2 + $0x1d8] sm:$0xff]  ;;  %v104_v19 = vld [vmem:[%s9235_s0 + $0x28] sm:$0xff]  ;;  %v252_v21 = vld [vmem:[#allocation2 + $0xc8] sm:$0xff]  ;;  %v6804_v8 = vmov 0.0  }
  0x1b   :  { %417 = vmatpush.msra.mxu2 %v256_v10  ;;  %455 = vmatpush.msra.mxu3 %v288_v11  ;;  %v283_v20 = vld [vmem:[#allocation2 + $0x1c0] sm:$0xff]  ;;  %v284_v22 = vld [vmem:[#allocation2 + $0x1c8] sm:$0xff]  ;;  %v249_v23 = vld [vmem:[#allocation2 + $0xb0] sm:$0xff] }
  0x1c   :  { %342 = vmatpush.msra.mxu0 %v253_v12  ;;  %380 = vmatpush.msra.mxu1 %v285_v13  ;;  %v281_v24 = vld [vmem:[#allocation2 + $0x1b0] sm:$0xff]  ;;  %v250_v25 = vld [vmem:[#allocation2 + $0xb8] sm:$0xff]  ;;  %v247_v27 = vld [vmem:[#allocation2 + $0xa0] sm:$0xff] }
  0x1d   :  { %418 = vmatpush.msra.mxu2 %v254_v16  ;;  %456 = vmatpush.msra.mxu3 %v286_v17  ;;  %v282_v26 = vld [vmem:[#allocation2 + $0x1b8] sm:$0xff]  ;;  %v279_v28 = vld [vmem:[#allocation2 + $0x1a0] sm:$0xff]  ;;  %v248_v29 = vld [vmem:[#allocation2 + $0xa8] sm:$0xff] }
  0x1e   :  { %120 = vperm.xlu1 %6665, %v102_v14   ;;  %343 = vmatpush.msra.mxu0 %v251_v18  ;;  %v280_v30 = vld [vmem:[#allocation2 + $0x1a8] sm:$0xff]  ;;  %v106_v31 = vld [vmem:[%s9235_s0 + $0x38] sm:$0xf]  ;;  %v246_v35 = vld [vmem:[#allocation2 + $0x98] sm:$0xff] }
  0x1f   :  { %114 = vperm.xlu0 %6664, %v100_v15   ;;  %126 = vperm.xlu2 %6666, %v104_v19   ;;  %v105_v32 = vld [vmem:[%s9235_s0 + $0x30] sm:$0xff]  ;;  %v245_v33 = vld [vmem:[#allocation2 + $0x90] sm:$0xff]  ;;  %v278_v36 = vld [vmem:[#allocation2 + $0x198] sm:$0xff] }
  0x20   :  { %381 = vmatpush.msra.mxu1 %v283_v20  ;;  %419 = vmatpush.msra.mxu2 %v252_v21  ;;  %v277_v34 = vld [vmem:[#allocation2 + $0x190] sm:$0xff]  ;;  %v243_v37 = vld [vmem:[#allocation2 + $0x80] sm:$0xff]  ;;  %v244_v39 = vld [vmem:[#allocation2 + $0x88] sm:$0xff] }
  0x21   :  { %457 = vmatpush.msra.mxu3 %v284_v22  ;;  %344 = vmatpush.msra.mxu0 %v249_v23  ;;  %v275_v38 = vld [vmem:[#allocation2 + $0x180] sm:$0xff]  ;;  %v276_v40 = vld [vmem:[#allocation2 + $0x188] sm:$0xff]  ;;  %v241_v41 = vld [vmem:[#allocation2 + $0x70] sm:$0xff] }
  0x22   :  { %382 = vmatpush.msra.mxu1 %v281_v24  ;;  %420 = vmatpush.msra.mxu2 %v250_v25  ;;  %v273_v42 = vld [vmem:[#allocation2 + $0x170] sm:$0xff]  ;;  %v242_v43 = vld [vmem:[#allocation2 + $0x78] sm:$0xff]  ;;  %v239_v45 = vld [vmem:[#allocation2 + $0x60] sm:$0xff] }
  0x23   :  { %458 = vmatpush.msra.mxu3 %v282_v26  ;;  %345 = vmatpush.msra.mxu0 %v247_v27  ;;  %v274_v44 = vld [vmem:[#allocation2 + $0x178] sm:$0xff]  ;;  %v271_v46 = vld [vmem:[#allocation2 + $0x160] sm:$0xff]  ;;  %v240_v47 = vld [vmem:[#allocation2 + $0x68] sm:$0xff] }
  0x24   :  { %383 = vmatpush.msra.mxu1 %v279_v28  ;;  %421 = vmatpush.msra.mxu2 %v248_v29  ;;  %v272_v48 = vld [vmem:[#allocation2 + $0x168] sm:$0xff]  ;;  %v237_v49 = vld [vmem:[#allocation2 + $0x50] sm:$0xff]  ;;  %v238_v51 = vld [vmem:[#allocation2 + $0x58] sm:$0xff] }
  0x25   :  { %459 = vmatpush.msra.mxu3 %v280_v30  ;;  %346 = vmatpush.msra.mxu0 %v245_v33  ;;  %v269_v50 = vld [vmem:[#allocation2 + $0x150] sm:$0xff]  ;;  %v270_v53 = vld [vmem:[#allocation2 + $0x158] sm:$0xff]  ;;  %v235_v54 = vld [vmem:[#allocation2 + $0x40] sm:$0xff] }
  0x26   :  { %132 = vperm.xlu1 %6665, %v106_v31   ;;  %384 = vmatpush.msra.mxu1 %v277_v34  ;;  %v267_v55 = vld [vmem:[#allocation2 + $0x140] sm:$0xff]  ;;  %v236_v56 = vld [vmem:[#allocation2 + $0x48] sm:$0xff]  ;;  %v233_v59 = vld [vmem:[#allocation2 + $0x30] sm:$0xff] }
  0x27   :  { %129 = vperm.xlu0 %6664, %v105_v32   ;;  %422 = vmatpush.msra.mxu2 %v246_v35  ;;  %v268_v57 = vld [vmem:[#allocation2 + $0x148] sm:$0xff]  ;;  %v265_v60 = vld [vmem:[#allocation2 + $0x130] sm:$0xff]  ;;  %v234_v61 = vld [vmem:[#allocation2 + $0x38] sm:$0xff] }
  0x28   :  { %460 = vmatpush.msra.mxu3 %v278_v36  ;;  %347 = vmatpush.msra.mxu0 %v243_v37  ;;  %v266_v62 = vld [vmem:[#allocation2 + $0x138] sm:$0xff]  ;;  %v231_v0 = vld [vmem:[#allocation2 + $0x20] sm:$0xff]  ;;  %v232_v2 = vld [vmem:[#allocation2 + $0x28] sm:$0xff] }
  0x29   :  { %385 = vmatpush.msra.mxu1 %v275_v38  ;;  %423 = vmatpush.msra.mxu2 %v244_v39  ;;  %v263_v1 = vld [vmem:[#allocation2 + $0x120] sm:$0xff]  ;;  %v264_v4 = vld [vmem:[#allocation2 + $0x128] sm:$0xff]  ;;  %v229_v5 = vld [vmem:[#allocation2 + $0x10] sm:$0xff] }
  0x2a   :  { %461 = vmatpush.msra.mxu3 %v276_v40  ;;  %348 = vmatpush.msra.mxu0 %v241_v41  ;;  %v261_v6 = vld [vmem:[#allocation2 + $0x110] sm:$0xff]  ;;  %v230_v7 = vld [vmem:[#allocation2 + $0x18] sm:$0xff]  ;;  %v227_v13 = vld [vmem:[#allocation2] sm:$0xff] }
  0x2b   :  { %386 = vmatpush.msra.mxu1 %v273_v42  ;;  %424 = vmatpush.msra.mxu2 %v242_v43  ;;  %v262_v11 = vld [vmem:[#allocation2 + $0x118] sm:$0xff]  ;;  %v259_v14 = vld [vmem:[#allocation2 + $0x100] sm:$0xff]  ;;  %v228_v15 = vld [vmem:[#allocation2 + $0x8] sm:$0xff] }
  0x2c   :  { %462 = vmatpush.msra.mxu3 %v274_v44  ;;  %349 = vmatpush.msra.mxu0 %v239_v45  ;;  %v260_v16 = vld [vmem:[#allocation2 + $0x108] sm:$0xff] }
  0x2d   :  { %387 = vmatpush.msra.mxu1 %v271_v46  ;;  %425 = vmatpush.msra.mxu2 %v240_v47 }
  0x2e   :  { %463 = vmatpush.msra.mxu3 %v272_v48  ;;  %350 = vmatpush.msra.mxu0 %v237_v49 }
  0x2f   :  { %388 = vmatpush.msra.mxu1 %v269_v50  ;;  %426 = vmatpush.msra.mxu2 %v238_v51 }
  0x30   :  { %464 = vmatpush.msra.mxu3 %v270_v53  ;;  %351 = vmatpush.msra.mxu0 %v235_v54 }
  0x31   :  { %389 = vmatpush.msra.mxu1 %v267_v55  ;;  %427 = vmatpush.msra.mxu2 %v236_v56 }
  0x32   :  { %465 = vmatpush.msra.mxu3 %v268_v57  ;;  %352 = vmatpush.msra.mxu0 %v233_v59 }
  0x33   :  { %390 = vmatpush.msra.mxu1 %v265_v60  ;;  %428 = vmatpush.msra.mxu2 %v234_v61 }
  0x34   :  { %466 = vmatpush.msra.mxu3 %v266_v62  ;;  %353 = vmatpush.msra.mxu0 %v231_v0 }
  0x35   :  { %391 = vmatpush.msra.mxu1 %v263_v1  ;;  %429 = vmatpush.msra.mxu2 %v232_v2 }
  0x36   :  { %467 = vmatpush.msra.mxu3 %v264_v4  ;;  %354 = vmatpush.msra.mxu0 %v229_v5 }
  0x37   :  { %392 = vmatpush.msra.mxu1 %v261_v6  ;;  %430 = vmatpush.msra.mxu2 %v230_v7 }
  0x38   :  { %468 = vmatpush.msra.mxu3 %v262_v11  ;;  %355 = vmatpush.msra.mxu0 %v227_v13 }
  0x39   :  { %393 = vmatpush.msra.mxu1 %v259_v14  ;;  %431 = vmatpush.msra.mxu2 %v228_v15  ;;  %v5111_v15 = vld [vmem:[#allocation5 + $0x70] sm:$0xf] }
  0x3a   :  { %469 = vmatpush.msra.mxu3 %v260_v16  ;;  %v6348_v16 = vld [vmem:[#allocation5 + $0x74] sm:$0xf0] }
  0x71   :  { %v124_v3 = vpop.permute.xlu2 %123 }
  0x72   :  { %vm142_vm0 = vcmp.eq.s32.totalorder %v6903_v58, %v124_v3  ;;  %vm143_vm1 = vcmp.eq.s32.totalorder %v6906_v63, %v124_v3 }
  0x73   :  { %v5045_v9 = vsel %vm142_vm0, 1.0, %v6804_v8  ;;  %v5046_v10 = vsel %vm143_vm1, 1.0, %v6804_v8  ;;  %vm613_vm1 = vcmask 1046528  }
  0x74   :  { %v202_v12 = vrot.slane %v5046_v10, 4 }
  0x76   :  { %v217_v17 = vsel %vm206_vm2, %v5045_v9, %v202_v12  ;;  %v218_v35 = vsel %vm206_vm2, %v202_v12, %v5045_v9 }
  0x77   :  { %305 = vst [vmem:[#allocation1 + $0x31] ss:$2 sm:$0xff] %v217_v17  ;;  %v219_v43 = vrot.slane %v218_v35, 4  ;;  %v5175_v17 = vld [vmem:[#allocation5 + $0xf0] sm:$0xf] }
  0x78   :  { %v5151_v35 = vld [vmem:[#allocation5 + $0xc0] sm:$0xf] }
  0x79   :  { %v127_v30 = vpop.permute.xlu2 %126 }
  0x7a   :  { %vm145_vm7 = vcmp.eq.s32.totalorder %v6906_v63, %v127_v30  ;;  %vm144_vm12 = vcmp.eq.s32.totalorder %v6903_v58, %v127_v30 }
  0x7b   :  { %v5048_v42 = vsel %vm145_vm7, 1.0, %v6804_v8  ;;  %v5047_v48 = vsel %vm144_vm12, 1.0, %v6804_v8 }
  0x7c   :  { %v203_v49 = vrot.slane %v5048_v42, 4 }
  0x7e   :  { %v220_v55 = vsel %vm206_vm2, %v5047_v48, %v203_v49  ;;  %v221_v61 = vsel %vm206_vm2, %v203_v49, %v5047_v48  ;;  %v6354_v49 = vld [vmem:[#allocation5 + $0xa4] sm:$0xf0] }
  0x88   :  { %v118_v18 = vpop.permute.xlu1 %117 }
  0x89   :  { %v112_v19 = vpop.permute.xlu0 %111  ;;  %vm138_vm3 = vcmp.eq.s32.totalorder %v6903_v58, %v118_v18  ;;  %vm139_vm4 = vcmp.eq.s32.totalorder %v6906_v63, %v118_v18  ;;  %v5112_v18 = vor.u32 %v6348_v16, %v5111_v15  ;;  %v5303_v15 = vld [vmem:[#allocation5 + $0x1f0] sm:$0xf] }
  0x8a   :  { %vm134_vm5 = vcmp.eq.s32.totalorder %v6903_v58, %v112_v19  ;;  %vm135_vm6 = vcmp.eq.s32.totalorder %v6906_v63, %v112_v19  ;;  %v5041_v20 = vsel %vm138_vm3, 1.0, %v6804_v8  ;;  %v5042_v21 = vsel %vm139_vm4, 1.0, %v6804_v8  ;;  %v6364_v19 = vld [vmem:[#allocation5 + $0xf4] sm:$0xf0] }
  0x8b   :  { %v5038_v22 = vsel %vm135_vm6, 1.0, %v6804_v8  ;;  %v200_v23 = vrot.slane %v5042_v21, 4  ;;  %v5037_v25 = vsel %vm134_vm5, 1.0, %v6804_v8  ;;  %v6346_v21 = vld [vmem:[#allocation5 + $0x64] sm:$0xf0]  ;;  %1847 = vmatpush.bf16.msrb.mxu0 %v5112_v18  ;;  %vm690_vm3 = vcmask 1045504  }
  0x8c   :  { %v198_v24 = vrot.slane %v5038_v22, 4  ;;  %v5176_v22 = vor.u32 %v6364_v19, %v5175_v17  ;;  %vm767_vm4 = vcmask 1044480  }
  0x8d   :  { %v213_v26 = vsel %vm206_vm2, %v5041_v20, %v200_v23  ;;  %v214_v27 = vsel %vm206_vm2, %v200_v23, %v5041_v20  ;;  %v5103_v20 = vld [vmem:[#allocation5 + $0x60] sm:$0xf] }
  0x8e   :  { %v207_v28 = vsel %vm206_vm2, %v5037_v25, %v198_v24  ;;  %v208_v29 = vsel %vm206_vm2, %v198_v24, %v5037_v25  ;;  %v215_v31 = vrot.slane %v214_v27, 4  ;;  %299 = vst [vmem:[#allocation1 + $0x20] ss:$2 sm:$0xff] %v213_v26  ;;  %v5167_v23 = vld [vmem:[#allocation5 + $0xe0] sm:$0xf]  ;;  %v5104_v25 = vor.u32 %v6346_v21, %v5103_v20  ;;  %1871 = vmatpush.bf16.msrb.mxu1 %v5176_v22 }
  0x8f   :  { %v209_v32 = vrot.slane %v208_v29, 4  ;;  %291 = vst [vmem:[#allocation1] ss:$2 sm:$0xff] %v207_v28  ;;  %v6362_v24 = vld [vmem:[#allocation5 + $0xe4] sm:$0xf0] }
  0x90   :  { %301 = vst [vmem:[#allocation1 + $0x21] ss:$2 sm:$0xff] %v215_v31  ;;  %v121_v33 = vpop.permute.xlu1 %120  ;;  %v5168_v26 = vor.u32 %v6362_v24, %v5167_v23  ;;  %1848 = vmatpush.bf16.msrb.mxu0 %v5104_v25  ;;  %v5095_v27 = vld [vmem:[#allocation5 + $0x50] sm:$0xf]  ;;  %v6344_v28 = vld [vmem:[#allocation5 + $0x54] sm:$0xf0] }
  0x91   :  { %v115_v34 = vpop.permute.xlu0 %114  ;;  %293 = vst [vmem:[#allocation1 + $0x1] ss:$2 sm:$0xff] %v209_v32  ;;  %vm140_vm8 = vcmp.eq.s32.totalorder %v6903_v58, %v121_v33  ;;  %vm141_vm9 = vcmp.eq.s32.totalorder %v6906_v63, %v121_v33  ;;  %v5159_v29 = vld [vmem:[#allocation5 + $0xd0] sm:$0xf]  ;;  %v5096_v30 = vor.u32 %v6344_v28, %v5095_v27  ;;  %v6360_v31 = vld [vmem:[#allocation5 + $0xd4] sm:$0xf0] }
  0x92   :  { %vm136_vm10 = vcmp.eq.s32.totalorder %v6903_v58, %v115_v34  ;;  %vm137_vm11 = vcmp.eq.s32.totalorder %v6906_v63, %v115_v34  ;;  %v5043_v36 = vsel %vm140_vm8, 1.0, %v6804_v8  ;;  %v5044_v37 = vsel %vm141_vm9, 1.0, %v6804_v8  ;;  %1872 = vmatpush.bf16.msrb.mxu1 %v5168_v26  ;;  %v5087_v33 = vld [vmem:[#allocation5 + $0x40] sm:$0xf]  ;;  %v6342_v34 = vld [vmem:[#allocation5 + $0x44] sm:$0xf0] }
  0x93   :  { %v5040_v38 = vsel %vm137_vm11, 1.0, %v6804_v8  ;;  %v201_v39 = vrot.slane %v5044_v37, 4  ;;  %v5039_v41 = vsel %vm136_vm10, 1.0, %v6804_v8  ;;  %v5160_v32 = vor.u32 %v6360_v31, %v5159_v29  ;;  %v6358_v37 = vld [vmem:[#allocation5 + $0xc4] sm:$0xf0] }
  0x94   :  { %v199_v40 = vrot.slane %v5040_v38, 4  ;;  %1849 = vmatpush.bf16.msrb.mxu0 %v5096_v30  ;;  %v5152_v38 = vor.u32 %v6358_v37, %v5151_v35  ;;  %v6396_v20 = vld [vmem:[#allocation5 + $0x1f4] sm:$0xf0]  ;;  %v5231_v21 = vld [vmem:[#allocation5 + $0x160] sm:$0xf] }
  0x95   :  { %v216_v44 = vsel %vm206_vm2, %v5043_v36, %v201_v39  ;;  %v5088_v36 = vor.u32 %v6342_v34, %v5087_v33  ;;  %v5079_v39 = vld [vmem:[#allocation5 + $0x30] sm:$0xf]  ;;  %v6378_v22 = vld [vmem:[#allocation5 + $0x164] sm:$0xf0]  ;;  %v5304_v23 = vor.u32 %v6396_v20, %v5303_v15  ;;  %v5295_v24 = vld [vmem:[#allocation5 + $0x1e0] sm:$0xf] }
  0x96   :  { %v211_v45 = vsel %vm206_vm2, %v199_v40, %v5039_v41  ;;  %303 = vst [vmem:[#allocation1 + $0x30] ss:$2 sm:$0xff] %v216_v44  ;;  %v210_v46 = vsel %vm206_vm2, %v5039_v41, %v199_v40  ;;  %1873 = vmatpush.bf16.msrb.mxu1 %v5160_v32  ;;  %v6340_v40 = vld [vmem:[#allocation5 + $0x34] sm:$0xf0]  ;;  %v5143_v41 = vld [vmem:[#allocation5 + $0xb0] sm:$0xf]  ;;  %v5232_v28 = vor.u32 %v6378_v22, %v5231_v21 }
  0x97   :  { %v212_v47 = vrot.slane %v211_v45, 4  ;;  %v310_v54 = vld.sshfl [vmem:[#allocation1 + $0x20] sm:$0xff pattern:$0x75316420]  ;;  %295 = vst [vmem:[#allocation1 + $0x10] ss:$2 sm:$0xff] %v210_v46  ;;  %v5080_v42 = vor.u32 %v6340_v40, %v5079_v39  ;;  %1919 = vmatpush.bf16.msrb.mxu3 %v5304_v23 }
  0x98   :  { %v306_v50 = vld.sshfl [vmem:[#allocation1] sm:$0xff pattern:$0x75316420]  ;;  %v307_v51 = vld.sshfl [vmem:[#allocation1 + $0x8] sm:$0xff pattern:$0x75316420]  ;;  %v133_v52 = vpop.permute.xlu1 %132  ;;  %1850 = vmatpush.bf16.msrb.mxu0 %v5088_v36 }
  0x99   :  { %v130_v53 = vpop.permute.xlu0 %129  ;;  %314 = vst [vmem:[#allocation1] ss:$2 sm:$0xff] %v219_v43  ;;  %vm148_vm13 = vcmp.eq.s32.totalorder %v6903_v58, %v133_v52  ;;  %vm149_vm14 = vcmp.eq.s32.totalorder %v6906_v63, %v133_v52  ;;  %356 = vmatmul.f32.vlgmr.msra.gmra.mxu0 %v306_v50  ;;  %394 = vmatmul.f32.vlgmr.msra.gmra.mxu1 %v307_v51  ;;  %v311_v56 = vld.sshfl [vmem:[#allocation1 + $0x28] sm:$0xff pattern:$0x75316420] }
  0x9a   :  { %v5052_v57 = vsel %vm149_vm14, 1.0, %v6804_v8  ;;  %432 = vmatmul.f32.vlgmr.msra.gmra.mxu2 %v306_v50  ;;  %470 = vmatmul.f32.vlgmr.msra.gmra.mxu3 %v307_v51  ;;  %vm146_vm15 = vcmp.eq.s32.totalorder %v6903_v58, %v130_v53  ;;  %vm147_vm0 = vcmp.eq.s32.totalorder %v6906_v63, %v130_v53  ;;  %297 = vst [vmem:[#allocation1 + $0x11] ss:$2 sm:$0xff] %v212_v47  ;;  %v5051_v62 = vsel %vm148_vm13, 1.0, %v6804_v8  ;;  %v6356_v43 = vld [vmem:[#allocation5 + $0xb4] sm:$0xf0] }
  0x9b   :  { %v205_v59 = vrot.slane %v5052_v57, 4  ;;  %v5050_v60 = vsel %vm147_vm0, 1.0, %v6804_v8  ;;  %315 = vst [vmem:[#allocation1 + $0x1] ss:$2 sm:$0xff] %v220_v55  ;;  %v5049_v2 = vsel %vm146_vm15, 1.0, %v6804_v8  ;;  %v222_v63 = vrot.slane %v221_v61, 4  ;;  %1874 = vmatpush.bf16.msrb.mxu1 %v5152_v38 }
  0x9c   :  { %v204_v0 = vrot.slane %v5050_v60, 4  ;;  %v5144_v44 = vor.u32 %v6356_v43, %v5143_v41  ;;  %1851 = vmatpush.bf16.msrb.mxu0 %v5080_v42  ;;  %v5071_v45 = vld [vmem:[#allocation5 + $0x20] sm:$0xf]  ;;  %v6338_v46 = vld [vmem:[#allocation5 + $0x24] sm:$0xf0] }
  0x9d   :  { %v226_v1 = vsel %vm206_vm2, %v5051_v62, %v205_v59  ;;  %v312_v58 = vld.sshfl [vmem:[#allocation1 + $0x30] sm:$0xff pattern:$0x75316420]  ;;  %v313_v8 = vld.sshfl [vmem:[#allocation1 + $0x38] sm:$0xff pattern:$0x75316420]  ;;  %v5072_v48 = vor.u32 %v6338_v46, %v5071_v45 }
  0x9e   :  { %319 = vst [vmem:[#allocation1 + $0x21] ss:$2 sm:$0xff] %v226_v1  ;;  %v224_v3 = vsel %vm206_vm2, %v204_v0, %v5049_v2  ;;  %v223_v7 = vsel %vm206_vm2, %v5049_v2, %v204_v0  ;;  %v5135_v47 = vld [vmem:[#allocation5 + $0xa0] sm:$0xf]  ;;  %v5063_v51 = vld [vmem:[#allocation5 + $0x10] sm:$0xf] }
  0x9f   :  { %v225_v4 = vrot.slane %v224_v3, 4  ;;  %1875 = vmatpush.bf16.msrb.mxu1 %v5144_v44  ;;  %v5136_v50 = vor.u32 %v6354_v49, %v5135_v47  ;;  %v6336_v52 = vld [vmem:[#allocation5 + $0x14] sm:$0xf0]  ;;  %v5127_v53 = vld [vmem:[#allocation5 + $0x90] sm:$0xf] }
  0xa0   :  { %1852 = vmatpush.bf16.msrb.mxu0 %v5072_v48  ;;  %v6352_v55 = vld [vmem:[#allocation5 + $0x94] sm:$0xf0]  ;;  %v5055_v57 = vld [vmem:[#allocation5] sm:$0xf]  ;;  %v6334_v59 = vld [vmem:[#allocation5 + $0x4] sm:$0xf0] }
  0xa1   :  { %318 = vst [vmem:[#allocation1 + $0x20] ss:$2 sm:$0xff] %v225_v4  ;;  %v308_v5 = vld.sshfl [vmem:[#allocation1 + $0x10] sm:$0xff pattern:$0x75316420]  ;;  %v5056_v61 = vor.u32 %v6334_v59, %v5055_v57 }
  0xa2   :  { %v309_v6 = vld.sshfl [vmem:[#allocation1 + $0x18] sm:$0xff pattern:$0x75316420]  ;;  %359 = vmatmul.f32.gmra.mxu0 %v308_v5  ;;  %435 = vmatmul.f32.gmra.mxu2 %v308_v5  ;;  %v320_v9 = vld.sshfl [vmem:[#allocation1] sm:$0xff pattern:$0x75316420] }
  0xa3   :  { %316 = vst [vmem:[#allocation1 + $0x10] ss:$2 sm:$0xff] %v222_v63  ;;  %397 = vmatmul.f32.gmra.mxu1 %v309_v6  ;;  %473 = vmatmul.f32.gmra.mxu3 %v309_v6  ;;  %v321_v10 = vld.sshfl [vmem:[#allocation1 + $0x8] sm:$0xff pattern:$0x75316420] }
  0xa4   :  { %317 = vst [vmem:[#allocation1 + $0x11] ss:$2 sm:$0xff] %v223_v7  ;;  %1876 = vmatpush.bf16.msrb.mxu1 %v5136_v50  ;;  %v5119_v60 = vld [vmem:[#allocation5 + $0x80] sm:$0xf]  ;;  %v6350_v62 = vld [vmem:[#allocation5 + $0x84] sm:$0xf0] }
  0xa5   :  { %v5120_v2 = vor.u32 %v6350_v62, %v5119_v60  ;;  %v6394_v25 = vld [vmem:[#allocation5 + $0x1e4] sm:$0xf0]  ;;  %v5223_v40 = vld [vmem:[#allocation5 + $0x150] sm:$0xf]  ;;  %v6376_v41 = vld [vmem:[#allocation5 + $0x154] sm:$0xf0] }
  0xa6   :  { %v5296_v29 = vor.u32 %v6394_v25, %v5295_v24  ;;  %v5224_v42 = vor.u32 %v6376_v41, %v5223_v40  ;;  %v5287_v43 = vld [vmem:[#allocation5 + $0x1d0] sm:$0xf]  ;;  %v6392_v44 = vld [vmem:[#allocation5 + $0x1d4] sm:$0xf0] }
  0xa7   :  { %v5288_v48 = vor.u32 %v6392_v44, %v5287_v43 }
  0xa8   :  { %v324_v13 = vld.sshfl [vmem:[#allocation1 + $0x20] sm:$0xff pattern:$0x75316420]  ;;  %v325_v14 = vld.sshfl [vmem:[#allocation1 + $0x28] sm:$0xff pattern:$0x75316420]  ;;  %1920 = vmatpush.bf16.msrb.mxu3 %v5296_v29 }
  0xaa   :  { %362 = vmatmul.f32.gmra.mxu0 %v310_v54  ;;  %438 = vmatmul.f32.gmra.mxu2 %v310_v54  ;;  %v5064_v54 = vor.u32 %v6336_v52, %v5063_v51 }
  0xab   :  { %400 = vmatmul.f32.gmra.mxu1 %v311_v56  ;;  %476 = vmatmul.f32.gmra.mxu3 %v311_v56  ;;  %v322_v11 = vld.sshfl [vmem:[#allocation1 + $0x10] sm:$0xff pattern:$0x75316420]  ;;  %v323_v12 = vld.sshfl [vmem:[#allocation1 + $0x18] sm:$0xff pattern:$0x75316420]  ;;  %v5128_v56 = vor.u32 %v6352_v55, %v5127_v53 }
  0xac   :  { %1853 = vmatpush.bf16.msrb.mxu0 %v5064_v54  ;;  %1921 = vmatpush.bf16.msrb.mxu3 %v5288_v48 }
  0xad   :  { %1877 = vmatpush.bf16.msrb.mxu1 %v5128_v56 }
  0xb0   :  { %1854 = vmatpush.bf16.msrb.mxu0 %v5056_v61 }
  0xb1   :  { %1878 = vmatpush.bf16.msrb.mxu1 %v5120_v2  ;;  %v5215_v2 = vld [vmem:[#allocation5 + $0x140] sm:$0xf] }
  0xb2   :  { %365 = vmatmul.f32.gmra.mxu0 %v312_v58  ;;  %441 = vmatmul.f32.gmra.mxu2 %v312_v58 }
  0xb3   :  { %403 = vmatmul.f32.gmra.mxu1 %v313_v8  ;;  %479 = vmatmul.f32.gmra.mxu3 %v313_v8 }
  0xba   :  { %368 = vmatmul.f32.gmra.mxu0 %v320_v9  ;;  %444 = vmatmul.f32.gmra.mxu2 %v320_v9 }
  0xbb   :  { %406 = vmatmul.f32.gmra.mxu1 %v321_v10  ;;  %482 = vmatmul.f32.gmra.mxu3 %v321_v10 }
  0xc2   :  { %371 = vmatmul.f32.gmra.mxu0 %v322_v11  ;;  %447 = vmatmul.f32.gmra.mxu2 %v322_v11 }
  0xc3   :  { %409 = vmatmul.f32.gmra.mxu1 %v323_v12  ;;  %485 = vmatmul.f32.gmra.mxu3 %v323_v12 }
  0xca   :  { %374 = vmatmul.f32.gmra.mxu0 %v324_v13  ;;  %450 = vmatmul.f32.gmra.mxu2 %v324_v13  ;;  %v5239_v13 = vld [vmem:[#allocation5 + $0x170] sm:$0xf] }
  0xcb   :  { %412 = vmatmul.f32.gmra.mxu1 %v325_v14  ;;  %488 = vmatmul.f32.gmra.mxu3 %v325_v14  ;;  %v6380_v14 = vld [vmem:[#allocation5 + $0x174] sm:$0xf0] }
  0xcc   :  { %v5240_v19 = vor.u32 %v6380_v14, %v5239_v13  ;;  %v5207_v13 = vld [vmem:[#allocation5 + $0x130] sm:$0xf]  ;;  %v6372_v14 = vld [vmem:[#allocation5 + $0x134] sm:$0xf0] }
  0xce   :  { %1895 = vmatpush.bf16.msrb.mxu2 %v5240_v19 }
  0xd2   :  { %1896 = vmatpush.bf16.msrb.mxu2 %v5232_v28 }
  0xd6   :  { %1897 = vmatpush.bf16.msrb.mxu2 %v5224_v42 }
 0x116   :  { %v357_v0 = vpop.f32.mrf.mxu0  ;;  %v395_v1 = vpop.f32.mrf.mxu1 }
 0x117   :  { %v396_v5 = vadd.f32 %v395_v1, %v357_v0 }
 0x11d   :  { %v433_v3 = vpop.f32.mrf.mxu2  ;;  %v471_v63 = vpop.f32.mrf.mxu3 }
 0x11e   :  { %v472_v4 = vadd.f32 %v471_v63, %v433_v3  ;;  %v6374_v3 = vld [vmem:[#allocation5 + $0x144] sm:$0xf0] }
 0x11f   :  { %v360_v7 = vpop.f32.mrf.mxu0 }
 0x120   :  { %v506_v6 = vrot.slane %v472_v4, 4  ;;  %v398_v58 = vpop.f32.mrf.mxu1 }
 0x121   :  { %v399_v26 = vadd.f32 %v398_v58, %v360_v7  ;;  %v5279_v58 = vld [vmem:[#allocation5 + $0x1c0] sm:$0xf] }
 0x122   :  { %v6957_v8 = vsel %vm206_vm2, %v396_v5, %v506_v6  ;;  %v514_v9 = vsel %vm206_vm2, %v506_v6, %v396_v5  ;;  %v5216_v5 = vor.u32 %v6374_v3, %v5215_v2  ;;  %v6370_v2 = vld [vmem:[#allocation5 + $0x124] sm:$0xf0] }
 0x123   :  { %v6960_v10 = vrot.slane %v514_v9, 4  ;;  %534 = vst [vmem:[#allocation1] ss:$2 sm:$0xff] %v6957_v8  ;;  %v6390_v9 = vld [vmem:[#allocation5 + $0x1c4] sm:$0xf0] }
 0x124   :  { %1898 = vmatpush.bf16.msrb.mxu2 %v5216_v5 }
 0x125   :  { %536 = vst [vmem:[#allocation1 + $0x1] ss:$2 sm:$0xff] %v6960_v10  ;;  %v436_v11 = vpop.f32.mrf.mxu2 }
 0x126   :  { %v474_v12 = vpop.f32.mrf.mxu3 }
 0x127   :  { %v475_v16 = vadd.f32 %v474_v12, %v436_v11  ;;  %v363_v17 = vpop.f32.mrf.mxu0  ;;  %v5280_v12 = vor.u32 %v6390_v9, %v5279_v58  ;;  %v6428_v9 = vld [vmem:[#allocation5 + $0x2f4] sm:$0xf0] }
 0x128   :  { %v401_v18 = vpop.f32.mrf.mxu1 }
 0x129   :  { %v507_v27 = vrot.slane %v475_v16, 4  ;;  %v402_v38 = vadd.f32 %v401_v18, %v363_v17  ;;  %1922 = vmatpush.bf16.msrb.mxu3 %v5280_v12  ;;  %v5208_v17 = vor.u32 %v6372_v14, %v5207_v13  ;;  %v6410_v12 = vld [vmem:[#allocation5 + $0x264] sm:$0xf0]  ;;  %v5191_v14 = vld [vmem:[#allocation5 + $0x110] sm:$0xf] }
 0x12b   :  { %v6965_v30 = vsel %vm206_vm2, %v399_v26, %v507_v27  ;;  %v517_v31 = vsel %vm206_vm2, %v507_v27, %v399_v26  ;;  %1899 = vmatpush.bf16.msrb.mxu2 %v5208_v17 }
 0x12c   :  { %v6968_v32 = vrot.slane %v517_v31, 4  ;;  %538 = vst [vmem:[#allocation1 + $0x10] ss:$2 sm:$0xff] %v6965_v30  ;;  %v545_v45 = vld.sshfl [vmem:[#allocation1] sm:$0xff pattern:$0x75316420] }
 0x12d   :  { %v439_v33 = vpop.f32.mrf.mxu2  ;;  %v546_v49 = vld.sshfl [vmem:[#allocation1 + $0x8] sm:$0xff pattern:$0x75316420] }
 0x12e   :  { %540 = vst [vmem:[#allocation1 + $0x11] ss:$2 sm:$0xff] %v6968_v32  ;;  %v477_v34 = vpop.f32.mrf.mxu3 }
 0x12f   :  { %v478_v35 = vadd.f32 %v477_v34, %v439_v33  ;;  %v366_v36 = vpop.f32.mrf.mxu0 }
 0x130   :  { %v404_v37 = vpop.f32.mrf.mxu1 }
 0x131   :  { %v508_v39 = vrot.slane %v478_v35, 4  ;;  %v405_v59 = vadd.f32 %v404_v37, %v366_v36 }
 0x133   :  { %v6973_v46 = vsel %vm206_vm2, %v402_v38, %v508_v39  ;;  %v520_v47 = vsel %vm206_vm2, %v508_v39, %v402_v38 }
 0x134   :  { %v6976_v50 = vrot.slane %v520_v47, 4  ;;  %542 = vst [vmem:[#allocation1 + $0x20] ss:$2 sm:$0xff] %v6973_v46 }
 0x135   :  { %v547_v51 = vld.sshfl [vmem:[#allocation1 + $0x10] sm:$0xff pattern:$0x75316420]  ;;  %v548_v52 = vld.sshfl [vmem:[#allocation1 + $0x18] sm:$0xff pattern:$0x75316420]  ;;  %v442_v53 = vpop.f32.mrf.mxu2 }
 0x136   :  { %544 = vst [vmem:[#allocation1 + $0x21] ss:$2 sm:$0xff] %v6976_v50  ;;  %v480_v54 = vpop.f32.mrf.mxu3  ;;  %v6980_v55 = vpack.c.bf16 %v547_v51, %v545_v45  ;;  %v6982_v56 = vpack.c.bf16 %v548_v52, %v546_v49 }
 0x137   :  { %v481_v57 = vadd.f32 %v480_v54, %v442_v53  ;;  %v369_v61 = vpop.f32.mrf.mxu0  ;;  %v5271_v54 = vld [vmem:[#allocation5 + $0x1b0] sm:$0xf] }
 0x138   :  { %1855 = vmatmul.bf16.vlgmr.msrb.gmra.mxu0 %v6980_v55  ;;  %1879 = vmatmul.bf16.vlgmr.msrb.gmra.mxu1 %v6982_v56  ;;  %v407_v62 = vpop.f32.mrf.mxu1 }
 0x139   :  { %v509_v60 = vrot.slane %v481_v57, 4  ;;  %v408_v15 = vadd.f32 %v407_v62, %v369_v61  ;;  %v5367_v61 = vld [vmem:[#allocation5 + $0x270] sm:$0xf] }
 0x13b   :  { %v523_v0 = vsel %vm206_vm2, %v509_v60, %v405_v59  ;;  %v7001_v28 = vsel %vm206_vm2, %v405_v59, %v509_v60  ;;  %v6388_v60 = vld [vmem:[#allocation5 + $0x1b4] sm:$0xf0] }
 0x13c   :  { %v6987_v1 = vrot.slane %v523_v0, 4  ;;  %v5272_v62 = vor.u32 %v6388_v60, %v5271_v54  ;;  %v5199_v0 = vld [vmem:[#allocation5 + $0x120] sm:$0xf]  ;;  %v5351_v54 = vld [vmem:[#allocation5 + $0x250] sm:$0xf] }
 0x13d   :  { %v549_v63 = vld.sshfl [vmem:[#allocation1 + $0x20] sm:$0xff pattern:$0x75316420]  ;;  %v550_v4 = vld.sshfl [vmem:[#allocation1 + $0x28] sm:$0xff pattern:$0x75316420]  ;;  %v445_v6 = vpop.f32.mrf.mxu2  ;;  %v5200_v3 = vor.u32 %v6370_v2, %v5199_v0 }
 0x13e   :  { %585 = vst [vmem:[#allocation1 + $0x20] ss:$2 sm:$0xff] %v6973_v46  ;;  %v483_v7 = vpop.f32.mrf.mxu3  ;;  %1923 = vmatpush.bf16.msrb.mxu3 %v5272_v62  ;;  %v6408_v60 = vld [vmem:[#allocation5 + $0x254] sm:$0xf0]  ;;  %v5415_v62 = vld [vmem:[#allocation5 + $0x2d0] sm:$0xf] }
 0x13f   :  { %587 = vst [vmem:[#allocation1 + $0x21] ss:$2 sm:$0xff] %v6976_v50  ;;  %v484_v11 = vadd.f32 %v483_v7, %v445_v6  ;;  %v372_v20 = vpop.f32.mrf.mxu0  ;;  %v6412_v6 = vld [vmem:[#allocation5 + $0x274] sm:$0xf0]  ;;  %v5431_v7 = vld [vmem:[#allocation5 + $0x2f0] sm:$0xf]  ;;  %1900 = vmatpush.bf16.msrb.mxu2 %v5200_v3 }
 0x140   :  { %552 = vst [vmem:[#allocation1 + $0x30] ss:$2 sm:$0xff] %v6987_v1  ;;  %v410_v21 = vpop.f32.mrf.mxu1  ;;  %v5368_v58 = vor.u32 %v6412_v6, %v5367_v61  ;;  %v5432_v13 = vor.u32 %v6428_v9, %v5431_v7  ;;  %v5352_v61 = vor.u32 %v6408_v60, %v5351_v54  ;;  %v6424_v0 = vld [vmem:[#allocation5 + $0x2d4] sm:$0xf0] }
 0x141   :  { %v510_v16 = vrot.slane %v484_v11, 4  ;;  %v411_v26 = vadd.f32 %v410_v21, %v372_v20  ;;  %v5359_v11 = vld [vmem:[#allocation5 + $0x260] sm:$0xf] }
 0x142   :  { %1943 = vmatpush.bf16.msra.mxu0 %v5368_v58  ;;  %v5360_v20 = vor.u32 %v6410_v12, %v5359_v11  ;;  %v5423_v21 = vld [vmem:[#allocation5 + $0x2e0] sm:$0xf]  ;;  %1967 = vmatpush.bf16.msra.mxu1 %v5432_v13  ;;  %v6406_v13 = vld [vmem:[#allocation5 + $0x244] sm:$0xf0] }
 0x143   :  { %v6993_v18 = vsel %vm206_vm2, %v408_v15, %v510_v16  ;;  %v526_v19 = vsel %vm206_vm2, %v510_v16, %v408_v15  ;;  %v6368_v15 = vld [vmem:[#allocation5 + $0x114] sm:$0xf0]  ;;  %v5255_v16 = vld [vmem:[#allocation5 + $0x190] sm:$0xf]  ;;  %v5343_v11 = vld [vmem:[#allocation5 + $0x240] sm:$0xf] }
 0x144   :  { %v6996_v22 = vrot.slane %v526_v19, 4  ;;  %554 = vst [vmem:[#allocation1 + $0x31] ss:$2 sm:$0xff] %v6993_v18  ;;  %v5192_v17 = vor.u32 %v6368_v15, %v5191_v14  ;;  %v6384_v19 = vld [vmem:[#allocation5 + $0x194] sm:$0xf0] }
 0x145   :  { %v448_v23 = vpop.f32.mrf.mxu2 }
 0x146   :  { %v486_v24 = vpop.f32.mrf.mxu3  ;;  %557 = vst [vmem:[#allocation1] ss:$2 sm:$0xff] %v6996_v22  ;;  %v7014_v38 = vld.sshfl [vmem:[#allocation1 + $0x20] sm:$0xff pattern:$0x75316420]  ;;  %1901 = vmatpush.bf16.msrb.mxu2 %v5192_v17  ;;  %1944 = vmatpush.bf16.msra.mxu0 %v5360_v20 }
 0x147   :  { %v487_v25 = vadd.f32 %v486_v24, %v448_v23  ;;  %v375_v39 = vpop.f32.mrf.mxu0  ;;  %v7017_v41 = vld.sshfl [vmem:[#allocation1 + $0x28] sm:$0xff pattern:$0x75316420]  ;;  %v6426_v23 = vld [vmem:[#allocation5 + $0x2e4] sm:$0xf0] }
 0x148   :  { %v413_v40 = vpop.f32.mrf.mxu1 }
 0x149   :  { %v511_v27 = vrot.slane %v487_v25, 4  ;;  %v414_v45 = vadd.f32 %v413_v40, %v375_v39 }
 0x14a   :  { %1945 = vmatpush.bf16.msra.mxu0 %v5352_v61 }
 0x14b   :  { %v555_v29 = vld.sshfl [vmem:[#allocation1 + $0x30] sm:$0xff pattern:$0x75316420]  ;;  %v556_v31 = vld.sshfl [vmem:[#allocation1 + $0x38] sm:$0xff pattern:$0x75316420]  ;;  %v7004_v33 = vsel %vm206_vm2, %v411_v26, %v511_v27  ;;  %v529_v34 = vsel %vm206_vm2, %v511_v27, %v411_v26  ;;  %v5256_v26 = vor.u32 %v6384_v19, %v5255_v16  ;;  %v5344_v16 = vor.u32 %v6406_v13, %v5343_v11 }
 0x14c   :  { %589 = vst [vmem:[#allocation1 + $0x30] ss:$2 sm:$0xff] %v7001_v28  ;;  %v7008_v35 = vrot.slane %v529_v34, 4  ;;  %v7010_v36 = vpack.c.bf16 %v555_v29, %v549_v63  ;;  %v7012_v37 = vpack.c.bf16 %v556_v31, %v550_v4  ;;  %v5263_v63 = vld [vmem:[#allocation5 + $0x1a0] sm:$0xf]  ;;  %v5424_v34 = vor.u32 %v6426_v23, %v5423_v21 }
 0x14d   :  { %558 = vst [vmem:[#allocation1 + $0x1] ss:$2 sm:$0xff] %v7004_v33  ;;  %v451_v42 = vpop.f32.mrf.mxu2  ;;  %v6386_v4 = vld [vmem:[#allocation5 + $0x1a4] sm:$0xf0]  ;;  %v5407_v23 = vld [vmem:[#allocation5 + $0x2c0] sm:$0xf] }
 0x14e   :  { %559 = vst [vmem:[#allocation1 + $0x10] ss:$2 sm:$0xff] %v7008_v35  ;;  %v489_v43 = vpop.f32.mrf.mxu3  ;;  %1860 = vmatmul.bf16.gmra.mxu0 %v7010_v36  ;;  %1884 = vmatmul.bf16.gmra.mxu1 %v7012_v37  ;;  %v5264_v5 = vor.u32 %v6386_v4, %v5263_v63  ;;  %v5416_v63 = vor.u32 %v6424_v0, %v5415_v62  ;;  %v5247_v4 = vld [vmem:[#allocation5 + $0x180] sm:$0xf]  ;;  %v6404_v0 = vld [vmem:[#allocation5 + $0x234] sm:$0xf0] }
 0x14f   :  { %602 = vst [vmem:[#allocation1 + $0x20] ss:$2 sm:$0xff] %v7008_v35  ;;  %v490_v44 = vadd.f32 %v489_v43, %v451_v42  ;;  %v620_v42 = vrot.slane %v7014_v38, 1  ;;  %1968 = vmatpush.bf16.msra.mxu1 %v5424_v34  ;;  %1946 = vmatpush.bf16.msra.mxu0 %v5344_v16  ;;  %v6422_v34 = vld [vmem:[#allocation5 + $0x2c4] sm:$0xf0] }
 0x150   :  { %1924 = vmatpush.bf16.msrb.mxu3 %v5264_v5  ;;  %v6382_v5 = vld [vmem:[#allocation5 + $0x184] sm:$0xf0]  ;;  %v5408_v60 = vor.u32 %v6422_v34, %v5407_v23  ;;  %v5495_v13 = vld [vmem:[#allocation5 + $0x370] sm:$0xf] }
 0x151   :  { %v512_v47 = vrot.slane %v490_v44, 4  ;;  %v622_v44 = vrot.slane %v7017_v41, 1  ;;  %v5248_v7 = vor.u32 %v6382_v5, %v5247_v4  ;;  %v6420_v5 = vld [vmem:[#allocation5 + $0x2b4] sm:$0xf0] }
 0x152   :  { %v6440_v41 = vld [vmem:[#allocation5 + $0x354] sm:$0xf0] }
 0x153   :  { %v532_v48 = vsel %vm206_vm2, %v512_v47, %v414_v45  ;;  %v7025_v52 = vsel %vm206_vm2, %v414_v45, %v512_v47  ;;  %v7030_v57 = vld.sshfl [vmem:[#allocation1 + $0x30] sm:$0xff pattern:$0x75316420]  ;;  %v7032_v59 = vld.sshfl [vmem:[#allocation1 + $0x38] sm:$0xff pattern:$0x75316420]  ;;  %1969 = vmatpush.bf16.msra.mxu1 %v5416_v63 }
 0x154   :  { %v561_v49 = vld.sshfl [vmem:[#allocation1] sm:$0xff pattern:$0x75316420]  ;;  %v562_v51 = vld.sshfl [vmem:[#allocation1 + $0x8] sm:$0xff pattern:$0x75316420]  ;;  %1925 = vmatpush.bf16.msrb.mxu3 %v5256_v26 }
 0x155   :  { %577 = vst [vmem:[#allocation1] ss:$2 sm:$0xff] %v6957_v8  ;;  %v7028_v53 = vrot.slane %v532_v48, 4  ;;  %v5183_v48 = vld [vmem:[#allocation5 + $0x100] sm:$0xf] }
 0x156   :  { %579 = vst [vmem:[#allocation1 + $0x1] ss:$2 sm:$0xff] %v6960_v10  ;;  %v5399_v63 = vld [vmem:[#allocation5 + $0x2b0] sm:$0xf] }
 0x157   :  { %560 = vst [vmem:[#allocation1 + $0x11] ss:$2 sm:$0xff] %v7025_v52  ;;  %1970 = vmatpush.bf16.msra.mxu1 %v5408_v60  ;;  %v5400_v11 = vor.u32 %v6420_v5, %v5399_v63  ;;  %v6418_v60 = vld [vmem:[#allocation5 + $0x2a4] sm:$0xf0]  ;;  %v5487_v5 = vld [vmem:[#allocation5 + $0x360] sm:$0xf] }
 0x158   :  { %603 = vst [vmem:[#allocation1 + $0x21] ss:$2 sm:$0xff] %v7025_v52  ;;  %1926 = vmatpush.bf16.msrb.mxu3 %v5248_v7 }
 0x159   :  { %604 = vst [vmem:[#allocation1 + $0x30] ss:$2 sm:$0xff] %v7028_v53 }
 0x15b   :  { %1971 = vmatpush.bf16.msra.mxu1 %v5400_v11  ;;  %v6442_v11 = vld [vmem:[#allocation5 + $0x364] sm:$0xf0] }
 0x15d   :  { %v7038_v24 = vld.sshfl [vmem:[#allocation1] sm:$0xff pattern:$0x75316420]  ;;  %v7040_v25 = vld.sshfl [vmem:[#allocation1 + $0x8] sm:$0xff pattern:$0x75316420] }
 0x15e   :  { %598 = vst [vmem:[#allocation1] ss:$2 sm:$0xff] %v6987_v1  ;;  %v563_v27 = vld.sshfl [vmem:[#allocation1 + $0x10] sm:$0xff pattern:$0x75316420]  ;;  %v614_v58 = vrot.slane %v7038_v24, 1 }
 0x15f   :  { %599 = vst [vmem:[#allocation1 + $0x1] ss:$2 sm:$0xff] %v6993_v18  ;;  %v564_v29 = vld.sshfl [vmem:[#allocation1 + $0x18] sm:$0xff pattern:$0x75316420]  ;;  %v7044_v31 = vpack.c.bf16 %v563_v27, %v561_v49  ;;  %v617_v14 = vrot.slane %v7040_v25, 1 }
 0x160   :  { %581 = vst [vmem:[#allocation1 + $0x10] ss:$2 sm:$0xff] %v6965_v30  ;;  %v7047_v39 = vld.sshfl [vmem:[#allocation1 + $0x20] sm:$0xff pattern:$0x75316420]  ;;  %v7049_v40 = vpack.c.bf16 %v564_v29, %v562_v51  ;;  %v624_v27 = vrot.slane %v7030_v57, 1 }
 0x161   :  { %583 = vst [vmem:[#allocation1 + $0x11] ss:$2 sm:$0xff] %v6968_v32  ;;  %v7053_v43 = vld.sshfl [vmem:[#allocation1 + $0x28] sm:$0xff pattern:$0x75316420]  ;;  %1865 = vmatmul.bf16.gmra.mxu0 %v7044_v31  ;;  %v626_v29 = vrot.slane %v7032_v59, 1 }
 0x162   :  { %v7057_v45 = vld.sshfl [vmem:[#allocation1 + $0x30] sm:$0xff pattern:$0x75316420]  ;;  %v7059_v47 = vld.sshfl [vmem:[#allocation1 + $0x38] sm:$0xff pattern:$0x75316420]  ;;  %1889 = vmatmul.bf16.gmra.mxu1 %v7049_v40 }
 0x163   :  { %662 = vst [vmem:[#allocation1 + $0x20] ss:$2 sm:$0xff] %v6973_v46  ;;  %v6366_v49 = vld [vmem:[#allocation5 + $0x104] sm:$0xf0]  ;;  %v627_v38 = vsel %vm613_vm1, %v622_v44, %v626_v29  ;;  %v634_v57 = vrot.slane %v7047_v39, 1 }
 0x164   :  { %664 = vst [vmem:[#allocation1 + $0x21] ss:$2 sm:$0xff] %v6976_v50  ;;  %v5184_v51 = vor.u32 %v6366_v49, %v5183_v48  ;;  %v5335_v49 = vld [vmem:[#allocation5 + $0x230] sm:$0xf] }
 0x165   :  { %666 = vst [vmem:[#allocation1 + $0x30] ss:$2 sm:$0xff] %v7001_v28  ;;  %v5336_v4 = vor.u32 %v6404_v0, %v5335_v49  ;;  %v5391_v49 = vld [vmem:[#allocation5 + $0x2a0] sm:$0xf] }
 0x166   :  { %v7065_v2 = vld.sshfl [vmem:[#allocation1] sm:$0xff pattern:$0x75316420]  ;;  %v7067_v3 = vld.sshfl [vmem:[#allocation1 + $0x8] sm:$0xff pattern:$0x75316420]  ;;  %1902 = vmatpush.bf16.msrb.mxu2 %v5184_v51 }
 0x167   :  { %654 = vst [vmem:[#allocation1] ss:$2 sm:$0xff] %v6957_v8  ;;  %v631_v7 = vrot.slane %v7067_v3, 1  ;;  %1947 = vmatpush.bf16.msra.mxu0 %v5336_v4  ;;  %v5392_v4 = vor.u32 %v6418_v60, %v5391_v49 }
 0x168   :  { %656 = vst [vmem:[#allocation1 + $0x1] ss:$2 sm:$0xff] %v6960_v10  ;;  %v592_v6 = vld.sshfl [vmem:[#allocation1 + $0x10] sm:$0xff pattern:$0x75316420] }
 0x169   :  { %v593_v9 = vld.sshfl [vmem:[#allocation1 + $0x18] sm:$0xff pattern:$0x75316420]  ;;  %v615_v12 = vrot.slane %v592_v6, 1  ;;  %v628_v6 = vrot.slane %v7065_v2, 1  ;;  %1972 = vmatpush.bf16.msra.mxu1 %v5392_v4 }
 0x16a   :  { %600 = vst [vmem:[#allocation1 + $0x10] ss:$2 sm:$0xff] %v6996_v22  ;;  %v618_v20 = vrot.slane %v593_v9, 1  ;;  %v5383_v4 = vld [vmem:[#allocation5 + $0x290] sm:$0xf] }
 0x16b   :  { %601 = vst [vmem:[#allocation1 + $0x11] ss:$2 sm:$0xff] %v7004_v33  ;;  %v7075_v15 = vld.sshfl [vmem:[#allocation1 + $0x20] sm:$0xff pattern:$0x75316420]  ;;  %v616_v17 = vsel %vm613_vm1, %v614_v58, %v615_v12  ;;  %v621_v19 = vsel %vm613_vm1, %v615_v12, %v620_v42 }
 0x16c   :  { %v7081_v21 = vld.sshfl [vmem:[#allocation1 + $0x28] sm:$0xff pattern:$0x75316420]  ;;  %v7083_v24 = vpack.c.bf16 %v621_v19, %v616_v17  ;;  %v619_v25 = vsel %vm613_vm1, %v617_v14, %v618_v20  ;;  %v623_v26 = vsel %vm613_vm1, %v618_v20, %v622_v44  ;;  %v7101_v61 = vld.sshfl [vmem:[#allocation1 + $0x30] sm:$0xff pattern:$0x75316420] }
 0x16d   :  { %679 = vst [vmem:[#allocation1 + $0x20] ss:$2 sm:$0xff] %v7008_v35  ;;  %v7094_v48 = vpack.c.bf16 %v623_v26, %v619_v25  ;;  %v7103_v62 = vld.sshfl [vmem:[#allocation1 + $0x38] sm:$0xff pattern:$0x75316420] }
 0x16e   :  { %680 = vst [vmem:[#allocation1 + $0x21] ss:$2 sm:$0xff] %v7025_v52  ;;  %1903 = vmatmul.bf16.vlgmr.msrb.gmra.mxu2 %v7083_v24  ;;  %v5327_v12 = vld [vmem:[#allocation5 + $0x220] sm:$0xf]  ;;  %v6444_v14 = vld [vmem:[#allocation5 + $0x374] sm:$0xf0] }
 0x16f   :  { %v7096_v51 = vld.sshfl [vmem:[#allocation1] sm:$0xff pattern:$0x75316420]  ;;  %v7098_v54 = vld.sshfl [vmem:[#allocation1 + $0x8] sm:$0xff pattern:$0x75316420]  ;;  %1927 = vmatmul.bf16.vlgmr.msrb.gmra.mxu3 %v7094_v48  ;;  %v5496_v16 = vor.u32 %v6444_v14, %v5495_v13 }
 0x170   :  { %675 = vst [vmem:[#allocation1] ss:$2 sm:$0xff] %v6987_v1  ;;  %v5559_v17 = vld [vmem:[#allocation5 + $0x3f0] sm:$0xf]  ;;  %v6460_v19 = vld [vmem:[#allocation5 + $0x3f4] sm:$0xf0] }
 0x171   :  { %676 = vst [vmem:[#allocation1 + $0x1] ss:$2 sm:$0xff] %v6993_v18  ;;  %v5560_v3 = vor.u32 %v6460_v19, %v5559_v17  ;;  %1991 = vmatpush.bf16.msra.mxu2 %v5496_v16  ;;  %v6402_v25 = vld [vmem:[#allocation5 + $0x224] sm:$0xf0]  ;;  %v5551_v14 = vld [vmem:[#allocation5 + $0x3e0] sm:$0xf] }
 0x172   :  { %v7109_v58 = vld.sshfl [vmem:[#allocation1 + $0x10] sm:$0xff pattern:$0x75316420]  ;;  %v7111_v9 = vld.sshfl [vmem:[#allocation1 + $0x18] sm:$0xff pattern:$0x75316420]  ;;  %v5328_v34 = vor.u32 %v6402_v25, %v5327_v12  ;;  %v5488_v12 = vor.u32 %v6442_v11, %v5487_v5 }
 0x173   :  { %658 = vst [vmem:[#allocation1 + $0x10] ss:$2 sm:$0xff] %v6965_v30  ;;  %v9247_v20 = vrot.slane %v7109_v58, 1  ;;  %v9246_v26 = vrot.slane %v7111_v9, 1  ;;  %2015 = vmatpush.bf16.msra.mxu3 %v5560_v3  ;;  %v6458_v16 = vld [vmem:[#allocation5 + $0x3e4] sm:$0xf0] }
 0x174   :  { %660 = vst [vmem:[#allocation1 + $0x11] ss:$2 sm:$0xff] %v6968_v32  ;;  %1948 = vmatpush.bf16.msra.mxu0 %v5328_v34  ;;  %v5552_v3 = vor.u32 %v6458_v16, %v5551_v14  ;;  %v6416_v5 = vld [vmem:[#allocation5 + $0x294] sm:$0xf0]  ;;  %v5479_v11 = vld [vmem:[#allocation5 + $0x350] sm:$0xf] }
 0x175   :  { %681 = vst [vmem:[#allocation1 + $0x30] ss:$2 sm:$0xff] %v7028_v53  ;;  %v7116_v2 = vld.sshfl [vmem:[#allocation1 + $0x20] sm:$0xff pattern:$0x75316420]  ;;  %v630_v13 = vsel %vm613_vm1, %v628_v6, %v9247_v20  ;;  %v633_v6 = vsel %vm613_vm1, %v631_v7, %v9246_v26  ;;  %1992 = vmatpush.bf16.msra.mxu2 %v5488_v12  ;;  %v5384_v59 = vor.u32 %v6416_v5, %v5383_v4 }
 0x176   :  { %v7119_v23 = vld.sshfl [vmem:[#allocation1 + $0x28] sm:$0xff pattern:$0x75316420]  ;;  %v7158_v7 = vpack.c.bf16 %v633_v6, %v627_v38  ;;  %v5480_v12 = vor.u32 %v6440_v41, %v5479_v11  ;;  %v6398_v14 = vld [vmem:[#allocation5 + $0x204] sm:$0xf0]  ;;  %v691_v6 = vrot.slane %v7096_v51, 2 }
 0x177   :  { %739 = vst [vmem:[#allocation1 + $0x20] ss:$2 sm:$0xff] %v6973_v46  ;;  %2016 = vmatpush.bf16.msra.mxu3 %v5552_v3  ;;  %1973 = vmatpush.bf16.msra.mxu1 %v5384_v59  ;;  %v5375_v16 = vld [vmem:[#allocation5 + $0x280] sm:$0xf]  ;;  %v9248_v59 = vrot.slane %v7075_v15, 2 }
 0x178   :  { %v7123_v0 = vld.sshfl [vmem:[#allocation1] sm:$0xff pattern:$0x75316420]  ;;  %v7125_v63 = vld.sshfl [vmem:[#allocation1 + $0x8] sm:$0xff pattern:$0x75316420] }
 0x179   :  { %731 = vst [vmem:[#allocation1] ss:$2 sm:$0xff] %v6957_v8  ;;  %v625_v8 = vsel %vm613_vm1, %v620_v42, %v624_v27  ;;  %v5319_v42 = vld [vmem:[#allocation5 + $0x210] sm:$0xf]  ;;  %v6400_v27 = vld [vmem:[#allocation5 + $0x214] sm:$0xf0]  ;;  %1993 = vmatpush.bf16.msra.mxu2 %v5480_v12 }
 0x17a   :  { %733 = vst [vmem:[#allocation1 + $0x1] ss:$2 sm:$0xff] %v6960_v10  ;;  %v7145_v34 = vpack.c.bf16 %v630_v13, %v625_v8  ;;  %v5320_v60 = vor.u32 %v6400_v27, %v5319_v42  ;;  %v5311_v13 = vld [vmem:[#allocation5 + $0x200] sm:$0xf]  ;;  %v6414_v8 = vld [vmem:[#allocation5 + $0x284] sm:$0xf0] }
 0x17b   :  { %v669_v17 = vld.sshfl [vmem:[#allocation1 + $0x10] sm:$0xff pattern:$0x75316420]  ;;  %v7132_v19 = vld.sshfl [vmem:[#allocation1 + $0x18] sm:$0xff pattern:$0x75316420]  ;;  %v5312_v3 = vor.u32 %v6398_v14, %v5311_v13  ;;  %v5376_v27 = vor.u32 %v6414_v8, %v5375_v16 }
 0x17c   :  { %677 = vst [vmem:[#allocation1 + $0x10] ss:$2 sm:$0xff] %v6996_v22  ;;  %v7143_v25 = vld.sshfl [vmem:[#allocation1 + $0x30] sm:$0xff pattern:$0x75316420]  ;;  %1949 = vmatpush.bf16.msra.mxu0 %v5320_v60  ;;  %v692_v4 = vrot.slane %v669_v17, 2 }
 0x17d   :  { %678 = vst [vmem:[#allocation1 + $0x11] ss:$2 sm:$0xff] %v7004_v33  ;;  %v7148_v49 = vld.sshfl [vmem:[#allocation1 + $0x38] sm:$0xff pattern:$0x75316420]  ;;  %1974 = vmatpush.bf16.msra.mxu1 %v5376_v27  ;;  %v694_v12 = vrot.slane %v7098_v54, 2 }
 0x17e   :  { %741 = vst [vmem:[#allocation1 + $0x21] ss:$2 sm:$0xff] %v6976_v50  ;;  %1908 = vmatmul.bf16.gmra.mxu2 %v7145_v34  ;;  %v5543_v60 = vld [vmem:[#allocation5 + $0x3d0] sm:$0xf]  ;;  %v693_v41 = vsel %vm690_vm3, %v691_v6, %v692_v4  ;;  %v6456_v13 = vld [vmem:[#allocation5 + $0x3d4] sm:$0xf0]  ;;  %v698_v17 = vsel %vm690_vm3, %v692_v4, %v9248_v59 }
 0x17f   :  { %743 = vst [vmem:[#allocation1 + $0x30] ss:$2 sm:$0xff] %v7001_v28  ;;  %1932 = vmatmul.bf16.gmra.mxu3 %v7158_v7  ;;  %v695_v14 = vrot.slane %v7132_v19, 2  ;;  %v5544_v16 = vor.u32 %v6456_v13, %v5543_v60  ;;  %v699_v8 = vrot.slane %v7081_v21, 2  ;;  %v5471_v27 = vld [vmem:[#allocation5 + $0x340] sm:$0xf] }
 0x180   :  { %1950 = vmatpush.bf16.msra.mxu0 %v5312_v3  ;;  %v7192_v3 = vpack.c.bf16 %v698_v17, %v693_v41  ;;  %v638_v6 = vrot.slane %v7057_v45, 1  ;;  %v9423_v54 = vrot.slane %v7109_v58, 1  ;;  %v6438_v60 = vld [vmem:[#allocation5 + $0x344] sm:$0xf0]  ;;  %v5535_v41 = vld [vmem:[#allocation5 + $0x3c0] sm:$0xf] }
 0x181   :  { %v7162_v44 = vld.sshfl [vmem:[#allocation1] sm:$0xff pattern:$0x75316420]  ;;  %v7164_v29 = vld.sshfl [vmem:[#allocation1 + $0x8] sm:$0xff pattern:$0x75316420]  ;;  %v696_v4 = vsel %vm690_vm3, %v694_v12, %v695_v14  ;;  %2017 = vmatpush.bf16.msra.mxu3 %v5544_v16  ;;  %v700_v45 = vsel %vm690_vm3, %v695_v14, %v699_v8  ;;  %v5472_v17 = vor.u32 %v6438_v60, %v5471_v27 }
 0x182   :  { %752 = vst [vmem:[#allocation1] ss:$2 sm:$0xff] %v6987_v1  ;;  %v635_v19 = vsel %vm613_vm1, %v9423_v54, %v634_v57  ;;  %v7212_v13 = vpack.c.bf16 %v700_v45, %v696_v4  ;;  %v6454_v12 = vld [vmem:[#allocation5 + $0x3c4] sm:$0xf0]  ;;  %v5463_v58 = vld [vmem:[#allocation5 + $0x330] sm:$0xf] }
 0x183   :  { %753 = vst [vmem:[#allocation1 + $0x1] ss:$2 sm:$0xff] %v6993_v18  ;;  %1951 = vmatmul.bf16.vlgmr.msra.gmra.mxu0 %v7192_v3  ;;  %v5536_v59 = vor.u32 %v6454_v12, %v5535_v41  ;;  %1994 = vmatpush.bf16.msra.mxu2 %v5472_v17  ;;  %v5527_v14 = vld [vmem:[#allocation5 + $0x3b0] sm:$0xf]  ;;  %v6452_v27 = vld [vmem:[#allocation5 + $0x3b4] sm:$0xf0] }
 0x184   :  { %v7169_v38 = vld.sshfl [vmem:[#allocation1 + $0x10] sm:$0xff pattern:$0x75316420]  ;;  %v7171_v42 = vld.sshfl [vmem:[#allocation1 + $0x18] sm:$0xff pattern:$0x75316420]  ;;  %1975 = vmatmul.bf16.vlgmr.msra.gmra.mxu1 %v7212_v13 }
 0x185   :  { %735 = vst [vmem:[#allocation1 + $0x10] ss:$2 sm:$0xff] %v6965_v30  ;;  %v7174_v1 = vld.sshfl [vmem:[#allocation1 + $0x20] sm:$0xff pattern:$0x75316420]  ;;  %2018 = vmatpush.bf16.msra.mxu3 %v5536_v59  ;;  %v640_v45 = vrot.slane %v7059_v47, 1 }
 0x186   :  { %737 = vst [vmem:[#allocation1 + $0x11] ss:$2 sm:$0xff] %v6968_v32  ;;  %v7177_v5 = vld.sshfl [vmem:[#allocation1 + $0x28] sm:$0xff pattern:$0x75316420]  ;;  %v701_v41 = vrot.slane %v7101_v61, 2 }
 0x187   :  { %v7180_v51 = vld.sshfl [vmem:[#allocation1 + $0x30] sm:$0xff pattern:$0x75316420]  ;;  %v7182_v11 = vld.sshfl [vmem:[#allocation1 + $0x38] sm:$0xff pattern:$0x75316420] }
 0x188   :  { %757 = vst [vmem:[#allocation1 + $0x21] ss:$2 sm:$0xff] %v7025_v52  ;;  %v6434_v4 = vld [vmem:[#allocation5 + $0x324] sm:$0xf0]  ;;  %v705_v17 = vrot.slane %v7123_v0, 2  ;;  %v9424_v59 = vrot.slane %v7111_v9, 1 }
 0x189   :  { %758 = vst [vmem:[#allocation1 + $0x30] ss:$2 sm:$0xff] %v7028_v53  ;;  %v5519_v12 = vld [vmem:[#allocation5 + $0x3a0] sm:$0xf]  ;;  %v708_v9 = vrot.slane %v7125_v63, 2 }
 0x18a   :  { %9422 = vst [vmem:[#allocation15_spill] sm:$0xff] %v7192_v3  ;;  %v7196_v26 = vld.sshfl [vmem:[#allocation1] sm:$0xff pattern:$0x75316420] }
 0x18b   :  { %v7198_v20 = vld.sshfl [vmem:[#allocation1 + $0x8] sm:$0xff pattern:$0x75316420]  ;;  %756 = vst [vmem:[#allocation1 + $0x20] ss:$2 sm:$0xff] %v7008_v35 }
 0x18c   :  { %808 = vst [vmem:[#allocation1] ss:$2 sm:$0xff] %v6960_v10  ;;  %v639_v10 = vsel %vm613_vm1, %v634_v57, %v638_v6  ;;  %v5455_v57 = vld [vmem:[#allocation5 + $0x320] sm:$0xf]  ;;  %v5528_v6 = vor.u32 %v6452_v27, %v5527_v14  ;;  %v703_v14 = vrot.slane %v7103_v62, 2 }
 0x18d   :  { %810 = vst [vmem:[#allocation1 + $0x1] ss:$2 sm:$0xff] %v6965_v30  ;;  %v7217_v16 = vld.sshfl [vmem:[#allocation1 + $0x10] sm:$0xff pattern:$0x75316420]  ;;  %v7221_v3 = vpack.c.bf16 %v639_v10, %v635_v19  ;;  %v636_v19 = vrot.slane %v7053_v43, 1  ;;  %v5456_v60 = vor.u32 %v6434_v4, %v5455_v57 }
 0x18e   :  { %v7219_v54 = vld.sshfl [vmem:[#allocation1 + $0x18] sm:$0xff pattern:$0x75316420]  ;;  %v6436_v30 = vld [vmem:[#allocation5 + $0x334] sm:$0xf0]  ;;  %2019 = vmatpush.bf16.msra.mxu3 %v5528_v6 }
 0x18f   :  { %754 = vst [vmem:[#allocation1 + $0x10] ss:$2 sm:$0xff] %v6996_v22  ;;  %v5464_v39 = vor.u32 %v6436_v30, %v5463_v58  ;;  %1913 = vmatmul.bf16.gmra.mxu2 %v7221_v3  ;;  %v637_v58 = vsel %vm613_vm1, %v9424_v59, %v636_v19  ;;  %v641_v10 = vsel %vm613_vm1, %v636_v19, %v640_v45  ;;  %v9250_v30 = vrot.slane %v7169_v38, 2  ;;  %v6450_v43 = vld [vmem:[#allocation5 + $0x3a4] sm:$0xf0] }
 0x190   :  { %755 = vst [vmem:[#allocation1 + $0x11] ss:$2 sm:$0xff] %v7004_v33  ;;  %v5623_v27 = vld [vmem:[#allocation5 + $0x470] sm:$0xf]  ;;  %v7242_v61 = vpack.c.bf16 %v641_v10, %v637_v58  ;;  %v5520_v0 = vor.u32 %v6450_v43, %v5519_v12  ;;  %v6476_v4 = vld [vmem:[#allocation5 + $0x474] sm:$0xf0] }
 0x191   :  { %1995 = vmatpush.bf16.msra.mxu2 %v5464_v39  ;;  %v709_v39 = vrot.slane %v7171_v42, 2  ;;  %v5624_v62 = vor.u32 %v6476_v4, %v5623_v27  ;;  %v5687_v19 = vld [vmem:[#allocation5 + $0x4f0] sm:$0xf]  ;;  %v6492_v45 = vld [vmem:[#allocation5 + $0x4f4] sm:$0xf0]  ;;  %v9425_v58 = vrot.slane %v7075_v15, 2 }
 0x192   :  { %1937 = vmatmul.bf16.gmra.mxu3 %v7242_v61  ;;  %v5688_v63 = vor.u32 %v6492_v45, %v5687_v19  ;;  %v6432_v12 = vld [vmem:[#allocation5 + $0x314] sm:$0xf0]  ;;  %v6474_v27 = vld [vmem:[#allocation5 + $0x464] sm:$0xf0]  ;;  %v5511_v19 = vld [vmem:[#allocation5 + $0x390] sm:$0xf] }
 0x193   :  { %2020 = vmatpush.bf16.msra.mxu3 %v5520_v0  ;;  %2039 = vmatpush.bf16.msrb.mxu0 %v5624_v62  ;;  %v702_v10 = vsel %vm690_vm3, %v9425_v58, %v701_v41  ;;  %v5679_v0 = vld [vmem:[#allocation5 + $0x4e0] sm:$0xf]  ;;  %v6490_v62 = vld [vmem:[#allocation5 + $0x4e4] sm:$0xf0]  ;;  %v6448_v45 = vld [vmem:[#allocation5 + $0x394] sm:$0xf0]  ;;  %v704_v41 = vsel %vm690_vm3, %v699_v8, %v703_v14 }
 0x194   :  { %v7238_v47 = vld.sshfl [vmem:[#allocation1] sm:$0xff pattern:$0x75316420]  ;;  %v7240_v57 = vld.sshfl [vmem:[#allocation1 + $0x8] sm:$0xff pattern:$0x75316420]  ;;  %2063 = vmatpush.bf16.msrb.mxu1 %v5688_v63 }
 0x195   :  { %831 = vst [vmem:[#allocation1] ss:$2 sm:$0xff] %v7004_v33  ;;  %1996 = vmatpush.bf16.msra.mxu2 %v5456_v60  ;;  %v707_v33 = vsel %vm690_vm3, %v705_v17, %v9250_v30  ;;  %v5615_v60 = vld [vmem:[#allocation5 + $0x460] sm:$0xf]  ;;  %v5607_v15 = vld [vmem:[#allocation5 + $0x450] sm:$0xf] }
 0x196   :  { %832 = vst [vmem:[#allocation1 + $0x1] ss:$2 sm:$0xff] %v7008_v35  ;;  %v5447_v35 = vld [vmem:[#allocation5 + $0x310] sm:$0xf]  ;;  %v7261_v4 = vpack.c.bf16 %v707_v33, %v702_v10  ;;  %v5616_v17 = vor.u32 %v6474_v27, %v5615_v60  ;;  %v6472_v30 = vld [vmem:[#allocation5 + $0x454] sm:$0xf0]  ;;  %v5512_v33 = vor.u32 %v6448_v45, %v5511_v19 }
 0x197   :  { %v7249_v59 = vld.sshfl [vmem:[#allocation1 + $0x10] sm:$0xff pattern:$0x75316420]  ;;  %v7251_v6 = vld.sshfl [vmem:[#allocation1 + $0x18] sm:$0xff pattern:$0x75316420]  ;;  %v5448_v43 = vor.u32 %v6432_v12, %v5447_v35  ;;  %v5608_v58 = vor.u32 %v6472_v30, %v5607_v15 }
 0x198   :  { %812 = vst [vmem:[#allocation1 + $0x10] ss:$2 sm:$0xff] %v6968_v32  ;;  %v710_v32 = vsel %vm690_vm3, %v708_v9, %v709_v39  ;;  %1956 = vmatmul.bf16.gmra.mxu0 %v7261_v4  ;;  %v5671_v63 = vld [vmem:[#allocation5 + $0x4d0] sm:$0xf]  ;;  %v6488_v35 = vld [vmem:[#allocation5 + $0x4d4] sm:$0xf0]  ;;  %2021 = vmatpush.bf16.msra.mxu3 %v5512_v33 }
 0x199   :  { %814 = vst [vmem:[#allocation1 + $0x11] ss:$2 sm:$0xff] %v6973_v46  ;;  %1997 = vmatpush.bf16.msra.mxu2 %v5448_v43  ;;  %v5680_v46 = vor.u32 %v6490_v62, %v5679_v0  ;;  %v5439_v12 = vld [vmem:[#allocation5 + $0x300] sm:$0xf]  ;;  %v7270_v9 = vpack.c.bf16 %v710_v32, %v704_v41  ;;  %2040 = vmatpush.bf16.msrb.mxu0 %v5616_v17  ;;  %v6430_v43 = vld [vmem:[#allocation5 + $0x304] sm:$0xf0] }
 0x19a   :  { %v5672_v10 = vor.u32 %v6488_v35, %v5671_v63  ;;  %v5503_v60 = vld [vmem:[#allocation5 + $0x380] sm:$0xf]  ;;  %v6446_v27 = vld [vmem:[#allocation5 + $0x384] sm:$0xf0]  ;;  %v5440_v0 = vor.u32 %v6430_v43, %v5439_v12  ;;  %v711_v17 = vrot.slane %v7116_v2, 2  ;;  %v713_v41 = vrot.slane %v7119_v23, 2 }
 0x19b   :  { %2064 = vmatpush.bf16.msrb.mxu1 %v5680_v46  ;;  %v5504_v21 = vor.u32 %v6446_v27, %v5503_v60  ;;  %v5599_v62 = vld [vmem:[#allocation5 + $0x440] sm:$0xf]  ;;  %v6470_v8 = vld [vmem:[#allocation5 + $0x444] sm:$0xf0]  ;;  %v715_v46 = vrot.slane %v7143_v25, 2  ;;  %v768_v33 = vrot.slane %v7162_v44, 3 }
 0x19c   :  { %1980 = vmatmul.bf16.gmra.mxu1 %v7270_v9  ;;  %v5663_v14 = vld [vmem:[#allocation5 + $0x4c0] sm:$0xf]  ;;  %v5600_v30 = vor.u32 %v6470_v8, %v5599_v62  ;;  %v6486_v32 = vld [vmem:[#allocation5 + $0x4c4] sm:$0xf0]  ;;  %v774_v63 = vrot.slane %v7174_v1, 3  ;;  %v771_v2 = vrot.slane %v7164_v29, 3 }
 0x19d   :  { %2041 = vmatpush.bf16.msrb.mxu0 %v5608_v58  ;;  %1998 = vmatpush.bf16.msra.mxu2 %v5440_v0  ;;  %v5664_v15 = vor.u32 %v6486_v32, %v5663_v14  ;;  %v6347_v35 = vld [vmem:[#allocation5 + $0x74] sm:$0xf]  ;;  %v5113_v12 = vld [vmem:[#allocation5 + $0x78] sm:$0xf0]  ;;  %v772_v25 = vrot.slane %v7219_v54, 3 }
 0x19e   :  { %2022 = vmatpush.bf16.msra.mxu3 %v5504_v21  ;;  %v5591_v58 = vld [vmem:[#allocation5 + $0x430] sm:$0xf]  ;;  %v6484_v60 = vld [vmem:[#allocation5 + $0x4b4] sm:$0xf0]  ;;  %v5116_v54 = vor.u32 %v6347_v35, %v5113_v12  ;;  %v6363_v21 = vld [vmem:[#allocation5 + $0xf4] sm:$0xf] }
 0x19f   :  { %2065 = vmatpush.bf16.msrb.mxu1 %v5672_v10  ;;  %v717_v10 = vrot.slane %v7148_v49, 2  ;;  %v5655_v43 = vld [vmem:[#allocation5 + $0x4b0] sm:$0xf]  ;;  %v773_v29 = vsel %vm767_vm4, %v771_v2, %v772_v25  ;;  %v5177_v62 = vld [vmem:[#allocation5 + $0xf8] sm:$0xf0]  ;;  %v9426_v49 = vrot.slane %v7169_v38, 2  ;;  %v716_v38 = vsel %vm690_vm3, %v711_v17, %v715_v46 }
 0x1a0   :  { %v7273_v19 = vld.sshfl [vmem:[#allocation1 + $0x10] sm:$0xff pattern:$0x75316420]  ;;  %v7275_v45 = vld.sshfl [vmem:[#allocation1 + $0x18] sm:$0xff pattern:$0x75316420]  ;;  %v5656_v32 = vor.u32 %v6484_v60, %v5655_v43  ;;  %v714_v43 = vsel %vm690_vm3, %v709_v39, %v713_v41 }
 0x1a1   :  { %833 = vst [vmem:[#allocation1 + $0x10] ss:$2 sm:$0xff] %v7025_v52  ;;  %v769_v52 = vrot.slane %v7217_v16, 3  ;;  %2042 = vmatpush.bf16.msrb.mxu0 %v5600_v30  ;;  %v776_v16 = vrot.slane %v7177_v5, 3  ;;  %v5583_v8 = vld [vmem:[#allocation5 + $0x420] sm:$0xf]  ;;  %v712_v14 = vsel %vm690_vm3, %v9426_v49, %v711_v17  ;;  %2087 = vmatpush.bf16.msrb.mxu2 %v5116_v54 }
 0x1a2   :  { %834 = vst [vmem:[#allocation1 + $0x11] ss:$2 sm:$0xff] %v7028_v53  ;;  %v6468_v53 = vld [vmem:[#allocation5 + $0x434] sm:$0xf0]  ;;  %v6345_v12 = vld [vmem:[#allocation5 + $0x64] sm:$0xf] }
 0x1a3   :  { %2066 = vmatpush.bf16.msrb.mxu1 %v5664_v15  ;;  %v770_v23 = vsel %vm767_vm4, %v768_v33, %v769_v52  ;;  %v775_v44 = vsel %vm767_vm4, %v769_v52, %v774_v63  ;;  %v5592_v0 = vor.u32 %v6468_v53, %v5591_v58  ;;  %v777_v30 = vsel %vm767_vm4, %v772_v25, %v776_v16  ;;  %v6466_v33 = vld [vmem:[#allocation5 + $0x424] sm:$0xf0]  ;;  %v5647_v52 = vld [vmem:[#allocation5 + $0x4a0] sm:$0xf]  ;;  %v5105_v2 = vld [vmem:[#allocation5 + $0x68] sm:$0xf0] }
 0x1a4   :  { %v7293_v27 = vpack.c.bf16 %v775_v44, %v770_v23  ;;  %v5180_v15 = vor.u32 %v6363_v21, %v5177_v62  ;;  %v6482_v23 = vld [vmem:[#allocation5 + $0x4a4] sm:$0xf0]  ;;  %v7303_v35 = vpack.c.bf16 %v777_v30, %v773_v29  ;;  %v6361_v58 = vld [vmem:[#allocation5 + $0xe4] sm:$0xf]  ;;  %v5584_v53 = vor.u32 %v6466_v33, %v5583_v8  ;;  %v5169_v49 = vld [vmem:[#allocation5 + $0xe8] sm:$0xf0] }
 0x1a5   :  { %2043 = vmatpush.bf16.msrb.mxu0 %v5592_v0  ;;  %v5108_v44 = vor.u32 %v6345_v12, %v5105_v2  ;;  %v7306_v25 = vpack.c.bf16 %v716_v38, %v712_v14  ;;  %v5648_v60 = vor.u32 %v6482_v23, %v5647_v52  ;;  %v5575_v29 = vld [vmem:[#allocation5 + $0x410] sm:$0xf]  ;;  %v6464_v21 = vld [vmem:[#allocation5 + $0x414] sm:$0xf0]  ;;  %v6343_v62 = vld [vmem:[#allocation5 + $0x54] sm:$0xf]  ;;  %v5172_v17 = vor.u32 %v6361_v58, %v5169_v49 }
 0x1a6   :  { %1999 = vmatmul.bf16.vlgmr.msra.gmra.mxu2 %v7293_v27  ;;  %2023 = vmatmul.bf16.vlgmr.msra.gmra.mxu3 %v7303_v35  ;;  %v5639_v46 = vld [vmem:[#allocation5 + $0x490] sm:$0xf]  ;;  %v6480_v54 = vld [vmem:[#allocation5 + $0x494] sm:$0xf0]  ;;  %v5097_v0 = vld [vmem:[#allocation5 + $0x58] sm:$0xf0]  ;;  %v718_v8 = vsel %vm690_vm3, %v713_v41, %v717_v10  ;;  %v5576_v39 = vor.u32 %v6464_v21, %v5575_v29 }
 0x1a7   :  { %2067 = vmatpush.bf16.msrb.mxu1 %v5656_v32  ;;  %2111 = vmatpush.bf16.msrb.mxu3 %v5180_v15  ;;  %v6359_v14 = vld [vmem:[#allocation5 + $0xd4] sm:$0xf]  ;;  %v7314_v42 = vpack.c.bf16 %v718_v8, %v714_v43  ;;  %v5100_v30 = vor.u32 %v6343_v62, %v5097_v0  ;;  %v5567_v32 = vld [vmem:[#allocation5 + $0x400] sm:$0xf]  ;;  %v5161_v33 = vld [vmem:[#allocation5 + $0xd8] sm:$0xf0]  ;;  %v5640_v52 = vor.u32 %v6480_v54, %v5639_v46 }
 0x1a8   :  { %1961 = vmatmul.bf16.gmra.mxu0 %v7306_v25  ;;  %2088 = vmatpush.bf16.msrb.mxu2 %v5108_v44  ;;  %v6462_v15 = vld [vmem:[#allocation5 + $0x404] sm:$0xf0]  ;;  %v5631_v23 = vld [vmem:[#allocation5 + $0x480] sm:$0xf]  ;;  %v6341_v12 = vld [vmem:[#allocation5 + $0x44] sm:$0xf]  ;;  %v5164_v58 = vor.u32 %v6359_v14, %v5161_v33 }
 0x1a9   :  { %2044 = vmatpush.bf16.msrb.mxu0 %v5584_v53  ;;  %v6478_v2 = vld [vmem:[#allocation5 + $0x484] sm:$0xf0]  ;;  %v783_v41 = vrot.slane %v7249_v59, 3  ;;  %v5089_v10 = vld [vmem:[#allocation5 + $0x48] sm:$0xf0]  ;;  %v778_v38 = vrot.slane %v7180_v51, 3  ;;  %v5568_v49 = vor.u32 %v6462_v15, %v5567_v32 }
 0x1aa   :  { %v6357_v53 = vld [vmem:[#allocation5 + $0xc4] sm:$0xf]  ;;  %v5153_v44 = vld [vmem:[#allocation5 + $0xc8] sm:$0xf0]  ;;  %v782_v43 = vrot.slane %v7196_v26, 3  ;;  %v5092_v29 = vor.u32 %v6341_v12, %v5089_v10  ;;  %v780_v51 = vrot.slane %v7182_v11, 3 }
 0x1ab   :  { %2068 = vmatpush.bf16.msrb.mxu1 %v5648_v60  ;;  %2112 = vmatpush.bf16.msrb.mxu3 %v5172_v17  ;;  %v786_v60 = vrot.slane %v7251_v6, 3  ;;  %v6339_v21 = vld [vmem:[#allocation5 + $0x34] sm:$0xf]  ;;  %v7324_v62 = vld [vmem:[%s9238_s3] sm:$0x3]  ;;  %v5632_v17 = vor.u32 %v6478_v2, %v5631_v23  ;;  %v785_v0 = vrot.slane %v7198_v20, 3  ;;  %v5156_v8 = vor.u32 %v6357_v53, %v5153_v44 }
 0x1ac   :  { %1985 = vmatmul.bf16.gmra.mxu1 %v7314_v42  ;;  %2089 = vmatpush.bf16.msrb.mxu2 %v5100_v30  ;;  %v5081_v46 = vld [vmem:[#allocation5 + $0x38] sm:$0xf0]  ;;  %v784_v26 = vsel %vm767_vm4, %v782_v43, %v783_v41  ;;  %v6355_v14 = vld [vmem:[#allocation5 + $0xb4] sm:$0xf]  ;;  %v7334_v30 = vperm.slane %v7324_v62, 0  ;;  %v779_v15 = vsel %vm767_vm4, %v774_v63, %v778_v38  ;;  %v781_v63 = vsel %vm767_vm4, %v776_v16, %v780_v51 }
 0x1ad   :  { %2045 = vmatpush.bf16.msrb.mxu0 %v5576_v39  ;;  %v7327_v54 = vld.sshfl [vmem:[#allocation1 + $0x20] sm:$0xff pattern:$0x75316420]  ;;  %v6337_v32 = vld [vmem:[#allocation5 + $0x24] sm:$0xf]  ;;  %v787_v20 = vsel %vm767_vm4, %v785_v0, %v786_v60  ;;  %v5084_v23 = vor.u32 %v6339_v21, %v5081_v46  ;;  %v7349_v2 = vpack.c.bf16 %v784_v26, %v779_v15  ;;  %v7366_v26 = vpack.c.bf16 %v7273_v19, %v7238_v47 }
 0x1ae   :  { %v5145_v39 = vld [vmem:[#allocation5 + $0xb8] sm:$0xf0]  ;;  %v5073_v33 = vld [vmem:[#allocation5 + $0x28] sm:$0xf0]  ;;  %v6353_v10 = vld [vmem:[#allocation5 + $0xa4] sm:$0xf] }
 0x1af   :  { %2069 = vmatpush.bf16.msrb.mxu1 %v5640_v52  ;;  %2113 = vmatpush.bf16.msrb.mxu3 %v5164_v58  ;;  %v7336_v52 = vld.sshfl [vmem:[#allocation1 + $0x30] sm:$0xff pattern:$0x75316420]  ;;  %v7338_v11 = vld.sshfl [vmem:[#allocation1 + $0x28] sm:$0xff pattern:$0x75316420]  ;;  %v5148_v38 = vor.u32 %v6355_v14, %v5145_v39  ;;  %v5076_v21 = vor.u32 %v6337_v32, %v5073_v33 }
 0x1b0   :  { %2090 = vmatpush.bf16.msrb.mxu2 %v5092_v29  ;;  %v7346_v12 = vld.sshfl [vmem:[#allocation1 + $0x38] sm:$0xff pattern:$0x75316420]  ;;  %816 = vst [vmem:[#allocation1 + $0x20] ss:$2 sm:$0xff] %v6976_v50 }
 0x1b1   :  { %2046 = vmatpush.bf16.msrb.mxu0 %v5568_v49  ;;  %818 = vst [vmem:[#allocation1 + $0x21] ss:$2 sm:$0xff] %v7001_v28  ;;  %v6379_v1 = vld [vmem:[#allocation5 + $0x174] sm:$0xf]  ;;  %v5241_v44 = vld [vmem:[#allocation5 + $0x178] sm:$0xf0]  ;;  %v7358_v49 = vpack.c.bf16 %v787_v20, %v781_v63 }
 0x1b2   :  { %826 = vst [vmem:[#allocation1 + $0x30] ss:$2 sm:$0xff] %v6993_v18  ;;  %v6395_v50 = vld [vmem:[#allocation5 + $0x1f4] sm:$0xf]  ;;  %v5137_v28 = vld [vmem:[#allocation5 + $0xa8] sm:$0xf0]  ;;  %v5244_v29 = vor.u32 %v6379_v1, %v5241_v44 }
 0x1b3   :  { %2070 = vmatpush.bf16.msrb.mxu1 %v5632_v17  ;;  %2114 = vmatpush.bf16.msrb.mxu3 %v5156_v8  ;;  %828 = vst [vmem:[#allocation1 + $0x31] ss:$2 sm:$0xff] %v6996_v22  ;;  %v5305_v5 = vld [vmem:[#allocation5 + $0x1f8] sm:$0xf0]  ;;  %v6335_v51 = vld [vmem:[#allocation5 + $0x14] sm:$0xf]  ;;  %v5140_v39 = vor.u32 %v6353_v10, %v5137_v28 }
 0x1b4   :  { %2091 = vmatpush.bf16.msrb.mxu2 %v5084_v23  ;;  %v5308_v17 = vor.u32 %v6395_v50, %v5305_v5  ;;  %v6377_v46 = vld [vmem:[#allocation5 + $0x164] sm:$0xf]  ;;  %v5233_v18 = vld [vmem:[#allocation5 + $0x168] sm:$0xf0]  ;;  %v5065_v0 = vld [vmem:[#allocation5 + $0x18] sm:$0xf0] }
 0x1b5   :  { %v1856_v58 = vpop.f32.mrf.mxu0  ;;  %v1880_v43 = vpop.f32.mrf.mxu1  ;;  %2135 = vmatpush.bf16.msra.mxu0 %v5244_v29  ;;  %v5236_v22 = vor.u32 %v6377_v46, %v5233_v18  ;;  %v6393_v8 = vld [vmem:[#allocation5 + $0x1e4] sm:$0xf]  ;;  %v5297_v14 = vld [vmem:[#allocation5 + $0x1e8] sm:$0xf0]  ;;  %v6375_v15 = vld [vmem:[#allocation5 + $0x154] sm:$0xf]  ;;  %v5068_v47 = vor.u32 %v6335_v51, %v5065_v0 }
 0x1b6   :  { %v1857_v53 = vadd.f32 %v1856_v58, %v7334_v30  ;;  %2004 = vmatmul.bf16.gmra.mxu2 %v7349_v2  ;;  %2028 = vmatmul.bf16.gmra.mxu3 %v7358_v49  ;;  %v5225_v32 = vld [vmem:[#allocation5 + $0x158] sm:$0xf0]  ;;  %v5300_v33 = vor.u32 %v6393_v8, %v5297_v14  ;;  %v6351_v20 = vld [vmem:[#allocation5 + $0x94] sm:$0xf]  ;;  %v7371_v58 = vpack.c.bf16 %v7275_v45, %v7240_v57  ;;  %v5057_v10 = vld [vmem:[#allocation5 + $0x8] sm:$0xf0] }
 0x1b7   :  { %2115 = vmatpush.bf16.msrb.mxu3 %v5148_v38  ;;  %2159 = vmatpush.bf16.msra.mxu1 %v5308_v17  ;;  %v5129_v23 = vld [vmem:[#allocation5 + $0x98] sm:$0xf0]  ;;  %v6391_v19 = vld [vmem:[#allocation5 + $0x1d4] sm:$0xf]  ;;  %v5228_v63 = vor.u32 %v6375_v15, %v5225_v32  ;;  %v6333_v38 = vld [vmem:[#allocation5 + $0x4] sm:$0xf] }
 0x1b8   :  { %v7361_v16 = vadd.f32 %v1880_v43, %v1857_v53  ;;  %2047 = vmatmul.bf16.vlgmr.msrb.gmra.mxu0 %v7366_v26  ;;  %2092 = vmatpush.bf16.msrb.mxu2 %v5076_v21  ;;  %v5289_v1 = vld [vmem:[#allocation5 + $0x1d8] sm:$0xf0]  ;;  %v5132_v53 = vor.u32 %v6351_v20, %v5129_v23  ;;  %v6349_v44 = vld [vmem:[#allocation5 + $0x84] sm:$0xf]  ;;  %v5121_v43 = vld [vmem:[#allocation5 + $0x88] sm:$0xf0]  ;;  %v5060_v5 = vor.u32 %v6333_v38, %v5057_v10 }
 0x1b9   :  { %2136 = vmatpush.bf16.msra.mxu0 %v5236_v22  ;;  %v5292_v50 = vor.u32 %v6391_v19, %v5289_v1  ;;  %v6373_v28 = vld [vmem:[#allocation5 + $0x144] sm:$0xf]  ;;  %v5217_v29 = vld [vmem:[#allocation5 + $0x148] sm:$0xf0]  ;;  %v788_v57 = vrot.slane %v7327_v54, 3  ;;  %v792_v45 = vrot.slane %v7336_v52, 3  ;;  %v5124_v8 = vor.u32 %v6349_v44, %v5121_v43 }
 0x1ba   :  { %v6389_v21 = vld [vmem:[#allocation5 + $0x1c4] sm:$0xf]  ;;  %v5281_v17 = vld [vmem:[#allocation5 + $0x1c8] sm:$0xf0]  ;;  %v790_v51 = vrot.slane %v7338_v11, 3  ;;  %v794_v46 = vrot.slane %v7346_v12, 3  ;;  %v5220_v18 = vor.u32 %v6373_v28, %v5217_v29 }
 0x1bb   :  { %2116 = vmatpush.bf16.msrb.mxu3 %v5140_v39  ;;  %2160 = vmatpush.bf16.msra.mxu1 %v5300_v33  ;;  %v6411_v0 = vld [vmem:[#allocation5 + $0x274] sm:$0xf]  ;;  %v789_v22 = vsel %vm767_vm4, %v783_v41, %v788_v57  ;;  %v5369_v54 = vld [vmem:[#allocation5 + $0x278] sm:$0xf0]  ;;  %v5284_v15 = vor.u32 %v6389_v21, %v5281_v17  ;;  %v793_v12 = vsel %vm767_vm4, %v788_v57, %v792_v45  ;;  %v6369_v38 = vld [vmem:[#allocation5 + $0x124] sm:$0xf] }
 0x1bc   :  { %2071 = vmatmul.bf16.vlgmr.msrb.gmra.mxu1 %v7371_v58  ;;  %2093 = vmatpush.bf16.msrb.mxu2 %v5068_v47  ;;  %v6371_v14 = vld [vmem:[#allocation5 + $0x134] sm:$0xf]  ;;  %v5209_v52 = vld [vmem:[#allocation5 + $0x138] sm:$0xf0]  ;;  %v5372_v32 = vor.u32 %v6411_v0, %v5369_v54  ;;  %v791_v33 = vsel %vm767_vm4, %v786_v60, %v790_v51  ;;  %v7389_v19 = vpack.c.bf16 %v793_v12, %v789_v22  ;;  %v5201_v10 = vld [vmem:[#allocation5 + $0x128] sm:$0xf0] }
 0x1bd   :  { %2137 = vmatpush.bf16.msra.mxu0 %v5228_v63  ;;  %v7381_v39 = vpop.f32.mrf.mxu0  ;;  %v6427_v11 = vld [vmem:[#allocation5 + $0x2f4] sm:$0xf]  ;;  %v829_v59 = vld.sshfl [vmem:[#allocation1 + $0x30] sm:$0xff pattern:$0x75316420]  ;;  %v7387_v20 = vpop.f32.mrf.mxu1  ;;  %v5212_v1 = vor.u32 %v6371_v14, %v5209_v52  ;;  %v795_v6 = vsel %vm767_vm4, %v790_v51, %v794_v46  ;;  %v5204_v0 = vor.u32 %v6369_v38, %v5201_v10 }
 0x1be   :  { %v6387_v41 = vld [vmem:[#allocation5 + $0x1b4] sm:$0xf]  ;;  %v5273_v23 = vld [vmem:[#allocation5 + $0x1b8] sm:$0xf0]  ;;  %v5361_v60 = vld [vmem:[#allocation5 + $0x268] sm:$0xf0]  ;;  %v7393_v43 = vpack.c.bf16 %v795_v6, %v791_v33 }
 0x1bf   :  { %2117 = vmatpush.bf16.msrb.mxu3 %v5132_v53  ;;  %2161 = vmatpush.bf16.msra.mxu1 %v5292_v50  ;;  %v5433_v47 = vld [vmem:[#allocation5 + $0x2f8] sm:$0xf0]  ;;  %v6409_v53 = vld [vmem:[#allocation5 + $0x264] sm:$0xf]  ;;  %v5425_v50 = vld [vmem:[#allocation5 + $0x2e8] sm:$0xf0]  ;;  %v5276_v29 = vor.u32 %v6387_v41, %v5273_v23 }
 0x1c0   :  { %2094 = vmatpush.bf16.msrb.mxu2 %v5060_v5  ;;  %v5436_v63 = vor.u32 %v6427_v11, %v5433_v47  ;;  %v6425_v44 = vld [vmem:[#allocation5 + $0x2e4] sm:$0xf]  ;;  %v823_v28 = vld.sshfl [vmem:[#allocation1 + $0x20] sm:$0xff pattern:$0x75316420]  ;;  %v5364_v45 = vor.u32 %v6409_v53, %v5361_v60 }
 0x1c1   :  { %2138 = vmatpush.bf16.msra.mxu0 %v5220_v18  ;;  %v6385_v57 = vld [vmem:[#allocation5 + $0x1a4] sm:$0xf]  ;;  %v5265_v5 = vld [vmem:[#allocation5 + $0x1a8] sm:$0xf0]  ;;  %v5428_v21 = vor.u32 %v6425_v44, %v5425_v50  ;;  %v6407_v17 = vld [vmem:[#allocation5 + $0x254] sm:$0xf]  ;;  %v7396_v51 = vpack.c.bf16 %v829_v59, %v823_v28 }
 0x1c2   :  { %v5353_v18 = vld [vmem:[#allocation5 + $0x258] sm:$0xf0]  ;;  %v830_v46 = vld.sshfl [vmem:[#allocation1 + $0x38] sm:$0xff pattern:$0x75316420]  ;;  %v5268_v11 = vor.u32 %v6385_v57, %v5265_v5 }
 0x1c3   :  { %2118 = vmatpush.bf16.msrb.mxu3 %v5124_v8  ;;  %2162 = vmatpush.bf16.msra.mxu1 %v5284_v15  ;;  %v6367_v22 = vld [vmem:[#allocation5 + $0x114] sm:$0xf]  ;;  %v5193_v8 = vld [vmem:[#allocation5 + $0x118] sm:$0xf0]  ;;  %v5356_v54 = vor.u32 %v6407_v17, %v5353_v18  ;;  %v5185_v38 = vld [vmem:[#allocation5 + $0x108] sm:$0xf0] }
 0x1c4   :  { %2183 = vmatpush.bf16.msra.mxu2 %v5372_v32  ;;  %v6423_v14 = vld [vmem:[#allocation5 + $0x2d4] sm:$0xf]  ;;  %v5417_v52 = vld [vmem:[#allocation5 + $0x2d8] sm:$0xf0]  ;;  %v6405_v53 = vld [vmem:[#allocation5 + $0x244] sm:$0xf] }
 0x1c5   :  { %2139 = vmatpush.bf16.msra.mxu0 %v5212_v1  ;;  %v824_v15 = vld.sshfl [vmem:[#allocation1 + $0x28] sm:$0xff pattern:$0x75316420]  ;;  %v6383_v41 = vld [vmem:[#allocation5 + $0x194] sm:$0xf]  ;;  %v5420_v47 = vor.u32 %v6423_v14, %v5417_v52  ;;  %v5196_v1 = vor.u32 %v6367_v22, %v5193_v8 }
 0x1c6   :  { %2009 = vmatmul.bf16.gmra.mxu2 %v7389_v19  ;;  %2033 = vmatmul.bf16.gmra.mxu3 %v7393_v43  ;;  %v7399_v12 = vpack.c.bf16 %v830_v46, %v824_v15  ;;  %v5257_v23 = vld [vmem:[#allocation5 + $0x198] sm:$0xf0]  ;;  %v5345_v6 = vld [vmem:[#allocation5 + $0x248] sm:$0xf0]  ;;  %v6421_v60 = vld [vmem:[#allocation5 + $0x2c4] sm:$0xf] }
 0x1c7   :  { %2207 = vmatpush.bf16.msra.mxu3 %v5436_v63  ;;  %2163 = vmatpush.bf16.msra.mxu1 %v5276_v29  ;;  %v6365_v63 = vld [vmem:[#allocation5 + $0x104] sm:$0xf]  ;;  %v5260_v44 = vor.u32 %v6383_v41, %v5257_v23  ;;  %v5348_v50 = vor.u32 %v6405_v53, %v5345_v6  ;;  %v5409_v28 = vld [vmem:[#allocation5 + $0x2c8] sm:$0xf0]  ;;  %v6403_v29 = vld [vmem:[#allocation5 + $0x234] sm:$0xf] }
 0x1c8   :  { %2184 = vmatpush.bf16.msra.mxu2 %v5364_v45  ;;  %2052 = vmatmul.bf16.gmra.mxu0 %v7396_v51  ;;  %v5337_v57 = vld [vmem:[#allocation5 + $0x238] sm:$0xf0]  ;;  %v6381_v45 = vld [vmem:[#allocation5 + $0x184] sm:$0xf]  ;;  %v5249_v5 = vld [vmem:[#allocation5 + $0x188] sm:$0xf0]  ;;  %v5188_v17 = vor.u32 %v6365_v63, %v5185_v38 }
 0x1c9   :  { %2140 = vmatpush.bf16.msra.mxu0 %v5204_v0  ;;  %v6419_v18 = vld [vmem:[#allocation5 + $0x2b4] sm:$0xf]  ;;  %v5401_v46 = vld [vmem:[#allocation5 + $0x2b8] sm:$0xf0]  ;;  %v5340_v0 = vor.u32 %v6403_v29, %v5337_v57  ;;  %v5252_v22 = vor.u32 %v6381_v45, %v5249_v5  ;;  %v6401_v8 = vld [vmem:[#allocation5 + $0x224] sm:$0xf] }
 0x1ca   :  { %v5404_v52 = vor.u32 %v6419_v18, %v5401_v46  ;;  %v837_v15 = vld.sshfl [vmem:[#allocation1 + $0x10] sm:$0xff pattern:$0x75316420]  ;;  %v838_v41 = vld.sshfl [vmem:[#allocation1 + $0x18] sm:$0xff pattern:$0x75316420] }
 0x1cb   :  { %v1861_v32 = vpop.f32.mrf.mxu0  ;;  %v1885_v59 = vpop.f32.mrf.mxu1  ;;  %2208 = vmatpush.bf16.msra.mxu3 %v5428_v21  ;;  %2164 = vmatpush.bf16.msra.mxu1 %v5268_v11  ;;  %v5412_v21 = vor.u32 %v6421_v60, %v5409_v28  ;;  %v836_v23 = vld.sshfl [vmem:[#allocation1 + $0x8] sm:$0xff pattern:$0x75316420]  ;;  %v5393_v38 = vld [vmem:[#allocation5 + $0x2a8] sm:$0xf0] }
 0x1cc   :  { %v1862_v33 = vadd.f32 %v1861_v32, %v7334_v30  ;;  %2076 = vmatmul.bf16.gmra.mxu1 %v7399_v12  ;;  %2185 = vmatpush.bf16.msra.mxu2 %v5356_v54  ;;  %v5329_v54 = vld [vmem:[#allocation5 + $0x228] sm:$0xf0]  ;;  %v6417_v63 = vld [vmem:[#allocation5 + $0x2a4] sm:$0xf]  ;;  %v5497_v60 = vld [vmem:[#allocation5 + $0x378] sm:$0xf0] }
 0x1cd   :  { %2141 = vmatpush.bf16.msra.mxu0 %v5196_v1  ;;  %v5332_v11 = vor.u32 %v6401_v8, %v5329_v54  ;;  %v5396_v6 = vor.u32 %v6417_v63, %v5393_v38  ;;  %v6399_v57 = vld [vmem:[#allocation5 + $0x214] sm:$0xf]  ;;  %v5321_v45 = vld [vmem:[#allocation5 + $0x218] sm:$0xf0]  ;;  %v6441_v5 = vld [vmem:[#allocation5 + $0x364] sm:$0xf] }
 0x1ce   :  { %v7403_v10 = vadd.f32 %v1885_v59, %v1862_v33  ;;  %v835_v33 = vld.sshfl [vmem:[#allocation1] sm:$0xff pattern:$0x75316420]  ;;  %v5489_v18 = vld [vmem:[#allocation5 + $0x368] sm:$0xf0] }
 0x1cf   :  { %2209 = vmatpush.bf16.msra.mxu3 %v5420_v47  ;;  %2165 = vmatpush.bf16.msra.mxu1 %v5260_v44  ;;  %v7410_v59 = vpack.c.bf16 %v837_v15, %v835_v33  ;;  %v7414_v47 = vpack.c.bf16 %v838_v41, %v836_v23  ;;  %v6459_v44 = vld [vmem:[#allocation5 + $0x3f4] sm:$0xf]  ;;  %v6457_v46 = vld [vmem:[#allocation5 + $0x3e4] sm:$0xf]  ;;  %v5481_v33 = vld [vmem:[#allocation5 + $0x358] sm:$0xf0] }
 0x1d0   :  { %2186 = vmatpush.bf16.msra.mxu2 %v5348_v50  ;;  %v5561_v50 = vld [vmem:[#allocation5 + $0x3f8] sm:$0xf0]  ;;  %v6415_v54 = vld [vmem:[#allocation5 + $0x294] sm:$0xf]  ;;  %v5313_v63 = vld [vmem:[#allocation5 + $0x208] sm:$0xf0] }
 0x1d1   :  { %2142 = vmatpush.bf16.msra.mxu0 %v5188_v17  ;;  %v5564_v29 = vor.u32 %v6459_v44, %v5561_v50  ;;  %v5324_v17 = vor.u32 %v6399_v57, %v5321_v45  ;;  %v6439_v15 = vld [vmem:[#allocation5 + $0x354] sm:$0xf]  ;;  %v5545_v23 = vld [vmem:[#allocation5 + $0x3d8] sm:$0xf0]  ;;  %v6413_v38 = vld [vmem:[#allocation5 + $0x284] sm:$0xf] }
 0x1d2   :  { %v6455_v41 = vld [vmem:[#allocation5 + $0x3d4] sm:$0xf]  ;;  %v6437_v50 = vld [vmem:[#allocation5 + $0x344] sm:$0xf]  ;;  %v5537_v57 = vld [vmem:[#allocation5 + $0x3c8] sm:$0xf0] }
 0x1d3   :  { %v7405_v14 = vpop.f32.mrf.mxu0  ;;  %2210 = vmatpush.bf16.msra.mxu3 %v5412_v21  ;;  %v7407_v32 = vpop.f32.mrf.mxu1  ;;  %2166 = vmatpush.bf16.msra.mxu1 %v5252_v22  ;;  %v5492_v22 = vor.u32 %v6441_v5, %v5489_v18  ;;  %v6475_v5 = vld [vmem:[#allocation5 + $0x474] sm:$0xf] }
 0x1d4   :  { %2187 = vmatpush.bf16.msra.mxu2 %v5340_v0  ;;  %v5553_v0 = vld [vmem:[#allocation5 + $0x3e8] sm:$0xf0] }
 0x1d5   :  { %v5556_v8 = vor.u32 %v6457_v46, %v5553_v0  ;;  %v5465_v46 = vld [vmem:[#allocation5 + $0x338] sm:$0xf0] }
 0x1d6   :  { %2095 = vmatmul.bf16.vlgmr.msrb.gmra.mxu2 %v6980_v55  ;;  %2119 = vmatmul.bf16.vlgmr.msrb.gmra.mxu3 %v6982_v56  ;;  %v6443_v55 = vld [vmem:[#allocation5 + $0x374] sm:$0xf]  ;;  %v5529_v0 = vld [vmem:[#allocation5 + $0x3b8] sm:$0xf0] }
 0x1d7   :  { %2211 = vmatpush.bf16.msra.mxu3 %v5404_v52  ;;  %v5500_v56 = vor.u32 %v6443_v55, %v5497_v60  ;;  %2255 = vmatpush.bf16.msrb.mxu1 %v5564_v29  ;;  %v5385_v52 = vld [vmem:[#allocation5 + $0x298] sm:$0xf0]  ;;  %v5548_v60 = vor.u32 %v6455_v41, %v5545_v23  ;;  %v6433_v23 = vld [vmem:[#allocation5 + $0x324] sm:$0xf] }
 0x1d8   :  { %2188 = vmatpush.bf16.msra.mxu2 %v5332_v11  ;;  %2057 = vmatmul.bf16.gmra.mxu0 %v7410_v59  ;;  %v5388_v11 = vor.u32 %v6415_v54, %v5385_v52  ;;  %v5689_v54 = vld [vmem:[#allocation5 + $0x4f8] sm:$0xf0] }
 0x1d9   :  { %2231 = vmatpush.bf16.msrb.mxu0 %v5500_v56  ;;  %v6453_v56 = vld [vmem:[#allocation5 + $0x3c4] sm:$0xf] }
 0x1da   :  { %v5540_v45 = vor.u32 %v6453_v56, %v5537_v57  ;;  %v5513_v57 = vld [vmem:[#allocation5 + $0x398] sm:$0xf0] }
 0x1db   :  { %2212 = vmatpush.bf16.msra.mxu3 %v5396_v6  ;;  %2256 = vmatpush.bf16.msrb.mxu1 %v5556_v8  ;;  %v5484_v6 = vor.u32 %v6439_v15, %v5481_v33  ;;  %v6491_v8 = vld [vmem:[#allocation5 + $0x4f4] sm:$0xf]  ;;  %v1859_v33 = vadd.f32 %v7381_v39, %v7334_v30  ;;  %v5449_v39 = vld [vmem:[#allocation5 + $0x318] sm:$0xf0] }
 0x1dc   :  { %2081 = vmatmul.bf16.gmra.mxu1 %v7414_v47  ;;  %2189 = vmatpush.bf16.msra.mxu2 %v5324_v17  ;;  %v5625_v17 = vld [vmem:[#allocation5 + $0x478] sm:$0xf0]  ;;  %v5692_v15 = vor.u32 %v6491_v8, %v5689_v54  ;;  %v6445_v8 = vld [vmem:[#allocation5 + $0x384] sm:$0xf] }
 0x1dd   :  { %2232 = vmatpush.bf16.msrb.mxu0 %v5492_v22  ;;  %v5628_v18 = vor.u32 %v6475_v5, %v5625_v17 }
 0x1de   :  { %v1866_v1 = vpop.f32.mrf.mxu0 }
 0x1df   :  { %v1867_v53 = vadd.f32 %v1866_v1, %v7334_v30  ;;  %v1890_v28 = vpop.f32.mrf.mxu1  ;;  %v6397_v1 = vld [vmem:[#allocation5 + $0x204] sm:$0xf]  ;;  %2213 = vmatpush.bf16.msra.mxu3 %v5388_v11  ;;  %2257 = vmatpush.bf16.msrb.mxu1 %v5548_v60 }
 0x1e0   :  { %v5316_v55 = vor.u32 %v6397_v1, %v5313_v63  ;;  %v5457_v1 = vld [vmem:[#allocation5 + $0x328] sm:$0xf0]  ;;  %v6449_v63 = vld [vmem:[#allocation5 + $0x3a4] sm:$0xf] }
 0x1e1   :  { %v7418_v21 = vadd.f32 %v1890_v28, %v1867_v53  ;;  %v5377_v53 = vld [vmem:[#allocation5 + $0x288] sm:$0xf0]  ;;  %2233 = vmatpush.bf16.msrb.mxu0 %v5484_v6 }
 0x1e2   :  { %v5380_v44 = vor.u32 %v6413_v38, %v5377_v53  ;;  %2190 = vmatpush.bf16.msra.mxu2 %v5316_v55  ;;  %v5473_v28 = vld [vmem:[#allocation5 + $0x348] sm:$0xf0]  ;;  %v5460_v38 = vor.u32 %v6433_v23, %v5457_v1  ;;  %v6473_v53 = vld [vmem:[#allocation5 + $0x464] sm:$0xf] }
 0x1e3   :  { %v5476_v29 = vor.u32 %v6437_v50, %v5473_v28  ;;  %2258 = vmatpush.bf16.msrb.mxu1 %v5540_v45  ;;  %v5521_v55 = vld [vmem:[#allocation5 + $0x3a8] sm:$0xf0]  ;;  %v6489_v50 = vld [vmem:[#allocation5 + $0x4e4] sm:$0xf]  ;;  %v6431_v28 = vld [vmem:[#allocation5 + $0x314] sm:$0xf]  ;;  %v1883_v45 = vadd.f32 %v7387_v20, %v1859_v33 }
 0x1e4   :  { %2214 = vmatpush.bf16.msra.mxu3 %v5380_v44  ;;  %v5617_v6 = vld [vmem:[#allocation5 + $0x468] sm:$0xf0]  ;;  %v5524_v60 = vor.u32 %v6449_v63, %v5521_v55  ;;  %v5452_v5 = vor.u32 %v6431_v28, %v5449_v39  ;;  %v6429_v20 = vld [vmem:[#allocation5 + $0x304] sm:$0xf]  ;;  %v5593_v28 = vld [vmem:[#allocation5 + $0x438] sm:$0xf0] }
 0x1e5   :  { %2234 = vmatpush.bf16.msrb.mxu0 %v5476_v29  ;;  %v5620_v44 = vor.u32 %v6473_v53, %v5617_v6  ;;  %v6447_v29 = vld [vmem:[#allocation5 + $0x394] sm:$0xf]  ;;  %v6469_v33 = vld [vmem:[#allocation5 + $0x444] sm:$0xf]  ;;  %v5601_v23 = vld [vmem:[#allocation5 + $0x448] sm:$0xf0] }
 0x1e6   :  { %2100 = vmatmul.bf16.gmra.mxu2 %v7010_v36  ;;  %2124 = vmatmul.bf16.gmra.mxu3 %v7012_v37  ;;  %v6435_v36 = vld [vmem:[#allocation5 + $0x334] sm:$0xf]  ;;  %v5516_v17 = vor.u32 %v6447_v29, %v5513_v57  ;;  %v5604_v1 = vor.u32 %v6469_v33, %v5601_v23  ;;  %v5665_v63 = vld [vmem:[#allocation5 + $0x4c8] sm:$0xf0]  ;;  %v5657_v29 = vld [vmem:[#allocation5 + $0x4b8] sm:$0xf0] }
 0x1e7   :  { %v6451_v37 = vld [vmem:[#allocation5 + $0x3b4] sm:$0xf]  ;;  %v5468_v22 = vor.u32 %v6435_v36, %v5465_v46  ;;  %2279 = vmatpush.bf16.msrb.mxu2 %v5628_v18  ;;  %v5609_v18 = vld [vmem:[#allocation5 + $0x458] sm:$0xf0]  ;;  %v6461_v23 = vld [vmem:[#allocation5 + $0x404] sm:$0xf] }
 0x1e8   :  { %2143 = vmatmul.bf16.vlgmr.msra.gmra.mxu0 %v7083_v24  ;;  %v5532_v24 = vor.u32 %v6451_v37, %v5529_v0  ;;  %2303 = vmatpush.bf16.msrb.mxu3 %v5692_v15  ;;  %v6471_v36 = vld [vmem:[#allocation5 + $0x454] sm:$0xf]  ;;  %v5641_v33 = vld [vmem:[#allocation5 + $0x498] sm:$0xf0] }
 0x1e9   :  { %2235 = vmatpush.bf16.msrb.mxu0 %v5468_v22  ;;  %v5612_v37 = vor.u32 %v6471_v36, %v5609_v18  ;;  %v6487_v15 = vld [vmem:[#allocation5 + $0x4d4] sm:$0xf] }
 0x1ea   :  { %2259 = vmatpush.bf16.msrb.mxu1 %v5532_v24  ;;  %v5441_v24 = vld [vmem:[#allocation5 + $0x308] sm:$0xf0] }
 0x1eb   :  { %2280 = vmatpush.bf16.msrb.mxu2 %v5620_v44  ;;  %v5444_v54 = vor.u32 %v6429_v20, %v5441_v24  ;;  %v5585_v20 = vld [vmem:[#allocation5 + $0x428] sm:$0xf0] }
 0x1ec   :  { %2167 = vmatmul.bf16.vlgmr.msra.gmra.mxu1 %v7094_v48 }
 0x1ed   :  { %2236 = vmatpush.bf16.msrb.mxu0 %v5460_v38  ;;  %v1868_v38 = vpop.f32.mrf.mxu0 }
 0x1ee   :  { %2260 = vmatpush.bf16.msrb.mxu1 %v5524_v60  ;;  %v1892_v60 = vpop.f32.mrf.mxu1 }
 0x1ef   :  { %2281 = vmatpush.bf16.msrb.mxu2 %v5612_v37 }
 0x1f1   :  { %v1904_v52 = vpop.f32.mrf.mxu2  ;;  %2237 = vmatpush.bf16.msrb.mxu0 %v5452_v5 }
 0x1f2   :  { %v1905_v11 = vadd.f32 %v1904_v52, %v7361_v16  ;;  %v1928_v48 = vpop.f32.mrf.mxu3  ;;  %v5681_v16 = vld [vmem:[#allocation5 + $0x4e8] sm:$0xf0]  ;;  %2261 = vmatpush.bf16.msrb.mxu1 %v5516_v17 }
 0x1f3   :  { %v5684_v56 = vor.u32 %v6489_v50, %v5681_v16  ;;  %v5505_v52 = vld [vmem:[#allocation5 + $0x388] sm:$0xf0]  ;;  %2282 = vmatpush.bf16.msrb.mxu2 %v5604_v1  ;;  %v6467_v16 = vld [vmem:[#allocation5 + $0x434] sm:$0xf] }
 0x1f4   :  { %v7427_v41 = vadd.f32 %v1928_v48, %v1905_v11  ;;  %v5673_v11 = vld [vmem:[#allocation5 + $0x4d8] sm:$0xf0]  ;;  %v5596_v39 = vor.u32 %v6467_v16, %v5593_v28  ;;  %v5569_v1 = vld [vmem:[#allocation5 + $0x408] sm:$0xf0] }
 0x1f5   :  { %2304 = vmatpush.bf16.msrb.mxu3 %v5684_v56  ;;  %v5676_v48 = vor.u32 %v6487_v15, %v5673_v11  ;;  %2238 = vmatpush.bf16.msrb.mxu0 %v5444_v54  ;;  %v6483_v56 = vld [vmem:[#allocation5 + $0x4b4] sm:$0xf]  ;;  %v5577_v54 = vld [vmem:[#allocation5 + $0x418] sm:$0xf0] }
 0x1f6   :  { %2105 = vmatmul.bf16.gmra.mxu2 %v7044_v31  ;;  %2129 = vmatmul.bf16.gmra.mxu3 %v7049_v40  ;;  %v5508_v40 = vor.u32 %v6445_v8, %v5505_v52  ;;  %v5660_v57 = vor.u32 %v6483_v56, %v5657_v29  ;;  %v5649_v8 = vld [vmem:[#allocation5 + $0x4a8] sm:$0xf0] }
 0x1f7   :  { %2283 = vmatpush.bf16.msrb.mxu2 %v5596_v39 }
 0x1f8   :  { %2148 = vmatmul.bf16.gmra.mxu0 %v7145_v34  ;;  %v6485_v34 = vld [vmem:[#allocation5 + $0x4c4] sm:$0xf]  ;;  %2262 = vmatpush.bf16.msrb.mxu1 %v5508_v40 }
 0x1f9   :  { %v1906_v46 = vpop.f32.mrf.mxu2  ;;  %2305 = vmatpush.bf16.msrb.mxu3 %v5676_v48  ;;  %v5668_v53 = vor.u32 %v6485_v34, %v5665_v63  ;;  %v6479_v48 = vld [vmem:[#allocation5 + $0x494] sm:$0xf]  ;;  %v5633_v63 = vld [vmem:[#allocation5 + $0x488] sm:$0xf0] }
 0x1fa   :  { %v1907_v0 = vadd.f32 %v1906_v46, %v1883_v45  ;;  %v1930_v31 = vpop.f32.mrf.mxu3  ;;  %v9427_v45 = vld [vmem:[#allocation15_spill] sm:$0xff]  ;;  %v5644_v34 = vor.u32 %v6479_v48, %v5641_v33 }
 0x1fc   :  { %v7433_v22 = vadd.f32 %v1930_v31, %v1907_v0  ;;  %2172 = vmatmul.bf16.gmra.mxu1 %v7158_v7  ;;  %v1864_v7 = vadd.f32 %v7405_v14, %v7334_v30  ;;  %v6465_v31 = vld [vmem:[#allocation5 + $0x424] sm:$0xf] }
 0x1fd   :  { %2306 = vmatpush.bf16.msrb.mxu3 %v5668_v53  ;;  %v5588_v24 = vor.u32 %v6465_v31, %v5585_v20  ;;  %v1869_v53 = vadd.f32 %v1868_v38, %v7334_v30 }
 0x1fe   :  { %v1888_v5 = vadd.f32 %v7407_v32, %v1864_v7  ;;  %v6481_v32 = vld [vmem:[#allocation5 + $0x4a4] sm:$0xf] }
 0x1ff   :  { %2284 = vmatpush.bf16.msrb.mxu2 %v5588_v24  ;;  %v1893_v56 = vadd.f32 %v1892_v60, %v1869_v53 }
 0x200   :  { %v1952_v17 = vpop.f32.mrf.mxu0 }
 0x201   :  { %v1909_v55 = vpop.f32.mrf.mxu2  ;;  %2307 = vmatpush.bf16.msrb.mxu3 %v5660_v57  ;;  %v1976_v18 = vpop.f32.mrf.mxu1 }
 0x202   :  { %v1910_v6 = vadd.f32 %v1909_v55, %v7403_v10  ;;  %v1933_v44 = vpop.f32.mrf.mxu3  ;;  %v1953_v10 = vadd.f32 %v1952_v17, %v7427_v41  ;;  %v6463_v41 = vld [vmem:[#allocation5 + $0x414] sm:$0xf]  ;;  %v5572_v55 = vor.u32 %v6461_v23, %v5569_v1 }
 0x203   :  { %v5580_v15 = vor.u32 %v6463_v41, %v5577_v54 }
 0x204   :  { %v1934_v50 = vadd.f32 %v1933_v44, %v1910_v6  ;;  %v1977_v37 = vadd.f32 %v1976_v18, %v1953_v10 }
 0x205   :  { %2285 = vmatpush.bf16.msrb.mxu2 %v5580_v15 }
 0x206   :  { %2191 = vmatmul.bf16.vlgmr.msra.gmra.mxu2 %v9427_v45  ;;  %2215 = vmatmul.bf16.vlgmr.msra.gmra.mxu3 %v7212_v13  ;;  %v5652_v13 = vor.u32 %v6481_v32, %v5649_v8 }
 0x208   :  { %2153 = vmatmul.bf16.gmra.mxu0 %v7221_v3  ;;  %v1954_v52 = vpop.f32.mrf.mxu0  ;;  %2308 = vmatpush.bf16.msrb.mxu3 %v5652_v13 }
 0x209   :  { %v1911_v36 = vpop.f32.mrf.mxu2  ;;  %v1978_v3 = vpop.f32.mrf.mxu1  ;;  %2286 = vmatpush.bf16.msrb.mxu2 %v5572_v55 }
 0x20a   :  { %v1912_v14 = vadd.f32 %v1911_v36, %v1888_v5  ;;  %v1935_v46 = vpop.f32.mrf.mxu3 }
 0x20c   :  { %v7444_v0 = vadd.f32 %v1935_v46, %v1912_v14  ;;  %2177 = vmatmul.bf16.gmra.mxu1 %v7242_v61  ;;  %v6477_v61 = vld [vmem:[#allocation5 + $0x484] sm:$0xf]  ;;  %2309 = vmatpush.bf16.msrb.mxu3 %v5644_v34  ;;  %v1955_v46 = vadd.f32 %v1954_v52, %v7433_v22 }
 0x20d   :  { %v5636_v6 = vor.u32 %v6477_v61, %v5633_v63 }
 0x20e   :  { %v1979_v31 = vadd.f32 %v1978_v3, %v1955_v46 }
 0x210   :  { %2310 = vmatpush.bf16.msrb.mxu3 %v5636_v6 }
 0x212   :  { %v1914_v11 = vpop.f32.mrf.mxu2 }
 0x213   :  { %v1915_v40 = vadd.f32 %v1914_v11, %v7418_v21 }
 0x215   :  { %v1957_v44 = vpop.f32.mrf.mxu0  ;;  %v1938_v7 = vpop.f32.mrf.mxu3 }
 0x216   :  { %2196 = vmatmul.bf16.gmra.mxu2 %v7261_v4  ;;  %v1958_v16 = vadd.f32 %v1957_v44, %v1934_v50  ;;  %2220 = vmatmul.bf16.gmra.mxu3 %v7270_v9  ;;  %v1939_v21 = vadd.f32 %v1938_v7, %v1915_v40 }
 0x218   :  { %2239 = vmatmul.bf16.vlgmr.msrb.gmra.mxu0 %v7293_v27 }
 0x219   :  { %v1981_v39 = vpop.f32.mrf.mxu1 }
 0x21a   :  { %v1916_v28 = vpop.f32.mrf.mxu2  ;;  %v1982_v29 = vadd.f32 %v1981_v39, %v1958_v16 }
 0x21b   :  { %v1917_v57 = vadd.f32 %v1916_v28, %v1893_v56 }
 0x21c   :  { %2263 = vmatmul.bf16.vlgmr.msrb.gmra.mxu1 %v7303_v35 }
 0x21d   :  { %v1959_v4 = vpop.f32.mrf.mxu0  ;;  %v1940_v30 = vpop.f32.mrf.mxu3 }
 0x21e   :  { %v7453_v38 = vadd.f32 %v1940_v30, %v1917_v57 }
 0x221   :  { %v1983_v45 = vpop.f32.mrf.mxu1 }
 0x225   :  { %v1962_v50 = vpop.f32.mrf.mxu0 }
 0x226   :  { %2201 = vmatmul.bf16.gmra.mxu2 %v7306_v25  ;;  %v1963_v9 = vadd.f32 %v1962_v50, %v1939_v21  ;;  %2225 = vmatmul.bf16.gmra.mxu3 %v7314_v42 }
 0x228   :  { %2244 = vmatmul.bf16.gmra.mxu0 %v7349_v2 }
 0x229   :  { %v2000_v60 = vpop.f32.mrf.mxu2  ;;  %v1986_v5 = vpop.f32.mrf.mxu1 }
 0x22a   :  { %v2001_v27 = vadd.f32 %v2000_v60, %v1977_v37  ;;  %v1987_v17 = vadd.f32 %v1986_v5, %v1963_v9  ;;  %v2024_v10 = vpop.f32.mrf.mxu3 }
 0x22c   :  { %v2025_v36 = vadd.f32 %v2024_v10, %v2001_v27  ;;  %2268 = vmatmul.bf16.gmra.mxu1 %v7358_v49 }
 0x22d   :  { %v7459_v35 = vpop.f32.mrf.mxu0 }
 0x22e   :  { %v1965_v10 = vadd.f32 %v7459_v35, %v7453_v38 }
 0x231   :  { %v2002_v14 = vpop.f32.mrf.mxu2  ;;  %v7461_v18 = vpop.f32.mrf.mxu1 }
 0x232   :  { %v2026_v25 = vpop.f32.mrf.mxu3  ;;  %v2003_v37 = vadd.f32 %v2002_v14, %v1979_v31  ;;  %v7525_v14 = vperm.slane %v7324_v62, 1  ;;  %v1989_v46 = vadd.f32 %v7461_v18, %v1965_v10 }
 0x234   :  { %v2027_v22 = vadd.f32 %v2026_v25, %v2003_v37 }
 0x235   :  { %v2048_v42 = vpop.f32.mrf.mxu0 }
 0x236   :  { %2287 = vmatmul.bf16.vlgmr.msrb.gmra.mxu2 %v7366_v26  ;;  %v2049_v20 = vadd.f32 %v2048_v42, %v2025_v36  ;;  %2311 = vmatmul.bf16.vlgmr.msrb.gmra.mxu3 %v7371_v58 }
 0x238   :  { %2249 = vmatmul.bf16.gmra.mxu0 %v7389_v19  ;;  %v1960_v19 = vadd.f32 %v1959_v4, %v7444_v0 }
 0x239   :  { %v2005_v2 = vpop.f32.mrf.mxu2  ;;  %v2072_v24 = vpop.f32.mrf.mxu1 }
 0x23a   :  { %v2006_v49 = vadd.f32 %v2005_v2, %v1982_v29  ;;  %v7467_v32 = vadd.f32 %v2072_v24, %v2049_v20  ;;  %v2029_v8 = vpop.f32.mrf.mxu3  ;;  %v1984_v55 = vadd.f32 %v1983_v45, %v1960_v19 }
 0x23c   :  { %v2030_v41 = vadd.f32 %v2029_v8, %v2006_v49  ;;  %2273 = vmatmul.bf16.gmra.mxu1 %v7393_v43  ;;  %v2399_v11 = vrot.slane %v7467_v32, 4  ;;  %v2339_v53 = vrot.slane %v7467_v32, 1  ;;  %v2359_v6 = vrot.slane %v7467_v32, 2 }
 0x23d   :  { %v2050_v13 = vpop.f32.mrf.mxu0  ;;  %v2379_v44 = vrot.slane %v7467_v32, 3 }
 0x23e   :  { %v2051_v26 = vadd.f32 %v2050_v13, %v2027_v22 }
 0x241   :  { %v2007_v54 = vpop.f32.mrf.mxu2  ;;  %v2074_v52 = vpop.f32.mrf.mxu1 }
 0x242   :  { %v7470_v15 = vadd.f32 %v2074_v52, %v2051_v26  ;;  %v2031_v58 = vpop.f32.mrf.mxu3  ;;  %v2008_v56 = vadd.f32 %v2007_v54, %v1984_v55 }
 0x244   :  { %v2400_v3 = vrot.slane %v7470_v15, 4  ;;  %v2340_v23 = vrot.slane %v7470_v15, 1  ;;  %v2360_v34 = vrot.slane %v7470_v15, 2  ;;  %v2380_v1 = vrot.slane %v7470_v15, 3 }
 0x245   :  { %v2053_v43 = vpop.f32.mrf.mxu0  ;;  %v2032_v27 = vadd.f32 %v2031_v58, %v2008_v56 }
 0x246   :  { %2292 = vmatmul.bf16.gmra.mxu2 %v7396_v51  ;;  %v7477_v40 = vsel %vm206_vm2, %v2399_v11, %v2400_v3  ;;  %v2054_v48 = vadd.f32 %v2053_v43, %v2030_v41  ;;  %2316 = vmatmul.bf16.gmra.mxu3 %v7399_v12  ;;  %v7493_v39 = vsel %vm613_vm1, %v2339_v53, %v2340_v23 }
 0x247   :  { %v7496_v29 = vsel %vm690_vm3, %v2359_v6, %v2360_v34  ;;  %v7499_v57 = vsel %vm767_vm4, %v2379_v44, %v2380_v1 }
 0x249   :  { %v2010_v33 = vpop.f32.mrf.mxu2  ;;  %v2077_v61 = vpop.f32.mrf.mxu1 }
 0x24a   :  { %v2011_v63 = vadd.f32 %v2010_v33, %v1987_v17  ;;  %v7483_v51 = vadd.f32 %v2077_v61, %v2054_v48  ;;  %v2034_v0 = vpop.f32.mrf.mxu3 }
 0x24c   :  { %v2035_v12 = vadd.f32 %v2034_v0, %v2011_v63  ;;  %v9258_v7 = vrot.slane %v7483_v51, 1  ;;  %v9257_v16 = vrot.slane %v7483_v51, 2  ;;  %v9256_v21 = vrot.slane %v7483_v51, 3 }
 0x24d   :  { %v9255_v28 = vrot.slane %v7483_v51, 4  ;;  %v2055_v9 = vpop.f32.mrf.mxu0 }
 0x24e   :  { %v7504_v4 = vsel %vm613_vm1, %v2340_v23, %v9258_v7  ;;  %v7509_v30 = vsel %vm690_vm3, %v2360_v34, %v9257_v16  ;;  %v7514_v45 = vsel %vm767_vm4, %v2380_v1, %v9256_v21  ;;  %v2056_v36 = vadd.f32 %v2055_v9, %v2032_v27  ;;  %v5871_v7 = vld [vmem:[#allocation7 + $0x160] sm:$0xf] }
 0x24f   :  { %v7519_v50 = vsel %vm206_vm2, %v2400_v3, %v9255_v28 }
 0x251   :  { %v2012_v60 = vpop.f32.mrf.mxu2  ;;  %v2079_v5 = vpop.f32.mrf.mxu1 }
 0x252   :  { %v2036_v17 = vpop.f32.mrf.mxu3  ;;  %v7529_v31 = vadd.f32 %v2079_v5, %v2056_v36  ;;  %v2013_v2 = vadd.f32 %v2012_v60, %v1989_v46 }
 0x254   :  { %v2409_v62 = vrot.slane %v7529_v31, 4  ;;  %v2037_v18 = vadd.f32 %v2036_v17, %v2013_v2  ;;  %v2349_v3 = vrot.slane %v7529_v31, 1  ;;  %v2369_v19 = vrot.slane %v7529_v31, 2 }
 0x255   :  { %v2058_v25 = vpop.f32.mrf.mxu0  ;;  %v2389_v43 = vrot.slane %v7529_v31, 3 }
 0x256   :  { %2297 = vmatmul.bf16.gmra.mxu2 %v7410_v59  ;;  %v2059_v42 = vadd.f32 %v2058_v25, %v2035_v12  ;;  %2321 = vmatmul.bf16.gmra.mxu3 %v7414_v47 }
 0x259   :  { %v2096_v20 = vpop.f32.mrf.mxu2  ;;  %v2082_v37 = vpop.f32.mrf.mxu1 }
 0x25a   :  { %v2097_v24 = vadd.f32 %v2096_v20, %v7525_v14  ;;  %v7532_v38 = vadd.f32 %v2082_v37, %v2059_v42  ;;  %v2120_v35 = vpop.f32.mrf.mxu3 }
 0x25c   :  { %v7534_v59 = vadd.f32 %v2120_v35, %v2097_v24  ;;  %v2410_v49 = vrot.slane %v7532_v38, 4  ;;  %v2350_v13 = vrot.slane %v7532_v38, 1  ;;  %v2370_v26 = vrot.slane %v7532_v38, 2 }
 0x25d   :  { %v2060_v47 = vpop.f32.mrf.mxu0  ;;  %v2390_v54 = vrot.slane %v7532_v38, 3 }
 0x25e   :  { %v7539_v8 = vsel %vm206_vm2, %v2409_v62, %v2410_v49  ;;  %v2061_v41 = vadd.f32 %v2060_v47, %v2037_v18  ;;  %v7558_v1 = vsel %vm613_vm1, %v2349_v3, %v2350_v13  ;;  %v7561_v61 = vsel %vm690_vm3, %v2369_v19, %v2370_v26 }
 0x25f   :  { %v7564_v63 = vsel %vm767_vm4, %v2389_v43, %v2390_v54 }
 0x261   :  { %v7541_v22 = vpop.f32.mrf.mxu2  ;;  %v2084_v52 = vpop.f32.mrf.mxu1 }
 0x262   :  { %v7546_v58 = vadd.f32 %v2084_v52, %v2061_v41  ;;  %v7548_v11 = vpop.f32.mrf.mxu3 }
 0x264   :  { %9428 = vst [vmem:[#allocation15_spill] sm:$0xff] %v7546_v58  ;;  %v9253_v48 = vrot.slane %v7546_v58, 1  ;;  %v9251_v33 = vrot.slane %v7546_v58, 2  ;;  %v9254_v23 = vrot.slane %v7546_v58, 3  ;;  %v9252_v34 = vrot.slane %v7546_v58, 4 }
 0x265   :  { %v7586_v44 = vpop.f32.mrf.mxu0 }
 0x266   :  { %v7569_v55 = vsel %vm613_vm1, %v2350_v13, %v9253_v48  ;;  %v7574_v0 = vsel %vm690_vm3, %v2370_v26, %v9251_v33  ;;  %v7579_v53 = vsel %vm767_vm4, %v2390_v54, %v9254_v23  ;;  %v7584_v6 = vsel %vm206_vm2, %v2410_v49, %v9252_v34  ;;  %v5943_v33 = vld [vmem:[#allocation7 + $0x1f0] sm:$0xf]  ;;  %v6556_v34 = vld [vmem:[#allocation7 + $0x1f4] sm:$0xf0] }
 0x267   :  { %9429 = vst [vmem:[#allocation16_spill] sm:$0xff] %v7569_v55  ;;  %v7634_v23 = vor.u32 %v6556_v34, %v5943_v33  ;;  %v5743_v33 = vld [vmem:[#allocation7 + $0x60] sm:$0xf]  ;;  %v6506_v34 = vld [vmem:[#allocation7 + $0x64] sm:$0xf0] }
 0x268   :  { %9430 = vst [vmem:[#allocation17_spill] sm:$0xff] %v7574_v0  ;;  %v6522_v55 = vld [vmem:[#allocation7 + $0xe4] sm:$0xf0] }
 0x269   :  { %9431 = vst [vmem:[#allocation18_spill] sm:$0xff] %v7579_v53  ;;  %v2101_v12 = vpop.f32.mrf.mxu2  ;;  %v7588_v56 = vpop.f32.mrf.mxu1  ;;  %3735 = vmatpush.bf16.msra.mxu3 %v7634_v23  ;;  %v5807_v53 = vld [vmem:[#allocation7 + $0xe0] sm:$0xf] }
 0x26a   :  { %9432 = vst [vmem:[#allocation19_spill] sm:$0xff] %v7584_v6  ;;  %v2102_v9 = vadd.f32 %v2101_v12, %v7525_v14  ;;  %v2125_v60 = vpop.f32.mrf.mxu3 }
 0x26b   :  { %9435 = vst [vmem:[#allocation22_spill] sm:$0xff] %v7634_v23  ;;  %v6554_v23 = vld [vmem:[#allocation7 + $0x1e4] sm:$0xf0] }
 0x26c   :  { %v7591_v5 = vadd.f32 %v2125_v60, %v2102_v9  ;;  %v5879_v9 = vld [vmem:[#allocation7 + $0x170] sm:$0xf]  ;;  %v6540_v60 = vld [vmem:[#allocation7 + $0x174] sm:$0xf0] }
 0x26d   :  { %v7593_v27 = vpop.f32.mrf.mxu0 }
 0x271   :  { %v7595_v17 = vpop.f32.mrf.mxu2  ;;  %v7597_v10 = vpop.f32.mrf.mxu1 }
 0x272   :  { %v7599_v36 = vpop.f32.mrf.mxu3 }
 0x275   :  { %v7601_v25 = vpop.f32.mrf.mxu0 }
 0x279   :  { %v2106_v46 = vpop.f32.mrf.mxu2  ;;  %v7603_v42 = vpop.f32.mrf.mxu1 }
 0x27a   :  { %v2107_v20 = vadd.f32 %v2106_v46, %v7525_v14  ;;  %v2130_v2 = vpop.f32.mrf.mxu3  ;;  %v5751_v46 = vld [vmem:[#allocation7 + $0x70] sm:$0xf] }
 0x27c   :  { %v7606_v37 = vadd.f32 %v2130_v2, %v2107_v20  ;;  %v7630_v20 = vor.u32 %v6540_v60, %v5879_v9  ;;  %v6508_v2 = vld [vmem:[#allocation7 + $0x74] sm:$0xf0]  ;;  %v5815_v9 = vld [vmem:[#allocation7 + $0xf0] sm:$0xf] }
 0x27d   :  { %v7608_v24 = vpop.f32.mrf.mxu0  ;;  %v7632_v48 = vor.u32 %v6508_v2, %v5751_v46  ;;  %v6524_v60 = vld [vmem:[#allocation7 + $0xf4] sm:$0xf0]  ;;  %v6538_v46 = vld [vmem:[#allocation7 + $0x164] sm:$0xf0] }
 0x27e   :  { %9433 = vst [vmem:[#allocation20_spill] sm:$0xff] %v7630_v20  ;;  %3712 = vmatpush.bf16.msra.mxu2 %v7630_v20  ;;  %v7643_v6 = vor.u32 %v6524_v60, %v5815_v9  ;;  %v7645_v2 = vor.u32 %v6538_v46, %v5871_v7  ;;  %v7647_v20 = vor.u32 %v6506_v34, %v5743_v33 }
 0x27f   :  { %9434 = vst [vmem:[#allocation21_spill] sm:$0xff] %v7632_v48  ;;  %3666 = vmatpush.bf16.msra.mxu0 %v7632_v48  ;;  %v5935_v48 = vld [vmem:[#allocation7 + $0x1e0] sm:$0xf]  ;;  %v7654_v9 = vor.u32 %v6522_v55, %v5807_v53  ;;  %v2145_v7 = vadd.f32 %v7586_v44, %v7534_v59  ;;  %v2099_v46 = vadd.f32 %v7541_v22, %v7525_v14 }
 0x280   :  { %9436 = vst [vmem:[#allocation23_spill] sm:$0xff] %v7643_v6  ;;  %3689 = vmatpush.bf16.msra.mxu1 %v7643_v6  ;;  %v7650_v0 = vor.u32 %v6554_v23, %v5935_v48  ;;  %v2104_v59 = vadd.f32 %v7595_v17, %v7525_v14 }
 0x281   :  { %v7610_v35 = vpop.f32.mrf.mxu2  ;;  %v7612_v62 = vpop.f32.mrf.mxu1  ;;  %9437 = vst [vmem:[#allocation24_spill] sm:$0xff] %v7645_v2  ;;  %v2169_v33 = vadd.f32 %v7588_v56, %v2145_v7  ;;  %v2123_v34 = vadd.f32 %v7548_v11, %v2099_v46  ;;  %v2150_v11 = vadd.f32 %v7601_v25, %v7591_v5 }
 0x282   :  { %v7614_v49 = vpop.f32.mrf.mxu3  ;;  %9438 = vst [vmem:[#allocation25_spill] sm:$0xff] %v7647_v20  ;;  %3713 = vmatpush.bf16.msra.mxu2 %v7645_v2  ;;  %3736 = vmatpush.bf16.msra.mxu3 %v7650_v0  ;;  %v2128_v2 = vadd.f32 %v7599_v36, %v2104_v59  ;;  %v2109_v17 = vadd.f32 %v7610_v35, %v7525_v14 }
 0x283   :  { %9439 = vst [vmem:[#allocation26_spill] sm:$0xff] %v7650_v0  ;;  %3667 = vmatpush.bf16.msra.mxu0 %v7647_v20  ;;  %v2147_v20 = vadd.f32 %v7593_v27, %v2123_v34  ;;  %v6520_v34 = vld [vmem:[#allocation7 + $0xd4] sm:$0xf0] }
 0x284   :  { %9440 = vst [vmem:[#allocation27_spill] sm:$0xff] %v7654_v9  ;;  %3690 = vmatpush.bf16.msra.mxu1 %v7654_v9  ;;  %v2152_v27 = vadd.f32 %v7608_v24, %v2128_v2  ;;  %v5735_v24 = vld [vmem:[#allocation7 + $0x50] sm:$0xf] }
 0x285   :  { %v7616_v18 = vpop.f32.mrf.mxu0  ;;  %v2171_v9 = vadd.f32 %v7597_v10, %v2147_v20  ;;  %v2174_v10 = vadd.f32 %v7603_v42, %v2150_v11  ;;  %v6536_v20 = vld [vmem:[#allocation7 + $0x154] sm:$0xf0]  ;;  %v5927_v42 = vld [vmem:[#allocation7 + $0x1d0] sm:$0xf] }
 0x289   :  { %v2192_v47 = vpop.f32.mrf.mxu2  ;;  %v7618_v13 = vpop.f32.mrf.mxu1 }
 0x28a   :  { %v2216_v41 = vpop.f32.mrf.mxu3  ;;  %v2193_v55 = vadd.f32 %v2192_v47, %v2169_v33  ;;  %v5799_v33 = vld [vmem:[#allocation7 + $0xd0] sm:$0xf] }
 0x28c   :  { %v2217_v0 = vadd.f32 %v2216_v41, %v2193_v55  ;;  %v2155_v41 = vadd.f32 %v7616_v18, %v7606_v37  ;;  %v6552_v18 = vld [vmem:[#allocation7 + $0x1d4] sm:$0xf0]  ;;  %v6534_v55 = vld [vmem:[#allocation7 + $0x144] sm:$0xf0] }
 0x28d   :  { %v7620_v26 = vpop.f32.mrf.mxu0 }
 0x28e   :  { %v2179_v14 = vadd.f32 %v7618_v13, %v2155_v41 }
 0x291   :  { %v2194_v54 = vpop.f32.mrf.mxu2  ;;  %v7624_v3 = vpop.f32.mrf.mxu1 }
 0x292   :  { %v7622_v52 = vpop.f32.mrf.mxu3  ;;  %v2195_v47 = vadd.f32 %v2194_v54, %v2171_v9  ;;  %v2133_v54 = vadd.f32 %v7614_v49, %v2109_v17  ;;  %v7696_v9 = vor.u32 %v6552_v18, %v5927_v42  ;;  %v5855_v49 = vld [vmem:[#allocation7 + $0x140] sm:$0xf] }
 0x294   :  { %v2219_v5 = vadd.f32 %v7622_v52, %v2195_v47  ;;  %v2157_v59 = vadd.f32 %v7620_v26, %v2133_v54  ;;  %3737 = vmatpush.bf16.msra.mxu3 %v7696_v9  ;;  %v7707_v47 = vor.u32 %v6534_v55, %v5855_v49  ;;  %v5727_v54 = vld [vmem:[#allocation7 + $0x40] sm:$0xf]  ;;  %v6532_v55 = vld [vmem:[#allocation7 + $0x134] sm:$0xf0] }
 0x295   :  { %v2240_v43 = vpop.f32.mrf.mxu0 }
 0x296   :  { %v2241_v6 = vadd.f32 %v2240_v43, %v2217_v0  ;;  %v2176_v0 = vadd.f32 %v7612_v62, %v2152_v27  ;;  %v5863_v43 = vld [vmem:[#allocation7 + $0x150] sm:$0xf] }
 0x299   :  { %v7626_v19 = vpop.f32.mrf.mxu2  ;;  %v2264_v28 = vpop.f32.mrf.mxu1 }
 0x29a   :  { %v7628_v12 = vpop.f32.mrf.mxu3  ;;  %v2265_v7 = vadd.f32 %v2264_v28, %v2241_v6  ;;  %v2198_v35 = vadd.f32 %v7626_v19, %v2174_v10  ;;  %v7690_v28 = vor.u32 %v6536_v20, %v5863_v43  ;;  %v6504_v6 = vld [vmem:[#allocation7 + $0x54] sm:$0xf0]  ;;  %v7700_v19 = vor.u32 %v6520_v34, %v5799_v33 }
 0x29b   :  { %v7694_v52 = vor.u32 %v6504_v6, %v5735_v24  ;;  %v6518_v6 = vld [vmem:[#allocation7 + $0xc4] sm:$0xf0] }
 0x29c   :  { %3714 = vmatpush.bf16.msra.mxu2 %v7690_v28  ;;  %3691 = vmatpush.bf16.msra.mxu1 %v7700_v19 }
 0x29d   :  { %v2242_v58 = vpop.f32.mrf.mxu0  ;;  %3668 = vmatpush.bf16.msra.mxu0 %v7694_v52 }
 0x29e   :  { %v2243_v2 = vadd.f32 %v2242_v58, %v2219_v5 }
 0x2a0   :  { %3715 = vmatpush.bf16.msra.mxu2 %v7707_v47 }
 0x2a1   :  { %v7639_v21 = vpop.f32.mrf.mxu2  ;;  %v2266_v48 = vpop.f32.mrf.mxu1 }
 0x2a2   :  { %v7641_v16 = vpop.f32.mrf.mxu3  ;;  %v2200_v13 = vadd.f32 %v7639_v21, %v2176_v0  ;;  %v2222_v21 = vadd.f32 %v7628_v12, %v2198_v35  ;;  %v2267_v17 = vadd.f32 %v2266_v48, %v2243_v2  ;;  %v5919_v35 = vld [vmem:[#allocation7 + $0x1c0] sm:$0xf] }
 0x2a5   :  { %v2245_v53 = vpop.f32.mrf.mxu0 }
 0x2a6   :  { %v2246_v0 = vadd.f32 %v2245_v53, %v2222_v21 }
 0x2a9   :  { %v2202_v60 = vpop.f32.mrf.mxu2  ;;  %v7677_v56 = vpop.f32.mrf.mxu1 }
 0x2aa   :  { %v7662_v23 = vpop.f32.mrf.mxu3  ;;  %v2203_v11 = vadd.f32 %v2202_v60, %v2179_v14  ;;  %v2224_v60 = vadd.f32 %v7641_v16, %v2200_v13  ;;  %v6502_v14 = vld [vmem:[#allocation7 + $0x44] sm:$0xf0]  ;;  %v2270_v33 = vadd.f32 %v7677_v56, %v2246_v0  ;;  %v5847_v13 = vld [vmem:[#allocation7 + $0x130] sm:$0xf] }
 0x2ab   :  { %v5911_v0 = vld [vmem:[#allocation7 + $0x1b0] sm:$0xf] }
 0x2ac   :  { %v2227_v5 = vadd.f32 %v7662_v23, %v2203_v11  ;;  %v7724_v23 = vor.u32 %v6502_v14, %v5727_v54 }
 0x2ad   :  { %v2247_v46 = vpop.f32.mrf.mxu0 }
 0x2ae   :  { %3669 = vmatpush.bf16.msra.mxu0 %v7724_v23 }
 0x2b1   :  { %v7669_v44 = vpop.f32.mrf.mxu2  ;;  %v2271_v27 = vpop.f32.mrf.mxu1 }
 0x2b2   :  { %v7671_v22 = vpop.f32.mrf.mxu3 }
 0x2b5   :  { %v2250_v12 = vpop.f32.mrf.mxu0 }
 0x2b6   :  { %v2251_v53 = vadd.f32 %v2250_v12, %v2227_v5 }
 0x2b9   :  { %v2288_v36 = vpop.f32.mrf.mxu2  ;;  %v2274_v21 = vpop.f32.mrf.mxu1 }
 0x2ba   :  { %v2289_v25 = vadd.f32 %v2288_v36, %v2265_v7  ;;  %v2312_v37 = vpop.f32.mrf.mxu3  ;;  %v2181_v36 = vadd.f32 %v7624_v3, %v2157_v59  ;;  %v7756_v12 = vadd.f32 %v2274_v21, %v2251_v53  ;;  %v5711_v53 = vld [vmem:[#allocation7 + $0x20] sm:$0xf] }
 0x2bc   :  { %v7692_v62 = vadd.f32 %v2312_v37, %v2289_v25  ;;  %v2248_v25 = vadd.f32 %v2247_v46, %v2224_v60  ;;  %v2205_v3 = vadd.f32 %v7669_v44, %v2181_v36  ;;  %v6550_v37 = vld [vmem:[#allocation7 + $0x1c4] sm:$0xf0]  ;;  %v5791_v46 = vld [vmem:[#allocation7 + $0xc0] sm:$0xf]  ;;  %v6500_v36 = vld [vmem:[#allocation7 + $0x34] sm:$0xf0] }
 0x2bd   :  { %v7736_v44 = vor.u32 %v6550_v37, %v5919_v35  ;;  %v7738_v49 = vor.u32 %v6518_v6, %v5791_v46  ;;  %v5839_v35 = vld [vmem:[#allocation7 + $0x120] sm:$0xf] }
 0x2be   :  { %v2402_v58 = vrot.slane %v7692_v62, 4  ;;  %v2342_v43 = vrot.slane %v7692_v62, 1  ;;  %v2362_v20 = vrot.slane %v7692_v62, 2  ;;  %v7733_v34 = vadd.f32 %v2271_v27, %v2248_v25  ;;  %v6548_v25 = vld [vmem:[#allocation7 + $0x1b4] sm:$0xf0] }
 0x2bf   :  { %3738 = vmatpush.bf16.msra.mxu3 %v7736_v44  ;;  %3692 = vmatpush.bf16.msra.mxu1 %v7738_v49  ;;  %v7754_v5 = vadd.f32 %v7671_v22, %v2205_v3  ;;  %v6530_v3 = vld [vmem:[#allocation7 + $0x124] sm:$0xf0] }
 0x2c0   :  { %v2443_v41 = vsel %vm206_vm2, %v7467_v32, %v2402_v58  ;;  %v2448_v26 = vsel %vm206_vm2, %v2402_v58, %v7467_v32  ;;  %v2382_v32 = vrot.slane %v7692_v62, 3 }
 0x2c1   :  { %v2449_v7 = vrot.slane %v2448_v26, 4  ;;  %2513 = vst [vmem:[#allocation1] ss:$2 sm:$0xff] %v2443_v41  ;;  %v2290_v10 = vpop.f32.mrf.mxu2 }
 0x2c2   :  { %v2291_v48 = vadd.f32 %v2290_v10, %v2267_v17  ;;  %v2314_v16 = vpop.f32.mrf.mxu3  ;;  %v5719_v10 = vld [vmem:[#allocation7 + $0x30] sm:$0xf] }
 0x2c3   :  { %2515 = vst [vmem:[#allocation1 + $0x1] ss:$2 sm:$0xff] %v2449_v7  ;;  %v7786_v21 = vor.u32 %v6500_v36, %v5719_v10 }
 0x2c4   :  { %v7721_v24 = vadd.f32 %v2314_v16, %v2291_v48 }
 0x2c5   :  { %3670 = vmatpush.bf16.msra.mxu0 %v7786_v21 }
 0x2c6   :  { %v2343_v42 = vrot.slane %v7721_v24, 1  ;;  %v2363_v18 = vrot.slane %v7721_v24, 2  ;;  %v2383_v2 = vrot.slane %v7721_v24, 3  ;;  %v7730_v62 = vrot.slane %v7721_v24, 4  ;;  %v6496_v24 = vld [vmem:[#allocation7 + $0x14] sm:$0xf0] }
 0x2c8   :  { %v2344_v59 = vsel %vm613_vm1, %v2342_v43, %v2343_v42  ;;  %v2364_v11 = vsel %vm690_vm3, %v2362_v20, %v2363_v18  ;;  %v2384_v56 = vsel %vm767_vm4, %v2382_v32, %v2383_v2  ;;  %v2404_v27 = vsel %vm206_vm2, %v2402_v58, %v7730_v62  ;;  %v5783_v43 = vld [vmem:[#allocation7 + $0xb0] sm:$0xf]  ;;  %v6516_v20 = vld [vmem:[#allocation7 + $0xb4] sm:$0xf0] }
 0x2c9   :  { %v2419_v17 = vrot.slane %v2344_v59, 4  ;;  %v2420_v41 = vrot.slane %v2364_v11, 4  ;;  %v2421_v26 = vrot.slane %v2384_v56, 4  ;;  %v2422_v60 = vrot.slane %v2404_v27, 4  ;;  %v2293_v7 = vpop.f32.mrf.mxu2 }
 0x2ca   :  { %v2294_v48 = vadd.f32 %v2293_v7, %v2270_v33  ;;  %v7758_v58 = vor.u32 %v6532_v55, %v5847_v13  ;;  %v2317_v14 = vpop.f32.mrf.mxu3  ;;  %v6498_v13 = vld [vmem:[#allocation7 + $0x24] sm:$0xf0]  ;;  %v5775_v55 = vld [vmem:[#allocation7 + $0xa0] sm:$0xf]  ;;  %v7779_v27 = vsel %vm206_vm2, %v7730_v62, %v7470_v15  ;;  %v7797_v7 = vor.u32 %v6530_v3, %v5839_v35 }
 0x2cb   :  { %v2444_v32 = vsel %vm206_vm2, %v7493_v39, %v2419_v17  ;;  %v2445_v16 = vsel %vm206_vm2, %v7496_v29, %v2420_v41  ;;  %v2446_v54 = vsel %vm206_vm2, %v7499_v57, %v2421_v26  ;;  %v2447_v22 = vsel %vm206_vm2, %v7477_v40, %v2422_v60 }
 0x2cc   :  { %v2450_v37 = vsel %vm206_vm2, %v2419_v17, %v7493_v39  ;;  %v2452_v46 = vsel %vm206_vm2, %v2420_v41, %v7496_v29  ;;  %v2454_v6 = vsel %vm206_vm2, %v2421_v26, %v7499_v57  ;;  %v2456_v33 = vsel %vm206_vm2, %v2422_v60, %v7477_v40  ;;  %2517 = vst [vmem:[#allocation1 + $0x10] ss:$2 sm:$0xff] %v2444_v32  ;;  %v7781_v39 = vld.sshfl [vmem:[#allocation1] sm:$0xff pattern:$0x75316420] }
 0x2cd   :  { %v2451_v59 = vrot.slane %v2450_v37, 4  ;;  %v2453_v11 = vrot.slane %v2452_v46, 4  ;;  %v2455_v56 = vrot.slane %v2454_v6, 4  ;;  %2521 = vst [vmem:[#allocation1 + $0x20] ss:$2 sm:$0xff] %v2445_v16  ;;  %3716 = vmatpush.bf16.msra.mxu2 %v7758_v58  ;;  %v2457_v57 = vrot.slane %v2456_v33, 4 }
 0x2ce   :  { %v7783_v29 = vld.sshfl [vmem:[#allocation1 + $0x8] sm:$0xff pattern:$0x75316420]  ;;  %2525 = vst [vmem:[#allocation1 + $0x30] ss:$2 sm:$0xff] %v2446_v54  ;;  %v2318_v40 = vadd.f32 %v2317_v14, %v2294_v48  ;;  %v7788_v17 = vor.u32 %v6548_v25, %v5911_v0  ;;  %v7793_v26 = vsel %vm206_vm2, %v7470_v15, %v7730_v62  ;;  %v7795_v60 = vor.u32 %v6516_v20, %v5783_v43 }
 0x2cf   :  { %v6514_v41 = vld [vmem:[#allocation7 + $0xa4] sm:$0xf0]  ;;  %2519 = vst [vmem:[#allocation1 + $0x11] ss:$2 sm:$0xff] %v2451_v59  ;;  %v7799_v32 = vor.u32 %v6498_v13, %v5711_v53  ;;  %v5903_v16 = vld [vmem:[#allocation7 + $0x1a0] sm:$0xf] }
 0x2d0   :  { %9441 = vst [vmem:[#allocation28_spill] sm:$0xff] %v7788_v17  ;;  %v6546_v54 = vld [vmem:[#allocation7 + $0x1a4] sm:$0xf0]  ;;  %v2347_v10 = vrot.slane %v2318_v40, 1  ;;  %v2367_v36 = vrot.slane %v2318_v40, 2  ;;  %v2387_v0 = vrot.slane %v2318_v40, 3  ;;  %3739 = vmatpush.bf16.msra.mxu3 %v7788_v17  ;;  %3693 = vmatpush.bf16.msra.mxu1 %v7795_v60  ;;  %v7806_v43 = vor.u32 %v6514_v41, %v5775_v55  ;;  %v2252_v41 = vpop.f32.mrf.mxu0 }
 0x2d1   :  { %9442 = vst [vmem:[#allocation29_spill] sm:$0xff] %v7795_v60  ;;  %v2407_v48 = vrot.slane %v2318_v40, 4  ;;  %v2464_v15 = vrot.slane %v7779_v27, 4  ;;  %v2295_v25 = vpop.f32.mrf.mxu2  ;;  %3717 = vmatpush.bf16.msra.mxu2 %v7797_v7  ;;  %v7808_v20 = vor.u32 %v6546_v54, %v5903_v16  ;;  %v5703_v13 = vld [vmem:[#allocation7 + $0x10] sm:$0xf]  ;;  %3671 = vmatpush.bf16.msra.mxu0 %v7799_v32 }
 0x2d2   :  { %9443 = vst [vmem:[#allocation30_spill] sm:$0xff] %v7797_v7  ;;  %v2348_v14 = vsel %vm613_vm1, %v2343_v42, %v2347_v10  ;;  %v2368_v35 = vsel %vm690_vm3, %v2363_v18, %v2367_v36  ;;  %v2388_v3 = vsel %vm767_vm4, %v2383_v2, %v2387_v0  ;;  %v2319_v33 = vpop.f32.mrf.mxu3  ;;  %v2427_v55 = vrot.slane %v2347_v10, 4  ;;  %v5767_v27 = vld [vmem:[#allocation7 + $0x90] sm:$0xf] }
 0x2d3   :  { %9444 = vst [vmem:[#allocation31_spill] sm:$0xff] %v7799_v32  ;;  %v2408_v53 = vsel %vm206_vm2, %v7730_v62, %v2407_v48  ;;  %v2423_v37 = vrot.slane %v2348_v14, 4  ;;  %v2424_v46 = vrot.slane %v2368_v35, 4  ;;  %v2425_v6 = vrot.slane %v2388_v3, 4  ;;  %v5831_v40 = vld [vmem:[#allocation7 + $0x110] sm:$0xf] }
 0x2d4   :  { %2523 = vst [vmem:[#allocation1 + $0x21] ss:$2 sm:$0xff] %v2453_v11  ;;  %v2428_v42 = vrot.slane %v2367_v36, 4  ;;  %v2429_v59 = vrot.slane %v2387_v0, 4  ;;  %v2430_v11 = vrot.slane %v2407_v48, 4  ;;  %3740 = vmatpush.bf16.msra.mxu3 %v7808_v20  ;;  %3694 = vmatpush.bf16.msra.mxu1 %v7806_v43  ;;  %v7854_v35 = vsel %vm206_vm2, %v7483_v51, %v2407_v48 }
 0x2d5   :  { %2527 = vst [vmem:[#allocation1 + $0x31] ss:$2 sm:$0xff] %v2455_v56  ;;  %v2459_v18 = vsel %vm206_vm2, %v7504_v4, %v2423_v37  ;;  %v2460_v2 = vsel %vm206_vm2, %v7509_v30, %v2424_v46  ;;  %v7829_v62 = vsel %vm206_vm2, %v7514_v45, %v2425_v6  ;;  %v2465_v10 = vsel %vm206_vm2, %v2423_v37, %v7504_v4 }
 0x2d6   :  { %9445 = vst [vmem:[#allocation32_spill] sm:$0xff] %v7806_v43  ;;  %v7836_v16 = vld.sshfl [vmem:[#allocation1 + $0x10] sm:$0xff pattern:$0x75316420]  ;;  %v2467_v36 = vsel %vm206_vm2, %v2424_v46, %v7509_v30  ;;  %v7846_v0 = vsel %vm206_vm2, %v2425_v6, %v7514_v45  ;;  %v9447_v3 = vrot.slane %v7483_v51, 1  ;;  %v9448_v4 = vrot.slane %v7483_v51, 2 }
 0x2d7   :  { %9446 = vst [vmem:[#allocation33_spill] sm:$0xff] %v7808_v20  ;;  %v7838_v54 = vld.sshfl [vmem:[#allocation1 + $0x18] sm:$0xff pattern:$0x75316420]  ;;  %v9449_v45 = vrot.slane %v7483_v51, 3  ;;  %v2253_v43 = vadd.f32 %v2252_v41, %v7754_v5  ;;  %v2466_v32 = vrot.slane %v2465_v10, 4 }
 0x2d8   :  { %2536 = vst [vmem:[#allocation1] ss:$2 sm:$0xff] %v2447_v22  ;;  %v2426_v22 = vrot.slane %v2408_v53, 4  ;;  %v7859_v53 = vsel %vm206_vm2, %v9447_v3, %v2427_v55  ;;  %v7864_v30 = vsel %vm206_vm2, %v9448_v4, %v2428_v42  ;;  %v5895_v46 = vld [vmem:[#allocation7 + $0x190] sm:$0xf]  ;;  %v9450_v3 = vrot.slane %v7483_v51, 4 }
 0x2d9   :  { %2537 = vst [vmem:[#allocation1 + $0x1] ss:$2 sm:$0xff] %v2457_v57  ;;  %v6512_v57 = vld [vmem:[#allocation7 + $0x94] sm:$0xf0]  ;;  %v7869_v37 = vsel %vm206_vm2, %v9449_v45, %v2429_v59  ;;  %v2296_v4 = vadd.f32 %v2295_v25, %v7733_v34  ;;  %v7885_v59 = vor.u32 %v6496_v24, %v5703_v13  ;;  %v2468_v7 = vrot.slane %v2467_v36, 4  ;;  %v2298_v17 = vpop.f32.mrf.mxu2 }
 0x2da   :  { %v7833_v56 = vsel %vm206_vm2, %v7519_v50, %v2426_v22  ;;  %v7850_v14 = vsel %vm206_vm2, %v2426_v22, %v7519_v50  ;;  %v6528_v50 = vld [vmem:[#allocation7 + $0x114] sm:$0xf0]  ;;  %v7882_v42 = vsel %vm206_vm2, %v9450_v3, %v2430_v11  ;;  %v7887_v45 = vor.u32 %v6512_v57, %v5767_v27  ;;  %2538 = vst [vmem:[#allocation1 + $0x10] ss:$2 sm:$0xff] %v7793_v26  ;;  %v5695_v25 = vld [vmem:[#allocation7] sm:$0xf] }
 0x2db   :  { %v6544_v6 = vld [vmem:[#allocation7 + $0x194] sm:$0xf0]  ;;  %v7873_v22 = vld.sshfl [vmem:[#allocation1 + $0x28] sm:$0xff pattern:$0x75316420]  ;;  %9451 = vst [vmem:[#allocation34_spill] sm:$0xff] %v7885_v59  ;;  %v2320_v60 = vadd.f32 %v2319_v33, %v2296_v4  ;;  %v2299_v51 = vadd.f32 %v2298_v17, %v7756_v12  ;;  %3672 = vmatpush.bf16.msra.mxu0 %v7885_v59  ;;  %v7894_v34 = vor.u32 %v6528_v50, %v5831_v40  ;;  %v2322_v12 = vpop.f32.mrf.mxu3  ;;  %v2276_v17 = vpop.f32.mrf.mxu1 }
 0x2dc   :  { %v7871_v48 = vld.sshfl [vmem:[#allocation1 + $0x20] sm:$0xff pattern:$0x75316420]  ;;  %v7875_v20 = vld.sshfl [vmem:[#allocation1 + $0x30] sm:$0xff pattern:$0x75316420]  ;;  %3695 = vmatpush.bf16.msra.mxu1 %v7887_v45  ;;  %v7896_v11 = vor.u32 %v6544_v6, %v5895_v46  ;;  %v2277_v10 = vadd.f32 %v2276_v17, %v2253_v43 }
 0x2dd   :  { %v7877_v55 = vld.sshfl [vmem:[#allocation1 + $0x38] sm:$0xff pattern:$0x75316420]  ;;  %9452 = vst [vmem:[#allocation35_spill] sm:$0xff] %v7887_v45  ;;  %v6494_v13 = vld [vmem:[#allocation7 + $0x4] sm:$0xf0]  ;;  %3718 = vmatpush.bf16.msra.mxu2 %v7894_v34  ;;  %v7903_v57 = vadd.f32 %v2322_v12, %v2299_v51 }
 0x2de   :  { %2539 = vst [vmem:[#allocation1 + $0x11] ss:$2 sm:$0xff] %v2464_v15  ;;  %v7898_v5 = vor.u32 %v6494_v13, %v5695_v25  ;;  %v5759_v26 = vld [vmem:[#allocation7 + $0x80] sm:$0xf]  ;;  %v6510_v24 = vld [vmem:[#allocation7 + $0x84] sm:$0xf0]  ;;  %3741 = vmatpush.bf16.msra.mxu3 %v7896_v11 }
 0x2df   :  { %9453 = vst [vmem:[#allocation36_spill] sm:$0xff] %v7894_v34  ;;  %v2352_v15 = vrot.slane %v2320_v60, 1  ;;  %v2372_v33 = vrot.slane %v2320_v60, 2  ;;  %v7900_v27 = vrot.slane %v2320_v60, 4  ;;  %v5823_v40 = vld [vmem:[#allocation7 + $0x100] sm:$0xf] }
 0x2e0   :  { %2542 = vst [vmem:[#allocation1 + $0x30] ss:$2 sm:$0xff] %v2460_v2  ;;  %v7906_v2 = vor.u32 %v6510_v24, %v5759_v26  ;;  %v6526_v41 = vld [vmem:[#allocation7 + $0x104] sm:$0xf0]  ;;  %3673 = vmatpush.bf16.msra.mxu0 %v7898_v5  ;;  %v5887_v36 = vld [vmem:[#allocation7 + $0x180] sm:$0xf] }
 0x2e1   :  { %9454 = vst [vmem:[#allocation37_spill] sm:$0xff] %v7896_v11  ;;  %v6542_v50 = vld [vmem:[#allocation7 + $0x184] sm:$0xf0]  ;;  %v2392_v46 = vrot.slane %v2320_v60, 3  ;;  %v9281_v6 = vrot.slane %v7903_v57, 1  ;;  %v9280_v3 = vrot.slane %v7903_v57, 3 }
 0x2e2   :  { %9455 = vst [vmem:[#allocation38_spill] sm:$0xff] %v7898_v5  ;;  %3696 = vmatpush.bf16.msra.mxu1 %v7906_v2  ;;  %v6135_v4 = vld [vmem:[#allocation7 + $0x370] sm:$0xf]  ;;  %v2472_v51 = vrot.slane %v7850_v14, 4  ;;  %v7922_v43 = vrot.slane %v7903_v57, 4  ;;  %v7925_v60 = vor.u32 %v6542_v50, %v5887_v36 }
 0x2e3   :  { %2543 = vst [vmem:[#allocation1 + $0x31] ss:$2 sm:$0xff] %v2468_v7  ;;  %v7909_v7 = vor.u32 %v6526_v41, %v5823_v40  ;;  %v6604_v25 = vld [vmem:[#allocation7 + $0x374] sm:$0xf0]  ;;  %v2354_v13 = vsel %vm613_vm1, %v2352_v15, %v9281_v6  ;;  %v2394_v26 = vsel %vm767_vm4, %v2392_v46, %v9280_v3  ;;  %v6007_v15 = vld [vmem:[#allocation7 + $0x270] sm:$0xf] }
 0x2e4   :  { %2540 = vst [vmem:[#allocation1 + $0x20] ss:$2 sm:$0xff] %v2459_v18  ;;  %v9279_v18 = vrot.slane %v7903_v57, 2  ;;  %v7936_v17 = vor.u32 %v6604_v25, %v6135_v4  ;;  %v2414_v40 = vsel %vm206_vm2, %v7900_v27, %v7922_v43  ;;  %v2431_v41 = vrot.slane %v2354_v13, 4  ;;  %3742 = vmatpush.bf16.msra.mxu3 %v7925_v60  ;;  %v6119_v5 = vld [vmem:[#allocation7 + $0x350] sm:$0xf] }
 0x2e5   :  { %9456 = vst [vmem:[#allocation39_spill] sm:$0xff] %v7906_v2  ;;  %3719 = vmatpush.bf16.msra.mxu2 %v7909_v7  ;;  %v2546_v24 = vld.sshfl [vmem:[#allocation1 + $0x10] sm:$0xff pattern:$0x75316420]  ;;  %v2433_v50 = vrot.slane %v2394_v26, 4  ;;  %v7950_v46 = vsel %vm206_vm2, %v7532_v38, %v7922_v43  ;;  %v7955_v4 = vsel %vm206_vm2, %v7922_v43, %v7532_v38  ;;  %v2434_v13 = vrot.slane %v2414_v40, 4 }
 0x2e6   :  { %2541 = vst [vmem:[#allocation1 + $0x21] ss:$2 sm:$0xff] %v2466_v32  ;;  %v7919_v32 = vsel %vm206_vm2, %v7900_v27, %v7529_v31  ;;  %v2374_v14 = vsel %vm690_vm3, %v2372_v33, %v9279_v18  ;;  %v2547_v12 = vld.sshfl [vmem:[#allocation1 + $0x18] sm:$0xff pattern:$0x75316420]  ;;  %v7958_v25 = vpack.c.bf16 %v2546_v24, %v7781_v39  ;;  %v2300_v39 = vpop.f32.mrf.mxu2 }
 0x2e7   :  { %9457 = vst [vmem:[#allocation40_spill] sm:$0xff] %v7909_v7  ;;  %v2432_v36 = vrot.slane %v2374_v14, 4  ;;  %v2479_v14 = vsel %vm206_vm2, %v7558_v1, %v2431_v41  ;;  %v2481_v38 = vsel %vm206_vm2, %v7564_v63, %v2433_v50  ;;  %v6572_v24 = vld [vmem:[#allocation7 + $0x274] sm:$0xf0]  ;;  %v7988_v3 = vsel %vm206_vm2, %v7539_v8, %v2434_v13  ;;  %v6586_v2 = vld [vmem:[#allocation7 + $0x2e4] sm:$0xf0] }
 0x2e8   :  { %9458 = vst [vmem:[#allocation41_spill] sm:$0xff] %v7925_v60  ;;  %3674 = vmatmul.bf16.vlgmr.msra.gmra.mxu0 %v7958_v25  ;;  %v5991_v11 = vld [vmem:[#allocation7 + $0x250] sm:$0xf]  ;;  %v6568_v45 = vld [vmem:[#allocation7 + $0x254] sm:$0xf0] }
 0x2e9   :  { %9459 = vst [vmem:[#allocation42_spill] sm:$0xff] %v7936_v17  ;;  %3804 = vmatpush.bf16.msrb.mxu2 %v7936_v17  ;;  %v7969_v26 = vsel %vm206_vm2, %v7561_v61, %v2432_v36  ;;  %v9467_v17 = vrot.slane %v7903_v57, 2 }
 0x2ea   :  { %2554 = vst [vmem:[#allocation1 + $0x10] ss:$2 sm:$0xff] %v7833_v56  ;;  %v7943_v33 = vld.sshfl [vmem:[#allocation1 + $0x30] sm:$0xff pattern:$0x75316420]  ;;  %v7961_v56 = vpack.c.bf16 %v2547_v12, %v7783_v29  ;;  %v7975_v29 = vsel %vm206_vm2, %v2431_v41, %v7558_v1  ;;  %v7983_v12 = vsel %vm206_vm2, %v2433_v50, %v7564_v63  ;;  %v7993_v1 = vsel %vm206_vm2, %v2434_v13, %v7539_v8  ;;  %v2324_v8 = vpop.f32.mrf.mxu3 }
 0x2eb   :  { %v7945_v18 = vld.sshfl [vmem:[#allocation1 + $0x38] sm:$0xff pattern:$0x75316420]  ;;  %2555 = vst [vmem:[#allocation1 + $0x11] ss:$2 sm:$0xff] %v2472_v51  ;;  %v2301_v41 = vadd.f32 %v2300_v39, %v2277_v10  ;;  %v2484_v51 = vrot.slane %v7919_v32, 4 }
 0x2ec   :  { %2558 = vst [vmem:[#allocation1 + $0x30] ss:$2 sm:$0xff] %v7859_v53  ;;  %v7979_v53 = vsel %vm206_vm2, %v2432_v36, %v7561_v61  ;;  %3697 = vmatmul.bf16.vlgmr.msra.gmra.mxu1 %v7961_v56  ;;  %v7998_v36 = vor.u32 %v6572_v24, %v6007_v15  ;;  %v6199_v50 = vld [vmem:[#allocation7 + $0x3f0] sm:$0xf]  ;;  %v6620_v13 = vld [vmem:[#allocation7 + $0x3f4] sm:$0xf0] }
 0x2ed   :  { %2559 = vst [vmem:[#allocation1 + $0x31] ss:$2 sm:$0xff] %v2479_v14  ;;  %v2548_v40 = vld.sshfl [vmem:[#allocation1 + $0x20] sm:$0xff pattern:$0x75316420]  ;;  %v2478_v14 = vsel %vm206_vm2, %v7529_v31, %v7900_v27  ;;  %v8012_v10 = vor.u32 %v6620_v13, %v6199_v50 }
 0x2ee   :  { %v7996_v61 = vpack.c.bf16 %v2548_v40, %v7836_v16  ;;  %v2549_v63 = vld.sshfl [vmem:[#allocation1 + $0x28] sm:$0xff pattern:$0x75316420]  ;;  %9460 = vst [vmem:[#allocation43_spill] sm:$0xff] %v7998_v36  ;;  %v8009_v16 = vadd.f32 %v2324_v8, %v2301_v41  ;;  %3758 = vmatpush.bf16.msrb.mxu0 %v7998_v36  ;;  %v6071_v15 = vld [vmem:[#allocation7 + $0x2f0] sm:$0xf] }
 0x2ef   :  { %v8005_v6 = vpack.c.bf16 %v2549_v63, %v7838_v54  ;;  %2556 = vst [vmem:[#allocation1 + $0x20] ss:$2 sm:$0xff] %v7854_v35  ;;  %v6588_v31 = vld [vmem:[#allocation7 + $0x2f4] sm:$0xf0]  ;;  %v6127_v54 = vld [vmem:[#allocation7 + $0x360] sm:$0xf]  ;;  %3827 = vmatpush.bf16.msrb.mxu3 %v8012_v10 }
 0x2f0   :  { %3720 = vmatmul.bf16.vlgmr.msra.gmra.mxu2 %v7996_v61  ;;  %2557 = vst [vmem:[#allocation1 + $0x21] ss:$2 sm:$0xff] %v2478_v14  ;;  %v8015_v27 = vor.u32 %v6588_v31, %v6071_v15  ;;  %v6602_v32 = vld [vmem:[#allocation7 + $0x364] sm:$0xf0]  ;;  %v5999_v35 = vld [vmem:[#allocation7 + $0x260] sm:$0xf] }
 0x2f1   :  { %9461 = vst [vmem:[#allocation44_spill] sm:$0xff] %v8012_v10  ;;  %3743 = vmatmul.bf16.vlgmr.msra.gmra.mxu3 %v8005_v6  ;;  %v9285_v39 = vrot.slane %v8009_v16, 1  ;;  %v2397_v40 = vrot.slane %v8009_v16, 3  ;;  %v8021_v63 = vrot.slane %v8009_v16, 4  ;;  %v6570_v41 = vld [vmem:[#allocation7 + $0x264] sm:$0xf0]  ;;  %v8029_v8 = vor.u32 %v6602_v32, %v6127_v54 }
 0x2f2   :  { %9462 = vst [vmem:[#allocation45_spill] sm:$0xff] %v8015_v27  ;;  %3781 = vmatpush.bf16.msrb.mxu1 %v8015_v27  ;;  %v8031_v13 = vor.u32 %v6570_v41, %v5999_v35  ;;  %v8033_v15 = vld.sshfl [vmem:[#allocation1 + $0x10] sm:$0xff pattern:$0x75316420]  ;;  %v9465_v31 = vrot.slane %v7903_v57, 1  ;;  %v9466_v10 = vrot.slane %v8009_v16, 2 }
 0x2f3   :  { %9463 = vst [vmem:[#allocation46_spill] sm:$0xff] %v8029_v8  ;;  %v9468_v54 = vrot.slane %v7903_v57, 3  ;;  %v8052_v35 = vld.sshfl [vmem:[#allocation1 + $0x18] sm:$0xff pattern:$0x75316420]  ;;  %3805 = vmatpush.bf16.msrb.mxu2 %v8029_v8  ;;  %v9472_v8 = vld [vmem:[#allocation19_spill] sm:$0xff] }
 0x2f4   :  { %v8024_v50 = vld.sshfl [vmem:[#allocation1 + $0x30] sm:$0xff pattern:$0x75316420]  ;;  %v8026_v14 = vld.sshfl [vmem:[#allocation1 + $0x38] sm:$0xff pattern:$0x75316420]  ;;  %v2358_v24 = vsel %vm613_vm1, %v9465_v31, %v9285_v39  ;;  %v2378_v60 = vsel %vm690_vm3, %v9467_v17, %v9466_v10  ;;  %3759 = vmatpush.bf16.msrb.mxu0 %v8031_v13 }
 0x2f5   :  { %9464 = vst [vmem:[#allocation47_spill] sm:$0xff] %v8031_v13  ;;  %v2398_v32 = vsel %vm767_vm4, %v9468_v54, %v2397_v40  ;;  %v2435_v41 = vrot.slane %v2358_v24, 4  ;;  %v2436_v17 = vrot.slane %v2378_v60, 4  ;;  %v9469_v31 = vld [vmem:[#allocation16_spill] sm:$0xff]  ;;  %v9471_v39 = vld [vmem:[#allocation18_spill] sm:$0xff] }
 0x2f6   :  { %2574 = vst [vmem:[#allocation1 + $0x30] ss:$2 sm:$0xff] %v2484_v51  ;;  %v2418_v51 = vsel %vm206_vm2, %v7922_v43, %v8021_v63  ;;  %v2437_v10 = vrot.slane %v2398_v32, 4  ;;  %v9470_v43 = vld [vmem:[#allocation17_spill] sm:$0xff]  ;;  %v6191_v60 = vld [vmem:[#allocation7 + $0x3e0] sm:$0xf] }
 0x2f7   :  { %2575 = vst [vmem:[#allocation1 + $0x31] ss:$2 sm:$0xff] %v7950_v46  ;;  %v2438_v57 = vrot.slane %v2418_v51, 4  ;;  %v8059_v54 = vsel %vm206_vm2, %v9469_v31, %v2435_v41  ;;  %v8063_v46 = vsel %vm206_vm2, %v9470_v43, %v2436_v17  ;;  %v8077_v32 = vsel %vm206_vm2, %v2436_v17, %v9470_v43  ;;  %v6063_v36 = vld [vmem:[#allocation7 + $0x2e0] sm:$0xf] }
 0x2f8   :  { %2570 = vst [vmem:[#allocation1 + $0x10] ss:$2 sm:$0xff] %v7869_v37  ;;  %v8067_v24 = vsel %vm206_vm2, %v9471_v39, %v2437_v10  ;;  %v8073_v37 = vsel %vm206_vm2, %v2435_v41, %v9469_v31  ;;  %v8081_v51 = vsel %vm206_vm2, %v2437_v10, %v9471_v39  ;;  %v2470_v41 = vrot.slane %v7846_v0, 4  ;;  %v6600_v31 = vld [vmem:[#allocation7 + $0x354] sm:$0xf0] }
 0x2f9   :  { %2571 = vst [vmem:[#allocation1 + $0x11] ss:$2 sm:$0xff] %v2481_v38  ;;  %v2497_v13 = vsel %vm206_vm2, %v9472_v8, %v2438_v57  ;;  %v6618_v38 = vld [vmem:[#allocation7 + $0x3e4] sm:$0xf0]  ;;  %v8085_v27 = vsel %vm206_vm2, %v2438_v57, %v9472_v8  ;;  %v6183_v17 = vld [vmem:[#allocation7 + $0x3d0] sm:$0xf]  ;;  %v8091_v59 = vor.u32 %v6586_v2, %v6063_v36  ;;  %v8093_v39 = vor.u32 %v6600_v31, %v6119_v5 }
 0x2fa   :  { %v8088_v7 = vor.u32 %v6618_v38, %v6191_v60  ;;  %v2490_v43 = vrot.slane %v7983_v12, 4  ;;  %v8095_v10 = vor.u32 %v6568_v45, %v5991_v11  ;;  %v6616_v8 = vld [vmem:[#allocation7 + $0x3d4] sm:$0xf0]  ;;  %v2565_v60 = vld.sshfl [vmem:[#allocation1 + $0x28] sm:$0xff pattern:$0x75316420] }
 0x2fb   :  { %9474 = vst [vmem:[#allocation17_spill] sm:$0xff] %v8091_v59  ;;  %v2564_v57 = vld.sshfl [vmem:[#allocation1 + $0x20] sm:$0xff pattern:$0x75316420]  ;;  %v8098_v34 = vor.u32 %v6616_v8, %v6183_v17  ;;  %v2492_v38 = vrot.slane %v7993_v1, 4  ;;  %3782 = vmatpush.bf16.msrb.mxu1 %v8091_v59  ;;  %3806 = vmatpush.bf16.msrb.mxu2 %v8093_v39  ;;  %v2441_v11 = vrot.slane %v2397_v40, 4 }
 0x2fc   :  { %9473 = vst [vmem:[#allocation16_spill] sm:$0xff] %v8088_v7  ;;  %3828 = vmatpush.bf16.msrb.mxu3 %v8088_v7  ;;  %3760 = vmatpush.bf16.msrb.mxu0 %v8095_v10  ;;  %v8110_v12 = vld.sshfl [vmem:[#allocation1] sm:$0xff pattern:$0x75316420]  ;;  %v2505_v1 = vrot.slane %v8081_v51, 4 }
 0x2fd   :  { %9475 = vst [vmem:[#allocation18_spill] sm:$0xff] %v8093_v39  ;;  %v8114_v36 = vld.sshfl [vmem:[#allocation1 + $0x8] sm:$0xff pattern:$0x75316420]  ;;  %v6584_v40 = vld [vmem:[#allocation7 + $0x2d4] sm:$0xf0] }
 0x2fe   :  { %9476 = vst [vmem:[#allocation19_spill] sm:$0xff] %v8095_v10  ;;  %v2582_v0 = vld.sshfl [vmem:[#allocation1 + $0x30] sm:$0xff pattern:$0x75316420]  ;;  %v6111_v31 = vld [vmem:[#allocation7 + $0x340] sm:$0xf] }
 0x2ff   :  { %9477 = vst [vmem:[#allocation48_spill] sm:$0xff] %v8098_v34  ;;  %v8103_v2 = vpack.c.bf16 %v2582_v0, %v2564_v57  ;;  %v2583_v45 = vld.sshfl [vmem:[#allocation1 + $0x38] sm:$0xff pattern:$0x75316420]  ;;  %v6598_v17 = vld [vmem:[#allocation7 + $0x344] sm:$0xf0] }
 0x300   :  { %2572 = vst [vmem:[#allocation1 + $0x20] ss:$2 sm:$0xff] %v7882_v42  ;;  %v8108_v5 = vpack.c.bf16 %v2583_v45, %v2565_v60  ;;  %3829 = vmatpush.bf16.msrb.mxu3 %v8098_v34  ;;  %v6055_v42 = vld [vmem:[#allocation7 + $0x2d0] sm:$0xf]  ;;  %v8121_v51 = vor.u32 %v6598_v17, %v6111_v31  ;;  %v5983_v8 = vld [vmem:[#allocation7 + $0x240] sm:$0xf] }
 0x301   :  { %2573 = vst [vmem:[#allocation1 + $0x21] ss:$2 sm:$0xff] %v7988_v3  ;;  %3679 = vmatmul.bf16.gmra.mxu0 %v8103_v2  ;;  %v8119_v3 = vor.u32 %v6584_v40, %v6055_v42  ;;  %v6566_v57 = vld [vmem:[#allocation7 + $0x244] sm:$0xf0]  ;;  %v6103_v42 = vld [vmem:[#allocation7 + $0x330] sm:$0xf] }
 0x302   :  { %2590 = vst [vmem:[#allocation1 + $0x30] ss:$2 sm:$0xff] %v2492_v38  ;;  %3702 = vmatmul.bf16.gmra.mxu1 %v8108_v5  ;;  %v8124_v0 = vor.u32 %v6566_v57, %v5983_v8  ;;  %v6614_v60 = vld [vmem:[#allocation7 + $0x3c4] sm:$0xf0]  ;;  %v6047_v38 = vld [vmem:[#allocation7 + $0x2c0] sm:$0xf]  ;;  %3807 = vmatpush.bf16.msrb.mxu2 %v8121_v51 }
 0x303   :  { %2591 = vst [vmem:[#allocation1 + $0x31] ss:$2 sm:$0xff] %v2497_v13  ;;  %3783 = vmatpush.bf16.msrb.mxu1 %v8119_v3  ;;  %v6175_v13 = vld [vmem:[#allocation7 + $0x3c0] sm:$0xf]  ;;  %v6596_v40 = vld [vmem:[#allocation7 + $0x334] sm:$0xf0] }
 0x304   :  { %2552 = vst [vmem:[#allocation1] ss:$2 sm:$0xff] %v7829_v62  ;;  %v8127_v45 = vor.u32 %v6614_v60, %v6175_v13  ;;  %v6582_v62 = vld [vmem:[#allocation7 + $0x2c4] sm:$0xf0]  ;;  %3761 = vmatpush.bf16.msrb.mxu0 %v8124_v0  ;;  %v8136_v17 = vor.u32 %v6596_v40, %v6103_v42  ;;  %v5975_v8 = vld [vmem:[#allocation7 + $0x230] sm:$0xf] }
 0x305   :  { %9478 = vst [vmem:[#allocation49_spill] sm:$0xff] %v8119_v3  ;;  %v8134_v31 = vor.u32 %v6582_v62, %v6047_v38  ;;  %v6564_v57 = vld [vmem:[#allocation7 + $0x234] sm:$0xf0]  ;;  %v6167_v38 = vld [vmem:[#allocation7 + $0x3b0] sm:$0xf]  ;;  %v9485_v42 = vld [vmem:[#allocation15_spill] sm:$0xff] }
 0x306   :  { %2553 = vst [vmem:[#allocation1 + $0x1] ss:$2 sm:$0xff] %v2470_v41  ;;  %3830 = vmatpush.bf16.msrb.mxu3 %v8127_v45  ;;  %3808 = vmatpush.bf16.msrb.mxu2 %v8136_v17  ;;  %v6612_v62 = vld [vmem:[#allocation7 + $0x3b4] sm:$0xf0] }
 0x307   :  { %9479 = vst [vmem:[#allocation50_spill] sm:$0xff] %v8121_v51  ;;  %3784 = vmatpush.bf16.msrb.mxu1 %v8134_v31  ;;  %v8144_v51 = vor.u32 %v6564_v57, %v5975_v8  ;;  %v2488_v8 = vrot.slane %v7979_v53, 4  ;;  %v8168_v53 = vld.sshfl [vmem:[#allocation1 + $0x18] sm:$0xff pattern:$0x75316420] }
 0x308   :  { %9480 = vst [vmem:[#allocation51_spill] sm:$0xff] %v8124_v0  ;;  %v8129_v34 = vld.sshfl [vmem:[#allocation1 + $0x20] sm:$0xff pattern:$0x75316420]  ;;  %v8154_v0 = vor.u32 %v6612_v62, %v6167_v38  ;;  %v2486_v62 = vrot.slane %v7975_v29, 4 }
 0x309   :  { %9481 = vst [vmem:[#allocation52_spill] sm:$0xff] %v8127_v45  ;;  %v8131_v41 = vld.sshfl [vmem:[#allocation1 + $0x28] sm:$0xff pattern:$0x75316420]  ;;  %3762 = vmatpush.bf16.msrb.mxu0 %v8144_v51  ;;  %v6610_v29 = vld [vmem:[#allocation7 + $0x3a4] sm:$0xf0] }
 0x30a   :  { %9482 = vst [vmem:[#allocation53_spill] sm:$0xff] %v8134_v31  ;;  %v8139_v13 = vld.sshfl [vmem:[#allocation1 + $0x30] sm:$0xff pattern:$0x75316420]  ;;  %3831 = vmatpush.bf16.msrb.mxu3 %v8154_v0  ;;  %v2503_v31 = vrot.slane %v8077_v32, 4 }
 0x30b   :  { %9483 = vst [vmem:[#allocation54_spill] sm:$0xff] %v8136_v17  ;;  %v8141_v60 = vld.sshfl [vmem:[#allocation1 + $0x38] sm:$0xff pattern:$0x75316420]  ;;  %v6580_v17 = vld [vmem:[#allocation7 + $0x2b4] sm:$0xf0] }
 0x30c   :  { %2588 = vst [vmem:[#allocation1 + $0x20] ss:$2 sm:$0xff] %v2490_v43  ;;  %v9486_v43 = vrot.slane %v9485_v42, 3  ;;  %v8166_v38 = vld.sshfl [vmem:[#allocation1 + $0x10] sm:$0xff pattern:$0x75316420] }
 0x30d   :  { %9484 = vst [vmem:[#allocation55_spill] sm:$0xff] %v8144_v51  ;;  %v8151_v45 = vld.sshfl [vmem:[#allocation1] sm:$0xff pattern:$0x75316420] }
 0x30e   :  { %2589 = vst [vmem:[#allocation1 + $0x21] ss:$2 sm:$0xff] %v8067_v24  ;;  %v2511_v40 = vsel %vm206_vm2, %v9486_v43, %v2441_v11  ;;  %v8157_v57 = vld.sshfl [vmem:[#allocation1 + $0x8] sm:$0xff pattern:$0x75316420] }
 0x30f   :  { %2606 = vst [vmem:[#allocation1 + $0x30] ss:$2 sm:$0xff] %v2505_v1  ;;  %v6039_v24 = vld [vmem:[#allocation7 + $0x2b0] sm:$0xf]  ;;  %v6095_v1 = vld [vmem:[#allocation7 + $0x320] sm:$0xf] }
 0x310   :  { %9487 = vst [vmem:[#allocation15_spill] sm:$0xff] %v8154_v0  ;;  %v8162_v11 = vor.u32 %v6580_v17, %v6039_v24  ;;  %v6594_v43 = vld [vmem:[#allocation7 + $0x324] sm:$0xf0]  ;;  %v2501_v0 = vrot.slane %v8073_v37, 4  ;;  %v6087_v37 = vld [vmem:[#allocation7 + $0x310] sm:$0xf] }
 0x311   :  { %2607 = vst [vmem:[#allocation1 + $0x31] ss:$2 sm:$0xff] %v2511_v40  ;;  %v8164_v51 = vor.u32 %v6594_v43, %v6095_v1  ;;  %v6562_v17 = vld [vmem:[#allocation7 + $0x224] sm:$0xf0]  ;;  %v6159_v1 = vld [vmem:[#allocation7 + $0x3a0] sm:$0xf] }
 0x312   :  { %2568 = vst [vmem:[#allocation1] ss:$2 sm:$0xff] %v7864_v30  ;;  %v9490_v30 = vrot.slane %v8009_v16, 1  ;;  %3785 = vmatpush.bf16.msrb.mxu1 %v8162_v11  ;;  %v6031_v43 = vld [vmem:[#allocation7 + $0x2a0] sm:$0xf]  ;;  %v8180_v39 = vor.u32 %v6610_v29, %v6159_v1 }
 0x313   :  { %2569 = vst [vmem:[#allocation1 + $0x1] ss:$2 sm:$0xff] %v7969_v26  ;;  %3809 = vmatpush.bf16.msrb.mxu2 %v8164_v51  ;;  %v5967_v26 = vld [vmem:[#allocation7 + $0x220] sm:$0xf]  ;;  %v6592_v3 = vld [vmem:[#allocation7 + $0x314] sm:$0xf0] }
 0x314   :  { %9488 = vst [vmem:[#allocation56_spill] sm:$0xff] %v8162_v11  ;;  %v2439_v40 = vrot.slane %v9490_v30, 4  ;;  %v8178_v24 = vor.u32 %v6562_v17, %v5967_v26  ;;  %v6578_v30 = vld [vmem:[#allocation7 + $0x2a4] sm:$0xf0]  ;;  %v6151_v11 = vld [vmem:[#allocation7 + $0x390] sm:$0xf]  ;;  %3832 = vmatpush.bf16.msrb.mxu3 %v8180_v39 }
 0x315   :  { %9489 = vst [vmem:[#allocation57_spill] sm:$0xff] %v8164_v51  ;;  %v8183_v32 = vor.u32 %v6578_v30, %v6031_v43  ;;  %v5959_v51 = vld [vmem:[#allocation7 + $0x210] sm:$0xf]  ;;  %v6608_v1 = vld [vmem:[#allocation7 + $0x394] sm:$0xf0] }
 0x316   :  { %2586 = vst [vmem:[#allocation1 + $0x10] ss:$2 sm:$0xff] %v2488_v8  ;;  %3763 = vmatpush.bf16.msrb.mxu0 %v8178_v24  ;;  %v8185_v8 = vor.u32 %v6592_v3, %v6087_v37  ;;  %v6023_v29 = vld [vmem:[#allocation7 + $0x290] sm:$0xf]  ;;  %v8197_v3 = vor.u32 %v6608_v1, %v6151_v11  ;;  %v6576_v43 = vld [vmem:[#allocation7 + $0x294] sm:$0xf0] }
 0x317   :  { %2587 = vst [vmem:[#allocation1 + $0x11] ss:$2 sm:$0xff] %v8063_v46  ;;  %v6560_v46 = vld [vmem:[#allocation7 + $0x214] sm:$0xf0]  ;;  %3786 = vmatpush.bf16.msrb.mxu1 %v8183_v32  ;;  %v6079_v30 = vld [vmem:[#allocation7 + $0x300] sm:$0xf] }
 0x318   :  { %9491 = vst [vmem:[#allocation58_spill] sm:$0xff] %v8178_v24  ;;  %v8192_v17 = vor.u32 %v6560_v46, %v5959_v51  ;;  %3810 = vmatpush.bf16.msrb.mxu2 %v8185_v8  ;;  %v8204_v51 = vor.u32 %v6576_v43, %v6023_v29  ;;  %3833 = vmatpush.bf16.msrb.mxu3 %v8197_v3  ;;  %v5951_v11 = vld [vmem:[#allocation7 + $0x200] sm:$0xf]  ;;  %v6606_v29 = vld [vmem:[#allocation7 + $0x384] sm:$0xf0] }
 0x319   :  { %9492 = vst [vmem:[#allocation59_spill] sm:$0xff] %v8180_v39  ;;  %v6143_v39 = vld [vmem:[#allocation7 + $0x380] sm:$0xf] }
 0x31a   :  { %9493 = vst [vmem:[#allocation60_spill] sm:$0xff] %v8183_v32  ;;  %v8187_v10 = vld.sshfl [vmem:[#allocation1] sm:$0xff pattern:$0x75316420]  ;;  %3764 = vmatpush.bf16.msrb.mxu0 %v8192_v17  ;;  %v6015_v43 = vld [vmem:[#allocation7 + $0x280] sm:$0xf] }
 0x31b   :  { %9494 = vst [vmem:[#allocation61_spill] sm:$0xff] %v8185_v8  ;;  %v8189_v26 = vld.sshfl [vmem:[#allocation1 + $0x8] sm:$0xff pattern:$0x75316420]  ;;  %3787 = vmatpush.bf16.msrb.mxu1 %v8204_v51  ;;  %v6558_v8 = vld [vmem:[#allocation7 + $0x204] sm:$0xf0] }
 0x31c   :  { %9495 = vst [vmem:[#allocation62_spill] sm:$0xff] %v8192_v17  ;;  %v8213_v32 = vor.u32 %v6558_v8, %v5951_v11  ;;  %v6574_v17 = vld [vmem:[#allocation7 + $0x284] sm:$0xf0] }
 0x31d   :  { %2584 = vst [vmem:[#allocation1] ss:$2 sm:$0xff] %v2486_v62  ;;  %v9498_v62 = vrot.slane %v9485_v42, 1 }
 0x31e   :  { %2585 = vst [vmem:[#allocation1 + $0x1] ss:$2 sm:$0xff] %v8059_v54  ;;  %v8199_v37 = vld.sshfl [vmem:[#allocation1 + $0x10] sm:$0xff pattern:$0x75316420]  ;;  %3765 = vmatpush.bf16.msrb.mxu0 %v8213_v32 }
 0x31f   :  { %9496 = vst [vmem:[#allocation63_spill] sm:$0xff] %v8197_v3  ;;  %v8201_v24 = vld.sshfl [vmem:[#allocation1 + $0x18] sm:$0xff pattern:$0x75316420]  ;;  %v2509_v46 = vsel %vm206_vm2, %v9498_v62, %v2439_v40  ;;  %v6590_v54 = vld [vmem:[#allocation7 + $0x304] sm:$0xf0]  ;;  %v8216_v40 = vor.u32 %v6606_v29, %v6143_v39  ;;  %v2508_v39 = vsel %vm206_vm2, %v9485_v42, %v8021_v63 }
 0x320   :  { %9497 = vst [vmem:[#allocation64_spill] sm:$0xff] %v8204_v51  ;;  %v8211_v1 = vor.u32 %v6590_v54, %v6079_v30  ;;  %v8220_v62 = vld.sshfl [vmem:[#allocation1 + $0x20] sm:$0xff pattern:$0x75316420]  ;;  %v2499_v30 = vrot.slane %v7955_v4, 4  ;;  %v9503_v4 = vrot.slane %v8009_v16, 2 }
 0x321   :  { %2602 = vst [vmem:[#allocation1 + $0x10] ss:$2 sm:$0xff] %v2501_v0  ;;  %v8218_v0 = vor.u32 %v6574_v17, %v6015_v43  ;;  %3834 = vmatpush.bf16.msrb.mxu3 %v8216_v40  ;;  %v2442_v29 = vrot.slane %v8021_v63, 4  ;;  %v2507_v43 = vrot.slane %v8085_v27, 4  ;;  %v6652_v63 = vld [vmem:[#allocation7 + $0x4f4] sm:$0xf0] }
 0x322   :  { %2603 = vst [vmem:[#allocation1 + $0x11] ss:$2 sm:$0xff] %v2509_v46  ;;  %3811 = vmatpush.bf16.msrb.mxu2 %v8211_v1  ;;  %v8222_v46 = vld.sshfl [vmem:[#allocation1 + $0x28] sm:$0xff pattern:$0x75316420] }
 0x323   :  { %9499 = vst [vmem:[#allocation65_spill] sm:$0xff] %v8211_v1  ;;  %3788 = vmatpush.bf16.msrb.mxu1 %v8218_v0  ;;  %v5753_v1 = vld [vmem:[#allocation7 + $0x78] sm:$0xf0]  ;;  %v6255_v3 = vld [vmem:[#allocation7 + $0x460] sm:$0xf] }
 0x324   :  { %9500 = vst [vmem:[#allocation66_spill] sm:$0xff] %v8213_v32  ;;  %v5745_v32 = vld [vmem:[#allocation7 + $0x68] sm:$0xf0]  ;;  %v6634_v51 = vld [vmem:[#allocation7 + $0x464] sm:$0xf0] }
 0x325   :  { %9501 = vst [vmem:[#allocation67_spill] sm:$0xff] %v8216_v40  ;;  %v2592_v8 = vld.sshfl [vmem:[#allocation1] sm:$0xff pattern:$0x75316420]  ;;  %v6507_v40 = vld [vmem:[#allocation7 + $0x74] sm:$0xf]  ;;  %v8257_v7 = vor.u32 %v6634_v51, %v6255_v3 }
 0x326   :  { %9502 = vst [vmem:[#allocation68_spill] sm:$0xff] %v8218_v0  ;;  %v2593_v54 = vld.sshfl [vmem:[#allocation1 + $0x8] sm:$0xff pattern:$0x75316420]  ;;  %v8232_v17 = vpack.c.bf16 %v2592_v8, %v8024_v50  ;;  %v6263_v50 = vld [vmem:[#allocation7 + $0x470] sm:$0xf]  ;;  %v8243_v8 = vor.u32 %v6507_v40, %v5753_v1 }
 0x327   :  { %2604 = vst [vmem:[#allocation1 + $0x20] ss:$2 sm:$0xff] %v2503_v31  ;;  %v8235_v11 = vpack.c.bf16 %v2593_v54, %v8026_v14  ;;  %v2440_v31 = vrot.slane %v9503_v4, 4  ;;  %v6636_v14 = vld [vmem:[#allocation7 + $0x474] sm:$0xf0] }
 0x328   :  { %2600 = vst [vmem:[#allocation1] ss:$2 sm:$0xff] %v2499_v30  ;;  %3725 = vmatmul.bf16.gmra.mxu2 %v8232_v17  ;;  %v6523_v54 = vld [vmem:[#allocation7 + $0xf4] sm:$0xf]  ;;  %v5817_v30 = vld [vmem:[#allocation7 + $0xf8] sm:$0xf0] }
 0x329   :  { %2601 = vst [vmem:[#allocation1 + $0x1] ss:$2 sm:$0xff] %v2508_v39  ;;  %3748 = vmatmul.bf16.gmra.mxu3 %v8235_v11  ;;  %v8245_v39 = vor.u32 %v6636_v14, %v6263_v50  ;;  %v8247_v16 = vor.u32 %v6523_v54, %v5817_v30  ;;  %v6327_v4 = vld [vmem:[#allocation7 + $0x4f0] sm:$0xf]  ;;  %v6505_v0 = vld [vmem:[#allocation7 + $0x64] sm:$0xf]  ;;  %3896 = vmatpush.bf16.msra.mxu2 %v8243_v8 }
 0x32a   :  { %9504 = vst [vmem:[#allocation69_spill] sm:$0xff] %v8243_v8  ;;  %v8250_v27 = vor.u32 %v6652_v63, %v6327_v4  ;;  %v8254_v1 = vor.u32 %v6505_v0, %v5745_v32  ;;  %v6521_v40 = vld [vmem:[#allocation7 + $0xe4] sm:$0xf]  ;;  %v5809_v50 = vld [vmem:[#allocation7 + $0xe8] sm:$0xf0]  ;;  %v9511_v63 = vrot.slane %v9485_v42, 4 }
 0x32b   :  { %9505 = vst [vmem:[#allocation70_spill] sm:$0xff] %v8245_v39  ;;  %3850 = vmatpush.bf16.msra.mxu0 %v8245_v39  ;;  %3919 = vmatpush.bf16.msra.mxu3 %v8247_v16  ;;  %v6319_v14 = vld [vmem:[#allocation7 + $0x4e0] sm:$0xf]  ;;  %v8259_v4 = vor.u32 %v6521_v40, %v5809_v50  ;;  %v6650_v32 = vld [vmem:[#allocation7 + $0x4e4] sm:$0xf0]  ;;  %v9513_v40 = vrot.slane %v9485_v42, 2 }
 0x32c   :  { %9506 = vst [vmem:[#allocation71_spill] sm:$0xff] %v8247_v16  ;;  %3873 = vmatpush.bf16.msra.mxu1 %v8250_v27  ;;  %v2512_v8 = vsel %vm206_vm2, %v9511_v63, %v2442_v29  ;;  %v6503_v0 = vld [vmem:[#allocation7 + $0x54] sm:$0xf]  ;;  %v8269_v59 = vor.u32 %v6650_v32, %v6319_v14  ;;  %v5737_v3 = vld [vmem:[#allocation7 + $0x58] sm:$0xf0] }
 0x32d   :  { %9507 = vst [vmem:[#allocation72_spill] sm:$0xff] %v8250_v27  ;;  %3897 = vmatpush.bf16.msra.mxu2 %v8254_v1  ;;  %v6247_v51 = vld [vmem:[#allocation7 + $0x450] sm:$0xf]  ;;  %v2510_v50 = vsel %vm206_vm2, %v9513_v40, %v2440_v31  ;;  %v8276_v29 = vor.u32 %v6503_v0, %v5737_v3  ;;  %v2610_v42 = vld.sshfl [vmem:[#allocation1 + $0x10] sm:$0xff pattern:$0x75316420] }
 0x32e   :  { %9508 = vst [vmem:[#allocation73_spill] sm:$0xff] %v8254_v1  ;;  %v2611_v31 = vld.sshfl [vmem:[#allocation1 + $0x18] sm:$0xff pattern:$0x75316420]  ;;  %v8286_v63 = vpack.c.bf16 %v2610_v42, %v2610_v42  ;;  %v6648_v3 = vld [vmem:[#allocation7 + $0x4d4] sm:$0xf0] }
 0x32f   :  { %9509 = vst [vmem:[#allocation74_spill] sm:$0xff] %v8257_v7  ;;  %3851 = vmatpush.bf16.msra.mxu0 %v8257_v7  ;;  %3920 = vmatpush.bf16.msra.mxu3 %v8259_v4  ;;  %v8288_v32 = vpack.c.bf16 %v2611_v31, %v2611_v31  ;;  %v6311_v0 = vld [vmem:[#allocation7 + $0x4d0] sm:$0xf]  ;;  %v6517_v31 = vld [vmem:[#allocation7 + $0xc4] sm:$0xf] }
 0x330   :  { %v2608_v54 = vld.sshfl [vmem:[#allocation1] sm:$0xff pattern:$0x75316420]  ;;  %v2609_v30 = vld.sshfl [vmem:[#allocation1 + $0x8] sm:$0xff pattern:$0x75316420]  ;;  %3874 = vmatpush.bf16.msra.mxu1 %v8269_v59  ;;  %v8294_v40 = vor.u32 %v6648_v3, %v6311_v0 }
 0x331   :  { %9510 = vst [vmem:[#allocation75_spill] sm:$0xff] %v8259_v4  ;;  %v8264_v39 = vpack.c.bf16 %v2608_v54, %v2608_v54  ;;  %v8266_v16 = vpack.c.bf16 %v2609_v30, %v2609_v30  ;;  %v6519_v54 = vld [vmem:[#allocation7 + $0xd4] sm:$0xf]  ;;  %v5801_v30 = vld [vmem:[#allocation7 + $0xd8] sm:$0xf0]  ;;  %3898 = vmatpush.bf16.msra.mxu2 %v8276_v29 }
 0x332   :  { %2616 = vst [vmem:[#allocation1] ss:$2 sm:$0xff] %v2507_v43  ;;  %v6632_v43 = vld [vmem:[#allocation7 + $0x454] sm:$0xf0]  ;;  %v8282_v14 = vor.u32 %v6519_v54, %v5801_v30  ;;  %v6630_v54 = vld [vmem:[#allocation7 + $0x444] sm:$0xf0] }
 0x333   :  { %2617 = vst [vmem:[#allocation1 + $0x1] ss:$2 sm:$0xff] %v2512_v8  ;;  %3684 = vmatmul.bf16.gmra.mxu0 %v8264_v39  ;;  %3707 = vmatmul.bf16.gmra.mxu1 %v8266_v16  ;;  %v8280_v8 = vor.u32 %v6632_v43, %v6247_v51  ;;  %v6501_v51 = vld [vmem:[#allocation7 + $0x44] sm:$0xf]  ;;  %v6239_v43 = vld [vmem:[#allocation7 + $0x440] sm:$0xf] }
 0x334   :  { %9512 = vst [vmem:[#allocation76_spill] sm:$0xff] %v8269_v59  ;;  %3921 = vmatpush.bf16.msra.mxu3 %v8282_v14  ;;  %v8298_v42 = vor.u32 %v6630_v54, %v6239_v43  ;;  %v6303_v4 = vld [vmem:[#allocation7 + $0x4c0] sm:$0xf]  ;;  %3875 = vmatpush.bf16.msra.mxu1 %v8294_v40  ;;  %v6646_v1 = vld [vmem:[#allocation7 + $0x4c4] sm:$0xf0] }
 0x335   :  { %9514 = vst [vmem:[#allocation77_spill] sm:$0xff] %v8276_v29  ;;  %3852 = vmatpush.bf16.msra.mxu0 %v8280_v8  ;;  %v5793_v29 = vld [vmem:[#allocation7 + $0xc8] sm:$0xf0]  ;;  %v5721_v59 = vld [vmem:[#allocation7 + $0x38] sm:$0xf0]  ;;  %v8305_v0 = vor.u32 %v6646_v1, %v6303_v4  ;;  %v8316_v1 = vpack.c.bf16 %v7943_v33, %v7871_v48  ;;  %v8336_v48 = vpack.c.bf16 %v8151_v45, %v7875_v20 }
 0x336   :  { %9515 = vst [vmem:[#allocation78_spill] sm:$0xff] %v8280_v8  ;;  %v6499_v8 = vld [vmem:[#allocation7 + $0x34] sm:$0xf]  ;;  %v6497_v27 = vld [vmem:[#allocation7 + $0x24] sm:$0xf] }
 0x337   :  { %9516 = vst [vmem:[#allocation79_spill] sm:$0xff] %v8282_v14  ;;  %v8301_v14 = vor.u32 %v6517_v31, %v5793_v29  ;;  %v8307_v3 = vor.u32 %v6499_v8, %v5721_v59  ;;  %v6515_v43 = vld [vmem:[#allocation7 + $0xb4] sm:$0xf]  ;;  %v5785_v29 = vld [vmem:[#allocation7 + $0xb8] sm:$0xf0]  ;;  %v8320_v59 = vpack.c.bf16 %v7945_v18, %v7873_v22  ;;  %v8340_v22 = vpack.c.bf16 %v8157_v57, %v7877_v55 }
 0x338   :  { %2605 = vst [vmem:[#allocation1 + $0x21] ss:$2 sm:$0xff] %v2510_v50  ;;  %3730 = vmatmul.bf16.gmra.mxu2 %v8286_v63  ;;  %v5729_v50 = vld [vmem:[#allocation7 + $0x48] sm:$0xf0]  ;;  %v6295_v31 = vld [vmem:[#allocation7 + $0x4b0] sm:$0xf]  ;;  %v8312_v7 = vor.u32 %v6515_v43, %v5785_v29  ;;  %3876 = vmatpush.bf16.msra.mxu1 %v8305_v0 }
 0x339   :  { %3753 = vmatmul.bf16.gmra.mxu3 %v8288_v32  ;;  %9517 = vst [vmem:[#allocation80_spill] sm:$0xff] %v8294_v40  ;;  %v8296_v30 = vor.u32 %v6501_v51, %v5729_v50  ;;  %3853 = vmatpush.bf16.msra.mxu0 %v8298_v42  ;;  %v6231_v51 = vld [vmem:[#allocation7 + $0x430] sm:$0xf]  ;;  %v6628_v50 = vld [vmem:[#allocation7 + $0x434] sm:$0xf0] }
 0x33a   :  { %9519 = vst [vmem:[#allocation82_spill] sm:$0xff] %v8298_v42  ;;  %3922 = vmatpush.bf16.msra.mxu3 %v8301_v14  ;;  %v8310_v54 = vor.u32 %v6628_v50, %v6231_v51  ;;  %v6644_v40 = vld [vmem:[#allocation7 + $0x4b4] sm:$0xf0]  ;;  %v6223_v18 = vld [vmem:[#allocation7 + $0x420] sm:$0xf] }
 0x33b   :  { %9518 = vst [vmem:[#allocation81_spill] sm:$0xff] %v8296_v30  ;;  %3899 = vmatpush.bf16.msra.mxu2 %v8296_v30  ;;  %v5713_v30 = vld [vmem:[#allocation7 + $0x28] sm:$0xf0]  ;;  %v8323_v4 = vor.u32 %v6644_v40, %v6295_v31  ;;  %v6626_v33 = vld [vmem:[#allocation7 + $0x424] sm:$0xf0] }
 0x33c   :  { %9520 = vst [vmem:[#allocation83_spill] sm:$0xff] %v8301_v14  ;;  %v8327_v8 = vor.u32 %v6497_v27, %v5713_v30  ;;  %v6513_v27 = vld [vmem:[#allocation7 + $0xa4] sm:$0xf]  ;;  %v8344_v40 = vor.u32 %v6626_v33, %v6223_v18  ;;  %v5777_v30 = vld [vmem:[#allocation7 + $0xa8] sm:$0xf0] }
 0x33d   :  { %9521 = vst [vmem:[#allocation84_spill] sm:$0xff] %v8305_v0  ;;  %3854 = vmatpush.bf16.msra.mxu0 %v8310_v54  ;;  %3877 = vmatpush.bf16.msra.mxu1 %v8323_v4  ;;  %v6287_v51 = vld [vmem:[#allocation7 + $0x4a0] sm:$0xf]  ;;  %v6642_v50 = vld [vmem:[#allocation7 + $0x4a4] sm:$0xf0]  ;;  %v8346_v43 = vor.u32 %v6513_v27, %v5777_v30 }
 0x33e   :  { %9522 = vst [vmem:[#allocation85_spill] sm:$0xff] %v8307_v3  ;;  %3923 = vmatpush.bf16.msra.mxu3 %v8312_v7  ;;  %v8348_v20 = vor.u32 %v6642_v50, %v6287_v51  ;;  %v6495_v45 = vld [vmem:[#allocation7 + $0x14] sm:$0xf]  ;;  %v5705_v29 = vld [vmem:[#allocation7 + $0x18] sm:$0xf0] }
 0x33f   :  { %9523 = vst [vmem:[#allocation86_spill] sm:$0xff] %v8310_v54  ;;  %3900 = vmatpush.bf16.msra.mxu2 %v8307_v3  ;;  %v6215_v55 = vld [vmem:[#allocation7 + $0x410] sm:$0xf]  ;;  %v8351_v57 = vor.u32 %v6495_v45, %v5705_v29  ;;  %v6624_v31 = vld [vmem:[#allocation7 + $0x414] sm:$0xf0] }
 0x340   :  { %9524 = vst [vmem:[#allocation87_spill] sm:$0xff] %v8312_v7  ;;  %v5769_v7 = vld [vmem:[#allocation7 + $0x98] sm:$0xf0]  ;;  %v8355_v18 = vor.u32 %v6624_v31, %v6215_v55  ;;  %v6279_v27 = vld [vmem:[#allocation7 + $0x490] sm:$0xf]  ;;  %v8366_v55 = vpack.c.bf16 %v8199_v37, %v8187_v10  ;;  %v8389_v10 = vpack.c.bf16 %v8220_v62, %v8166_v38 }
 0x341   :  { %9525 = vst [vmem:[#allocation88_spill] sm:$0xff] %v8323_v4  ;;  %3855 = vmatpush.bf16.msra.mxu0 %v8344_v40  ;;  %3878 = vmatpush.bf16.msra.mxu1 %v8348_v20  ;;  %v6640_v30 = vld [vmem:[#allocation7 + $0x494] sm:$0xf0]  ;;  %v6493_v51 = vld [vmem:[#allocation7 + $0x4] sm:$0xf] }
 0x342   :  { %9526 = vst [vmem:[#allocation89_spill] sm:$0xff] %v8327_v8  ;;  %3924 = vmatpush.bf16.msra.mxu3 %v8346_v43  ;;  %v8360_v50 = vor.u32 %v6640_v30, %v6279_v27  ;;  %v5697_v45 = vld [vmem:[#allocation7 + $0x8] sm:$0xf0]  ;;  %v6207_v29 = vld [vmem:[#allocation7 + $0x400] sm:$0xf] }
 0x343   :  { %3766 = vmatmul.bf16.vlgmr.msrb.gmra.mxu0 %v8316_v1  ;;  %3789 = vmatmul.bf16.vlgmr.msrb.gmra.mxu1 %v8320_v59  ;;  %9527 = vst [vmem:[#allocation90_spill] sm:$0xff] %v8344_v40  ;;  %v6622_v3 = vld [vmem:[#allocation7 + $0x404] sm:$0xf0]  ;;  %v8362_v14 = vor.u32 %v6493_v51, %v5697_v45  ;;  %v6509_v40 = vld [vmem:[#allocation7 + $0x84] sm:$0xf] }
 0x344   :  { %3901 = vmatpush.bf16.msra.mxu2 %v8327_v8  ;;  %9528 = vst [vmem:[#allocation91_spill] sm:$0xff] %v8346_v43  ;;  %v6511_v8 = vld [vmem:[#allocation7 + $0x94] sm:$0xf]  ;;  %v5761_v43 = vld [vmem:[#allocation7 + $0x88] sm:$0xf0] }
 0x345   :  { %9529 = vst [vmem:[#allocation92_spill] sm:$0xff] %v8348_v20  ;;  %v8357_v33 = vor.u32 %v6511_v8, %v5769_v7  ;;  %v6271_v4 = vld [vmem:[#allocation7 + $0x480] sm:$0xf]  ;;  %v8370_v7 = vpack.c.bf16 %v8201_v24, %v8189_v26  ;;  %3856 = vmatpush.bf16.msra.mxu0 %v8355_v18  ;;  %v8373_v8 = vor.u32 %v6622_v3, %v6207_v29  ;;  %v6638_v31 = vld [vmem:[#allocation7 + $0x484] sm:$0xf0] }
 0x346   :  { %9530 = vst [vmem:[#allocation93_spill] sm:$0xff] %v8351_v57  ;;  %3879 = vmatpush.bf16.msra.mxu1 %v8360_v50  ;;  %v8377_v27 = vor.u32 %v6509_v40, %v5761_v43  ;;  %v8379_v30 = vor.u32 %v6638_v31, %v6271_v4  ;;  %v8393_v24 = vpack.c.bf16 %v8222_v46, %v8168_v53  ;;  %v6571_v26 = vld [vmem:[#allocation7 + $0x274] sm:$0xf]  ;;  %v6009_v37 = vld [vmem:[#allocation7 + $0x278] sm:$0xf0] }
 0x347   :  { %9531 = vst [vmem:[#allocation94_spill] sm:$0xff] %v8355_v18  ;;  %3925 = vmatpush.bf16.msra.mxu3 %v8357_v33  ;;  %v6539_v3 = vld [vmem:[#allocation7 + $0x174] sm:$0xf]  ;;  %v8397_v4 = vor.u32 %v6571_v26, %v6009_v37  ;;  %v5881_v40 = vld [vmem:[#allocation7 + $0x178] sm:$0xf0]  ;;  %v8476_v18 = vpack.c.bf16 %v8052_v35, %v8114_v36  ;;  %v8519_v20 = vpack.c.bf16 %v8139_v13, %v8129_v34 }
 0x348   :  { %3812 = vmatmul.bf16.vlgmr.msrb.gmra.mxu2 %v8336_v48  ;;  %9532 = vst [vmem:[#allocation95_spill] sm:$0xff] %v8357_v33  ;;  %v6587_v43 = vld [vmem:[#allocation7 + $0x2f4] sm:$0xf]  ;;  %v6073_v51 = vld [vmem:[#allocation7 + $0x2f8] sm:$0xf0]  ;;  %v8399_v38 = vor.u32 %v6539_v3, %v5881_v40 }
 0x349   :  { %3835 = vmatmul.bf16.vlgmr.msrb.gmra.mxu3 %v8340_v22  ;;  %3902 = vmatpush.bf16.msra.mxu2 %v8351_v57  ;;  %9533 = vst [vmem:[#allocation96_spill] sm:$0xff] %v8360_v50  ;;  %v2612_v45 = vld.sshfl [vmem:[#allocation1 + $0x20] sm:$0xff pattern:$0x75316420]  ;;  %v8401_v62 = vor.u32 %v6587_v43, %v6073_v51  ;;  %v6555_v53 = vld [vmem:[#allocation7 + $0x1f4] sm:$0xf] }
 0x34a   :  { %9534 = vst [vmem:[#allocation97_spill] sm:$0xff] %v8362_v14  ;;  %3857 = vmatpush.bf16.msra.mxu0 %v8373_v8  ;;  %3880 = vmatpush.bf16.msra.mxu1 %v8379_v30  ;;  %v2613_v29 = vld.sshfl [vmem:[#allocation1 + $0x28] sm:$0xff pattern:$0x75316420]  ;;  %v5945_v46 = vld [vmem:[#allocation7 + $0x1f8] sm:$0xf0] }
 0x34b   :  { %9535 = vst [vmem:[#allocation98_spill] sm:$0xff] %v8373_v8  ;;  %3926 = vmatpush.bf16.msra.mxu3 %v8377_v27  ;;  %v6569_v31 = vld [vmem:[#allocation7 + $0x264] sm:$0xf]  ;;  %v5873_v26 = vld [vmem:[#allocation7 + $0x168] sm:$0xf0] }
 0x34c   :  { %9536 = vst [vmem:[#allocation99_spill] sm:$0xff] %v8377_v27  ;;  %v8404_v27 = vor.u32 %v6555_v53, %v5945_v46  ;;  %v6537_v33 = vld [vmem:[#allocation7 + $0x164] sm:$0xf]  ;;  %v6065_v43 = vld [vmem:[#allocation7 + $0x2e8] sm:$0xf0] }
 0x34d   :  { %9537 = vst [vmem:[#allocation100_spill] sm:$0xff] %v8379_v30  ;;  %3903 = vmatpush.bf16.msra.mxu2 %v8362_v14  ;;  %v6001_v14 = vld [vmem:[#allocation7 + $0x268] sm:$0xf0]  ;;  %v8410_v3 = vor.u32 %v6537_v33, %v5873_v26  ;;  %v6585_v40 = vld [vmem:[#allocation7 + $0x2e4] sm:$0xf] }
 0x34e   :  { %9538 = vst [vmem:[#allocation101_spill] sm:$0xff] %v8397_v4  ;;  %3942 = vmatpush.bf16.msrb.mxu0 %v8399_v38  ;;  %v8408_v37 = vor.u32 %v6569_v31, %v6001_v14  ;;  %v6553_v51 = vld [vmem:[#allocation7 + $0x1e4] sm:$0xf]  ;;  %3965 = vmatpush.bf16.msrb.mxu1 %v8404_v27  ;;  %v8413_v57 = vor.u32 %v6585_v40, %v6065_v43  ;;  %v5937_v53 = vld [vmem:[#allocation7 + $0x1e8] sm:$0xf0] }
 0x34f   :  { %9539 = vst [vmem:[#allocation102_spill] sm:$0xff] %v8399_v38  ;;  %4011 = vmatpush.bf16.msrb.mxu3 %v8401_v62  ;;  %v6567_v46 = vld [vmem:[#allocation7 + $0x254] sm:$0xf]  ;;  %v8415_v30 = vor.u32 %v6553_v51, %v5937_v53  ;;  %v5865_v38 = vld [vmem:[#allocation7 + $0x158] sm:$0xf0]  ;;  %v8419_v14 = vpack.c.bf16 %v2613_v29, %v2613_v29 }
 0x350   :  { %9540 = vst [vmem:[#allocation103_spill] sm:$0xff] %v8401_v62  ;;  %v6535_v8 = vld [vmem:[#allocation7 + $0x154] sm:$0xf]  ;;  %v8417_v62 = vpack.c.bf16 %v2612_v45, %v2612_v45  ;;  %v6057_v31 = vld [vmem:[#allocation7 + $0x2d8] sm:$0xf0] }
 0x351   :  { %3988 = vmatpush.bf16.msrb.mxu2 %v8397_v4  ;;  %9541 = vst [vmem:[#allocation104_spill] sm:$0xff] %v8404_v27  ;;  %v5993_v4 = vld [vmem:[#allocation7 + $0x258] sm:$0xf0]  ;;  %v6583_v50 = vld [vmem:[#allocation7 + $0x2d4] sm:$0xf]  ;;  %v8426_v26 = vor.u32 %v6535_v8, %v5865_v38 }
 0x352   :  { %9542 = vst [vmem:[#allocation105_spill] sm:$0xff] %v8408_v37  ;;  %v8422_v33 = vor.u32 %v6567_v46, %v5993_v4  ;;  %3943 = vmatpush.bf16.msrb.mxu0 %v8410_v3  ;;  %v8428_v40 = vor.u32 %v6583_v50, %v6057_v31  ;;  %3966 = vmatpush.bf16.msrb.mxu1 %v8415_v30  ;;  %v2614_v45 = vld.sshfl [vmem:[#allocation1 + $0x30] sm:$0xff pattern:$0x75316420]  ;;  %v6551_v50 = vld [vmem:[#allocation7 + $0x1d4] sm:$0xf] }
 0x353   :  { %3771 = vmatmul.bf16.gmra.mxu0 %v8366_v55  ;;  %3794 = vmatmul.bf16.gmra.mxu1 %v8370_v7  ;;  %9543 = vst [vmem:[#allocation106_spill] sm:$0xff] %v8410_v3  ;;  %v2615_v29 = vld.sshfl [vmem:[#allocation1 + $0x38] sm:$0xff pattern:$0x75316420]  ;;  %v8436_v4 = vpack.c.bf16 %v2614_v45, %v2614_v45  ;;  %v5929_v38 = vld [vmem:[#allocation7 + $0x1d8] sm:$0xf0] }
 0x354   :  { %9544 = vst [vmem:[#allocation107_spill] sm:$0xff] %v8413_v57  ;;  %4012 = vmatpush.bf16.msrb.mxu3 %v8413_v57  ;;  %v8438_v8 = vpack.c.bf16 %v2615_v29, %v2615_v29  ;;  %v6565_v43 = vld [vmem:[#allocation7 + $0x244] sm:$0xf]  ;;  %v8442_v51 = vor.u32 %v6551_v50, %v5929_v38  ;;  %v5985_v53 = vld [vmem:[#allocation7 + $0x248] sm:$0xf0] }
 0x355   :  { %9545 = vst [vmem:[#allocation108_spill] sm:$0xff] %v8415_v30  ;;  %3989 = vmatpush.bf16.msrb.mxu2 %v8408_v37  ;;  %v6533_v46 = vld [vmem:[#allocation7 + $0x144] sm:$0xf]  ;;  %v5857_v31 = vld [vmem:[#allocation7 + $0x148] sm:$0xf0] }
 0x356   :  { %9546 = vst [vmem:[#allocation109_spill] sm:$0xff] %v8422_v33  ;;  %3944 = vmatpush.bf16.msrb.mxu0 %v8426_v26  ;;  %v8446_v57 = vor.u32 %v6533_v46, %v5857_v31  ;;  %v6581_v45 = vld [vmem:[#allocation7 + $0x2c4] sm:$0xf]  ;;  %3967 = vmatpush.bf16.msrb.mxu1 %v8442_v51  ;;  %v8454_v50 = vld [vmem:[%s9240_s5] sm:$0x3] }
 0x357   :  { %9547 = vst [vmem:[#allocation110_spill] sm:$0xff] %v8426_v26  ;;  %v6549_v29 = vld [vmem:[#allocation7 + $0x1c4] sm:$0xf]  ;;  %v5921_v26 = vld [vmem:[#allocation7 + $0x1c8] sm:$0xf0] }
 0x358   :  { %3817 = vmatmul.bf16.gmra.mxu2 %v8389_v10  ;;  %9548 = vst [vmem:[#allocation111_spill] sm:$0xff] %v8428_v40  ;;  %4013 = vmatpush.bf16.msrb.mxu3 %v8428_v40  ;;  %v6049_v40 = vld [vmem:[#allocation7 + $0x2c8] sm:$0xf0]  ;;  %v6563_v38 = vld [vmem:[#allocation7 + $0x234] sm:$0xf] }
 0x359   :  { %3840 = vmatmul.bf16.gmra.mxu3 %v8393_v24  ;;  %3990 = vmatpush.bf16.msrb.mxu2 %v8422_v33  ;;  %9549 = vst [vmem:[#allocation112_spill] sm:$0xff] %v8442_v51  ;;  %v8444_v33 = vor.u32 %v6565_v43, %v5985_v53  ;;  %v8449_v37 = vor.u32 %v6581_v45, %v6049_v40  ;;  %v8461_v53 = vperm.slane %v8454_v50, 0  ;;  %v5977_v46 = vld [vmem:[#allocation7 + $0x238] sm:$0xf0]  ;;  %v6531_v31 = vld [vmem:[#allocation7 + $0x134] sm:$0xf] }
 0x35a   :  { %9551 = vst [vmem:[#allocation114_spill] sm:$0xff] %v8446_v57  ;;  %3945 = vmatpush.bf16.msrb.mxu0 %v8446_v57  ;;  %v8458_v43 = vor.u32 %v6549_v29, %v5921_v26  ;;  %v8464_v40 = vor.u32 %v6563_v38, %v5977_v46  ;;  %v5849_v45 = vld [vmem:[#allocation7 + $0x138] sm:$0xf0]  ;;  %v6579_v51 = vld [vmem:[#allocation7 + $0x2b4] sm:$0xf]  ;;  %v8472_v29 = vpack.c.bf16 %v8033_v15, %v8110_v12 }
 0x35b   :  { %9550 = vst [vmem:[#allocation113_spill] sm:$0xff] %v8444_v33  ;;  %v6041_v30 = vld [vmem:[#allocation7 + $0x2b8] sm:$0xf0]  ;;  %v8466_v3 = vor.u32 %v6531_v31, %v5849_v45  ;;  %v6561_v26 = vld [vmem:[#allocation7 + $0x224] sm:$0xf] }
 0x35c   :  { %9552 = vst [vmem:[#allocation115_spill] sm:$0xff] %v8449_v37  ;;  %4014 = vmatpush.bf16.msrb.mxu3 %v8449_v37  ;;  %v8468_v27 = vor.u32 %v6579_v51, %v6041_v30  ;;  %v5913_v57 = vld [vmem:[#allocation7 + $0x1b8] sm:$0xf0]  ;;  %3968 = vmatpush.bf16.msrb.mxu1 %v8458_v43  ;;  %v5969_v46 = vld [vmem:[#allocation7 + $0x228] sm:$0xf0] }
 0x35d   :  { %3991 = vmatpush.bf16.msrb.mxu2 %v8444_v33  ;;  %9553 = vst [vmem:[#allocation116_spill] sm:$0xff] %v8458_v43  ;;  %v6547_v33 = vld [vmem:[#allocation7 + $0x1b4] sm:$0xf]  ;;  %v8483_v30 = vor.u32 %v6561_v26, %v5969_v46  ;;  %v6577_v51 = vld [vmem:[#allocation7 + $0x2a4] sm:$0xf] }
 0x35e   :  { %9554 = vst [vmem:[#allocation117_spill] sm:$0xff] %v8461_v53  ;;  %v8479_v38 = vor.u32 %v6547_v33, %v5913_v57  ;;  %3946 = vmatpush.bf16.msrb.mxu0 %v8466_v3  ;;  %v6529_v57 = vld [vmem:[#allocation7 + $0x124] sm:$0xf]  ;;  %v5841_v33 = vld [vmem:[#allocation7 + $0x128] sm:$0xf0] }
 0x35f   :  { %9555 = vst [vmem:[#allocation118_spill] sm:$0xff] %v8464_v40  ;;  %v8493_v31 = vor.u32 %v6529_v57, %v5841_v33  ;;  %v6033_v45 = vld [vmem:[#allocation7 + $0x2a8] sm:$0xf0]  ;;  %v6545_v26 = vld [vmem:[#allocation7 + $0x1a4] sm:$0xf] }
 0x360   :  { %9556 = vst [vmem:[#allocation119_spill] sm:$0xff] %v8466_v3  ;;  %4015 = vmatpush.bf16.msrb.mxu3 %v8468_v27  ;;  %3969 = vmatpush.bf16.msrb.mxu1 %v8479_v38  ;;  %v5905_v46 = vld [vmem:[#allocation7 + $0x1a8] sm:$0xf0]  ;;  %v6575_v37 = vld [vmem:[#allocation7 + $0x294] sm:$0xf] }
 0x361   :  { %9557 = vst [vmem:[#allocation120_spill] sm:$0xff] %v8468_v27  ;;  %3992 = vmatpush.bf16.msrb.mxu2 %v8464_v40  ;;  %v8497_v27 = vor.u32 %v6545_v26, %v5905_v46  ;;  %v6559_v40 = vld [vmem:[#allocation7 + $0x214] sm:$0xf]  ;;  %v6557_v26 = vld [vmem:[#allocation7 + $0x204] sm:$0xf] }
 0x362   :  { %9558 = vst [vmem:[#allocation121_spill] sm:$0xff] %v8479_v38  ;;  %3947 = vmatpush.bf16.msrb.mxu0 %v8493_v31  ;;  %v6025_v38 = vld [vmem:[#allocation7 + $0x298] sm:$0xf0]  ;;  %v6541_v43 = vld [vmem:[#allocation7 + $0x184] sm:$0xf] }
 0x363   :  { %3776 = vmatmul.bf16.gmra.mxu0 %v8417_v62  ;;  %3799 = vmatmul.bf16.gmra.mxu1 %v8419_v14  ;;  %9559 = vst [vmem:[#allocation122_spill] sm:$0xff] %v8483_v30 }
 0x364   :  { %9560 = vst [vmem:[#allocation123_spill] sm:$0xff] %v8493_v31  ;;  %3970 = vmatpush.bf16.msrb.mxu1 %v8497_v27  ;;  %v5953_v31 = vld [vmem:[#allocation7 + $0x208] sm:$0xf0] }
 0x365   :  { %v3675_v15 = vpop.f32.mrf.mxu0  ;;  %3993 = vmatpush.bf16.msrb.mxu2 %v8483_v30  ;;  %9562 = vst [vmem:[#allocation125_spill] sm:$0xff] %v8497_v27  ;;  %v8515_v27 = vor.u32 %v6557_v26, %v5953_v31  ;;  %v6265_v26 = vld [vmem:[#allocation7 + $0x478] sm:$0xf0] }
 0x366   :  { %v3676_v12 = vadd.f32 %v3675_v15, %v8461_v53  ;;  %v8495_v15 = vor.u32 %v6577_v51, %v6033_v45  ;;  %v6543_v51 = vld [vmem:[#allocation7 + $0x194] sm:$0xf]  ;;  %v5897_v45 = vld [vmem:[#allocation7 + $0x198] sm:$0xf0] }
 0x367   :  { %9567 = vst [vmem:[#allocation130_spill] sm:$0xff] %v8515_v27 }
 0x368   :  { %3822 = vmatmul.bf16.gmra.mxu2 %v8436_v4  ;;  %9561 = vst [vmem:[#allocation124_spill] sm:$0xff] %v8495_v15  ;;  %4016 = vmatpush.bf16.msrb.mxu3 %v8495_v15 }
 0x369   :  { %3845 = vmatmul.bf16.gmra.mxu3 %v8438_v8  ;;  %v3698_v35 = vpop.f32.mrf.mxu1 }
 0x36a   :  { %v3699_v36 = vadd.f32 %v3698_v35, %v3676_v12  ;;  %v5961_v12 = vld [vmem:[#allocation7 + $0x218] sm:$0xf0]  ;;  %v6527_v35 = vld [vmem:[#allocation7 + $0x114] sm:$0xf] }
 0x36d   :  { %v8506_v3 = vpop.f32.mrf.mxu0 }
 0x373   :  { %3858 = vmatmul.bf16.vlgmr.msra.gmra.mxu0 %v8472_v29  ;;  %3881 = vmatmul.bf16.vlgmr.msra.gmra.mxu1 %v8476_v18  ;;  %v3721_v30 = vpop.f32.mrf.mxu2 }
 0x374   :  { %v3722_v57 = vadd.f32 %v3721_v30, %v3699_v36  ;;  %v3744_v46 = vpop.f32.mrf.mxu3  ;;  %v6525_v30 = vld [vmem:[#allocation7 + $0x104] sm:$0xf]  ;;  %v5825_v36 = vld [vmem:[#allocation7 + $0x108] sm:$0xf0] }
 0x376   :  { %v8513_v15 = vadd.f32 %v3744_v46, %v3722_v57  ;;  %v5889_v57 = vld [vmem:[#allocation7 + $0x188] sm:$0xf0]  ;;  %v6603_v46 = vld [vmem:[#allocation7 + $0x374] sm:$0xf] }
 0x378   :  { %3904 = vmatmul.bf16.vlgmr.msra.gmra.mxu2 %v7958_v25  ;;  %v8500_v25 = vor.u32 %v6559_v40, %v5961_v12  ;;  %v8509_v40 = vor.u32 %v6575_v37, %v6025_v38  ;;  %v8511_v12 = vor.u32 %v6543_v51, %v5897_v45  ;;  %v8523_v37 = vpack.c.bf16 %v8141_v60, %v8131_v41  ;;  %v8525_v38 = vpop.f32.mrf.mxu1 }
 0x379   :  { %3927 = vmatmul.bf16.vlgmr.msra.gmra.mxu3 %v7961_v56  ;;  %v5833_v56 = vld [vmem:[#allocation7 + $0x118] sm:$0xf0]  ;;  %v8528_v51 = vor.u32 %v6525_v30, %v5825_v36  ;;  %v8534_v45 = vor.u32 %v6541_v43, %v5889_v57  ;;  %v6635_v43 = vld [vmem:[#allocation7 + $0x474] sm:$0xf] }
 0x37a   :  { %9563 = vst [vmem:[#allocation126_spill] sm:$0xff] %v8500_v25  ;;  %v8504_v33 = vor.u32 %v6527_v35, %v5833_v56  ;;  %3994 = vmatpush.bf16.msrb.mxu2 %v8500_v25  ;;  %v6573_v35 = vld [vmem:[#allocation7 + $0x284] sm:$0xf]  ;;  %v6017_v56 = vld [vmem:[#allocation7 + $0x288] sm:$0xf0]  ;;  %4017 = vmatpush.bf16.msrb.mxu3 %v8509_v40  ;;  %v8547_v30 = vor.u32 %v6635_v43, %v6265_v26 }
 0x37b   :  { %9565 = vst [vmem:[#allocation128_spill] sm:$0xff] %v8509_v40  ;;  %3971 = vmatpush.bf16.msrb.mxu1 %v8511_v12  ;;  %v8532_v31 = vor.u32 %v6573_v35, %v6017_v56  ;;  %v6137_v36 = vld [vmem:[#allocation7 + $0x378] sm:$0xf0]  ;;  %v6651_v35 = vld [vmem:[#allocation7 + $0x4f4] sm:$0xf] }
 0x37c   :  { %9564 = vst [vmem:[#allocation127_spill] sm:$0xff] %v8504_v33  ;;  %3948 = vmatpush.bf16.msrb.mxu0 %v8504_v33  ;;  %v6329_v56 = vld [vmem:[#allocation7 + $0x4f8] sm:$0xf0]  ;;  %v8549_v57 = vor.u32 %v6603_v46, %v6137_v36  ;;  %v6257_v46 = vld [vmem:[#allocation7 + $0x468] sm:$0xf0] }
 0x37d   :  { %9566 = vst [vmem:[#allocation129_spill] sm:$0xff] %v8511_v12  ;;  %v6601_v36 = vld [vmem:[#allocation7 + $0x364] sm:$0xf]  ;;  %v6321_v25 = vld [vmem:[#allocation7 + $0x4e8] sm:$0xf0] }
 0x37e   :  { %9568 = vst [vmem:[#allocation131_spill] sm:$0xff] %v8528_v51  ;;  %3995 = vmatpush.bf16.msrb.mxu2 %v8515_v27  ;;  %4018 = vmatpush.bf16.msrb.mxu3 %v8532_v31  ;;  %v3680_v34 = vpop.f32.mrf.mxu0  ;;  %v6649_v40 = vld [vmem:[#allocation7 + $0x4e4] sm:$0xf] }
 0x37f   :  { %9569 = vst [vmem:[#allocation132_spill] sm:$0xff] %v8532_v31  ;;  %3972 = vmatpush.bf16.msrb.mxu1 %v8534_v45  ;;  %v3681_v41 = vadd.f32 %v3680_v34, %v8461_v53  ;;  %v8551_v31 = vor.u32 %v6651_v35, %v6329_v56  ;;  %v2618_v34 = vld.sshfl [vmem:[#allocation1] sm:$0xff pattern:$0x75316420]  ;;  %v6129_v35 = vld [vmem:[#allocation7 + $0x368] sm:$0xf0] }
 0x380   :  { %9570 = vst [vmem:[#allocation133_spill] sm:$0xff] %v8534_v45  ;;  %3949 = vmatpush.bf16.msrb.mxu0 %v8528_v51  ;;  %v3703_v13 = vpop.f32.mrf.mxu1  ;;  %v8556_v43 = vpack.c.bf16 %v2618_v34, %v2618_v34  ;;  %v8568_v34 = vor.u32 %v6649_v40, %v6321_v25  ;;  %v6121_v25 = vld [vmem:[#allocation7 + $0x358] sm:$0xf0]  ;;  %v6647_v40 = vld [vmem:[#allocation7 + $0x4d4] sm:$0xf] }
 0x381   :  { %v8545_v60 = vadd.f32 %v3703_v13, %v3681_v41  ;;  %9571 = vst [vmem:[#allocation134_spill] sm:$0xff] %v8547_v30  ;;  %v6201_v41 = vld [vmem:[#allocation7 + $0x3f8] sm:$0xf0]  ;;  %v6633_v13 = vld [vmem:[#allocation7 + $0x464] sm:$0xf] }
 0x382   :  { %9572 = vst [vmem:[#allocation135_spill] sm:$0xff] %v8549_v57  ;;  %4080 = vmatpush.bf16.msra.mxu2 %v8547_v30  ;;  %4103 = vmatpush.bf16.msra.mxu3 %v8551_v31  ;;  %v8562_v56 = vor.u32 %v6633_v13, %v6257_v46  ;;  %v8564_v30 = vor.u32 %v6601_v36, %v6129_v35  ;;  %v6249_v13 = vld [vmem:[#allocation7 + $0x458] sm:$0xf0]  ;;  %v6599_v46 = vld [vmem:[#allocation7 + $0x354] sm:$0xf] }
 0x383   :  { %3863 = vmatmul.bf16.gmra.mxu0 %v8519_v20  ;;  %3886 = vmatmul.bf16.gmra.mxu1 %v8523_v37  ;;  %9573 = vst [vmem:[#allocation136_spill] sm:$0xff] %v8551_v31  ;;  %v6313_v35 = vld [vmem:[#allocation7 + $0x4d8] sm:$0xf0]  ;;  %v6629_v31 = vld [vmem:[#allocation7 + $0x444] sm:$0xf] }
 0x384   :  { %4034 = vmatpush.bf16.msra.mxu0 %v8549_v57  ;;  %9575 = vst [vmem:[#allocation138_spill] sm:$0xff] %v8562_v56  ;;  %v6617_v57 = vld [vmem:[#allocation7 + $0x3e4] sm:$0xf] }
 0x385   :  { %9576 = vst [vmem:[#allocation139_spill] sm:$0xff] %v8564_v30 }
 0x386   :  { %9577 = vst [vmem:[#allocation140_spill] sm:$0xff] %v8568_v34  ;;  %4081 = vmatpush.bf16.msra.mxu2 %v8562_v56  ;;  %4104 = vmatpush.bf16.msra.mxu3 %v8568_v34  ;;  %v6615_v56 = vld [vmem:[#allocation7 + $0x3d4] sm:$0xf]  ;;  %v6185_v34 = vld [vmem:[#allocation7 + $0x3d8] sm:$0xf0] }
 0x388   :  { %3909 = vmatmul.bf16.gmra.mxu2 %v8103_v2  ;;  %v2619_v2 = vld.sshfl [vmem:[#allocation1 + $0x8] sm:$0xff pattern:$0x75316420]  ;;  %4035 = vmatpush.bf16.msra.mxu0 %v8564_v30  ;;  %v6639_v30 = vld [vmem:[#allocation7 + $0x494] sm:$0xf] }
 0x389   :  { %3932 = vmatmul.bf16.gmra.mxu3 %v8108_v5  ;;  %v6619_v5 = vld [vmem:[#allocation7 + $0x3f4] sm:$0xf]  ;;  %v8558_v26 = vpack.c.bf16 %v2619_v2, %v2619_v2  ;;  %v6193_v2 = vld [vmem:[#allocation7 + $0x3e8] sm:$0xf0] }
 0x38a   :  { %v8560_v27 = vor.u32 %v6619_v5, %v6201_v41  ;;  %v8572_v5 = vor.u32 %v6617_v57, %v6193_v2  ;;  %v6631_v41 = vld [vmem:[#allocation7 + $0x454] sm:$0xf]  ;;  %v8581_v57 = vor.u32 %v6599_v46, %v6121_v25  ;;  %v8583_v2 = vor.u32 %v6647_v40, %v6313_v35  ;;  %v6645_v46 = vld [vmem:[#allocation7 + $0x4c4] sm:$0xf]  ;;  %v6305_v40 = vld [vmem:[#allocation7 + $0x4c8] sm:$0xf0] }
 0x38b   :  { %v8577_v36 = vor.u32 %v6631_v41, %v6249_v13  ;;  %v6241_v41 = vld [vmem:[#allocation7 + $0x448] sm:$0xf0]  ;;  %v6613_v35 = vld [vmem:[#allocation7 + $0x3c4] sm:$0xf] }
 0x38c   :  { %9574 = vst [vmem:[#allocation137_spill] sm:$0xff] %v8560_v27  ;;  %4057 = vmatpush.bf16.msra.mxu1 %v8560_v27  ;;  %4036 = vmatpush.bf16.msra.mxu0 %v8581_v57  ;;  %v8590_v13 = vor.u32 %v6629_v31, %v6241_v41  ;;  %v6595_v31 = vld [vmem:[#allocation7 + $0x334] sm:$0xf] }
 0x38d   :  { %9578 = vst [vmem:[#allocation141_spill] sm:$0xff] %v8572_v5  ;;  %4082 = vmatpush.bf16.msra.mxu2 %v8577_v36  ;;  %4105 = vmatpush.bf16.msra.mxu3 %v8583_v2 }
 0x38e   :  { %9579 = vst [vmem:[#allocation142_spill] sm:$0xff] %v8577_v36 }
 0x38f   :  { %9580 = vst [vmem:[#allocation143_spill] sm:$0xff] %v8581_v57  ;;  %v6627_v57 = vld [vmem:[#allocation7 + $0x434] sm:$0xf] }
 0x390   :  { %4058 = vmatpush.bf16.msra.mxu1 %v8572_v5  ;;  %9581 = vst [vmem:[#allocation144_spill] sm:$0xff] %v8583_v2  ;;  %v8586_v5 = vor.u32 %v6615_v56, %v6185_v34  ;;  %v6177_v56 = vld [vmem:[#allocation7 + $0x3c8] sm:$0xf0]  ;;  %v8596_v34 = vor.u32 %v6645_v46, %v6305_v40  ;;  %v6233_v2 = vld [vmem:[#allocation7 + $0x438] sm:$0xf0]  ;;  %v8610_v40 = vpop.f32.mrf.mxu2 }
 0x391   :  { %9583 = vst [vmem:[#allocation146_spill] sm:$0xff] %v8590_v13  ;;  %4083 = vmatpush.bf16.msra.mxu2 %v8590_v13  ;;  %v8598_v36 = vor.u32 %v6613_v35, %v6177_v56  ;;  %v8602_v41 = vor.u32 %v6627_v57, %v6233_v2  ;;  %v6105_v13 = vld [vmem:[#allocation7 + $0x338] sm:$0xf0]  ;;  %v8612_v35 = vpop.f32.mrf.mxu3  ;;  %v6625_v57 = vld [vmem:[#allocation7 + $0x424] sm:$0xf]  ;;  %v3682_v2 = vpop.f32.mrf.mxu0 }
 0x392   :  { %9582 = vst [vmem:[#allocation145_spill] sm:$0xff] %v8586_v5  ;;  %4106 = vmatpush.bf16.msra.mxu3 %v8596_v34  ;;  %v3705_v56 = vpop.f32.mrf.mxu1 }
 0x393   :  { %3868 = vmatmul.bf16.gmra.mxu0 %v8556_v43  ;;  %3891 = vmatmul.bf16.gmra.mxu1 %v8558_v26  ;;  %9585 = vst [vmem:[#allocation148_spill] sm:$0xff] %v8596_v34  ;;  %v6225_v34 = vld [vmem:[#allocation7 + $0x428] sm:$0xf0] }
 0x394   :  { %4059 = vmatpush.bf16.msra.mxu1 %v8586_v5  ;;  %9586 = vst [vmem:[#allocation149_spill] sm:$0xff] %v8598_v36  ;;  %v6643_v5 = vld [vmem:[#allocation7 + $0x4b4] sm:$0xf] }
 0x395   :  { %9587 = vst [vmem:[#allocation150_spill] sm:$0xff] %v8602_v41  ;;  %4084 = vmatpush.bf16.msra.mxu2 %v8602_v41 }
 0x398   :  { %3914 = vmatmul.bf16.gmra.mxu2 %v8264_v39  ;;  %v6597_v39 = vld [vmem:[#allocation7 + $0x344] sm:$0xf]  ;;  %4060 = vmatpush.bf16.msra.mxu1 %v8598_v36 }
 0x399   :  { %3937 = vmatmul.bf16.gmra.mxu3 %v8266_v16  ;;  %v6113_v16 = vld [vmem:[#allocation7 + $0x348] sm:$0xf0] }
 0x39a   :  { %v8594_v25 = vor.u32 %v6597_v39, %v6113_v16  ;;  %v6297_v39 = vld [vmem:[#allocation7 + $0x4b8] sm:$0xf0]  ;;  %v8606_v16 = vor.u32 %v6595_v31, %v6105_v13  ;;  %v8618_v13 = vor.u32 %v6625_v57, %v6225_v34  ;;  %v6097_v31 = vld [vmem:[#allocation7 + $0x328] sm:$0xf0]  ;;  %v6609_v34 = vld [vmem:[#allocation7 + $0x3a4] sm:$0xf] }
 0x39b   :  { %v8608_v46 = vor.u32 %v6643_v5, %v6297_v39  ;;  %v6593_v5 = vld [vmem:[#allocation7 + $0x324] sm:$0xf]  ;;  %v6161_v57 = vld [vmem:[#allocation7 + $0x3a8] sm:$0xf0] }
 0x39c   :  { %9584 = vst [vmem:[#allocation147_spill] sm:$0xff] %v8594_v25  ;;  %4037 = vmatpush.bf16.msra.mxu0 %v8594_v25  ;;  %4085 = vmatpush.bf16.msra.mxu2 %v8618_v13  ;;  %v6641_v39 = vld [vmem:[#allocation7 + $0x4a4] sm:$0xf] }
 0x39d   :  { %9588 = vst [vmem:[#allocation151_spill] sm:$0xff] %v8606_v16  ;;  %4107 = vmatpush.bf16.msra.mxu3 %v8608_v46 }
 0x39e   :  { %9589 = vst [vmem:[#allocation152_spill] sm:$0xff] %v8608_v46 }
 0x39f   :  { %9591 = vst [vmem:[#allocation154_spill] sm:$0xff] %v8618_v13 }
 0x3a0   :  { %4038 = vmatpush.bf16.msra.mxu0 %v8606_v16  ;;  %v8630_v16 = vor.u32 %v6609_v34, %v6161_v57  ;;  %v6591_v34 = vld [vmem:[#allocation7 + $0x314] sm:$0xf] }
 0x3a2   :  { %9594 = vst [vmem:[#allocation157_spill] sm:$0xff] %v8630_v16 }
 0x3a3   :  { %3950 = vmatmul.bf16.vlgmr.msrb.gmra.mxu0 %v7996_v61  ;;  %3973 = vmatmul.bf16.vlgmr.msrb.gmra.mxu1 %v8005_v6  ;;  %v6611_v6 = vld [vmem:[#allocation7 + $0x3b4] sm:$0xf]  ;;  %v6169_v61 = vld [vmem:[#allocation7 + $0x3b8] sm:$0xf0] }
 0x3a4   :  { %v8616_v25 = vor.u32 %v6611_v6, %v6169_v61  ;;  %v8626_v6 = vor.u32 %v6593_v5, %v6097_v31  ;;  %v6289_v61 = vld [vmem:[#allocation7 + $0x4a8] sm:$0xf0]  ;;  %v3683_v5 = vadd.f32 %v3682_v2, %v8461_v53 }
 0x3a5   :  { %v8628_v41 = vor.u32 %v6641_v39, %v6289_v61  ;;  %v6623_v39 = vld [vmem:[#allocation7 + $0x414] sm:$0xf]  ;;  %v6217_v61 = vld [vmem:[#allocation7 + $0x418] sm:$0xf0] }
 0x3a6   :  { %9590 = vst [vmem:[#allocation153_spill] sm:$0xff] %v8616_v25  ;;  %4061 = vmatpush.bf16.msra.mxu1 %v8616_v25  ;;  %4039 = vmatpush.bf16.msra.mxu0 %v8626_v6  ;;  %v8640_v36 = vor.u32 %v6623_v39, %v6217_v61  ;;  %v3706_v39 = vadd.f32 %v3705_v56, %v3683_v5  ;;  %v6589_v56 = vld [vmem:[#allocation7 + $0x304] sm:$0xf]  ;;  %v6081_v5 = vld [vmem:[#allocation7 + $0x308] sm:$0xf0] }
 0x3a7   :  { %9592 = vst [vmem:[#allocation155_spill] sm:$0xff] %v8626_v6  ;;  %4108 = vmatpush.bf16.msra.mxu3 %v8628_v41  ;;  %v6089_v6 = vld [vmem:[#allocation7 + $0x318] sm:$0xf0] }
 0x3a8   :  { %3996 = vmatmul.bf16.vlgmr.msrb.gmra.mxu2 %v8316_v1  ;;  %9593 = vst [vmem:[#allocation156_spill] sm:$0xff] %v8628_v41 }
 0x3a9   :  { %4019 = vmatmul.bf16.vlgmr.msrb.gmra.mxu3 %v8320_v59  ;;  %9595 = vst [vmem:[#allocation158_spill] sm:$0xff] %v8640_v36  ;;  %4086 = vmatpush.bf16.msra.mxu2 %v8640_v36 }
 0x3aa   :  { %4062 = vmatpush.bf16.msra.mxu1 %v8630_v16  ;;  %v6621_v16 = vld [vmem:[#allocation7 + $0x404] sm:$0xf] }
 0x3ab   :  { %v3726_v46 = vpop.f32.mrf.mxu2 }
 0x3ac   :  { %v3749_v25 = vpop.f32.mrf.mxu3  ;;  %v3727_v1 = vadd.f32 %v3726_v46, %v8545_v60  ;;  %v6281_v60 = vld [vmem:[#allocation7 + $0x498] sm:$0xf0]  ;;  %v8642_v46 = vor.u32 %v6591_v34, %v6089_v6 }
 0x3ad   :  { %v8644_v41 = vor.u32 %v6639_v30, %v6281_v60  ;;  %v8659_v60 = vor.u32 %v6589_v56, %v6081_v5 }
 0x3ae   :  { %v8636_v59 = vadd.f32 %v3749_v25, %v3727_v1  ;;  %9596 = vst [vmem:[#allocation159_spill] sm:$0xff] %v8642_v46  ;;  %v6607_v25 = vld [vmem:[#allocation7 + $0x394] sm:$0xf]  ;;  %v6153_v1 = vld [vmem:[#allocation7 + $0x398] sm:$0xf0]  ;;  %4040 = vmatpush.bf16.msra.mxu0 %v8642_v46 }
 0x3af   :  { %9597 = vst [vmem:[#allocation160_spill] sm:$0xff] %v8644_v41  ;;  %v8648_v27 = vor.u32 %v6607_v25, %v6153_v1  ;;  %4109 = vmatpush.bf16.msra.mxu3 %v8644_v41  ;;  %v6605_v25 = vld [vmem:[#allocation7 + $0x384] sm:$0xf]  ;;  %v6145_v1 = vld [vmem:[#allocation7 + $0x388] sm:$0xf0] }
 0x3b0   :  { %v3685_v31 = vpop.f32.mrf.mxu0  ;;  %v3708_v13 = vpop.f32.mrf.mxu1  ;;  %9600 = vst [vmem:[#allocation163_spill] sm:$0xff] %v8659_v60 }
 0x3b1   :  { %v3686_v57 = vadd.f32 %v3685_v31, %v8461_v53  ;;  %9598 = vst [vmem:[#allocation161_spill] sm:$0xff] %v8648_v27  ;;  %v6209_v31 = vld [vmem:[#allocation7 + $0x408] sm:$0xf0]  ;;  %4063 = vmatpush.bf16.msra.mxu1 %v8648_v27 }
 0x3b2   :  { %v8652_v6 = vor.u32 %v6621_v16, %v6209_v31  ;;  %v6273_v16 = vld [vmem:[#allocation7 + $0x488] sm:$0xf0]  ;;  %4041 = vmatpush.bf16.msra.mxu0 %v8659_v60 }
 0x3b3   :  { %v3709_v2 = vadd.f32 %v3708_v13, %v3686_v57  ;;  %3955 = vmatmul.bf16.gmra.mxu0 %v8232_v17  ;;  %3978 = vmatmul.bf16.gmra.mxu1 %v8235_v11  ;;  %v3728_v30 = vpop.f32.mrf.mxu2  ;;  %v6637_v57 = vld [vmem:[#allocation7 + $0x484] sm:$0xf]  ;;  %v9601_v31 = vld [vmem:[#allocation20_spill] sm:$0xff] }
 0x3b4   :  { %9599 = vst [vmem:[#allocation162_spill] sm:$0xff] %v8652_v6  ;;  %v3751_v61 = vpop.f32.mrf.mxu3  ;;  %v3729_v13 = vadd.f32 %v3728_v30, %v3706_v39  ;;  %4087 = vmatpush.bf16.msra.mxu2 %v8652_v6  ;;  %v8664_v39 = vor.u32 %v6637_v57, %v6273_v16  ;;  %v8666_v30 = vor.u32 %v6605_v25, %v6145_v1  ;;  %v9608_v1 = vld [vmem:[#allocation25_spill] sm:$0xff] }
 0x3b5   :  { %v3678_v6 = vadd.f32 %v8506_v3, %v8461_v53 }
 0x3b6   :  { %v8656_v17 = vadd.f32 %v3751_v61, %v3729_v13  ;;  %9602 = vst [vmem:[#allocation20_spill] sm:$0xff] %v8664_v39  ;;  %4110 = vmatpush.bf16.msra.mxu3 %v8664_v39  ;;  %4064 = vmatpush.bf16.msra.mxu1 %v8666_v30  ;;  %v9610_v39 = vld [vmem:[#allocation26_spill] sm:$0xff] }
 0x3b7   :  { %9603 = vst [vmem:[#allocation164_spill] sm:$0xff] %v8666_v30  ;;  %v3701_v45 = vadd.f32 %v8525_v38, %v3678_v6 }
 0x3b8   :  { %v3687_v11 = vpop.f32.mrf.mxu0  ;;  %v3710_v34 = vpop.f32.mrf.mxu1  ;;  %4444 = vmatpush.bf16.msrb.mxu2 %v9601_v31  ;;  %v9609_v31 = vld [vmem:[#allocation27_spill] sm:$0xff] }
 0x3b9   :  { %4001 = vmatmul.bf16.gmra.mxu2 %v8366_v55  ;;  %4024 = vmatmul.bf16.gmra.mxu3 %v8370_v7  ;;  %v9604_v11 = vld [vmem:[#allocation21_spill] sm:$0xff]  ;;  %v9605_v34 = vld [vmem:[#allocation23_spill] sm:$0xff]  ;;  %v9606_v55 = vld [vmem:[#allocation22_spill] sm:$0xff] }
 0x3ba   :  { %4406 = vmatpush.bf16.msrb.mxu0 %v9604_v11  ;;  %4425 = vmatpush.bf16.msrb.mxu1 %v9605_v34  ;;  %v9607_v7 = vld [vmem:[#allocation24_spill] sm:$0xff] }
 0x3bb   :  { %v3731_v61 = vpop.f32.mrf.mxu2  ;;  %4463 = vmatpush.bf16.msrb.mxu3 %v9606_v55  ;;  %v9618_v55 = vld [vmem:[#allocation34_spill] sm:$0xff] }
 0x3bc   :  { %v3754_v13 = vpop.f32.mrf.mxu3  ;;  %v3732_v56 = vadd.f32 %v3731_v61, %v3709_v2  ;;  %4445 = vmatpush.bf16.msrb.mxu2 %v9607_v7 }
 0x3be   :  { %v8675_v5 = vadd.f32 %v3754_v13, %v3732_v56  ;;  %4407 = vmatpush.bf16.msrb.mxu0 %v9608_v1  ;;  %4426 = vmatpush.bf16.msrb.mxu1 %v9609_v31  ;;  %v9617_v13 = vld [vmem:[#allocation36_spill] sm:$0xff]  ;;  %v9624_v1 = vld [vmem:[#allocation43_spill] sm:$0xff]  ;;  %v9625_v31 = vld [vmem:[#allocation45_spill] sm:$0xff] }
 0x3bf   :  { %4464 = vmatpush.bf16.msrb.mxu3 %v9610_v39 }
 0x3c0   :  { %v3767_v57 = vpop.f32.mrf.mxu0  ;;  %v3790_v16 = vpop.f32.mrf.mxu1  ;;  %4446 = vmatpush.bf16.msrb.mxu2 %v7690_v28 }
 0x3c1   :  { %v3768_v25 = vadd.f32 %v3767_v57, %v8513_v15 }
 0x3c2   :  { %4408 = vmatpush.bf16.msrb.mxu0 %v7694_v52  ;;  %4427 = vmatpush.bf16.msrb.mxu1 %v7700_v19 }
 0x3c3   :  { %v3791_v11 = vadd.f32 %v3790_v16, %v3768_v25  ;;  %3960 = vmatmul.bf16.gmra.mxu0 %v8286_v63  ;;  %3983 = vmatmul.bf16.gmra.mxu1 %v8288_v32  ;;  %v3733_v2 = vpop.f32.mrf.mxu2  ;;  %v9620_v16 = vld [vmem:[#allocation37_spill] sm:$0xff]  ;;  %v9623_v25 = vld [vmem:[#allocation39_spill] sm:$0xff] }
 0x3c4   :  { %v3756_v61 = vpop.f32.mrf.mxu3  ;;  %4465 = vmatpush.bf16.msrb.mxu3 %v7696_v9  ;;  %4447 = vmatpush.bf16.msrb.mxu2 %v7707_v47  ;;  %v9611_v9 = vld [vmem:[#allocation29_spill] sm:$0xff]  ;;  %v9612_v47 = vld [vmem:[#allocation28_spill] sm:$0xff]  ;;  %v9627_v2 = vld [vmem:[#allocation42_spill] sm:$0xff] }
 0x3c6   :  { %4409 = vmatpush.bf16.msrb.mxu0 %v7724_v23  ;;  %4428 = vmatpush.bf16.msrb.mxu1 %v7738_v49  ;;  %v9613_v23 = vld [vmem:[#allocation30_spill] sm:$0xff] }
 0x3c8   :  { %v8688_v15 = vpop.f32.mrf.mxu0  ;;  %v8690_v39 = vpop.f32.mrf.mxu1  ;;  %4466 = vmatpush.bf16.msrb.mxu3 %v7736_v44  ;;  %4448 = vmatpush.bf16.msrb.mxu2 %v7758_v58  ;;  %v9614_v44 = vld [vmem:[#allocation31_spill] sm:$0xff]  ;;  %v9615_v58 = vld [vmem:[#allocation32_spill] sm:$0xff] }
 0x3c9   :  { %4006 = vmatmul.bf16.gmra.mxu2 %v8417_v62  ;;  %4029 = vmatmul.bf16.gmra.mxu3 %v8419_v14 }
 0x3ca   :  { %4410 = vmatpush.bf16.msrb.mxu0 %v7786_v21  ;;  %4429 = vmatpush.bf16.msrb.mxu1 %v9611_v9  ;;  %v9616_v21 = vld [vmem:[#allocation33_spill] sm:$0xff] }
 0x3cb   :  { %v3813_v28 = vpop.f32.mrf.mxu2 }
 0x3cc   :  { %v3836_v52 = vpop.f32.mrf.mxu3  ;;  %v3814_v19 = vadd.f32 %v3813_v28, %v3791_v11  ;;  %4467 = vmatpush.bf16.msrb.mxu3 %v9612_v47  ;;  %4449 = vmatpush.bf16.msrb.mxu2 %v9613_v23  ;;  %v9626_v11 = vld [vmem:[#allocation41_spill] sm:$0xff] }
 0x3cd   :  { %v9630_v47 = vld [vmem:[#allocation17_spill] sm:$0xff] }
 0x3ce   :  { %v8702_v49 = vadd.f32 %v3836_v52, %v3814_v19  ;;  %4411 = vmatpush.bf16.msrb.mxu0 %v9614_v44  ;;  %4430 = vmatpush.bf16.msrb.mxu1 %v9615_v58  ;;  %v9628_v52 = vld [vmem:[#allocation44_spill] sm:$0xff]  ;;  %v9629_v19 = vld [vmem:[#allocation47_spill] sm:$0xff] }
 0x3cf   :  { %v9633_v58 = vld [vmem:[#allocation19_spill] sm:$0xff] }
 0x3d0   :  { %v3772_v63 = vpop.f32.mrf.mxu0  ;;  %v3795_v32 = vpop.f32.mrf.mxu1  ;;  %4468 = vmatpush.bf16.msrb.mxu3 %v9616_v21  ;;  %4450 = vmatpush.bf16.msrb.mxu2 %v9617_v13 }
 0x3d1   :  { %v3773_v62 = vadd.f32 %v3772_v63, %v8636_v59  ;;  %v9619_v59 = vld [vmem:[#allocation35_spill] sm:$0xff]  ;;  %v9631_v63 = vld [vmem:[#allocation46_spill] sm:$0xff] }
 0x3d2   :  { %4412 = vmatpush.bf16.msrb.mxu0 %v9618_v55  ;;  %4431 = vmatpush.bf16.msrb.mxu1 %v9619_v59  ;;  %v9635_v55 = vld [vmem:[#allocation18_spill] sm:$0xff]  ;;  %v9636_v59 = vld [vmem:[#allocation48_spill] sm:$0xff] }
 0x3d3   :  { %v3796_v14 = vadd.f32 %v3795_v32, %v3773_v62  ;;  %4042 = vmatmul.bf16.vlgmr.msra.gmra.mxu0 %v8336_v48  ;;  %4065 = vmatmul.bf16.vlgmr.msra.gmra.mxu1 %v8340_v22  ;;  %v8711_v34 = vpop.f32.mrf.mxu2  ;;  %v9621_v48 = vld [vmem:[#allocation40_spill] sm:$0xff]  ;;  %v9622_v22 = vld [vmem:[#allocation38_spill] sm:$0xff] }
 0x3d4   :  { %v8713_v56 = vpop.f32.mrf.mxu3  ;;  %4469 = vmatpush.bf16.msrb.mxu3 %v9620_v16  ;;  %4451 = vmatpush.bf16.msrb.mxu2 %v9621_v48  ;;  %v9632_v62 = vld [vmem:[#allocation16_spill] sm:$0xff]  ;;  %v9637_v48 = vld [vmem:[#allocation51_spill] sm:$0xff] }
 0x3d6   :  { %4413 = vmatpush.bf16.msrb.mxu0 %v9622_v22  ;;  %4432 = vmatpush.bf16.msrb.mxu1 %v9623_v25  ;;  %v9638_v22 = vld [vmem:[#allocation53_spill] sm:$0xff]  ;;  %v9641_v25 = vld [vmem:[#allocation55_spill] sm:$0xff] }
 0x3d8   :  { %v8717_v7 = vpop.f32.mrf.mxu0  ;;  %v8719_v57 = vpop.f32.mrf.mxu1  ;;  %4470 = vmatpush.bf16.msrb.mxu3 %v9626_v11 }
 0x3d9   :  { %4088 = vmatmul.bf16.vlgmr.msra.gmra.mxu2 %v8472_v29  ;;  %4111 = vmatmul.bf16.vlgmr.msra.gmra.mxu3 %v8476_v18 }
 0x3da   :  { %4482 = vmatpush.bf16.msra.mxu0 %v9624_v1  ;;  %4501 = vmatpush.bf16.msra.mxu1 %v9625_v31  ;;  %v9642_v1 = vld [vmem:[#allocation56_spill] sm:$0xff] }
 0x3db   :  { %4520 = vmatpush.bf16.msra.mxu2 %v9627_v2  ;;  %v3818_v61 = vpop.f32.mrf.mxu2  ;;  %v9643_v2 = vld [vmem:[#allocation54_spill] sm:$0xff] }
 0x3dc   :  { %v3841_v28 = vpop.f32.mrf.mxu3  ;;  %4539 = vmatpush.bf16.msra.mxu3 %v9628_v52  ;;  %v3819_v9 = vadd.f32 %v3818_v61, %v3796_v14  ;;  %v9634_v14 = vld [vmem:[#allocation49_spill] sm:$0xff]  ;;  %v9644_v61 = vld [vmem:[#allocation15_spill] sm:$0xff] }
 0x3de   :  { %4483 = vmatpush.bf16.msra.mxu0 %v9629_v19  ;;  %4502 = vmatpush.bf16.msra.mxu1 %v9630_v47  ;;  %v3842_v29 = vadd.f32 %v3841_v28, %v3819_v9  ;;  %v9645_v47 = vld [vmem:[#allocation58_spill] sm:$0xff] }
 0x3df   :  { %4521 = vmatpush.bf16.msra.mxu2 %v9631_v63 }
 0x3e0   :  { %v3777_v23 = vpop.f32.mrf.mxu0  ;;  %v3800_v18 = vpop.f32.mrf.mxu1  ;;  %4540 = vmatpush.bf16.msra.mxu3 %v9632_v62  ;;  %v9650_v62 = vld [vmem:[#allocation64_spill] sm:$0xff] }
 0x3e1   :  { %v3778_v32 = vadd.f32 %v3777_v23, %v8675_v5  ;;  %v9646_v23 = vld [vmem:[#allocation60_spill] sm:$0xff] }
 0x3e2   :  { %4484 = vmatpush.bf16.msra.mxu0 %v9633_v58  ;;  %4503 = vmatpush.bf16.msra.mxu1 %v9634_v14  ;;  %v9651_v14 = vld [vmem:[#allocation61_spill] sm:$0xff] }
 0x3e3   :  { %v3801_v44 = vadd.f32 %v3800_v18, %v3778_v32  ;;  %4047 = vmatmul.bf16.gmra.mxu0 %v8389_v10  ;;  %4070 = vmatmul.bf16.gmra.mxu1 %v8393_v24  ;;  %v8741_v21 = vpop.f32.mrf.mxu2  ;;  %v9639_v10 = vld [vmem:[#allocation50_spill] sm:$0xff]  ;;  %v9640_v24 = vld [vmem:[#allocation52_spill] sm:$0xff]  ;;  %v9648_v18 = vld [vmem:[#allocation59_spill] sm:$0xff] }
 0x3e4   :  { %v8743_v13 = vpop.f32.mrf.mxu3  ;;  %4522 = vmatpush.bf16.msra.mxu2 %v9635_v55  ;;  %4541 = vmatpush.bf16.msra.mxu3 %v9636_v59  ;;  %v9649_v32 = vld [vmem:[#allocation62_spill] sm:$0xff]  ;;  %v9652_v55 = vld [vmem:[#allocation63_spill] sm:$0xff] }
 0x3e6   :  { %4485 = vmatpush.bf16.msra.mxu0 %v9637_v48  ;;  %4504 = vmatpush.bf16.msra.mxu1 %v9638_v22  ;;  %v8781_v48 = vperm.slane %v8454_v50, 1 }
 0x3e8   :  { %v3779_v5 = vpop.f32.mrf.mxu0  ;;  %v3802_v16 = vpop.f32.mrf.mxu1  ;;  %4523 = vmatpush.bf16.msra.mxu2 %v9639_v10  ;;  %4542 = vmatpush.bf16.msra.mxu3 %v9640_v24 }
 0x3e9   :  { %4093 = vmatmul.bf16.gmra.mxu2 %v8519_v20  ;;  %4116 = vmatmul.bf16.gmra.mxu3 %v8523_v37  ;;  %v9647_v37 = vld [vmem:[#allocation57_spill] sm:$0xff]  ;;  %v9653_v5 = vld [vmem:[#allocation66_spill] sm:$0xff]  ;;  %v9654_v16 = vld [vmem:[#allocation68_spill] sm:$0xff] }
 0x3ea   :  { %4486 = vmatpush.bf16.msra.mxu0 %v9641_v25  ;;  %4505 = vmatpush.bf16.msra.mxu1 %v9642_v1 }
 0x3eb   :  { %v3823_v31 = vpop.f32.mrf.mxu2 }
 0x3ec   :  { %v3846_v11 = vpop.f32.mrf.mxu3  ;;  %4524 = vmatpush.bf16.msra.mxu2 %v9643_v2  ;;  %4543 = vmatpush.bf16.msra.mxu3 %v9644_v61  ;;  %v3824_v28 = vadd.f32 %v3823_v31, %v3801_v44 }
 0x3ee   :  { %v3847_v52 = vadd.f32 %v3846_v11, %v3824_v28  ;;  %4487 = vmatpush.bf16.msra.mxu0 %v9645_v47  ;;  %4506 = vmatpush.bf16.msra.mxu1 %v9646_v23 }
 0x3f0   :  { %v3859_v9 = vpop.f32.mrf.mxu0  ;;  %v3882_v19 = vpop.f32.mrf.mxu1  ;;  %4525 = vmatpush.bf16.msra.mxu2 %v9647_v37  ;;  %4544 = vmatpush.bf16.msra.mxu3 %v9648_v18 }
 0x3f1   :  { %v3860_v20 = vadd.f32 %v3859_v9, %v8702_v49 }
 0x3f2   :  { %4488 = vmatpush.bf16.msra.mxu0 %v9649_v32  ;;  %4507 = vmatpush.bf16.msra.mxu1 %v9650_v62 }
 0x3f3   :  { %v8762_v63 = vadd.f32 %v3882_v19, %v3860_v20  ;;  %4052 = vmatmul.bf16.gmra.mxu0 %v8436_v4  ;;  %4075 = vmatmul.bf16.gmra.mxu1 %v8438_v8  ;;  %v3825_v44 = vpop.f32.mrf.mxu2  ;;  %v9655_v4 = vld [vmem:[#allocation65_spill] sm:$0xff]  ;;  %v9656_v8 = vld [vmem:[#allocation67_spill] sm:$0xff] }
 0x3f4   :  { %v3848_v58 = vpop.f32.mrf.mxu3  ;;  %4526 = vmatpush.bf16.msra.mxu2 %v9651_v14  ;;  %4545 = vmatpush.bf16.msra.mxu3 %v9652_v55 }
 0x3f6   :  { %4489 = vmatpush.bf16.msra.mxu0 %v9653_v5  ;;  %4508 = vmatpush.bf16.msra.mxu1 %v9654_v16 }
 0x3f8   :  { %v8770_v49 = vpop.f32.mrf.mxu0  ;;  %v8772_v59 = vpop.f32.mrf.mxu1  ;;  %4527 = vmatpush.bf16.msra.mxu2 %v9655_v4  ;;  %4546 = vmatpush.bf16.msra.mxu3 %v9656_v8 }
 0x3f9   :  { %4098 = vmatmul.bf16.gmra.mxu2 %v8556_v43  ;;  %4121 = vmatmul.bf16.gmra.mxu3 %v8558_v26 }
 0x3fb   :  { %v3905_v22 = vpop.f32.mrf.mxu2 }
 0x3fc   :  { %v3928_v10 = vpop.f32.mrf.mxu3  ;;  %v3906_v24 = vadd.f32 %v3905_v22, %v8781_v48 }
 0x3fe   :  { %v3929_v25 = vadd.f32 %v3928_v10, %v3906_v24 }
 0x400   :  { %v3864_v1 = vpop.f32.mrf.mxu0  ;;  %v3887_v31 = vpop.f32.mrf.mxu1 }
 0x401   :  { %v3865_v11 = vadd.f32 %v3864_v1, %v3842_v29 }
 0x403   :  { %v8784_v2 = vadd.f32 %v3887_v31, %v3865_v11  ;;  %v3907_v61 = vpop.f32.mrf.mxu2 }
 0x404   :  { %v3930_v28 = vpop.f32.mrf.mxu3  ;;  %v3908_v30 = vadd.f32 %v3907_v61, %v8781_v48 }
 0x406   :  { %v3931_v51 = vadd.f32 %v3930_v28, %v3908_v30 }
 0x408   :  { %v8786_v9 = vpop.f32.mrf.mxu0  ;;  %v8788_v43 = vpop.f32.mrf.mxu1 }
 0x40b   :  { %v3910_v26 = vpop.f32.mrf.mxu2 }
 0x40c   :  { %v3933_v19 = vpop.f32.mrf.mxu3  ;;  %v3911_v50 = vadd.f32 %v3910_v26, %v8781_v48 }
 0x40e   :  { %v3934_v47 = vadd.f32 %v3933_v19, %v3911_v50 }
 0x410   :  { %v3869_v23 = vpop.f32.mrf.mxu0  ;;  %v3892_v20 = vpop.f32.mrf.mxu1 }
 0x411   :  { %v3870_v37 = vadd.f32 %v3869_v23, %v3847_v52 }
 0x413   :  { %v8791_v18 = vadd.f32 %v3892_v20, %v3870_v37  ;;  %v3912_v32 = vpop.f32.mrf.mxu2 }
 0x414   :  { %v8793_v29 = vpop.f32.mrf.mxu3 }
 0x415   :  { %9657 = vst [vmem:[#allocation21_spill] sm:$0xff] %v8791_v18 }
 0x418   :  { %v3871_v62 = vpop.f32.mrf.mxu0  ;;  %v3894_v44 = vpop.f32.mrf.mxu1 }
 0x41b   :  { %v3915_v58 = vpop.f32.mrf.mxu2 }
 0x41c   :  { %v3938_v14 = vpop.f32.mrf.mxu3  ;;  %v3916_v55 = vadd.f32 %v3915_v58, %v8781_v48 }
 0x41e   :  { %v8796_v5 = vadd.f32 %v3938_v14, %v3916_v55 }
 0x420   :  { %v3951_v16 = vpop.f32.mrf.mxu0  ;;  %v3974_v4 = vpop.f32.mrf.mxu1 }
 0x423   :  { %v3917_v8 = vpop.f32.mrf.mxu2 }
 0x424   :  { %v3940_v22 = vpop.f32.mrf.mxu3 }
 0x425   :  { %v3952_v22 = vadd.f32 %v3951_v16, %v3929_v25 }
 0x427   :  { %v3975_v60 = vadd.f32 %v3974_v4, %v3952_v22 }
 0x428   :  { %v3953_v10 = vpop.f32.mrf.mxu0  ;;  %v3976_v24 = vpop.f32.mrf.mxu1 }
 0x42b   :  { %v3997_v52 = vpop.f32.mrf.mxu2 }
 0x42c   :  { %v4020_v1 = vpop.f32.mrf.mxu3  ;;  %v3998_v12 = vadd.f32 %v3997_v52, %v3975_v60 }
 0x42e   :  { %v4021_v33 = vadd.f32 %v4020_v1, %v3998_v12 }
 0x430   :  { %v3956_v31 = vpop.f32.mrf.mxu0  ;;  %v3979_v11 = vpop.f32.mrf.mxu1 }
 0x431   :  { %v3957_v22 = vadd.f32 %v3956_v31, %v3934_v47 }
 0x433   :  { %v3999_v26 = vpop.f32.mrf.mxu2 }
 0x434   :  { %v4022_v19 = vpop.f32.mrf.mxu3 }
 0x438   :  { %v3958_v50 = vpop.f32.mrf.mxu0  ;;  %v3981_v23 = vpop.f32.mrf.mxu1 }
 0x43c   :  { %v4002_v20 = vpop.f32.mrf.mxu2  ;;  %v4025_v37 = vpop.f32.mrf.mxu3 }
 0x440   :  { %v8798_v62 = vpop.f32.mrf.mxu0  ;;  %v8800_v44 = vpop.f32.mrf.mxu1 }
 0x444   :  { %v8802_v58 = vpop.f32.mrf.mxu2  ;;  %v8804_v14 = vpop.f32.mrf.mxu3 }
 0x448   :  { %v3963_v55 = vpop.f32.mrf.mxu0  ;;  %v3986_v8 = vpop.f32.mrf.mxu1 }
 0x449   :  { %v3724_v55 = vadd.f32 %v8610_v40, %v3701_v45  ;;  %v3954_v8 = vadd.f32 %v3953_v10, %v3931_v51  ;;  %v3913_v51 = vadd.f32 %v3912_v32, %v8781_v48 }
 0x44b   :  { %v3747_v3 = vadd.f32 %v8612_v35, %v3724_v55  ;;  %v3977_v53 = vadd.f32 %v3976_v24, %v3954_v8  ;;  %v3980_v35 = vadd.f32 %v3979_v11, %v3957_v22 }
 0x44c   :  { %v8808_v41 = vpop.f32.mrf.mxu2  ;;  %v8810_v36 = vpop.f32.mrf.mxu3 }
 0x44d   :  { %v3770_v61 = vadd.f32 %v8688_v15, %v3747_v3  ;;  %v4000_v4 = vadd.f32 %v3999_v26, %v3977_v53  ;;  %v3936_v15 = vadd.f32 %v8793_v29, %v3913_v51  ;;  %v4003_v53 = vadd.f32 %v4002_v20, %v3980_v35 }
 0x44f   :  { %v3793_v38 = vadd.f32 %v8690_v39, %v3770_v61  ;;  %v4023_v45 = vadd.f32 %v4022_v19, %v4000_v4  ;;  %v4026_v24 = vadd.f32 %v4025_v37, %v4003_v53  ;;  %v9658_v53 = vld [vmem:[#allocation70_spill] sm:$0xff] }
 0x450   :  { %v4043_v27 = vpop.f32.mrf.mxu0  ;;  %v4066_v46 = vpop.f32.mrf.mxu1 }
 0x451   :  { %v4044_v54 = vadd.f32 %v4043_v27, %v4021_v33  ;;  %v3816_v12 = vadd.f32 %v8711_v34, %v3793_v38 }
 0x453   :  { %v4067_v18 = vadd.f32 %v4066_v46, %v4044_v54  ;;  %v3839_v54 = vadd.f32 %v8713_v56, %v3816_v12  ;;  %v3959_v46 = vadd.f32 %v3958_v50, %v3936_v15 }
 0x454   :  { %v4009_v25 = vpop.f32.mrf.mxu2  ;;  %v4032_v16 = vpop.f32.mrf.mxu3 }
 0x455   :  { %v3862_v29 = vadd.f32 %v8770_v49, %v3839_v54  ;;  %v3982_v56 = vadd.f32 %v3981_v23, %v3959_v46  ;;  %v3962_v49 = vadd.f32 %v8798_v62, %v8796_v5 }
 0x457   :  { %v4005_v19 = vadd.f32 %v8802_v58, %v3982_v56  ;;  %v3985_v62 = vadd.f32 %v8800_v44, %v3962_v49 }
 0x458   :  { %v4045_v0 = vpop.f32.mrf.mxu0  ;;  %v4068_v42 = vpop.f32.mrf.mxu1 }
 0x459   :  { %v4046_v27 = vadd.f32 %v4045_v0, %v4023_v45 }
 0x45b   :  { %v4069_v34 = vadd.f32 %v4068_v42, %v4046_v27  ;;  %v3775_v42 = vadd.f32 %v8717_v7, %v8656_v17 }
 0x45c   :  { %v4089_v6 = vpop.f32.mrf.mxu2  ;;  %v4112_v60 = vpop.f32.mrf.mxu3 }
 0x45d   :  { %v4090_v40 = vadd.f32 %v4089_v6, %v4067_v18  ;;  %v3798_v7 = vadd.f32 %v8719_v57, %v3775_v42  ;;  %v4008_v57 = vadd.f32 %v8808_v41, %v3985_v62  ;;  %v9664_v42 = vld [vmem:[#allocation21_spill] sm:$0xff] }
 0x45f   :  { %v4113_v30 = vadd.f32 %v4112_v60, %v4090_v40  ;;  %v3821_v5 = vadd.f32 %v8741_v21, %v3798_v7  ;;  %v4031_v12 = vadd.f32 %v8810_v36, %v4008_v57  ;;  %v9665_v7 = vld [vmem:[#allocation82_spill] sm:$0xff] }
 0x460   :  { %v4048_v33 = vpop.f32.mrf.mxu0  ;;  %v4071_v28 = vpop.f32.mrf.mxu1 }
 0x461   :  { %v4136_v47 = vrot.slane %v4113_v30, 4  ;;  %v4049_v31 = vadd.f32 %v4048_v33, %v4026_v24  ;;  %v3844_v38 = vadd.f32 %v8743_v13, %v3821_v5 }
 0x463   :  { %v8824_v39 = vsel %vm206_vm2, %v8762_v63, %v4136_v47  ;;  %v4142_v18 = vsel %vm206_vm2, %v4136_v47, %v8762_v63  ;;  %v3885_v63 = vadd.f32 %v8772_v59, %v3862_v29  ;;  %v4072_v37 = vadd.f32 %v4071_v28, %v4049_v31  ;;  %v9659_v47 = vld [vmem:[#allocation72_spill] sm:$0xff] }
 0x464   :  { %v8828_v32 = vrot.slane %v4142_v18, 4  ;;  %4156 = vst [vmem:[#allocation1] ss:$2 sm:$0xff] %v8824_v39  ;;  %v4091_v0 = vpop.f32.mrf.mxu2  ;;  %v4114_v10 = vpop.f32.mrf.mxu3  ;;  %v4028_v59 = vadd.f32 %v8804_v14, %v4005_v19  ;;  %v3867_v40 = vadd.f32 %v8786_v9, %v3844_v38  ;;  %v9670_v38 = vld [vmem:[#allocation92_spill] sm:$0xff] }
 0x465   :  { %v4092_v52 = vadd.f32 %v4091_v0, %v4069_v34 }
 0x466   :  { %4158 = vst [vmem:[#allocation1 + $0x1] ss:$2 sm:$0xff] %v8828_v32  ;;  %v3890_v36 = vadd.f32 %v8788_v43, %v3867_v40  ;;  %v9660_v43 = vld [vmem:[#allocation74_spill] sm:$0xff] }
 0x467   :  { %v4115_v1 = vadd.f32 %v4114_v10, %v4092_v52  ;;  %v9661_v52 = vld [vmem:[#allocation76_spill] sm:$0xff] }
 0x468   :  { %v4050_v11 = vpop.f32.mrf.mxu0  ;;  %v4073_v26 = vpop.f32.mrf.mxu1 }
 0x469   :  { %v4137_v50 = vrot.slane %v4115_v1, 4  ;;  %v4051_v61 = vadd.f32 %v4050_v11, %v4028_v59  ;;  %v9662_v11 = vld [vmem:[#allocation78_spill] sm:$0xff]  ;;  %v9666_v59 = vld [vmem:[#allocation84_spill] sm:$0xff] }
 0x46b   :  { %v8840_v20 = vsel %vm206_vm2, %v3885_v63, %v4137_v50  ;;  %v4145_v23 = vsel %vm206_vm2, %v4137_v50, %v3885_v63  ;;  %v4074_v44 = vadd.f32 %v4073_v26, %v4051_v61  ;;  %v9663_v26 = vld [vmem:[#allocation80_spill] sm:$0xff] }
 0x46c   :  { %v8843_v55 = vrot.slane %v4145_v23, 4  ;;  %4160 = vst [vmem:[#allocation1 + $0x10] ss:$2 sm:$0xff] %v8840_v20  ;;  %v4094_v8 = vpop.f32.mrf.mxu2  ;;  %v4117_v17 = vpop.f32.mrf.mxu3 }
 0x46d   :  { %v4095_v58 = vadd.f32 %v4094_v8, %v4072_v37  ;;  %v4163_v25 = vld.sshfl [vmem:[#allocation1] sm:$0xff pattern:$0x75316420]  ;;  %v4164_v16 = vld.sshfl [vmem:[#allocation1 + $0x8] sm:$0xff pattern:$0x75316420] }
 0x46e   :  { %4162 = vst [vmem:[#allocation1 + $0x11] ss:$2 sm:$0xff] %v8843_v55 }
 0x46f   :  { %v4118_v3 = vadd.f32 %v4117_v17, %v4095_v58  ;;  %4187 = vst [vmem:[#allocation1] ss:$2 sm:$0xff] %v8824_v39 }
 0x470   :  { %v4053_v4 = vpop.f32.mrf.mxu0  ;;  %v4076_v22 = vpop.f32.mrf.mxu1  ;;  %4189 = vst [vmem:[#allocation1 + $0x1] ss:$2 sm:$0xff] %v8828_v32 }
 0x471   :  { %v4138_v14 = vrot.slane %v4118_v3, 4 }
 0x473   :  { %v8857_v6 = vsel %vm206_vm2, %v8784_v2, %v4138_v14  ;;  %v4148_v21 = vsel %vm206_vm2, %v4138_v14, %v8784_v2  ;;  %v4054_v2 = vadd.f32 %v4053_v4, %v4031_v12  ;;  %v9669_v14 = vld [vmem:[#allocation90_spill] sm:$0xff] }
 0x474   :  { %v8861_v60 = vrot.slane %v4148_v21, 4  ;;  %v4096_v51 = vpop.f32.mrf.mxu2  ;;  %v4119_v45 = vpop.f32.mrf.mxu3 }
 0x475   :  { %v4097_v41 = vadd.f32 %v4096_v51, %v4074_v44  ;;  %v4165_v35 = vld.sshfl [vmem:[#allocation1 + $0x10] sm:$0xff pattern:$0x75316420]  ;;  %v4166_v30 = vld.sshfl [vmem:[#allocation1 + $0x18] sm:$0xff pattern:$0x75316420]  ;;  %v4077_v18 = vadd.f32 %v4076_v22, %v4054_v2 }
 0x476   :  { %4168 = vst [vmem:[#allocation1 + $0x20] ss:$2 sm:$0xff] %v8861_v60  ;;  %v8866_v13 = vpack.c.bf16 %v4165_v35, %v4163_v25  ;;  %v8868_v27 = vpack.c.bf16 %v4166_v30, %v4164_v16  ;;  %v9667_v25 = vld [vmem:[#allocation86_spill] sm:$0xff]  ;;  %v9668_v16 = vld [vmem:[#allocation88_spill] sm:$0xff] }
 0x477   :  { %v4120_v33 = vadd.f32 %v4119_v45, %v4097_v41  ;;  %4191 = vst [vmem:[#allocation1 + $0x10] ss:$2 sm:$0xff] %v8840_v20  ;;  %v4196_v24 = vld.sshfl [vmem:[#allocation1] sm:$0xff pattern:$0x75316420] }
 0x478   :  { %v4055_v28 = vpop.f32.mrf.mxu0  ;;  %v4078_v15 = vpop.f32.mrf.mxu1  ;;  %4414 = vmatmul.bf16.vlgmr.msrb.gmra.mxu0 %v8866_v13  ;;  %4433 = vmatmul.bf16.vlgmr.msrb.gmra.mxu1 %v8868_v27  ;;  %4193 = vst [vmem:[#allocation1 + $0x11] ss:$2 sm:$0xff] %v8843_v55  ;;  %v4197_v56 = vld.sshfl [vmem:[#allocation1 + $0x8] sm:$0xff pattern:$0x75316420]  ;;  %v4215_v61 = vrot.slane %v4196_v24, 1 }
 0x479   :  { %v4139_v9 = vrot.slane %v4120_v33, 4  ;;  %4558 = vmatpush.bf16.msrb.mxu0 %v9658_v53  ;;  %4577 = vmatpush.bf16.msrb.mxu1 %v9659_v47  ;;  %v4218_v33 = vrot.slane %v4197_v56, 1  ;;  %v9671_v28 = vld [vmem:[#allocation94_spill] sm:$0xff]  ;;  %v9672_v15 = vld [vmem:[#allocation96_spill] sm:$0xff] }
 0x47a   :  { %v9675_v24 = vld [vmem:[#allocation100_spill] sm:$0xff] }
 0x47b   :  { %v8878_v54 = vsel %vm206_vm2, %v3890_v36, %v4139_v9  ;;  %v4151_v46 = vsel %vm206_vm2, %v4139_v9, %v3890_v36 }
 0x47c   :  { %v8881_v34 = vrot.slane %v4151_v46, 4  ;;  %4170 = vst [vmem:[#allocation1 + $0x21] ss:$2 sm:$0xff] %v8878_v54  ;;  %v4099_v0 = vpop.f32.mrf.mxu2  ;;  %v4122_v10 = vpop.f32.mrf.mxu3 }
 0x47d   :  { %v4100_v29 = vadd.f32 %v4099_v0, %v4077_v18  ;;  %4559 = vmatpush.bf16.msrb.mxu0 %v9660_v43  ;;  %4578 = vmatpush.bf16.msrb.mxu1 %v9661_v52  ;;  %v9673_v0 = vld [vmem:[#allocation69_spill] sm:$0xff]  ;;  %v9676_v52 = vld [vmem:[#allocation71_spill] sm:$0xff] }
 0x47e   :  { %4172 = vst [vmem:[#allocation1 + $0x30] ss:$2 sm:$0xff] %v8881_v34 }
 0x47f   :  { %v4123_v1 = vadd.f32 %v4122_v10, %v4100_v29  ;;  %4208 = vst [vmem:[#allocation1] ss:$2 sm:$0xff] %v8881_v34  ;;  %v4198_v17 = vld.sshfl [vmem:[#allocation1 + $0x10] sm:$0xff pattern:$0x75316420]  ;;  %v9674_v10 = vld [vmem:[#allocation98_spill] sm:$0xff] }
 0x480   :  { %v4199_v58 = vld.sshfl [vmem:[#allocation1 + $0x18] sm:$0xff pattern:$0x75316420]  ;;  %v4216_v57 = vrot.slane %v4198_v17, 1 }
 0x481   :  { %v4140_v31 = vrot.slane %v4123_v1, 4  ;;  %4560 = vmatpush.bf16.msrb.mxu0 %v9662_v11  ;;  %4579 = vmatpush.bf16.msrb.mxu1 %v9663_v26  ;;  %v4219_v51 = vrot.slane %v4199_v58, 1 }
 0x482   :  { %v4217_v35 = vsel %vm613_vm1, %v4215_v61, %v4216_v57 }
 0x483   :  { %v8892_v63 = vsel %vm206_vm2, %v9664_v42, %v4140_v31  ;;  %v4154_v19 = vsel %vm206_vm2, %v4140_v31, %v9664_v42  ;;  %v4175_v50 = vld.sshfl [vmem:[#allocation1 + $0x20] sm:$0xff pattern:$0x75316420]  ;;  %v4176_v49 = vld.sshfl [vmem:[#allocation1 + $0x28] sm:$0xff pattern:$0x75316420]  ;;  %v4220_v9 = vsel %vm613_vm1, %v4218_v33, %v4219_v51 }
 0x484   :  { %v8896_v23 = vrot.slane %v4154_v19, 4  ;;  %4209 = vst [vmem:[#allocation1 + $0x1] ss:$2 sm:$0xff] %v8892_v63  ;;  %v4101_v37 = vpop.f32.mrf.mxu2  ;;  %v4124_v8 = vpop.f32.mrf.mxu3  ;;  %v9677_v19 = vld [vmem:[#allocation73_spill] sm:$0xff] }
 0x485   :  { %4174 = vst [vmem:[#allocation1 + $0x31] ss:$2 sm:$0xff] %v8892_v63  ;;  %4561 = vmatpush.bf16.msrb.mxu0 %v9665_v7  ;;  %4580 = vmatpush.bf16.msrb.mxu1 %v9666_v59  ;;  %v9678_v59 = vld [vmem:[#allocation75_spill] sm:$0xff] }
 0x486   :  { %4195 = vst [vmem:[#allocation1 + $0x20] ss:$2 sm:$0xff] %v8857_v6 }
 0x487   :  { %4210 = vst [vmem:[#allocation1 + $0x10] ss:$2 sm:$0xff] %v8896_v23 }
 0x489   :  { %4562 = vmatpush.bf16.msrb.mxu0 %v9667_v25  ;;  %4581 = vmatpush.bf16.msrb.mxu1 %v9668_v16 }
 0x48b   :  { %v8906_v5 = vld.sshfl [vmem:[#allocation1] sm:$0xff pattern:$0x75316420]  ;;  %v8908_v62 = vld.sshfl [vmem:[#allocation1 + $0x8] sm:$0xff pattern:$0x75316420] }
 0x48c   :  { %4243 = vst [vmem:[#allocation1] ss:$2 sm:$0xff] %v8824_v39  ;;  %v4177_v3 = vld.sshfl [vmem:[#allocation1 + $0x30] sm:$0xff pattern:$0x75316420]  ;;  %v4226_v31 = vrot.slane %v8906_v5, 1 }
 0x48d   :  { %4245 = vst [vmem:[#allocation1 + $0x1] ss:$2 sm:$0xff] %v8828_v32  ;;  %v8912_v4 = vpack.c.bf16 %v4177_v3, %v4175_v50  ;;  %v4178_v22 = vld.sshfl [vmem:[#allocation1 + $0x38] sm:$0xff pattern:$0x75316420]  ;;  %4563 = vmatpush.bf16.msrb.mxu0 %v9669_v14  ;;  %4582 = vmatpush.bf16.msrb.mxu1 %v9670_v38 }
 0x48e   :  { %v8916_v21 = vpack.c.bf16 %v4178_v22, %v4176_v49  ;;  %4203 = vst [vmem:[#allocation1 + $0x30] ss:$2 sm:$0xff] %v8861_v60  ;;  %v4200_v44 = vld.sshfl [vmem:[#allocation1 + $0x20] sm:$0xff pattern:$0x75316420] }
 0x48f   :  { %4419 = vmatmul.bf16.gmra.mxu0 %v8912_v4  ;;  %4205 = vst [vmem:[#allocation1 + $0x31] ss:$2 sm:$0xff] %v8878_v54  ;;  %v4221_v45 = vrot.slane %v4200_v44, 1  ;;  %v4201_v40 = vld.sshfl [vmem:[#allocation1 + $0x28] sm:$0xff pattern:$0x75316420] }
 0x490   :  { %4438 = vmatmul.bf16.gmra.mxu1 %v8916_v21  ;;  %v8922_v12 = vld.sshfl [vmem:[#allocation1 + $0x10] sm:$0xff pattern:$0x75316420]  ;;  %v8924_v41 = vld.sshfl [vmem:[#allocation1 + $0x18] sm:$0xff pattern:$0x75316420] }
 0x491   :  { %v4222_v30 = vsel %vm613_vm1, %v4216_v57, %v4221_v45  ;;  %v4223_v2 = vrot.slane %v4201_v40, 1  ;;  %4247 = vst [vmem:[#allocation1 + $0x10] ss:$2 sm:$0xff] %v8840_v20  ;;  %4564 = vmatpush.bf16.msrb.mxu0 %v9671_v28  ;;  %4583 = vmatpush.bf16.msrb.mxu1 %v9672_v15  ;;  %v4231_v11 = vrot.slane %v8922_v12, 1  ;;  %v9679_v57 = vld [vmem:[#allocation77_spill] sm:$0xff]  ;;  %v4229_v45 = vrot.slane %v8908_v62, 1 }
 0x492   :  { %v8931_v36 = vpack.c.bf16 %v4222_v30, %v4217_v35  ;;  %4249 = vst [vmem:[#allocation1 + $0x11] ss:$2 sm:$0xff] %v8843_v55  ;;  %v4233_v40 = vrot.slane %v8924_v41, 1  ;;  %v9680_v12 = vld [vmem:[#allocation79_spill] sm:$0xff]  ;;  %v9681_v30 = vld [vmem:[#allocation81_spill] sm:$0xff]  ;;  %v9682_v28 = vld [vmem:[#allocation102_spill] sm:$0xff] }
 0x493   :  { %v4224_v53 = vsel %vm613_vm1, %v4219_v51, %v4223_v2  ;;  %4251 = vst [vmem:[#allocation1 + $0x20] ss:$2 sm:$0xff] %v8857_v6  ;;  %v9683_v41 = vld [vmem:[#allocation104_spill] sm:$0xff] }
 0x494   :  { %v4252_v47 = vld.sshfl [vmem:[#allocation1] sm:$0xff pattern:$0x75316420]  ;;  %v4253_v46 = vld.sshfl [vmem:[#allocation1 + $0x8] sm:$0xff pattern:$0x75316420]  ;;  %4452 = vmatmul.bf16.vlgmr.msrb.gmra.mxu2 %v8931_v36  ;;  %v8938_v18 = vpack.c.bf16 %v4224_v53, %v4220_v9  ;;  %v4234_v15 = vsel %vm613_vm1, %v4229_v45, %v4233_v40 }
 0x495   :  { %4264 = vst [vmem:[#allocation1] ss:$2 sm:$0xff] %v8881_v34  ;;  %4596 = vmatpush.bf16.msrb.mxu2 %v9673_v0  ;;  %4565 = vmatpush.bf16.msrb.mxu0 %v9674_v10  ;;  %v4271_v56 = vrot.slane %v4252_v47, 2  ;;  %v4274_v1 = vrot.slane %v4253_v46, 2  ;;  %v9684_v9 = vld [vmem:[#allocation83_spill] sm:$0xff]  ;;  %v9685_v0 = vld [vmem:[#allocation85_spill] sm:$0xff] }
 0x496   :  { %4265 = vst [vmem:[#allocation1 + $0x1] ss:$2 sm:$0xff] %v8892_v63  ;;  %4471 = vmatmul.bf16.vlgmr.msrb.gmra.mxu3 %v8938_v18  ;;  %v4206_v29 = vld.sshfl [vmem:[#allocation1 + $0x30] sm:$0xff pattern:$0x75316420]  ;;  %4584 = vmatpush.bf16.msrb.mxu1 %v9675_v24  ;;  %v9686_v24 = vld [vmem:[#allocation106_spill] sm:$0xff] }
 0x497   :  { %v4207_v43 = vld.sshfl [vmem:[#allocation1 + $0x38] sm:$0xff pattern:$0x75316420]  ;;  %4615 = vmatpush.bf16.msrb.mxu3 %v9676_v52  ;;  %v4225_v8 = vrot.slane %v4206_v29, 1 }
 0x498   :  { %4259 = vst [vmem:[#allocation1 + $0x30] ss:$2 sm:$0xff] %v8861_v60  ;;  %v4228_v5 = vrot.slane %v4207_v43, 1 }
 0x499   :  { %v4254_v26 = vld.sshfl [vmem:[#allocation1 + $0x10] sm:$0xff pattern:$0x75316420]  ;;  %v4255_v42 = vld.sshfl [vmem:[#allocation1 + $0x18] sm:$0xff pattern:$0x75316420]  ;;  %4597 = vmatpush.bf16.msrb.mxu2 %v9677_v19  ;;  %v4227_v51 = vsel %vm613_vm1, %v4225_v8, %v4226_v31 }
 0x49a   :  { %v4256_v50 = vld.sshfl [vmem:[#allocation1 + $0x20] sm:$0xff pattern:$0x75316420]  ;;  %v4272_v49 = vrot.slane %v4254_v26, 2  ;;  %v4275_v37 = vrot.slane %v4255_v42, 2  ;;  %v4230_v35 = vsel %vm613_vm1, %v4228_v5, %v4229_v45  ;;  %v9689_v19 = vld [vmem:[#allocation89_spill] sm:$0xff] }
 0x49b   :  { %v4277_v17 = vrot.slane %v4256_v50, 2  ;;  %v4257_v7 = vld.sshfl [vmem:[#allocation1 + $0x28] sm:$0xff pattern:$0x75316420]  ;;  %4266 = vst [vmem:[#allocation1 + $0x10] ss:$2 sm:$0xff] %v8896_v23  ;;  %4616 = vmatpush.bf16.msrb.mxu3 %v9678_v59  ;;  %v8987_v53 = vpack.c.bf16 %v4234_v15, %v4230_v35 }
 0x49c   :  { %v4273_v58 = vsel %vm690_vm3, %v4271_v56, %v4272_v49  ;;  %v4276_v25 = vsel %vm690_vm3, %v4274_v1, %v4275_v37  ;;  %v4279_v16 = vrot.slane %v4257_v7, 2  ;;  %4307 = vst [vmem:[#allocation1 + $0x20] ss:$2 sm:$0xff] %v8857_v6  ;;  %v9687_v56 = vld [vmem:[#allocation87_spill] sm:$0xff]  ;;  %v9688_v1 = vld [vmem:[#allocation108_spill] sm:$0xff] }
 0x49d   :  { %v8956_v3 = vld.sshfl [vmem:[#allocation1] sm:$0xff pattern:$0x75316420]  ;;  %v8958_v61 = vld.sshfl [vmem:[#allocation1 + $0x8] sm:$0xff pattern:$0x75316420]  ;;  %v4278_v22 = vsel %vm690_vm3, %v4272_v49, %v4277_v17  ;;  %4598 = vmatpush.bf16.msrb.mxu2 %v9679_v57 }
 0x49e   :  { %4299 = vst [vmem:[#allocation1] ss:$2 sm:$0xff] %v8824_v39  ;;  %v8963_v14 = vpack.c.bf16 %v4278_v22, %v4273_v58  ;;  %v4280_v38 = vsel %vm690_vm3, %v4275_v37, %v4279_v16  ;;  %v4232_v39 = vsel %vm613_vm1, %v4226_v31, %v4231_v11  ;;  %v4282_v47 = vrot.slane %v8956_v3, 2  ;;  %v9690_v37 = vld [vmem:[#allocation110_spill] sm:$0xff]  ;;  %v9691_v59 = vld [vmem:[#allocation91_spill] sm:$0xff]  ;;  %v9692_v58 = vld [vmem:[#allocation112_spill] sm:$0xff] }
 0x49f   :  { %4301 = vst [vmem:[#allocation1 + $0x1] ss:$2 sm:$0xff] %v8828_v32  ;;  %v8967_v44 = vpack.c.bf16 %v4280_v38, %v4276_v25  ;;  %4617 = vmatpush.bf16.msrb.mxu3 %v9680_v12  ;;  %v8979_v33 = vpack.c.bf16 %v4232_v39, %v4227_v51  ;;  %v4285_v46 = vrot.slane %v8958_v61, 2  ;;  %v9693_v22 = vld [vmem:[#allocation93_spill] sm:$0xff] }
 0x4a0   :  { %4490 = vmatmul.bf16.vlgmr.msra.gmra.mxu0 %v8963_v14  ;;  %4261 = vst [vmem:[#allocation1 + $0x31] ss:$2 sm:$0xff] %v8878_v54 }
 0x4a1   :  { %4509 = vmatmul.bf16.vlgmr.msra.gmra.mxu1 %v8967_v44  ;;  %4599 = vmatpush.bf16.msrb.mxu2 %v9681_v30 }
 0x4a2   :  { %v4269_v2 = vld.sshfl [vmem:[#allocation1 + $0x10] sm:$0xff pattern:$0x75316420]  ;;  %v4270_v62 = vld.sshfl [vmem:[#allocation1 + $0x18] sm:$0xff pattern:$0x75316420]  ;;  %4634 = vmatpush.bf16.msra.mxu0 %v9682_v28  ;;  %4653 = vmatpush.bf16.msra.mxu1 %v9683_v41 }
 0x4a3   :  { %4303 = vst [vmem:[#allocation1 + $0x10] ss:$2 sm:$0xff] %v8840_v20  ;;  %4618 = vmatpush.bf16.msrb.mxu3 %v9684_v9  ;;  %v4287_v52 = vrot.slane %v4269_v2, 2  ;;  %v4289_v11 = vrot.slane %v4270_v62, 2  ;;  %v9695_v2 = vld [vmem:[#allocation114_spill] sm:$0xff]  ;;  %v9696_v62 = vld [vmem:[#allocation116_spill] sm:$0xff] }
 0x4a4   :  { %4457 = vmatmul.bf16.gmra.mxu2 %v8979_v33  ;;  %4305 = vst [vmem:[#allocation1 + $0x11] ss:$2 sm:$0xff] %v8843_v55  ;;  %v4312_v42 = vld.sshfl [vmem:[#allocation1 + $0x20] sm:$0xff pattern:$0x75316420]  ;;  %v9697_v41 = vld [vmem:[#allocation97_spill] sm:$0xff] }
 0x4a5   :  { %4600 = vmatpush.bf16.msrb.mxu2 %v9685_v0  ;;  %v4313_v49 = vld.sshfl [vmem:[#allocation1 + $0x28] sm:$0xff pattern:$0x75316420]  ;;  %v4288_v8 = vsel %vm690_vm3, %v4282_v47, %v4287_v52  ;;  %v4290_v25 = vsel %vm690_vm3, %v4285_v46, %v4289_v11  ;;  %v4333_v3 = vrot.slane %v4312_v42, 3  ;;  %v9708_v42 = vld [vmem:[#allocation129_spill] sm:$0xff] }
 0x4a6   :  { %v4308_v10 = vld.sshfl [vmem:[#allocation1] sm:$0xff pattern:$0x75316420]  ;;  %v4309_v29 = vld.sshfl [vmem:[#allocation1 + $0x8] sm:$0xff pattern:$0x75316420]  ;;  %4476 = vmatmul.bf16.gmra.mxu3 %v8987_v53  ;;  %4635 = vmatpush.bf16.msra.mxu0 %v9686_v24 }
 0x4a7   :  { %4320 = vst [vmem:[#allocation1] ss:$2 sm:$0xff] %v8881_v34  ;;  %v4262_v43 = vld.sshfl [vmem:[#allocation1 + $0x30] sm:$0xff pattern:$0x75316420]  ;;  %4619 = vmatpush.bf16.msrb.mxu3 %v9687_v56  ;;  %4654 = vmatpush.bf16.msra.mxu1 %v9688_v1  ;;  %v4327_v5 = vrot.slane %v4308_v10, 3 }
 0x4a8   :  { %4321 = vst [vmem:[#allocation1 + $0x1] ss:$2 sm:$0xff] %v8892_v63  ;;  %v4263_v31 = vld.sshfl [vmem:[#allocation1 + $0x38] sm:$0xff pattern:$0x75316420]  ;;  %v4281_v26 = vrot.slane %v4262_v43, 2 }
 0x4a9   :  { %4315 = vst [vmem:[#allocation1 + $0x30] ss:$2 sm:$0xff] %v8861_v60  ;;  %4601 = vmatpush.bf16.msrb.mxu2 %v9689_v19  ;;  %v4284_v50 = vrot.slane %v4263_v31, 2  ;;  %v4330_v51 = vrot.slane %v4309_v29, 3  ;;  %v4335_v45 = vrot.slane %v4313_v49, 3  ;;  %v9698_v0 = vld [vmem:[#allocation99_spill] sm:$0xff] }
 0x4aa   :  { %4317 = vst [vmem:[#allocation1 + $0x31] ss:$2 sm:$0xff] %v8878_v54  ;;  %4636 = vmatpush.bf16.msra.mxu0 %v9690_v37  ;;  %v4283_v16 = vsel %vm690_vm3, %v4281_v26, %v4282_v47  ;;  %v9699_v10 = vld [vmem:[#allocation119_spill] sm:$0xff]  ;;  %v9700_v29 = vld [vmem:[#allocation121_spill] sm:$0xff] }
 0x4ab   :  { %v4310_v17 = vld.sshfl [vmem:[#allocation1 + $0x10] sm:$0xff pattern:$0x75316420]  ;;  %v4311_v7 = vld.sshfl [vmem:[#allocation1 + $0x18] sm:$0xff pattern:$0x75316420]  ;;  %4620 = vmatpush.bf16.msrb.mxu3 %v9691_v59  ;;  %4655 = vmatpush.bf16.msra.mxu1 %v9692_v58  ;;  %v9011_v57 = vpack.c.bf16 %v4288_v8, %v4283_v16  ;;  %v4286_v38 = vsel %vm690_vm3, %v4284_v50, %v4285_v46 }
 0x4ac   :  { %v4328_v60 = vrot.slane %v4310_v17, 3  ;;  %4322 = vst [vmem:[#allocation1 + $0x10] ss:$2 sm:$0xff] %v8896_v23  ;;  %v4331_v61 = vrot.slane %v4311_v7, 3  ;;  %v9017_v39 = vpack.c.bf16 %v4290_v25, %v4286_v38  ;;  %v9701_v24 = vld [vmem:[#allocation101_spill] sm:$0xff]  ;;  %v9702_v43 = vld [vmem:[#allocation103_spill] sm:$0xff] }
 0x4ad   :  { %4367 = vst [vmem:[#allocation1 + $0x20] ss:$2 sm:$0xff] %v8878_v54  ;;  %4602 = vmatpush.bf16.msrb.mxu2 %v9693_v22  ;;  %v9694_v54 = vld [vmem:[#allocation95_spill] sm:$0xff]  ;;  %v9704_v56 = vld [vmem:[#allocation125_spill] sm:$0xff] }
 0x4ae   :  { %4369 = vst [vmem:[#allocation1 + $0x21] ss:$2 sm:$0xff] %v8881_v34  ;;  %v4329_v35 = vsel %vm767_vm4, %v4327_v5, %v4328_v60  ;;  %v4334_v30 = vsel %vm767_vm4, %v4328_v60, %v4333_v3  ;;  %4637 = vmatpush.bf16.msra.mxu0 %v9695_v2  ;;  %v4332_v34 = vsel %vm767_vm4, %v4330_v51, %v4331_v61  ;;  %v9703_v52 = vld [vmem:[#allocation123_spill] sm:$0xff]  ;;  %v9705_v1 = vld [vmem:[#allocation105_spill] sm:$0xff] }
 0x4af   :  { %v4323_v40 = vld.sshfl [vmem:[#allocation1] sm:$0xff pattern:$0x75316420]  ;;  %v9015_v12 = vld.sshfl [vmem:[#allocation1 + $0x8] sm:$0xff pattern:$0x75316420]  ;;  %4621 = vmatpush.bf16.msrb.mxu3 %v9694_v54  ;;  %4656 = vmatpush.bf16.msra.mxu1 %v9696_v62  ;;  %v4336_v28 = vsel %vm767_vm4, %v4331_v61, %v4335_v45  ;;  %v9031_v15 = vpack.c.bf16 %v4334_v30, %v4329_v35 }
 0x4b0   :  { %4355 = vst [vmem:[#allocation1] ss:$2 sm:$0xff] %v8828_v32  ;;  %4495 = vmatmul.bf16.gmra.mxu0 %v9011_v57  ;;  %v9706_v31 = vld [vmem:[#allocation107_spill] sm:$0xff]  ;;  %v4338_v19 = vrot.slane %v4323_v40, 3  ;;  %v9709_v50 = vld [vmem:[#allocation109_spill] sm:$0xff]  ;;  %v4341_v59 = vrot.slane %v9015_v12, 3 }
 0x4b1   :  { %4357 = vst [vmem:[#allocation1 + $0x1] ss:$2 sm:$0xff] %v8840_v20  ;;  %4514 = vmatmul.bf16.gmra.mxu1 %v9017_v39  ;;  %4603 = vmatpush.bf16.msrb.mxu2 %v9697_v41  ;;  %v4318_v9 = vld.sshfl [vmem:[#allocation1 + $0x30] sm:$0xff pattern:$0x75316420]  ;;  %v9036_v20 = vpack.c.bf16 %v4336_v28, %v4332_v34  ;;  %v9710_v58 = vld [vmem:[#allocation111_spill] sm:$0xff] }
 0x4b2   :  { %v4319_v47 = vld.sshfl [vmem:[#allocation1 + $0x38] sm:$0xff pattern:$0x75316420]  ;;  %4638 = vmatpush.bf16.msra.mxu0 %v9699_v10  ;;  %v4337_v17 = vrot.slane %v4318_v9, 3  ;;  %v9711_v25 = vld [vmem:[#allocation131_spill] sm:$0xff]  ;;  %v9717_v35 = vld [vmem:[#allocation118_spill] sm:$0xff] }
 0x4b3   :  { %v4325_v46 = vld.sshfl [vmem:[#allocation1 + $0x10] sm:$0xff pattern:$0x75316420]  ;;  %v4326_v32 = vld.sshfl [vmem:[#allocation1 + $0x18] sm:$0xff pattern:$0x75316420]  ;;  %4622 = vmatpush.bf16.msrb.mxu3 %v9698_v0  ;;  %4657 = vmatpush.bf16.msra.mxu1 %v9700_v29 }
 0x4b4   :  { %4528 = vmatmul.bf16.vlgmr.msra.gmra.mxu2 %v9031_v15  ;;  %4359 = vst [vmem:[#allocation1 + $0x10] ss:$2 sm:$0xff] %v8843_v55  ;;  %v4343_v55 = vrot.slane %v4325_v46, 3  ;;  %v9712_v60 = vld [vmem:[#allocation133_spill] sm:$0xff]  ;;  %v4339_v16 = vsel %vm767_vm4, %v4337_v17, %v4338_v19  ;;  %v4340_v5 = vrot.slane %v4319_v47, 3  ;;  %v9714_v38 = vld [vmem:[#allocation135_spill] sm:$0xff] }
 0x4b5   :  { %4361 = vst [vmem:[#allocation1 + $0x11] ss:$2 sm:$0xff] %v8857_v6  ;;  %4672 = vmatpush.bf16.msra.mxu2 %v9701_v24  ;;  %v9707_v6 = vld [vmem:[#allocation127_spill] sm:$0xff]  ;;  %v9713_v61 = vld [vmem:[#allocation113_spill] sm:$0xff]  ;;  %v9719_v54 = vld [vmem:[#allocation120_spill] sm:$0xff] }
 0x4b6   :  { %4547 = vmatmul.bf16.vlgmr.msra.gmra.mxu3 %v9036_v20  ;;  %4371 = vst [vmem:[#allocation1 + $0x30] ss:$2 sm:$0xff] %v8892_v63  ;;  %4639 = vmatpush.bf16.msra.mxu0 %v9703_v52  ;;  %v4344_v7 = vsel %vm767_vm4, %v4338_v19, %v4343_v55  ;;  %v9715_v51 = vld [vmem:[#allocation137_spill] sm:$0xff]  ;;  %v4342_v45 = vsel %vm767_vm4, %v4340_v5, %v4341_v59  ;;  %v9716_v40 = vld [vmem:[#allocation115_spill] sm:$0xff]  ;;  %v9721_v62 = vld [vmem:[#allocation122_spill] sm:$0xff] }
 0x4b7   :  { %4373 = vst [vmem:[#allocation1 + $0x31] ss:$2 sm:$0xff] %v8896_v23  ;;  %4691 = vmatpush.bf16.msra.mxu3 %v9702_v43  ;;  %4658 = vmatpush.bf16.msra.mxu1 %v9704_v56  ;;  %v4345_v23 = vrot.slane %v4326_v32, 3  ;;  %v9067_v22 = vpack.c.bf16 %v4344_v7, %v4339_v16  ;;  %v9718_v30 = vld [vmem:[#allocation139_spill] sm:$0xff]  ;;  %v9720_v2 = vld [vmem:[#allocation141_spill] sm:$0xff]  ;;  %v9723_v41 = vld [vmem:[#allocation124_spill] sm:$0xff] }
 0x4b8   :  { %v4362_v63 = vld.sshfl [vmem:[#allocation1] sm:$0xff pattern:$0x75316420]  ;;  %v4363_v37 = vld.sshfl [vmem:[#allocation1 + $0x8] sm:$0xff pattern:$0x75316420] }
 0x4b9   :  { %4673 = vmatpush.bf16.msra.mxu2 %v9705_v1  ;;  %v4346_v3 = vsel %vm767_vm4, %v4341_v59, %v4345_v23  ;;  %v9722_v34 = vld [vmem:[#allocation143_spill] sm:$0xff]  ;;  %v9724_v9 = vld [vmem:[#allocation145_spill] sm:$0xff]  ;;  %v4374_v46 = vld.sshfl [vmem:[#allocation1 + $0x20] sm:$0xff pattern:$0x75316420] }
 0x4ba   :  { %4640 = vmatpush.bf16.msra.mxu0 %v9707_v6  ;;  %v9074_v12 = vpack.c.bf16 %v4346_v3, %v4342_v45  ;;  %v9725_v32 = vld [vmem:[#allocation126_spill] sm:$0xff]  ;;  %v4375_v10 = vld.sshfl [vmem:[#allocation1 + $0x28] sm:$0xff pattern:$0x75316420]  ;;  %v9727_v43 = vld [vmem:[#allocation128_spill] sm:$0xff] }
 0x4bb   :  { %4692 = vmatpush.bf16.msra.mxu3 %v9706_v31  ;;  %4659 = vmatpush.bf16.msra.mxu1 %v9708_v42  ;;  %v9726_v29 = vld [vmem:[#allocation147_spill] sm:$0xff]  ;;  %v9728_v52 = vld [vmem:[#allocation149_spill] sm:$0xff]  ;;  %v9729_v56 = vld [vmem:[#allocation130_spill] sm:$0xff] }
 0x4bc   :  { %v4364_v11 = vld.sshfl [vmem:[#allocation1 + $0x10] sm:$0xff pattern:$0x75316420]  ;;  %v4365_v26 = vld.sshfl [vmem:[#allocation1 + $0x18] sm:$0xff pattern:$0x75316420] }
 0x4bd   :  { %4674 = vmatpush.bf16.msra.mxu2 %v9709_v50  ;;  %v9053_v49 = vpack.c.bf16 %v4364_v11, %v4362_v63  ;;  %v9055_v8 = vpack.c.bf16 %v4365_v26, %v4363_v37  ;;  %v9730_v1 = vld [vmem:[#allocation151_spill] sm:$0xff]  ;;  %v9731_v55 = vld [vmem:[#allocation132_spill] sm:$0xff]  ;;  %v9732_v31 = vld [vmem:[#allocation153_spill] sm:$0xff] }
 0x4be   :  { %4641 = vmatpush.bf16.msra.mxu0 %v9711_v25  ;;  %v4376_v28 = vld.sshfl [vmem:[#allocation1 + $0x30] sm:$0xff pattern:$0x75316420]  ;;  %v4377_v47 = vld.sshfl [vmem:[#allocation1 + $0x38] sm:$0xff pattern:$0x75316420] }
 0x4bf   :  { %4693 = vmatpush.bf16.msra.mxu3 %v9710_v58  ;;  %4660 = vmatpush.bf16.msra.mxu1 %v9712_v60  ;;  %v9086_v0 = vpack.c.bf16 %v4376_v28, %v4374_v46  ;;  %v9089_v24 = vpack.c.bf16 %v4377_v47, %v4375_v10  ;;  %v9733_v6 = vld [vmem:[#allocation134_spill] sm:$0xff]  ;;  %v9734_v11 = vld [vmem:[#allocation155_spill] sm:$0xff]  ;;  %v9735_v26 = vld [vmem:[#allocation136_spill] sm:$0xff] }
 0x4c0   :  { %4566 = vmatmul.bf16.vlgmr.msrb.gmra.mxu0 %v9053_v49  ;;  %v9736_v42 = vld [vmem:[#allocation157_spill] sm:$0xff]  ;;  %v9737_v63 = vld [vmem:[#allocation138_spill] sm:$0xff]  ;;  %v9738_v19 = vld [vmem:[#allocation159_spill] sm:$0xff] }
 0x4c1   :  { %4585 = vmatmul.bf16.vlgmr.msrb.gmra.mxu1 %v9055_v8  ;;  %4675 = vmatpush.bf16.msra.mxu2 %v9713_v61  ;;  %v9739_v23 = vld [vmem:[#allocation140_spill] sm:$0xff]  ;;  %v9740_v50 = vld [vmem:[#allocation161_spill] sm:$0xff]  ;;  %v9741_v37 = vld [vmem:[#allocation142_spill] sm:$0xff] }
 0x4c2   :  { %4710 = vmatpush.bf16.msrb.mxu0 %v9714_v38  ;;  %v9743_v17 = vld [vmem:[#allocation144_spill] sm:$0xff]  ;;  %v9745_v7 = vld [vmem:[#allocation146_spill] sm:$0xff]  ;;  %v4850_v38 = vld [vmem:[#allocation8 + $0xe0] sm:$0xff] }
 0x4c3   :  { %4729 = vmatpush.bf16.msrb.mxu1 %v9715_v51  ;;  %4694 = vmatpush.bf16.msra.mxu3 %v9716_v40  ;;  %v9746_v59 = vld [vmem:[#allocation148_spill] sm:$0xff]  ;;  %v9747_v58 = vld [vmem:[#allocation150_spill] sm:$0xff]  ;;  %v4844_v40 = vld [vmem:[#allocation8 + $0xb0] sm:$0xff] }
 0x4c4   :  { %4533 = vmatmul.bf16.gmra.mxu2 %v9067_v22  ;;  %v9748_v25 = vld [vmem:[#allocation152_spill] sm:$0xff]  ;;  %v9749_v60 = vld [vmem:[#allocation154_spill] sm:$0xff]  ;;  %v4834_v46 = vld [vmem:[#allocation8 + $0x60] sm:$0xff] }
 0x4c5   :  { %4676 = vmatpush.bf16.msra.mxu2 %v9717_v35  ;;  %v9750_v16 = vld [vmem:[#allocation156_spill] sm:$0xff]  ;;  %v9751_v5 = vld [vmem:[#allocation158_spill] sm:$0xff] }
 0x4c6   :  { %4552 = vmatmul.bf16.gmra.mxu3 %v9074_v12  ;;  %4711 = vmatpush.bf16.msrb.mxu0 %v9718_v30  ;;  %v4845_v30 = vld [vmem:[#allocation8 + $0xb8] sm:$0xff]  ;;  %v4835_v10 = vld [vmem:[#allocation8 + $0x68] sm:$0xff] }
 0x4c7   :  { %4695 = vmatpush.bf16.msra.mxu3 %v9719_v54  ;;  %4730 = vmatpush.bf16.msrb.mxu1 %v9720_v2  ;;  %v4842_v54 = vld [vmem:[#allocation8 + $0xa0] sm:$0xff]  ;;  %v4837_v47 = vld [vmem:[#allocation8 + $0x78] sm:$0xff] }
 0x4c9   :  { %4677 = vmatpush.bf16.msra.mxu2 %v9721_v62  ;;  %v4840_v62 = vld [vmem:[#allocation8 + $0x90] sm:$0xff] }
 0x4ca   :  { %4712 = vmatpush.bf16.msrb.mxu0 %v9722_v34  ;;  %v4841_v34 = vld [vmem:[#allocation8 + $0x98] sm:$0xff] }
 0x4cb   :  { %4696 = vmatpush.bf16.msra.mxu3 %v9723_v41  ;;  %4731 = vmatpush.bf16.msrb.mxu1 %v9724_v9  ;;  %v4839_v41 = vld [vmem:[#allocation8 + $0x88] sm:$0xff]  ;;  %v4836_v9 = vld [vmem:[#allocation8 + $0x70] sm:$0xff] }
 0x4cd   :  { %4678 = vmatpush.bf16.msra.mxu2 %v9725_v32 }
 0x4ce   :  { %4713 = vmatpush.bf16.msrb.mxu0 %v9726_v29 }
 0x4cf   :  { %4697 = vmatpush.bf16.msra.mxu3 %v9727_v43  ;;  %4732 = vmatpush.bf16.msrb.mxu1 %v9728_v52 }
 0x4d0   :  { %4571 = vmatmul.bf16.gmra.mxu0 %v9086_v0 }
 0x4d1   :  { %4590 = vmatmul.bf16.gmra.mxu1 %v9089_v24  ;;  %4679 = vmatpush.bf16.msra.mxu2 %v9729_v56  ;;  %v9755_v56 = vld [vmem:[#allocation117_spill] sm:$0xff] }
 0x4d2   :  { %4714 = vmatpush.bf16.msrb.mxu0 %v9730_v1 }
 0x4d3   :  { %4698 = vmatpush.bf16.msra.mxu3 %v9731_v55  ;;  %4733 = vmatpush.bf16.msrb.mxu1 %v9732_v31  ;;  %v4832_v31 = vld [vmem:[#allocation8 + $0x50] sm:$0xff] }
 0x4d4   :  { %4604 = vmatmul.bf16.vlgmr.msrb.gmra.mxu2 %v8866_v13  ;;  %v9742_v13 = vld [vmem:[#allocation163_spill] sm:$0xff] }
 0x4d5   :  { %4748 = vmatpush.bf16.msrb.mxu2 %v9733_v6  ;;  %v4833_v6 = vld [vmem:[#allocation8 + $0x58] sm:$0xff] }
 0x4d6   :  { %4623 = vmatmul.bf16.vlgmr.msrb.gmra.mxu3 %v8868_v27  ;;  %4715 = vmatpush.bf16.msrb.mxu0 %v9734_v11  ;;  %v9744_v27 = vld [vmem:[#allocation164_spill] sm:$0xff]  ;;  %v4830_v11 = vld [vmem:[#allocation8 + $0x40] sm:$0xff] }
 0x4d7   :  { %4767 = vmatpush.bf16.msrb.mxu3 %v9735_v26  ;;  %4734 = vmatpush.bf16.msrb.mxu1 %v9736_v42  ;;  %v4831_v42 = vld [vmem:[#allocation8 + $0x48] sm:$0xff] }
 0x4d9   :  { %4749 = vmatpush.bf16.msrb.mxu2 %v9737_v63  ;;  %v4828_v63 = vld [vmem:[#allocation8 + $0x30] sm:$0xff] }
 0x4da   :  { %4716 = vmatpush.bf16.msrb.mxu0 %v9738_v19  ;;  %v4829_v19 = vld [vmem:[#allocation8 + $0x38] sm:$0xff] }
 0x4db   :  { %4768 = vmatpush.bf16.msrb.mxu3 %v9739_v23  ;;  %4735 = vmatpush.bf16.msrb.mxu1 %v9740_v50  ;;  %v4826_v50 = vld [vmem:[#allocation8 + $0x20] sm:$0xff] }
 0x4dd   :  { %4750 = vmatpush.bf16.msrb.mxu2 %v9741_v37  ;;  %v4827_v37 = vld [vmem:[#allocation8 + $0x28] sm:$0xff] }
 0x4de   :  { %4717 = vmatpush.bf16.msrb.mxu0 %v9742_v13  ;;  %v4824_v13 = vld [vmem:[#allocation8 + $0x10] sm:$0xff] }
 0x4df   :  { %4769 = vmatpush.bf16.msrb.mxu3 %v9743_v17  ;;  %4736 = vmatpush.bf16.msrb.mxu1 %v9744_v27  ;;  %v4825_v17 = vld [vmem:[#allocation8 + $0x18] sm:$0xff] }
 0x4e0   :  { %4642 = vmatmul.bf16.vlgmr.msra.gmra.mxu0 %v8931_v36  ;;  %v9752_v36 = vld [vmem:[#allocation160_spill] sm:$0xff] }
 0x4e1   :  { %4661 = vmatmul.bf16.vlgmr.msra.gmra.mxu1 %v8938_v18  ;;  %4751 = vmatpush.bf16.msrb.mxu2 %v9745_v7  ;;  %v9753_v18 = vld [vmem:[#allocation162_spill] sm:$0xff] }
 0x4e3   :  { %4770 = vmatpush.bf16.msrb.mxu3 %v9746_v59 }
 0x4e4   :  { %4609 = vmatmul.bf16.gmra.mxu2 %v8912_v4  ;;  %v9754_v4 = vld [vmem:[#allocation20_spill] sm:$0xff] }
 0x4e5   :  { %4752 = vmatpush.bf16.msrb.mxu2 %v9747_v58  ;;  %v4822_v58 = vld [vmem:[#allocation8] sm:$0xff] }
 0x4e6   :  { %4628 = vmatmul.bf16.gmra.mxu3 %v8916_v21 }
 0x4e7   :  { %4771 = vmatpush.bf16.msrb.mxu3 %v9748_v25  ;;  %v4823_v25 = vld [vmem:[#allocation8 + $0x8] sm:$0xff] }
 0x4e9   :  { %4753 = vmatpush.bf16.msrb.mxu2 %v9749_v60 }
 0x4eb   :  { %4772 = vmatpush.bf16.msrb.mxu3 %v9750_v16 }
 0x4ed   :  { %4754 = vmatpush.bf16.msrb.mxu2 %v9751_v5 }
 0x4ef   :  { %4773 = vmatpush.bf16.msrb.mxu3 %v9752_v36 }
 0x4f0   :  { %4647 = vmatmul.bf16.gmra.mxu0 %v8979_v33 }
 0x4f1   :  { %4666 = vmatmul.bf16.gmra.mxu1 %v8987_v53  ;;  %4755 = vmatpush.bf16.msrb.mxu2 %v9753_v18  ;;  %v4852_v53 = vld [vmem:[#allocation8 + $0xf0] sm:$0xff] }
 0x4f2   :  { %4892 = vmatpush.msra.mxu0 %v4852_v53 }
 0x4f3   :  { %4774 = vmatpush.bf16.msrb.mxu3 %v9754_v4 }
 0x4f4   :  { %4680 = vmatmul.bf16.vlgmr.msra.gmra.mxu2 %v8963_v14  ;;  %v4853_v14 = vld [vmem:[#allocation8 + $0xf8] sm:$0xff]  ;;  %4893 = vmatpush.msra.mxu0 %v4850_v38 }
 0x4f5   :  { %v9131_v21 = vpop.f32.mrf.mxu0  ;;  %v9133_v3 = vpop.f32.mrf.mxu1  ;;  %4950 = vmatpush.msra.mxu2 %v4853_v14 }
 0x4f6   :  { %4699 = vmatmul.bf16.vlgmr.msra.gmra.mxu3 %v8967_v44  ;;  %v4851_v44 = vld [vmem:[#allocation8 + $0xe8] sm:$0xff]  ;;  %v4416_v1 = vadd.f32 %v9131_v21, %v9755_v56 }
 0x4f7   :  { %4951 = vmatpush.msra.mxu2 %v4851_v44 }
 0x4fd   :  { %v9137_v61 = vpop.f32.mrf.mxu0  ;;  %v9140_v33 = vpop.f32.mrf.mxu1 }
 0x4fe   :  { %v4418_v7 = vadd.f32 %v9137_v61, %v9755_v56 }
 0x500   :  { %4718 = vmatmul.bf16.vlgmr.msrb.gmra.mxu0 %v9031_v15  ;;  %v4848_v15 = vld [vmem:[#allocation8 + $0xd0] sm:$0xff]  ;;  %v4437_v36 = vadd.f32 %v9140_v33, %v4418_v7 }
 0x501   :  { %4737 = vmatmul.bf16.vlgmr.msrb.gmra.mxu1 %v9036_v20  ;;  %4894 = vmatpush.msra.mxu0 %v4848_v15  ;;  %v4847_v20 = vld [vmem:[#allocation8 + $0xc8] sm:$0xff] }
 0x504   :  { %4685 = vmatmul.bf16.gmra.mxu2 %v9011_v57  ;;  %v4849_v57 = vld [vmem:[#allocation8 + $0xd8] sm:$0xff] }
 0x505   :  { %4952 = vmatpush.msra.mxu2 %v4849_v57 }
 0x506   :  { %4704 = vmatmul.bf16.gmra.mxu3 %v9017_v39  ;;  %v4846_v39 = vld [vmem:[#allocation8 + $0xc0] sm:$0xff] }
 0x507   :  { %4895 = vmatpush.msra.mxu0 %v4846_v39  ;;  %4953 = vmatpush.msra.mxu2 %v4847_v20  ;;  %v9169_v20 = vld [vmem:[%s9241_s6] sm:$0x3] }
 0x509   :  { %4896 = vmatpush.msra.mxu0 %v4844_v40  ;;  %4954 = vmatpush.msra.mxu2 %v4845_v30 }
 0x50b   :  { %4897 = vmatpush.msra.mxu0 %v4842_v54 }
 0x50c   :  { %v9143_v51 = vpop.f32.mrf.mxu0 }
 0x50d   :  { %v9145_v45 = vpop.f32.mrf.mxu1  ;;  %4898 = vmatpush.msra.mxu0 %v4840_v62  ;;  %v4788_v62 = vperm.slane %v9169_v20, 0 }
 0x510   :  { %4723 = vmatmul.bf16.gmra.mxu0 %v9067_v22  ;;  %v4843_v22 = vld [vmem:[#allocation8 + $0xa8] sm:$0xff] }
 0x511   :  { %4742 = vmatmul.bf16.gmra.mxu1 %v9074_v12  ;;  %4955 = vmatpush.msra.mxu2 %v4843_v22 }
 0x513   :  { %4956 = vmatpush.msra.mxu2 %v4841_v34 }
 0x514   :  { %4756 = vmatmul.bf16.vlgmr.msrb.gmra.mxu2 %v9053_v49  ;;  %v9150_v35 = vpop.f32.mrf.mxu0  ;;  %v4838_v49 = vld [vmem:[#allocation8 + $0x80] sm:$0xff] }
 0x515   :  { %v9152_v2 = vpop.f32.mrf.mxu1  ;;  %4899 = vmatpush.msra.mxu0 %v4838_v49  ;;  %4957 = vmatpush.msra.mxu2 %v4839_v41  ;;  %v4423_v54 = vadd.f32 %v9150_v35, %v9755_v56 }
 0x516   :  { %4775 = vmatmul.bf16.vlgmr.msrb.gmra.mxu3 %v9055_v8 }
 0x517   :  { %v4453_v12 = vpop.f32.mrf.mxu2  ;;  %4900 = vmatpush.msra.mxu0 %v4836_v9  ;;  %4958 = vmatpush.msra.mxu2 %v4837_v47 }
 0x519   :  { %v4472_v28 = vpop.f32.mrf.mxu3  ;;  %4901 = vmatpush.msra.mxu0 %v4834_v46  ;;  %4959 = vmatpush.msra.mxu2 %v4835_v10  ;;  %v4442_v46 = vadd.f32 %v9152_v2, %v4423_v54 }
 0x51b   :  { %4902 = vmatpush.msra.mxu0 %v4832_v31  ;;  %4960 = vmatpush.msra.mxu2 %v4833_v6 }
 0x51d   :  { %v4491_v32 = vpop.f32.mrf.mxu0  ;;  %4903 = vmatpush.msra.mxu0 %v4830_v11  ;;  %4961 = vmatpush.msra.mxu2 %v4831_v42 }
 0x51e   :  { %v4510_v8 = vpop.f32.mrf.mxu1 }
 0x51f   :  { %v4455_v29 = vpop.f32.mrf.mxu2  ;;  %4904 = vmatpush.msra.mxu0 %v4828_v63  ;;  %4962 = vmatpush.msra.mxu2 %v4829_v19 }
 0x520   :  { %v4456_v4 = vadd.f32 %v4455_v29, %v4437_v36 }
 0x521   :  { %v4474_v43 = vpop.f32.mrf.mxu3  ;;  %4905 = vmatpush.msra.mxu0 %v4826_v50  ;;  %4963 = vmatpush.msra.mxu2 %v4827_v37 }
 0x522   :  { %v4475_v38 = vadd.f32 %v4474_v43, %v4456_v4 }
 0x523   :  { %4906 = vmatpush.msra.mxu0 %v4824_v13  ;;  %4964 = vmatpush.msra.mxu2 %v4825_v17 }
 0x524   :  { %4761 = vmatmul.bf16.gmra.mxu2 %v9086_v0  ;;  %v4435_v0 = vadd.f32 %v9133_v3, %v4416_v1  ;;  %v4421_v3 = vadd.f32 %v9143_v51, %v9755_v56  ;;  %v9174_v51 = vld [vmem:[%s9242_s7] sm:$0x3] }
 0x525   :  { %v4493_v52 = vpop.f32.mrf.mxu0  ;;  %4907 = vmatpush.msra.mxu0 %v4822_v58  ;;  %4965 = vmatpush.msra.mxu2 %v4823_v25  ;;  %v4802_v41 = vperm.slane %v9174_v51, 0 }
 0x526   :  { %4780 = vmatmul.bf16.gmra.mxu3 %v9089_v24  ;;  %v4512_v55 = vpop.f32.mrf.mxu1  ;;  %v4454_v24 = vadd.f32 %v4453_v12, %v4435_v0  ;;  %v4440_v57 = vadd.f32 %v9145_v45, %v4421_v3  ;;  %v4494_v39 = vadd.f32 %v4493_v52, %v4475_v38 }
 0x527   :  { %v4458_v26 = vpop.f32.mrf.mxu2 }
 0x528   :  { %v4473_v16 = vadd.f32 %v4472_v28, %v4454_v24  ;;  %v4459_v33 = vadd.f32 %v4458_v26, %v4440_v57  ;;  %v4513_v22 = vadd.f32 %v4512_v55, %v4494_v39  ;;  %v4885_v57 = vld [vmem:[#allocation8 + $0x1f8] sm:$0xff]  ;;  %v4884_v39 = vld [vmem:[#allocation8 + $0x1f0] sm:$0xff] }
 0x529   :  { %v4477_v23 = vpop.f32.mrf.mxu3  ;;  %4979 = vmatpush.msra.mxu3 %v4885_v57  ;;  %4921 = vmatpush.msra.mxu1 %v4884_v39 }
 0x52a   :  { %v4492_v18 = vadd.f32 %v4491_v32, %v4473_v16  ;;  %v4478_v28 = vadd.f32 %v4477_v23, %v4459_v33  ;;  %v4883_v33 = vld [vmem:[#allocation8 + $0x1e8] sm:$0xff] }
 0x52b   :  { %4980 = vmatpush.msra.mxu3 %v4883_v33 }
 0x52c   :  { %v4511_v53 = vadd.f32 %v4510_v8, %v4492_v18 }
 0x52d   :  { %v4496_v27 = vpop.f32.mrf.mxu0 }
 0x52e   :  { %v4515_v59 = vpop.f32.mrf.mxu1  ;;  %v4497_v32 = vadd.f32 %v4496_v27, %v4478_v28 }
 0x52f   :  { %v4460_v60 = vpop.f32.mrf.mxu2 }
 0x530   :  { %v4461_v10 = vadd.f32 %v4460_v60, %v4442_v46  ;;  %v4516_v52 = vadd.f32 %v4515_v59, %v4497_v32  ;;  %v4873_v32 = vld [vmem:[#allocation8 + $0x198] sm:$0xff] }
 0x531   :  { %v4479_v5 = vpop.f32.mrf.mxu3 }
 0x532   :  { %v4480_v6 = vadd.f32 %v4479_v5, %v4461_v10 }
 0x535   :  { %v4498_v21 = vpop.f32.mrf.mxu0 }
 0x536   :  { %v4517_v61 = vpop.f32.mrf.mxu1  ;;  %v4499_v63 = vadd.f32 %v4498_v21, %v4480_v6 }
 0x537   :  { %v4529_v14 = vpop.f32.mrf.mxu2 }
 0x538   :  { %v4530_v44 = vadd.f32 %v4529_v14, %v4511_v53  ;;  %v4518_v50 = vadd.f32 %v4517_v61, %v4499_v63 }
 0x539   :  { %v4548_v15 = vpop.f32.mrf.mxu3 }
 0x53a   :  { %v4549_v40 = vadd.f32 %v4548_v15, %v4530_v44 }
 0x53d   :  { %v4567_v30 = vpop.f32.mrf.mxu0 }
 0x53e   :  { %v4568_v12 = vadd.f32 %v4567_v30, %v4549_v40  ;;  %v4586_v45 = vpop.f32.mrf.mxu1  ;;  %v4882_v40 = vld [vmem:[#allocation8 + $0x1e0] sm:$0xff] }
 0x53f   :  { %v4531_v34 = vpop.f32.mrf.mxu2  ;;  %4922 = vmatpush.msra.mxu1 %v4882_v40 }
 0x540   :  { %v4587_v49 = vadd.f32 %v4586_v45, %v4568_v12  ;;  %v4532_v9 = vadd.f32 %v4531_v34, %v4513_v22  ;;  %v4881_v22 = vld [vmem:[#allocation8 + $0x1d8] sm:$0xff]  ;;  %v4880_v45 = vld [vmem:[#allocation8 + $0x1d0] sm:$0xff]  ;;  %v4878_v34 = vld [vmem:[#allocation8 + $0x1c0] sm:$0xff] }
 0x541   :  { %v4550_v47 = vpop.f32.mrf.mxu3  ;;  %4981 = vmatpush.msra.mxu3 %v4881_v22  ;;  %4923 = vmatpush.msra.mxu1 %v4880_v45 }
 0x542   :  { %v4792_v8 = vmul.f32 %v4788_v62, %v4587_v49  ;;  %v4551_v43 = vadd.f32 %v4550_v47, %v4532_v9  ;;  %v4877_v49 = vld [vmem:[#allocation8 + $0x1b8] sm:$0xff]  ;;  %v4875_v9 = vld [vmem:[#allocation8 + $0x1a8] sm:$0xff]  ;;  %v4874_v47 = vld [vmem:[#allocation8 + $0x1a0] sm:$0xff] }
 0x543   :  { %4924 = vmatpush.msra.mxu1 %v4878_v34 }
 0x544   :  { %v4806_v29 = vadd.f32 %v4802_v41, %v4792_v8 }
 0x545   :  { %v4569_v35 = vpop.f32.mrf.mxu0 }
 0x546   :  { %v4814_v56 = vmax.f32 %v4806_v29, 0.0  ;;  %v4570_v1 = vadd.f32 %v4569_v35, %v4551_v43  ;;  %v4588_v55 = vpop.f32.mrf.mxu1  ;;  %v4872_v29 = vld [vmem:[#allocation8 + $0x190] sm:$0xff]  ;;  %v4871_v43 = vld [vmem:[#allocation8 + $0x188] sm:$0xff]  ;;  %v4870_v35 = vld [vmem:[#allocation8 + $0x180] sm:$0xff] }
 0x547   :  { %v4534_v31 = vpop.f32.mrf.mxu2 }
 0x548   :  { %v4589_v11 = vadd.f32 %v4588_v55, %v4570_v1  ;;  %v4535_v26 = vadd.f32 %v4534_v31, %v4516_v52  ;;  %4908 = vmatmul.f32.vlgmr.msra.gmra.mxu0 %v4814_v56  ;;  %4966 = vmatmul.f32.vlgmr.msra.gmra.mxu2 %v4814_v56  ;;  %v4869_v52 = vld [vmem:[#allocation8 + $0x178] sm:$0xff]  ;;  %v4868_v56 = vld [vmem:[#allocation8 + $0x170] sm:$0xff]  ;;  %v4867_v1 = vld [vmem:[#allocation8 + $0x168] sm:$0xff] }
 0x549   :  { %v4553_v42 = vpop.f32.mrf.mxu3  ;;  %v4866_v31 = vld [vmem:[#allocation8 + $0x160] sm:$0xff] }
 0x54a   :  { %v4794_v19 = vmul.f32 %v4788_v62, %v4589_v11  ;;  %v4554_v2 = vadd.f32 %v4553_v42, %v4535_v26  ;;  %v4865_v11 = vld [vmem:[#allocation8 + $0x158] sm:$0xff] }
 0x54c   :  { %v4808_v23 = vadd.f32 %v4802_v41, %v4794_v19 }
 0x54d   :  { %v4572_v0 = vpop.f32.mrf.mxu0 }
 0x54e   :  { %v4573_v37 = vadd.f32 %v4572_v0, %v4554_v2  ;;  %v4591_v24 = vpop.f32.mrf.mxu1  ;;  %v4816_v13 = vmax.f32 %v4808_v23, 0.0  ;;  %v4864_v23 = vld [vmem:[#allocation8 + $0x150] sm:$0xff]  ;;  %v4863_v0 = vld [vmem:[#allocation8 + $0x148] sm:$0xff] }
 0x54f   :  { %v4536_v17 = vpop.f32.mrf.mxu2 }
 0x550   :  { %v4592_v27 = vadd.f32 %v4591_v24, %v4573_v37  ;;  %v4537_v7 = vadd.f32 %v4536_v17, %v4518_v50  ;;  %4911 = vmatmul.f32.gmra.mxu0 %v4816_v13  ;;  %4969 = vmatmul.f32.gmra.mxu2 %v4816_v13  ;;  %v4862_v50 = vld [vmem:[#allocation8 + $0x140] sm:$0xff]  ;;  %v4861_v24 = vld [vmem:[#allocation8 + $0x138] sm:$0xff]  ;;  %v4860_v13 = vld [vmem:[#allocation8 + $0x130] sm:$0xff] }
 0x551   :  { %v4555_v59 = vpop.f32.mrf.mxu3  ;;  %v4859_v17 = vld [vmem:[#allocation8 + $0x128] sm:$0xff] }
 0x552   :  { %v4796_v58 = vmul.f32 %v4788_v62, %v4592_v27  ;;  %v4556_v25 = vadd.f32 %v4555_v59, %v4537_v7  ;;  %v4858_v7 = vld [vmem:[#allocation8 + $0x120] sm:$0xff]  ;;  %v4857_v59 = vld [vmem:[#allocation8 + $0x118] sm:$0xff] }
 0x554   :  { %v4810_v60 = vadd.f32 %v4802_v41, %v4796_v58 }
 0x555   :  { %v4574_v16 = vpop.f32.mrf.mxu0 }
 0x556   :  { %v4575_v5 = vadd.f32 %v4574_v16, %v4556_v25  ;;  %v4818_v36 = vmax.f32 %v4810_v60, 0.0  ;;  %v4593_v18 = vpop.f32.mrf.mxu1  ;;  %v4856_v60 = vld [vmem:[#allocation8 + $0x110] sm:$0xff]  ;;  %v4855_v16 = vld [vmem:[#allocation8 + $0x108] sm:$0xff] }
 0x557   :  { %v9181_v4 = vpop.f32.mrf.mxu2 }
 0x558   :  { %v4594_v21 = vadd.f32 %v4593_v18, %v4575_v5  ;;  %4914 = vmatmul.f32.gmra.mxu0 %v4818_v36  ;;  %4972 = vmatmul.f32.gmra.mxu2 %v4818_v36  ;;  %v4606_v2 = vadd.f32 %v9181_v4, %v8781_v48  ;;  %v4854_v18 = vld [vmem:[#allocation8 + $0x100] sm:$0xff] }
 0x559   :  { %v9183_v3 = vpop.f32.mrf.mxu3 }
 0x55a   :  { %v4798_v53 = vmul.f32 %v4788_v62, %v4594_v21  ;;  %v4879_v62 = vld [vmem:[#allocation8 + $0x1c8] sm:$0xff]  ;;  %v4625_v27 = vadd.f32 %v9183_v3, %v4606_v2 }
 0x55b   :  { %4982 = vmatpush.msra.mxu3 %v4879_v62 }
 0x55c   :  { %v4812_v61 = vadd.f32 %v4802_v41, %v4798_v53  ;;  %v4876_v41 = vld [vmem:[#allocation8 + $0x1b0] sm:$0xff] }
 0x55d   :  { %v9187_v44 = vpop.f32.mrf.mxu0  ;;  %4983 = vmatpush.msra.mxu3 %v4877_v49  ;;  %4925 = vmatpush.msra.mxu1 %v4876_v41 }
 0x55e   :  { %v4820_v14 = vmax.f32 %v4812_v61, 0.0  ;;  %v9191_v30 = vpop.f32.mrf.mxu1  ;;  %v4644_v25 = vadd.f32 %v9187_v44, %v4625_v27 }
 0x55f   :  { %v9185_v38 = vpop.f32.mrf.mxu2  ;;  %4984 = vmatpush.msra.mxu3 %v4875_v9  ;;  %4926 = vmatpush.msra.mxu1 %v4874_v47  ;;  %v4789_v47 = vperm.slane %v9169_v20, 1 }
 0x560   :  { %4917 = vmatmul.f32.gmra.mxu0 %v4820_v14  ;;  %4975 = vmatmul.f32.gmra.mxu2 %v4820_v14  ;;  %v4608_v36 = vadd.f32 %v9185_v38, %v8781_v48  ;;  %v4663_v3 = vadd.f32 %v9191_v30, %v4644_v25 }
 0x561   :  { %v9189_v15 = vpop.f32.mrf.mxu3  ;;  %4985 = vmatpush.msra.mxu3 %v4873_v32  ;;  %4927 = vmatpush.msra.mxu1 %v4872_v29 }
 0x562   :  { %v4627_v53 = vadd.f32 %v9189_v15, %v4608_v36 }
 0x563   :  { %4986 = vmatpush.msra.mxu3 %v4871_v43  ;;  %4928 = vmatpush.msra.mxu1 %v4870_v35  ;;  %v4803_v35 = vperm.slane %v9174_v51, 1 }
 0x565   :  { %v9197_v28 = vpop.f32.mrf.mxu0  ;;  %4987 = vmatpush.msra.mxu3 %v4869_v52  ;;  %4929 = vmatpush.msra.mxu1 %v4868_v56 }
 0x566   :  { %v9201_v8 = vpop.f32.mrf.mxu1  ;;  %v4646_v14 = vadd.f32 %v9197_v28, %v4627_v53 }
 0x567   :  { %v9193_v54 = vpop.f32.mrf.mxu2  ;;  %4988 = vmatpush.msra.mxu3 %v4867_v1  ;;  %4930 = vmatpush.msra.mxu1 %v4866_v31 }
 0x568   :  { %v4611_v39 = vadd.f32 %v9193_v54, %v8781_v48  ;;  %v4665_v40 = vadd.f32 %v9201_v8, %v4646_v14 }
 0x569   :  { %v9195_v12 = vpop.f32.mrf.mxu3  ;;  %4989 = vmatpush.msra.mxu3 %v4865_v11  ;;  %4931 = vmatpush.msra.mxu1 %v4864_v23 }
 0x56a   :  { %v4630_v62 = vadd.f32 %v9195_v12, %v4611_v39 }
 0x56b   :  { %4990 = vmatpush.msra.mxu3 %v4863_v0  ;;  %4932 = vmatpush.msra.mxu1 %v4862_v50 }
 0x56d   :  { %v4648_v55 = vpop.f32.mrf.mxu0  ;;  %4991 = vmatpush.msra.mxu3 %v4861_v24  ;;  %4933 = vmatpush.msra.mxu1 %v4860_v13 }
 0x56e   :  { %v4667_v42 = vpop.f32.mrf.mxu1  ;;  %v4649_v34 = vadd.f32 %v4648_v55, %v4630_v62 }
 0x56f   :  { %v9199_v46 = vpop.f32.mrf.mxu2  ;;  %4992 = vmatpush.msra.mxu3 %v4859_v17  ;;  %4934 = vmatpush.msra.mxu1 %v4858_v7 }
 0x570   :  { %v4613_v28 = vadd.f32 %v9199_v46, %v8781_v48  ;;  %v4668_v29 = vadd.f32 %v4667_v42, %v4649_v34 }
 0x571   :  { %v9203_v10 = vpop.f32.mrf.mxu3  ;;  %4993 = vmatpush.msra.mxu3 %v4857_v59  ;;  %4935 = vmatpush.msra.mxu1 %v4856_v60 }
 0x572   :  { %v4632_v12 = vadd.f32 %v9203_v10, %v4613_v28 }
 0x573   :  { %4994 = vmatpush.msra.mxu3 %v4855_v16  ;;  %4936 = vmatpush.msra.mxu1 %v4854_v18 }
 0x575   :  { %v9205_v63 = vpop.f32.mrf.mxu0 }
 0x576   :  { %v4669_v58 = vpop.f32.mrf.mxu1  ;;  %v4651_v55 = vadd.f32 %v9205_v63, %v4632_v12 }
 0x577   :  { %v4681_v6 = vpop.f32.mrf.mxu2 }
 0x578   :  { %v4682_v61 = vadd.f32 %v4681_v6, %v4663_v3 }
 0x579   :  { %v4700_v26 = vpop.f32.mrf.mxu3 }
 0x57a   :  { %v4701_v33 = vadd.f32 %v4700_v26, %v4682_v61 }
 0x57d   :  { %v4719_v4 = vpop.f32.mrf.mxu0 }
 0x57e   :  { %v4738_v44 = vpop.f32.mrf.mxu1  ;;  %v4720_v22 = vadd.f32 %v4719_v4, %v4701_v33 }
 0x57f   :  { %v4683_v19 = vpop.f32.mrf.mxu2 }
 0x580   :  { %v4684_v30 = vadd.f32 %v4683_v19, %v4665_v40  ;;  %v4739_v49 = vadd.f32 %v4738_v44, %v4720_v22  ;;  %v4670_v19 = vadd.f32 %v4669_v58, %v4651_v55  ;;  %v4886_v44 = vld [vmem:[%s9244_s9] sm:$0x3]  ;;  %s6805_s9 = smov [#allocation10]  }
 0x581   :  { %v4702_v37 = vpop.f32.mrf.mxu3  ;;  %v4889_v22 = vperm.slane %v4886_v44, 1  ;;  %s5020_s14 = sshll.u32 %s6805_s9, 4  ;;  %s5021_s14 = int_to_ptr.vmem [resolvable:$true] %s5020_s14 }
 0x582   :  { %v4703_v41 = vadd.f32 %v4702_v37, %v4684_v30 }
 0x585   :  { %v4721_v45 = vpop.f32.mrf.mxu0 }
 0x586   :  { %v4740_v54 = vpop.f32.mrf.mxu1  ;;  %v4722_v43 = vadd.f32 %v4721_v45, %v4703_v41 }
 0x587   :  { %v4686_v5 = vpop.f32.mrf.mxu2 }
 0x588   :  { %v4687_v52 = vadd.f32 %v4686_v5, %v4668_v29  ;;  %v4741_v31 = vadd.f32 %v4740_v54, %v4722_v43 }
 0x589   :  { %v4705_v21 = vpop.f32.mrf.mxu3 }
 0x58a   :  { %v4706_v6 = vadd.f32 %v4705_v21, %v4687_v52 }
 0x58d   :  { %v4724_v1 = vpop.f32.mrf.mxu0 }
 0x58e   :  { %v4725_v42 = vadd.f32 %v4724_v1, %v4706_v6  ;;  %v4743_v51 = vpop.f32.mrf.mxu1 }
 0x58f   :  { %v4688_v57 = vpop.f32.mrf.mxu2 }
 0x590   :  { %v4689_v23 = vadd.f32 %v4688_v57, %v4670_v19  ;;  %v4744_v0 = vadd.f32 %v4743_v51, %v4725_v42  ;;  %v4888_v57 = vperm.slane %v4886_v44, 0 }
 0x591   :  { %v4707_v38 = vpop.f32.mrf.mxu3 }
 0x592   :  { %v4708_v63 = vadd.f32 %v4707_v38, %v4689_v23 }
 0x595   :  { %v4726_v37 = vpop.f32.mrf.mxu0 }
 0x596   :  { %v4727_v7 = vadd.f32 %v4726_v37, %v4708_v63  ;;  %v4745_v25 = vpop.f32.mrf.mxu1 }
 0x597   :  { %v4757_v15 = vpop.f32.mrf.mxu2 }
 0x598   :  { %v4758_v9 = vadd.f32 %v4757_v15, %v4739_v49  ;;  %v4746_v60 = vadd.f32 %v4745_v25, %v4727_v7 }
 0x599   :  { %v4776_v32 = vpop.f32.mrf.mxu3 }
 0x59a   :  { %v4777_v8 = vadd.f32 %v4776_v32, %v4758_v9 }
 0x59c   :  { %v4793_v56 = vmul.f32 %v4789_v47, %v4777_v8 }
 0x59e   :  { %v4807_v48 = vadd.f32 %v4803_v35, %v4793_v56 }
 0x59f   :  { %v4759_v46 = vpop.f32.mrf.mxu2 }
 0x5a0   :  { %v4815_v11 = vmax.f32 %v4807_v48, 0.0  ;;  %v4760_v20 = vadd.f32 %v4759_v46, %v4741_v31 }
 0x5a1   :  { %v4778_v26 = vpop.f32.mrf.mxu3 }
 0x5a2   :  { %v4779_v2 = vadd.f32 %v4778_v26, %v4760_v20  ;;  %4937 = vmatmul.f32.vlgmr.msra.gmra.mxu1 %v4815_v11  ;;  %4995 = vmatmul.f32.vlgmr.msra.gmra.mxu3 %v4815_v11 }
 0x5a4   :  { %v4795_v10 = vmul.f32 %v4789_v47, %v4779_v2 }
 0x5a6   :  { %v4809_v50 = vadd.f32 %v4803_v35, %v4795_v10 }
 0x5a7   :  { %v4762_v24 = vpop.f32.mrf.mxu2 }
 0x5a8   :  { %v4763_v13 = vadd.f32 %v4762_v24, %v4744_v0  ;;  %v4817_v17 = vmax.f32 %v4809_v50, 0.0 }
 0x5a9   :  { %v4781_v27 = vpop.f32.mrf.mxu3 }
 0x5aa   :  { %v4782_v59 = vadd.f32 %v4781_v27, %v4763_v13  ;;  %4940 = vmatmul.f32.gmra.mxu1 %v4817_v17  ;;  %4998 = vmatmul.f32.gmra.mxu3 %v4817_v17 }
 0x5ac   :  { %v4797_v58 = vmul.f32 %v4789_v47, %v4782_v59 }
 0x5ae   :  { %v4811_v16 = vadd.f32 %v4803_v35, %v4797_v58 }
 0x5af   :  { %v4764_v5 = vpop.f32.mrf.mxu2 }
 0x5b0   :  { %v4765_v36 = vadd.f32 %v4764_v5, %v4746_v60  ;;  %v4819_v18 = vmax.f32 %v4811_v16, 0.0 }
 0x5b1   :  { %v4783_v4 = vpop.f32.mrf.mxu3 }
 0x5b2   :  { %v4784_v21 = vadd.f32 %v4783_v4, %v4765_v36  ;;  %4943 = vmatmul.f32.gmra.mxu1 %v4819_v18  ;;  %5001 = vmatmul.f32.gmra.mxu3 %v4819_v18 }
 0x5b4   :  { %v4799_v3 = vmul.f32 %v4789_v47, %v4784_v21 }
 0x5b6   :  { %v4813_v53 = vadd.f32 %v4803_v35, %v4799_v3 }
 0x5b8   :  { %v4821_v61 = vmax.f32 %v4813_v53, 0.0 }
 0x5ba   :  { %4946 = vmatmul.f32.gmra.mxu1 %v4821_v61  ;;  %5004 = vmatmul.f32.gmra.mxu3 %v4821_v61 }
 0x5c5   :  { %v4909_v14 = vpop.f32.mrf.mxu0 }
 0x5c6   :  { %v4910_v33 = vadd.f32 %v4909_v14, %v4888_v57 }
 0x5cb   :  { %v4967_v39 = vpop.f32.mrf.mxu2 }
 0x5cc   :  { %v4968_v62 = vadd.f32 %v4967_v39, %v4889_v22 }
 0x5cd   :  { %v4912_v38 = vpop.f32.mrf.mxu0 }
 0x5ce   :  { %v4913_v49 = vadd.f32 %v4912_v38, %v4888_v57 }
 0x5d3   :  { %v4970_v30 = vpop.f32.mrf.mxu2 }
 0x5d4   :  { %v4971_v47 = vadd.f32 %v4970_v30, %v4889_v22 }
 0x5d5   :  { %v4915_v9 = vpop.f32.mrf.mxu0 }
 0x5d6   :  { %v4916_v32 = vadd.f32 %v4915_v9, %v4888_v57 }
 0x5db   :  { %v4973_v43 = vpop.f32.mrf.mxu2 }
 0x5dc   :  { %v4974_v52 = vadd.f32 %v4973_v43, %v4889_v22 }
 0x5dd   :  { %v4918_v12 = vpop.f32.mrf.mxu0 }
 0x5de   :  { %v4919_v1 = vadd.f32 %v4918_v12, %v4888_v57 }
 0x5e3   :  { %v4976_v46 = vpop.f32.mrf.mxu2 }
 0x5e4   :  { %v4977_v6 = vadd.f32 %v4976_v46, %v4889_v22 }
 0x61f   :  { %v4938_v40 = vpop.f32.mrf.mxu1 }
 0x620   :  { %v4939_v45 = vadd.f32 %v4938_v40, %v4910_v33 }
 0x622   :  { %5008 = vst [vmem:[#allocation10] sm:$0xff] %v4939_v45 }
 0x625   :  { %v4996_v34 = vpop.f32.mrf.mxu3 }
 0x626   :  { %v4997_v15 = vadd.f32 %v4996_v34, %v4968_v62 }
 0x627   :  { %v4941_v28 = vpop.f32.mrf.mxu1 }
 0x628   :  { %5009 = vst [vmem:[#allocation10 + $0x8] sm:$0xff] %v4997_v15  ;;  %v4942_v41 = vadd.f32 %v4941_v28, %v4913_v49 }
 0x62a   :  { %5010 = vst [vmem:[#allocation10 + $0x10] sm:$0xff] %v4942_v41 }
 0x62d   :  { %v4999_v54 = vpop.f32.mrf.mxu3 }
 0x62e   :  { %v5000_v29 = vadd.f32 %v4999_v54, %v4971_v47 }
 0x62f   :  { %v4944_v8 = vpop.f32.mrf.mxu1 }
 0x630   :  { %5011 = vst [vmem:[#allocation10 + $0x18] sm:$0xff] %v5000_v29  ;;  %v4945_v35 = vadd.f32 %v4944_v8, %v4916_v32 }
 0x632   :  { %5012 = vst [vmem:[#allocation10 + $0x20] sm:$0xff] %v4945_v35 }
 0x635   :  { %v5002_v56 = vpop.f32.mrf.mxu3 }
 0x636   :  { %v5003_v55 = vadd.f32 %v5002_v56, %v4974_v52 }
 0x637   :  { %v4947_v31 = vpop.f32.mrf.mxu1 }
 0x638   :  { %5013 = vst [vmem:[#allocation10 + $0x28] sm:$0xff] %v5003_v55  ;;  %v4948_v48 = vadd.f32 %v4947_v31, %v4919_v1 }
 0x63a   :  { %5014 = vst [vmem:[#allocation10 + $0x30] sm:$0xff] %v4948_v48 }
 0x63d   :  { %v5005_v11 = vpop.f32.mrf.mxu3 }
 0x63e   :  { %v5006_v20 = vadd.f32 %v5005_v11, %v4977_v6 }
 0x640   :  { %5015 = vst [vmem:[#allocation10 + $0x38] sm:$0xff] %v5006_v20 }
 0x641   :  { %5028 = dma.vmem_to_hbm [thread:$0]  %s5021_s14, 1024, %s5023_s15, [#allocation4], %s6799_s25, %s6799_s25, %s6800_s26  }
 0x642   :  { %6793 = dma.done.wait [#allocation4], 1024  }
 0x643   :  { %6794 = vsyncadd [#allocation4], 4294966272 }
 0x644   :  { %5033 = vsyncpa [#allocation3], 1 }
 0x645   :  { %5034 = vsyncpa [#allocation6], 1 }
 0x646   :  { %5035 = vsyncpa [#allocation9], 1 }
 0x647   :  { %5036 = vsyncpa [#allocation4], 1 }

</bundles_post_ra>
